<compile_context>
chip_gen: v6e
topology: v6e:2x2x1
jax: 0.10.0
libtpu: 0.0.40
codegen_flags: <defaults>
</compile_context>

<pallas_src>
import jax
import jax.numpy as jnp
from jax.experimental import pallas as pl
from jax.experimental.pallas import tpu as pltpu

HIDDEN = 24          # LSTM hidden size
SEQ = 24             # timesteps (state[:, 0:24])
TAIL = 3             # passthrough features (state[:, 24:27])
FEAT = SEQ + TAIL    # 27
G4 = 4 * HIDDEN      # stacked i, f, g, o gates
XB = 8               # sublane-padded height of the [x_t; 1; 0...] MXU operand
SUB = 128            # lanes per independent sub-chain
MAX_TILE_B = 512     # up to 4 interleaved chains per grid step


def _round_up(n, m):
    return ((n + m - 1) // m) * m


def _sigmoid(z):
    # sigmoid via tanh: one EUP push instead of exp + reciprocal (two pushes).
    return 0.5 * jnp.tanh(0.5 * z) + 0.5


def lstm_kernel(state_ref, w_hh_ref, w_xb_ref, out_ref):
    # state_ref : [27, TB]  feature-major tile; rows 0:24 = x_t, rows 24:27 = tail
    # w_hh_ref  : [4H, 24]  recurrent weights
    # w_xb_ref  : [4H, 8]   col 0 = w_ih, col 1 = b_ih + b_hh, cols 2:8 = 0
    # out_ref   : [27, TB]  rows 0:24 = h_T, rows 24:27 = tail
    H = HIDDEN
    TB = state_ref.shape[1]
    n_sub = TB // SUB

    # Hoisted constants for assembling the [x_t; 1; 0...] MXU operand (the input
    # and bias terms ride the matmul -- no scratch buffer, no per-step VPU
    # broadcasts of w_ih / b).
    row_idx = jax.lax.broadcasted_iota(jnp.int32, (XB, SUB), 0)
    is_row0 = row_idx == 0
    one_at_row1 = (row_idx == 1).astype(jnp.float32)

    # Independent per-sub-chain recurrent state, kept in vregs.
    hs = [jnp.zeros((H, SUB), jnp.float32) for _ in range(n_sub)]
    cs = [jnp.zeros((H, SUB), jnp.float32) for _ in range(n_sub)]

    # Static unroll over the 24 timesteps; the n_sub chains are independent, so
    # their MXU / EUP / VPU work interleaves and hides the per-step serial
    # latency.  Weights are read from VMEM inside the loop (vld slots are nearly
    # idle), letting regalloc keep or reload them as pressure dictates.
    for t in range(SEQ):
        for s in range(n_sub):
            sl = slice(s * SUB, (s + 1) * SUB)
            x_row = state_ref[t:t + 1, sl]                       # [1, SUB]
            xb = jnp.where(is_row0, x_row, one_at_row1)          # [8, SUB] = [x_t; 1; 0...]
            gates = (
                jnp.dot(w_hh_ref[...], hs[s], preferred_element_type=jnp.float32)
                + jnp.dot(w_xb_ref[...], xb, preferred_element_type=jnp.float32)
            )                                                    # [4H, SUB]
            # Gate slices land on 8-aligned sublane offsets -> free vreg selection.
            i_g = _sigmoid(gates[0:H, :])
            f_g = _sigmoid(gates[H:2 * H, :])
            g_g = jnp.tanh(gates[2 * H:3 * H, :])
            o_g = _sigmoid(gates[3 * H:4 * H, :])
            cs[s] = f_g * cs[s] + i_g * g_g
            hs[s] = o_g * jnp.tanh(cs[s])

    # Lane-dense stores: the last dim of every store is a multiple of 128.
    for s in range(n_sub):
        out_ref[0:H, s * SUB:(s + 1) * SUB] = hs[s]
    out_ref[H:H + TAIL, :] = state_ref[SEQ:SEQ + TAIL, :]


def _pick_tile_b(batch):
    # Size the tile to the real batch so small batches don't burn MXU/EUP/VPU
    # work on padding lanes, capped so larger batches still get a multi-tile
    # grid (pipelining + v7x TensorCore sharding).
    return min(_round_up(max(batch, 1), SUB), MAX_TILE_B)


def lstm_forward_feature_major(state_fm, w_ih, w_hh, b_ih, b_hh, tile_b=None):
    """Feature-major entry point (no layout ops anywhere).

    state_fm: [27, B]  rows 0:24 = scalar time series, rows 24:27 = tail
    returns : [27, B]  rows 0:24 = h_T,                rows 24:27 = tail (f32)
    """
    feat, batch = state_fm.shape
    assert feat == FEAT, state_fm.shape
    if tile_b is None:
        tile_b = _pick_tile_b(batch)
        # NOTE(v7x): for mid-sized B pass tile_b ~= round_up(ceil(B/2), 128) so
        # the grid has >= 2 tiles and both TensorCores are used.
    tile_b = _round_up(tile_b, SUB)
    bp = _round_up(batch, tile_b)

    x = state_fm.astype(jnp.float32)
    if bp != batch:
        x = jnp.pad(x, ((0, 0), (0, bp - batch)))

    w_hh_c = w_hh.astype(jnp.float32).reshape(G4, HIDDEN)
    w_xb = jnp.zeros((G4, XB), jnp.float32)
    w_xb = w_xb.at[:, 0].set(w_ih.astype(jnp.float32).reshape(G4))
    w_xb = w_xb.at[:, 1].set((b_ih + b_hh).astype(jnp.float32).reshape(G4))

    out_fm = pl.pallas_call(
        lstm_kernel,
        out_shape=jax.ShapeDtypeStruct((FEAT, bp), jnp.float32),
        grid_spec=pltpu.PrefetchScalarGridSpec(
            num_scalar_prefetch=0,
            grid=(bp // tile_b,),
            in_specs=[
                pl.BlockSpec((FEAT, tile_b), lambda i: (0, i)),
                pl.BlockSpec((G4, HIDDEN), lambda i: (0, 0)),
                pl.BlockSpec((G4, XB), lambda i: (0, 0)),
            ],
            out_specs=pl.BlockSpec((FEAT, tile_b), lambda i: (0, i)),
        ),
        compiler_params=pltpu.CompilerParams(
            dimension_semantics=("parallel",)),
    )(x, w_hh_c, w_xb)

    return out_fm[:, 0:batch]


def lstm_forward(state, w_ih, w_hh, b_ih, b_hh, tile_b=None):
    """PyTorch-layout wrapper: state [B, 27] -> out [B, 27] (matches Lstm.forward).

    The two transposes here are the only layout ops; layout-aware callers should
    use lstm_forward_feature_major directly and skip them entirely.
    """
    out_fm = lstm_forward_feature_major(state.T, w_ih, w_hh, b_ih, b_hh, tile_b)
    return out_fm.T


def lstm_reference(state, w_ih, w_hh, b_ih, b_hh):
    """Pure-JAX reference matching torch.nn.LSTM(input_size=1, hidden_size=24)."""
    B = state.shape[0]
    H = HIDDEN
    x = state[:, 0:SEQ]                                     # [B, 24]
    tail = state[:, SEQ:SEQ + TAIL]
    b = b_ih + b_hh

    def step(carry, x_t):
        h, c = carry
        gates = x_t[:, None] * w_ih[:, 0][None, :] + h @ w_hh.T + b[None, :]
        i_g = jax.nn.sigmoid(gates[:, 0:H])
        f_g = jax.nn.sigmoid(gates[:, H:2 * H])
        g_g = jnp.tanh(gates[:, 2 * H:3 * H])
        o_g = jax.nn.sigmoid(gates[:, 3 * H:4 * H])
        c_new = f_g * c + i_g * g_g
        h_new = o_g * jnp.tanh(c_new)
        return (h_new, c_new), None

    h0 = jnp.zeros((B, H), jnp.float32)
    c0 = jnp.zeros((B, H), jnp.float32)
    (h, _), _ = jax.lax.scan(step, (h0, c0), jnp.transpose(x, (1, 0)))
    return jnp.concatenate([h, tail], axis=1)


if __name__ == "__main__":
    key = jax.random.PRNGKey(0)
    k_s1, k_s2, k1, k2, k3, k4 = jax.random.split(key, 6)

    # PyTorch LSTM default init: U(-1/sqrt(H), 1/sqrt(H)) for all params.
    bound = 1.0 / jnp.sqrt(jnp.float32(HIDDEN))
    w_ih = jax.random.uniform(k1, (G4, 1), jnp.float32, -bound, bound)
    w_hh = jax.random.uniform(k2, (G4, HIDDEN), jnp.float32, -bound, bound)
    b_ih = jax.random.uniform(k3, (G4,), jnp.float32, -bound, bound)
    b_hh = jax.random.uniform(k4, (G4,), jnp.float32, -bound, bound)

    # Small batch (tile sized to the batch -> single 128-lane tile) and a larger
    # odd batch (padding + 2 grid tiles at tile_b=512 -> 4 interleaved chains).
    for B, ks in ((4, k_s1), (643, k_s2)):
        state = jax.random.normal(ks, (B, 27), dtype=jnp.float32)
        out = jax.block_until_ready(lstm_forward(state, w_ih, w_hh, b_ih, b_hh))
        ref = lstm_reference(state, w_ih, w_hh, b_ih, b_hh)
        assert out.shape == (B, 27), out.shape
        assert jnp.allclose(out, ref, atol=2e-4, rtol=2e-4), \
            float(jnp.max(jnp.abs(out - ref)))

    print("KERNEL_OK")
</pallas_src>

<mosaic_0001>
module attributes {stable_mosaic.version = 11 : i64} {
  func.func @lstm_kernel(%arg0: i32, %arg1: memref<27x128xf32, #tpu.memory_space<vmem>>, %arg2: memref<96x24xf32, #tpu.memory_space<vmem>>, %arg3: memref<96x8xf32, #tpu.memory_space<vmem>>, %arg4: memref<27x128xf32, #tpu.memory_space<vmem>>) attributes {dimension_semantics = [#tpu.dimension_semantics<parallel>], iteration_bounds = array<i64: 1>, scalar_prefetch = 0 : i64, scratch_operands = 0 : i64, tpu.core_type = #tpu.core_type<tc>, window_params = [{transform_indices = @transform_0, window_bounds = array<i64: 27, 128>}, {pipeline_mode = #tpu.pipeline_mode<synchronous>, transform_indices = @transform_1, window_bounds = array<i64: 96, 24>}, {pipeline_mode = #tpu.pipeline_mode<synchronous>, transform_indices = @transform_2, window_bounds = array<i64: 96, 8>}, {transform_indices = @transform_3, window_bounds = array<i64: 27, 128>}]} {
    %0 = tpu.iota {dimensions = array<i32: 0>} : vector<8x128xi32>
    %c0_i32 = arith.constant 0 : i32
    %1 = vector.broadcast %c0_i32 : i32 to vector<8x128xi32>
    %2 = arith.cmpi eq, %0, %1 : vector<8x128xi32>
    %c1_i32 = arith.constant 1 : i32
    %3 = vector.broadcast %c1_i32 : i32 to vector<8x128xi32>
    %4 = arith.cmpi eq, %0, %3 : vector<8x128xi32>
    %5 = arith.extui %4 : vector<8x128xi1> to vector<8x128xi32>
    %6 = arith.sitofp %5 : vector<8x128xi32> to vector<8x128xf32>
    %cst = arith.constant 0.000000e+00 : f32
    %7 = vector.broadcast %cst : f32 to vector<24x128xf32>
    %cst_0 = arith.constant 0.000000e+00 : f32
    %8 = vector.broadcast %cst_0 : f32 to vector<24x128xf32>
    %c0 = arith.constant 0 : index
    %c0_1 = arith.constant 0 : index
    %9 = vector.load %arg1[%c0, %c0_1] : memref<27x128xf32, #tpu.memory_space<vmem>>, vector<1x128xf32>
    %10 = vector.shape_cast %9 : vector<1x128xf32> to vector<1x128xf32>
    %11 = vector.broadcast %10 : vector<1x128xf32> to vector<8x128xf32>
    %12 = arith.select %2, %11, %6 : vector<8x128xi1>, vector<8x128xf32>
    %c0_2 = arith.constant 0 : index
    %c0_3 = arith.constant 0 : index
    %13 = vector.load %arg2[%c0_2, %c0_3] : memref<96x24xf32, #tpu.memory_space<vmem>>, vector<96x24xf32>
    %cst_4 = arith.constant dense<0.000000e+00> : vector<96x128xf32>
    %14 = tpu.matmul %13, %7, %cst_4 {dimension_numbers = #tpu.dot_dimension_numbers<[1], [0], [0], [1], [0, 0, 1, 1], [], []>} : vector<96x24xf32>, vector<24x128xf32>, vector<96x128xf32> -> vector<96x128xf32>
    %c0_5 = arith.constant 0 : index
    %c0_6 = arith.constant 0 : index
    %15 = vector.load %arg3[%c0_5, %c0_6] : memref<96x8xf32, #tpu.memory_space<vmem>>, vector<96x8xf32>
    %cst_7 = arith.constant dense<0.000000e+00> : vector<96x128xf32>
    %16 = tpu.matmul %15, %12, %cst_7 {dimension_numbers = #tpu.dot_dimension_numbers<[1], [0], [0], [1], [0, 0, 1, 1], [], []>} : vector<96x8xf32>, vector<8x128xf32>, vector<96x128xf32> -> vector<96x128xf32>
    %17 = arith.addf %14, %16 : vector<96x128xf32>
    %18 = vector.extract_strided_slice %17 {offsets = [0, 0], sizes = [24, 128], strides = [1, 1]} : vector<96x128xf32> to vector<24x128xf32>
    %cst_8 = arith.constant 5.000000e-01 : f32
    %19 = vector.broadcast %cst_8 : f32 to vector<24x128xf32>
    %20 = arith.mulf %19, %18 : vector<24x128xf32>
    %21 = math.tanh %20 : vector<24x128xf32>
    %cst_9 = arith.constant 5.000000e-01 : f32
    %22 = vector.broadcast %cst_9 : f32 to vector<24x128xf32>
    %23 = arith.mulf %22, %21 : vector<24x128xf32>
    %cst_10 = arith.constant 5.000000e-01 : f32
    %24 = vector.broadcast %cst_10 : f32 to vector<24x128xf32>
    %25 = arith.addf %23, %24 : vector<24x128xf32>
    %26 = vector.extract_strided_slice %17 {offsets = [24, 0], sizes = [24, 128], strides = [1, 1]} : vector<96x128xf32> to vector<24x128xf32>
    %cst_11 = arith.constant 5.000000e-01 : f32
    %27 = vector.broadcast %cst_11 : f32 to vector<24x128xf32>
    %28 = arith.mulf %27, %26 : vector<24x128xf32>
    %29 = math.tanh %28 : vector<24x128xf32>
    %cst_12 = arith.constant 5.000000e-01 : f32
    %30 = vector.broadcast %cst_12 : f32 to vector<24x128xf32>
    %31 = arith.mulf %30, %29 : vector<24x128xf32>
    %cst_13 = arith.constant 5.000000e-01 : f32
    %32 = vector.broadcast %cst_13 : f32 to vector<24x128xf32>
    %33 = arith.addf %31, %32 : vector<24x128xf32>
    %34 = vector.extract_strided_slice %17 {offsets = [48, 0], sizes = [24, 128], strides = [1, 1]} : vector<96x128xf32> to vector<24x128xf32>
    %35 = math.tanh %34 : vector<24x128xf32>
    %36 = vector.extract_strided_slice %17 {offsets = [72, 0], sizes = [24, 128], strides = [1, 1]} : vector<96x128xf32> to vector<24x128xf32>
    %cst_14 = arith.constant 5.000000e-01 : f32
    %37 = vector.broadcast %cst_14 : f32 to vector<24x128xf32>
    %38 = arith.mulf %37, %36 : vector<24x128xf32>
    %39 = math.tanh %38 : vector<24x128xf32>
    %cst_15 = arith.constant 5.000000e-01 : f32
    %40 = vector.broadcast %cst_15 : f32 to vector<24x128xf32>
    %41 = arith.mulf %40, %39 : vector<24x128xf32>
    %cst_16 = arith.constant 5.000000e-01 : f32
    %42 = vector.broadcast %cst_16 : f32 to vector<24x128xf32>
    %43 = arith.addf %41, %42 : vector<24x128xf32>
    %44 = arith.mulf %33, %8 : vector<24x128xf32>
    %45 = arith.mulf %25, %35 : vector<24x128xf32>
    %46 = arith.addf %44, %45 : vector<24x128xf32>
    %47 = math.tanh %46 : vector<24x128xf32>
    %48 = arith.mulf %43, %47 : vector<24x128xf32>
    %c1 = arith.constant 1 : index
    %c0_17 = arith.constant 0 : index
    %49 = vector.load %arg1[%c1, %c0_17] : memref<27x128xf32, #tpu.memory_space<vmem>>, vector<1x128xf32>
    %50 = vector.shape_cast %49 : vector<1x128xf32> to vector<1x128xf32>
    %51 = vector.broadcast %50 : vector<1x128xf32> to vector<8x128xf32>
    %52 = arith.select %2, %51, %6 : vector<8x128xi1>, vector<8x128xf32>
    %c0_18 = arith.constant 0 : index
    %c0_19 = arith.constant 0 : index
    %53 = vector.load %arg2[%c0_18, %c0_19] : memref<96x24xf32, #tpu.memory_space<vmem>>, vector<96x24xf32>
    %cst_20 = arith.constant dense<0.000000e+00> : vector<96x128xf32>
    %54 = tpu.matmul %53, %48, %cst_20 {dimension_numbers = #tpu.dot_dimension_numbers<[1], [0], [0], [1], [0, 0, 1, 1], [], []>} : vector<96x24xf32>, vector<24x128xf32>, vector<96x128xf32> -> vector<96x128xf32>
    %c0_21 = arith.constant 0 : index
    %c0_22 = arith.constant 0 : index
    %55 = vector.load %arg3[%c0_21, %c0_22] : memref<96x8xf32, #tpu.memory_space<vmem>>, vector<96x8xf32>
    %cst_23 = arith.constant dense<0.000000e+00> : vector<96x128xf32>
    %56 = tpu.matmul %55, %52, %cst_23 {dimension_numbers = #tpu.dot_dimension_numbers<[1], [0], [0], [1], [0, 0, 1, 1], [], []>} : vector<96x8xf32>, vector<8x128xf32>, vector<96x128xf32> -> vector<96x128xf32>
    %57 = arith.addf %54, %56 : vector<96x128xf32>
    %58 = vector.extract_strided_slice %57 {offsets = [0, 0], sizes = [24, 128], strides = [1, 1]} : vector<96x128xf32> to vector<24x128xf32>
    %cst_24 = arith.constant 5.000000e-01 : f32
    %59 = vector.broadcast %cst_24 : f32 to vector<24x128xf32>
    %60 = arith.mulf %59, %58 : vector<24x128xf32>
    %61 = math.tanh %60 : vector<24x128xf32>
    %cst_25 = arith.constant 5.000000e-01 : f32
    %62 = vector.broadcast %cst_25 : f32 to vector<24x128xf32>
    %63 = arith.mulf %62, %61 : vector<24x128xf32>
    %cst_26 = arith.constant 5.000000e-01 : f32
    %64 = vector.broadcast %cst_26 : f32 to vector<24x128xf32>
    %65 = arith.addf %63, %64 : vector<24x128xf32>
    %66 = vector.extract_strided_slice %57 {offsets = [24, 0], sizes = [24, 128], strides = [1, 1]} : vector<96x128xf32> to vector<24x128xf32>
    %cst_27 = arith.constant 5.000000e-01 : f32
    %67 = vector.broadcast %cst_27 : f32 to vector<24x128xf32>
    %68 = arith.mulf %67, %66 : vector<24x128xf32>
    %69 = math.tanh %68 : vector<24x128xf32>
    %cst_28 = arith.constant 5.000000e-01 : f32
    %70 = vector.broadcast %cst_28 : f32 to vector<24x128xf32>
    %71 = arith.mulf %70, %69 : vector<24x128xf32>
    %cst_29 = arith.constant 5.000000e-01 : f32
    %72 = vector.broadcast %cst_29 : f32 to vector<24x128xf32>
    %73 = arith.addf %71, %72 : vector<24x128xf32>
    %74 = vector.extract_strided_slice %57 {offsets = [48, 0], sizes = [24, 128], strides = [1, 1]} : vector<96x128xf32> to vector<24x128xf32>
    %75 = math.tanh %74 : vector<24x128xf32>
    %76 = vector.extract_strided_slice %57 {offsets = [72, 0], sizes = [24, 128], strides = [1, 1]} : vector<96x128xf32> to vector<24x128xf32>
    %cst_30 = arith.constant 5.000000e-01 : f32
    %77 = vector.broadcast %cst_30 : f32 to vector<24x128xf32>
    %78 = arith.mulf %77, %76 : vector<24x128xf32>
    %79 = math.tanh %78 : vector<24x128xf32>
    %cst_31 = arith.constant 5.000000e-01 : f32
    %80 = vector.broadcast %cst_31 : f32 to vector<24x128xf32>
    %81 = arith.mulf %80, %79 : vector<24x128xf32>
    %cst_32 = arith.constant 5.000000e-01 : f32
    %82 = vector.broadcast %cst_32 : f32 to vector<24x128xf32>
    %83 = arith.addf %81, %82 : vector<24x128xf32>
    %84 = arith.mulf %73, %46 : vector<24x128xf32>
    %85 = arith.mulf %65, %75 : vector<24x128xf32>
    %86 = arith.addf %84, %85 : vector<24x128xf32>
    %87 = math.tanh %86 : vector<24x128xf32>
    %88 = arith.mulf %83, %87 : vector<24x128xf32>
    %c2 = arith.constant 2 : index
    %c0_33 = arith.constant 0 : index
    %89 = vector.load %arg1[%c2, %c0_33] : memref<27x128xf32, #tpu.memory_space<vmem>>, vector<1x128xf32>
    %90 = vector.shape_cast %89 : vector<1x128xf32> to vector<1x128xf32>
    %91 = vector.broadcast %90 : vector<1x128xf32> to vector<8x128xf32>
    %92 = arith.select %2, %91, %6 : vector<8x128xi1>, vector<8x128xf32>
    %c0_34 = arith.constant 0 : index
    %c0_35 = arith.constant 0 : index
    %93 = vector.load %arg2[%c0_34, %c0_35] : memref<96x24xf32, #tpu.memory_space<vmem>>, vector<96x24xf32>
    %cst_36 = arith.constant dense<0.000000e+00> : vector<96x128xf32>
    %94 = tpu.matmul %93, %88, %cst_36 {dimension_numbers = #tpu.dot_dimension_numbers<[1], [0], [0], [1], [0, 0, 1, 1], [], []>} : vector<96x24xf32>, vector<24x128xf32>, vector<96x128xf32> -> vector<96x128xf32>
    %c0_37 = arith.constant 0 : index
    %c0_38 = arith.constant 0 : index
    %95 = vector.load %arg3[%c0_37, %c0_38] : memref<96x8xf32, #tpu.memory_space<vmem>>, vector<96x8xf32>
    %cst_39 = arith.constant dense<0.000000e+00> : vector<96x128xf32>
    %96 = tpu.matmul %95, %92, %cst_39 {dimension_numbers = #tpu.dot_dimension_numbers<[1], [0], [0], [1], [0, 0, 1, 1], [], []>} : vector<96x8xf32>, vector<8x128xf32>, vector<96x128xf32> -> vector<96x128xf32>
    %97 = arith.addf %94, %96 : vector<96x128xf32>
    %98 = vector.extract_strided_slice %97 {offsets = [0, 0], sizes = [24, 128], strides = [1, 1]} : vector<96x128xf32> to vector<24x128xf32>
    %cst_40 = arith.constant 5.000000e-01 : f32
    %99 = vector.broadcast %cst_40 : f32 to vector<24x128xf32>
    %100 = arith.mulf %99, %98 : vector<24x128xf32>
    %101 = math.tanh %100 : vector<24x128xf32>
    %cst_41 = arith.constant 5.000000e-01 : f32
    %102 = vector.broadcast %cst_41 : f32 to vector<24x128xf32>
    %103 = arith.mulf %102, %101 : vector<24x128xf32>
    %cst_42 = arith.constant 5.000000e-01 : f32
    %104 = vector.broadcast %cst_42 : f32 to vector<24x128xf32>
    %105 = arith.addf %103, %104 : vector<24x128xf32>
    %106 = vector.extract_strided_slice %97 {offsets = [24, 0], sizes = [24, 128], strides = [1, 1]} : vector<96x128xf32> to vector<24x128xf32>
    %cst_43 = arith.constant 5.000000e-01 : f32
    %107 = vector.broadcast %cst_43 : f32 to vector<24x128xf32>
    %108 = arith.mulf %107, %106 : vector<24x128xf32>
    %109 = math.tanh %108 : vector<24x128xf32>
    %cst_44 = arith.constant 5.000000e-01 : f32
    %110 = vector.broadcast %cst_44 : f32 to vector<24x128xf32>
    %111 = arith.mulf %110, %109 : vector<24x128xf32>
    %cst_45 = arith.constant 5.000000e-01 : f32
    %112 = vector.broadcast %cst_45 : f32 to vector<24x128xf32>
    %113 = arith.addf %111, %112 : vector<24x128xf32>
    %114 = vector.extract_strided_slice %97 {offsets = [48, 0], sizes = [24, 128], strides = [1, 1]} : vector<96x128xf32> to vector<24x128xf32>
    %115 = math.tanh %114 : vector<24x128xf32>
    %116 = vector.extract_strided_slice %97 {offsets = [72, 0], sizes = [24, 128], strides = [1, 1]} : vector<96x128xf32> to vector<24x128xf32>
    %cst_46 = arith.constant 5.000000e-01 : f32
    %117 = vector.broadcast %cst_46 : f32 to vector<24x128xf32>
    %118 = arith.mulf %117, %116 : vector<24x128xf32>
    %119 = math.tanh %118 : vector<24x128xf32>
    %cst_47 = arith.constant 5.000000e-01 : f32
    %120 = vector.broadcast %cst_47 : f32 to vector<24x128xf32>
    %121 = arith.mulf %120, %119 : vector<24x128xf32>
    %cst_48 = arith.constant 5.000000e-01 : f32
    %122 = vector.broadcast %cst_48 : f32 to vector<24x128xf32>
    %123 = arith.addf %121, %122 : vector<24x128xf32>
    %124 = arith.mulf %113, %86 : vector<24x128xf32>
    %125 = arith.mulf %105, %115 : vector<24x128xf32>
    %126 = arith.addf %124, %125 : vector<24x128xf32>
    %127 = math.tanh %126 : vector<24x128xf32>
    %128 = arith.mulf %123, %127 : vector<24x128xf32>
    %c3 = arith.constant 3 : index
    %c0_49 = arith.constant 0 : index
    %129 = vector.load %arg1[%c3, %c0_49] : memref<27x128xf32, #tpu.memory_space<vmem>>, vector<1x128xf32>
    %130 = vector.shape_cast %129 : vector<1x128xf32> to vector<1x128xf32>
    %131 = vector.broadcast %130 : vector<1x128xf32> to vector<8x128xf32>
    %132 = arith.select %2, %131, %6 : vector<8x128xi1>, vector<8x128xf32>
    %c0_50 = arith.constant 0 : index
    %c0_51 = arith.constant 0 : index
    %133 = vector.load %arg2[%c0_50, %c0_51] : memref<96x24xf32, #tpu.memory_space<vmem>>, vector<96x24xf32>
    %cst_52 = arith.constant dense<0.000000e+00> : vector<96x128xf32>
    %134 = tpu.matmul %133, %128, %cst_52 {dimension_numbers = #tpu.dot_dimension_numbers<[1], [0], [0], [1], [0, 0, 1, 1], [], []>} : vector<96x24xf32>, vector<24x128xf32>, vector<96x128xf32> -> vector<96x128xf32>
    %c0_53 = arith.constant 0 : index
    %c0_54 = arith.constant 0 : index
    %135 = vector.load %arg3[%c0_53, %c0_54] : memref<96x8xf32, #tpu.memory_space<vmem>>, vector<96x8xf32>
    %cst_55 = arith.constant dense<0.000000e+00> : vector<96x128xf32>
    %136 = tpu.matmul %135, %132, %cst_55 {dimension_numbers = #tpu.dot_dimension_numbers<[1], [0], [0], [1], [0, 0, 1, 1], [], []>} : vector<96x8xf32>, vector<8x128xf32>, vector<96x128xf32> -> vector<96x128xf32>
    %137 = arith.addf %134, %136 : vector<96x128xf32>
    %138 = vector.extract_strided_slice %137 {offsets = [0, 0], sizes = [24, 128], strides = [1, 1]} : vector<96x128xf32> to vector<24x128xf32>
    %cst_56 = arith.constant 5.000000e-01 : f32
    %139 = vector.broadcast %cst_56 : f32 to vector<24x128xf32>
    %140 = arith.mulf %139, %138 : vector<24x128xf32>
    %141 = math.tanh %140 : vector<24x128xf32>
    %cst_57 = arith.constant 5.000000e-01 : f32
    %142 = vector.broadcast %cst_57 : f32 to vector<24x128xf32>
    %143 = arith.mulf %142, %141 : vector<24x128xf32>
    %cst_58 = arith.constant 5.000000e-01 : f32
    %144 = vector.broadcast %cst_58 : f32 to vector<24x128xf32>
    %145 = arith.addf %143, %144 : vector<24x128xf32>
    %146 = vector.extract_strided_slice %137 {offsets = [24, 0], sizes = [24, 128], strides = [1, 1]} : vector<96x128xf32> to vector<24x128xf32>
    %cst_59 = arith.constant 5.000000e-01 : f32
    %147 = vector.broadcast %cst_59 : f32 to vector<24x128xf32>
    %148 = arith.mulf %147, %146 : vector<24x128xf32>
    %149 = math.tanh %148 : vector<24x128xf32>
    %cst_60 = arith.constant 5.000000e-01 : f32
    %150 = vector.broadcast %cst_60 : f32 to vector<24x128xf32>
    %151 = arith.mulf %150, %149 : vector<24x128xf32>
    %cst_61 = arith.constant 5.000000e-01 : f32
    %152 = vector.broadcast %cst_61 : f32 to vector<24x128xf32>
    %153 = arith.addf %151, %152 : vector<24x128xf32>
    %154 = vector.extract_strided_slice %137 {offsets = [48, 0], sizes = [24, 128], strides = [1, 1]} : vector<96x128xf32> to vector<24x128xf32>
    %155 = math.tanh %154 : vector<24x128xf32>
    %156 = vector.extract_strided_slice %137 {offsets = [72, 0], sizes = [24, 128], strides = [1, 1]} : vector<96x128xf32> to vector<24x128xf32>
    %cst_62 = arith.constant 5.000000e-01 : f32
    %157 = vector.broadcast %cst_62 : f32 to vector<24x128xf32>
    %158 = arith.mulf %157, %156 : vector<24x128xf32>
    %159 = math.tanh %158 : vector<24x128xf32>
    %cst_63 = arith.constant 5.000000e-01 : f32
    %160 = vector.broadcast %cst_63 : f32 to vector<24x128xf32>
    %161 = arith.mulf %160, %159 : vector<24x128xf32>
    %cst_64 = arith.constant 5.000000e-01 : f32
    %162 = vector.broadcast %cst_64 : f32 to vector<24x128xf32>
    %163 = arith.addf %161, %162 : vector<24x128xf32>
    %164 = arith.mulf %153, %126 : vector<24x128xf32>
    %165 = arith.mulf %145, %155 : vector<24x128xf32>
    %166 = arith.addf %164, %165 : vector<24x128xf32>
    %167 = math.tanh %166 : vector<24x128xf32>
    %168 = arith.mulf %163, %167 : vector<24x128xf32>
    %c4 = arith.constant 4 : index
    %c0_65 = arith.constant 0 : index
    %169 = vector.load %arg1[%c4, %c0_65] : memref<27x128xf32, #tpu.memory_space<vmem>>, vector<1x128xf32>
    %170 = vector.shape_cast %169 : vector<1x128xf32> to vector<1x128xf32>
    %171 = vector.broadcast %170 : vector<1x128xf32> to vector<8x128xf32>
    %172 = arith.select %2, %171, %6 : vector<8x128xi1>, vector<8x128xf32>
    %c0_66 = arith.constant 0 : index
    %c0_67 = arith.constant 0 : index
    %173 = vector.load %arg2[%c0_66, %c0_67] : memref<96x24xf32, #tpu.memory_space<vmem>>, vector<96x24xf32>
    %cst_68 = arith.constant dense<0.000000e+00> : vector<96x128xf32>
    %174 = tpu.matmul %173, %168, %cst_68 {dimension_numbers = #tpu.dot_dimension_numbers<[1], [0], [0], [1], [0, 0, 1, 1], [], []>} : vector<96x24xf32>, vector<24x128xf32>, vector<96x128xf32> -> vector<96x128xf32>
    %c0_69 = arith.constant 0 : index
    %c0_70 = arith.constant 0 : index
    %175 = vector.load %arg3[%c0_69, %c0_70] : memref<96x8xf32, #tpu.memory_space<vmem>>, vector<96x8xf32>
    %cst_71 = arith.constant dense<0.000000e+00> : vector<96x128xf32>
    %176 = tpu.matmul %175, %172, %cst_71 {dimension_numbers = #tpu.dot_dimension_numbers<[1], [0], [0], [1], [0, 0, 1, 1], [], []>} : vector<96x8xf32>, vector<8x128xf32>, vector<96x128xf32> -> vector<96x128xf32>
    %177 = arith.addf %174, %176 : vector<96x128xf32>
    %178 = vector.extract_strided_slice %177 {offsets = [0, 0], sizes = [24, 128], strides = [1, 1]} : vector<96x128xf32> to vector<24x128xf32>
    %cst_72 = arith.constant 5.000000e-01 : f32
    %179 = vector.broadcast %cst_72 : f32 to vector<24x128xf32>
    %180 = arith.mulf %179, %178 : vector<24x128xf32>
    %181 = math.tanh %180 : vector<24x128xf32>
    %cst_73 = arith.constant 5.000000e-01 : f32
    %182 = vector.broadcast %cst_73 : f32 to vector<24x128xf32>
    %183 = arith.mulf %182, %181 : vector<24x128xf32>
    %cst_74 = arith.constant 5.000000e-01 : f32
    %184 = vector.broadcast %cst_74 : f32 to vector<24x128xf32>
    %185 = arith.addf %183, %184 : vector<24x128xf32>
    %186 = vector.extract_strided_slice %177 {offsets = [24, 0], sizes = [24, 128], strides = [1, 1]} : vector<96x128xf32> to vector<24x128xf32>
    %cst_75 = arith.constant 5.000000e-01 : f32
    %187 = vector.broadcast %cst_75 : f32 to vector<24x128xf32>
    %188 = arith.mulf %187, %186 : vector<24x128xf32>
    %189 = math.tanh %188 : vector<24x128xf32>
    %cst_76 = arith.constant 5.000000e-01 : f32
    %190 = vector.broadcast %cst_76 : f32 to vector<24x128xf32>
    %191 = arith.mulf %190, %189 : vector<24x128xf32>
    %cst_77 = arith.constant 5.000000e-01 : f32
    %192 = vector.broadcast %cst_77 : f32 to vector<24x128xf32>
    %193 = arith.addf %191, %192 : vector<24x128xf32>
    %194 = vector.extract_strided_slice %177 {offsets = [48, 0], sizes = [24, 128], strides = [1, 1]} : vector<96x128xf32> to vector<24x128xf32>
    %195 = math.tanh %194 : vector<24x128xf32>
    %196 = vector.extract_strided_slice %177 {offsets = [72, 0], sizes = [24, 128], strides = [1, 1]} : vector<96x128xf32> to vector<24x128xf32>
    %cst_78 = arith.constant 5.000000e-01 : f32
    %197 = vector.broadcast %cst_78 : f32 to vector<24x128xf32>
    %198 = arith.mulf %197, %196 : vector<24x128xf32>
    %199 = math.tanh %198 : vector<24x128xf32>
    %cst_79 = arith.constant 5.000000e-01 : f32
    %200 = vector.broadcast %cst_79 : f32 to vector<24x128xf32>
    %201 = arith.mulf %200, %199 : vector<24x128xf32>
    %cst_80 = arith.constant 5.000000e-01 : f32
    %202 = vector.broadcast %cst_80 : f32 to vector<24x128xf32>
    %203 = arith.addf %201, %202 : vector<24x128xf32>
    %204 = arith.mulf %193, %166 : vector<24x128xf32>
    %205 = arith.mulf %185, %195 : vector<24x128xf32>
    %206 = arith.addf %204, %205 : vector<24x128xf32>
    %207 = math.tanh %206 : vector<24x128xf32>
    %208 = arith.mulf %203, %207 : vector<24x128xf32>
    %c5 = arith.constant 5 : index
    %c0_81 = arith.constant 0 : index
    %209 = vector.load %arg1[%c5, %c0_81] : memref<27x128xf32, #tpu.memory_space<vmem>>, vector<1x128xf32>
    %210 = vector.shape_cast %209 : vector<1x128xf32> to vector<1x128xf32>
    %211 = vector.broadcast %210 : vector<1x128xf32> to vector<8x128xf32>
    %212 = arith.select %2, %211, %6 : vector<8x128xi1>, vector<8x128xf32>
    %c0_82 = arith.constant 0 : index
    %c0_83 = arith.constant 0 : index
    %213 = vector.load %arg2[%c0_82, %c0_83] : memref<96x24xf32, #tpu.memory_space<vmem>>, vector<96x24xf32>
    %cst_84 = arith.constant dense<0.000000e+00> : vector<96x128xf32>
    %214 = tpu.matmul %213, %208, %cst_84 {dimension_numbers = #tpu.dot_dimension_numbers<[1], [0], [0], [1], [0, 0, 1, 1], [], []>} : vector<96x24xf32>, vector<24x128xf32>, vector<96x128xf32> -> vector<96x128xf32>
    %c0_85 = arith.constant 0 : index
    %c0_86 = arith.constant 0 : index
    %215 = vector.load %arg3[%c0_85, %c0_86] : memref<96x8xf32, #tpu.memory_space<vmem>>, vector<96x8xf32>
    %cst_87 = arith.constant dense<0.000000e+00> : vector<96x128xf32>
    %216 = tpu.matmul %215, %212, %cst_87 {dimension_numbers = #tpu.dot_dimension_numbers<[1], [0], [0], [1], [0, 0, 1, 1], [], []>} : vector<96x8xf32>, vector<8x128xf32>, vector<96x128xf32> -> vector<96x128xf32>
    %217 = arith.addf %214, %216 : vector<96x128xf32>
    %218 = vector.extract_strided_slice %217 {offsets = [0, 0], sizes = [24, 128], strides = [1, 1]} : vector<96x128xf32> to vector<24x128xf32>
    %cst_88 = arith.constant 5.000000e-01 : f32
    %219 = vector.broadcast %cst_88 : f32 to vector<24x128xf32>
    %220 = arith.mulf %219, %218 : vector<24x128xf32>
    %221 = math.tanh %220 : vector<24x128xf32>
    %cst_89 = arith.constant 5.000000e-01 : f32
    %222 = vector.broadcast %cst_89 : f32 to vector<24x128xf32>
    %223 = arith.mulf %222, %221 : vector<24x128xf32>
    %cst_90 = arith.constant 5.000000e-01 : f32
    %224 = vector.broadcast %cst_90 : f32 to vector<24x128xf32>
    %225 = arith.addf %223, %224 : vector<24x128xf32>
    %226 = vector.extract_strided_slice %217 {offsets = [24, 0], sizes = [24, 128], strides = [1, 1]} : vector<96x128xf32> to vector<24x128xf32>
    %cst_91 = arith.constant 5.000000e-01 : f32
    %227 = vector.broadcast %cst_91 : f32 to vector<24x128xf32>
    %228 = arith.mulf %227, %226 : vector<24x128xf32>
    %229 = math.tanh %228 : vector<24x128xf32>
    %cst_92 = arith.constant 5.000000e-01 : f32
    %230 = vector.broadcast %cst_92 : f32 to vector<24x128xf32>
    %231 = arith.mulf %230, %229 : vector<24x128xf32>
    %cst_93 = arith.constant 5.000000e-01 : f32
    %232 = vector.broadcast %cst_93 : f32 to vector<24x128xf32>
    %233 = arith.addf %231, %232 : vector<24x128xf32>
    %234 = vector.extract_strided_slice %217 {offsets = [48, 0], sizes = [24, 128], strides = [1, 1]} : vector<96x128xf32> to vector<24x128xf32>
    %235 = math.tanh %234 : vector<24x128xf32>
    %236 = vector.extract_strided_slice %217 {offsets = [72, 0], sizes = [24, 128], strides = [1, 1]} : vector<96x128xf32> to vector<24x128xf32>
    %cst_94 = arith.constant 5.000000e-01 : f32
    %237 = vector.broadcast %cst_94 : f32 to vector<24x128xf32>
    %238 = arith.mulf %237, %236 : vector<24x128xf32>
    %239 = math.tanh %238 : vector<24x128xf32>
    %cst_95 = arith.constant 5.000000e-01 : f32
    %240 = vector.broadcast %cst_95 : f32 to vector<24x128xf32>
    %241 = arith.mulf %240, %239 : vector<24x128xf32>
    %cst_96 = arith.constant 5.000000e-01 : f32
    %242 = vector.broadcast %cst_96 : f32 to vector<24x128xf32>
    %243 = arith.addf %241, %242 : vector<24x128xf32>
    %244 = arith.mulf %233, %206 : vector<24x128xf32>
    %245 = arith.mulf %225, %235 : vector<24x128xf32>
    %246 = arith.addf %244, %245 : vector<24x128xf32>
    %247 = math.tanh %246 : vector<24x128xf32>
    %248 = arith.mulf %243, %247 : vector<24x128xf32>
    %c6 = arith.constant 6 : index
    %c0_97 = arith.constant 0 : index
    %249 = vector.load %arg1[%c6, %c0_97] : memref<27x128xf32, #tpu.memory_space<vmem>>, vector<1x128xf32>
    %250 = vector.shape_cast %249 : vector<1x128xf32> to vector<1x128xf32>
    %251 = vector.broadcast %250 : vector<1x128xf32> to vector<8x128xf32>
    %252 = arith.select %2, %251, %6 : vector<8x128xi1>, vector<8x128xf32>
    %c0_98 = arith.constant 0 : index
    %c0_99 = arith.constant 0 : index
    %253 = vector.load %arg2[%c0_98, %c0_99] : memref<96x24xf32, #tpu.memory_space<vmem>>, vector<96x24xf32>
    %cst_100 = arith.constant dense<0.000000e+00> : vector<96x128xf32>
    %254 = tpu.matmul %253, %248, %cst_100 {dimension_numbers = #tpu.dot_dimension_numbers<[1], [0], [0], [1], [0, 0, 1, 1], [], []>} : vector<96x24xf32>, vector<24x128xf32>, vector<96x128xf32> -> vector<96x128xf32>
    %c0_101 = arith.constant 0 : index
    %c0_102 = arith.constant 0 : index
    %255 = vector.load %arg3[%c0_101, %c0_102] : memref<96x8xf32, #tpu.memory_space<vmem>>, vector<96x8xf32>
    %cst_103 = arith.constant dense<0.000000e+00> : vector<96x128xf32>
    %256 = tpu.matmul %255, %252, %cst_103 {dimension_numbers = #tpu.dot_dimension_numbers<[1], [0], [0], [1], [0, 0, 1, 1], [], []>} : vector<96x8xf32>, vector<8x128xf32>, vector<96x128xf32> -> vector<96x128xf32>
    %257 = arith.addf %254, %256 : vector<96x128xf32>
    %258 = vector.extract_strided_slice %257 {offsets = [0, 0], sizes = [24, 128], strides = [1, 1]} : vector<96x128xf32> to vector<24x128xf32>
    %cst_104 = arith.constant 5.000000e-01 : f32
    %259 = vector.broadcast %cst_104 : f32 to vector<24x128xf32>
    %260 = arith.mulf %259, %258 : vector<24x128xf32>
    %261 = math.tanh %260 : vector<24x128xf32>
    %cst_105 = arith.constant 5.000000e-01 : f32
    %262 = vector.broadcast %cst_105 : f32 to vector<24x128xf32>
    %263 = arith.mulf %262, %261 : vector<24x128xf32>
    %cst_106 = arith.constant 5.000000e-01 : f32
    %264 = vector.broadcast %cst_106 : f32 to vector<24x128xf32>
    %265 = arith.addf %263, %264 : vector<24x128xf32>
    %266 = vector.extract_strided_slice %257 {offsets = [24, 0], sizes = [24, 128], strides = [1, 1]} : vector<96x128xf32> to vector<24x128xf32>
    %cst_107 = arith.constant 5.000000e-01 : f32
    %267 = vector.broadcast %cst_107 : f32 to vector<24x128xf32>
    %268 = arith.mulf %267, %266 : vector<24x128xf32>
    %269 = math.tanh %268 : vector<24x128xf32>
    %cst_108 = arith.constant 5.000000e-01 : f32
    %270 = vector.broadcast %cst_108 : f32 to vector<24x128xf32>
    %271 = arith.mulf %270, %269 : vector<24x128xf32>
    %cst_109 = arith.constant 5.000000e-01 : f32
    %272 = vector.broadcast %cst_109 : f32 to vector<24x128xf32>
    %273 = arith.addf %271, %272 : vector<24x128xf32>
    %274 = vector.extract_strided_slice %257 {offsets = [48, 0], sizes = [24, 128], strides = [1, 1]} : vector<96x128xf32> to vector<24x128xf32>
    %275 = math.tanh %274 : vector<24x128xf32>
    %276 = vector.extract_strided_slice %257 {offsets = [72, 0], sizes = [24, 128], strides = [1, 1]} : vector<96x128xf32> to vector<24x128xf32>
    %cst_110 = arith.constant 5.000000e-01 : f32
    %277 = vector.broadcast %cst_110 : f32 to vector<24x128xf32>
    %278 = arith.mulf %277, %276 : vector<24x128xf32>
    %279 = math.tanh %278 : vector<24x128xf32>
    %cst_111 = arith.constant 5.000000e-01 : f32
    %280 = vector.broadcast %cst_111 : f32 to vector<24x128xf32>
    %281 = arith.mulf %280, %279 : vector<24x128xf32>
    %cst_112 = arith.constant 5.000000e-01 : f32
    %282 = vector.broadcast %cst_112 : f32 to vector<24x128xf32>
    %283 = arith.addf %281, %282 : vector<24x128xf32>
    %284 = arith.mulf %273, %246 : vector<24x128xf32>
    %285 = arith.mulf %265, %275 : vector<24x128xf32>
    %286 = arith.addf %284, %285 : vector<24x128xf32>
    %287 = math.tanh %286 : vector<24x128xf32>
    %288 = arith.mulf %283, %287 : vector<24x128xf32>
    %c7 = arith.constant 7 : index
    %c0_113 = arith.constant 0 : index
    %289 = vector.load %arg1[%c7, %c0_113] : memref<27x128xf32, #tpu.memory_space<vmem>>, vector<1x128xf32>
    %290 = vector.shape_cast %289 : vector<1x128xf32> to vector<1x128xf32>
    %291 = vector.broadcast %290 : vector<1x128xf32> to vector<8x128xf32>
    %292 = arith.select %2, %291, %6 : vector<8x128xi1>, vector<8x128xf32>
    %c0_114 = arith.constant 0 : index
    %c0_115 = arith.constant 0 : index
    %293 = vector.load %arg2[%c0_114, %c0_115] : memref<96x24xf32, #tpu.memory_space<vmem>>, vector<96x24xf32>
    %cst_116 = arith.constant dense<0.000000e+00> : vector<96x128xf32>
    %294 = tpu.matmul %293, %288, %cst_116 {dimension_numbers = #tpu.dot_dimension_numbers<[1], [0], [0], [1], [0, 0, 1, 1], [], []>} : vector<96x24xf32>, vector<24x128xf32>, vector<96x128xf32> -> vector<96x128xf32>
    %c0_117 = arith.constant 0 : index
    %c0_118 = arith.constant 0 : index
    %295 = vector.load %arg3[%c0_117, %c0_118] : memref<96x8xf32, #tpu.memory_space<vmem>>, vector<96x8xf32>
    %cst_119 = arith.constant dense<0.000000e+00> : vector<96x128xf32>
    %296 = tpu.matmul %295, %292, %cst_119 {dimension_numbers = #tpu.dot_dimension_numbers<[1], [0], [0], [1], [0, 0, 1, 1], [], []>} : vector<96x8xf32>, vector<8x128xf32>, vector<96x128xf32> -> vector<96x128xf32>
    %297 = arith.addf %294, %296 : vector<96x128xf32>
    %298 = vector.extract_strided_slice %297 {offsets = [0, 0], sizes = [24, 128], strides = [1, 1]} : vector<96x128xf32> to vector<24x128xf32>
    %cst_120 = arith.constant 5.000000e-01 : f32
    %299 = vector.broadcast %cst_120 : f32 to vector<24x128xf32>
    %300 = arith.mulf %299, %298 : vector<24x128xf32>
    %301 = math.tanh %300 : vector<24x128xf32>
    %cst_121 = arith.constant 5.000000e-01 : f32
    %302 = vector.broadcast %cst_121 : f32 to vector<24x128xf32>
    %303 = arith.mulf %302, %301 : vector<24x128xf32>
    %cst_122 = arith.constant 5.000000e-01 : f32
    %304 = vector.broadcast %cst_122 : f32 to vector<24x128xf32>
    %305 = arith.addf %303, %304 : vector<24x128xf32>
    %306 = vector.extract_strided_slice %297 {offsets = [24, 0], sizes = [24, 128], strides = [1, 1]} : vector<96x128xf32> to vector<24x128xf32>
    %cst_123 = arith.constant 5.000000e-01 : f32
    %307 = vector.broadcast %cst_123 : f32 to vector<24x128xf32>
    %308 = arith.mulf %307, %306 : vector<24x128xf32>
    %309 = math.tanh %308 : vector<24x128xf32>
    %cst_124 = arith.constant 5.000000e-01 : f32
    %310 = vector.broadcast %cst_124 : f32 to vector<24x128xf32>
    %311 = arith.mulf %310, %309 : vector<24x128xf32>
    %cst_125 = arith.constant 5.000000e-01 : f32
    %312 = vector.broadcast %cst_125 : f32 to vector<24x128xf32>
    %313 = arith.addf %311, %312 : vector<24x128xf32>
    %314 = vector.extract_strided_slice %297 {offsets = [48, 0], sizes = [24, 128], strides = [1, 1]} : vector<96x128xf32> to vector<24x128xf32>
    %315 = math.tanh %314 : vector<24x128xf32>
    %316 = vector.extract_strided_slice %297 {offsets = [72, 0], sizes = [24, 128], strides = [1, 1]} : vector<96x128xf32> to vector<24x128xf32>
    %cst_126 = arith.constant 5.000000e-01 : f32
    %317 = vector.broadcast %cst_126 : f32 to vector<24x128xf32>
    %318 = arith.mulf %317, %316 : vector<24x128xf32>
    %319 = math.tanh %318 : vector<24x128xf32>
    %cst_127 = arith.constant 5.000000e-01 : f32
    %320 = vector.broadcast %cst_127 : f32 to vector<24x128xf32>
    %321 = arith.mulf %320, %319 : vector<24x128xf32>
    %cst_128 = arith.constant 5.000000e-01 : f32
    %322 = vector.broadcast %cst_128 : f32 to vector<24x128xf32>
    %323 = arith.addf %321, %322 : vector<24x128xf32>
    %324 = arith.mulf %313, %286 : vector<24x128xf32>
    %325 = arith.mulf %305, %315 : vector<24x128xf32>
    %326 = arith.addf %324, %325 : vector<24x128xf32>
    %327 = math.tanh %326 : vector<24x128xf32>
    %328 = arith.mulf %323, %327 : vector<24x128xf32>
    %c8 = arith.constant 8 : index
    %c0_129 = arith.constant 0 : index
    %329 = vector.load %arg1[%c8, %c0_129] : memref<27x128xf32, #tpu.memory_space<vmem>>, vector<1x128xf32>
    %330 = vector.shape_cast %329 : vector<1x128xf32> to vector<1x128xf32>
    %331 = vector.broadcast %330 : vector<1x128xf32> to vector<8x128xf32>
    %332 = arith.select %2, %331, %6 : vector<8x128xi1>, vector<8x128xf32>
    %c0_130 = arith.constant 0 : index
    %c0_131 = arith.constant 0 : index
    %333 = vector.load %arg2[%c0_130, %c0_131] : memref<96x24xf32, #tpu.memory_space<vmem>>, vector<96x24xf32>
    %cst_132 = arith.constant dense<0.000000e+00> : vector<96x128xf32>
    %334 = tpu.matmul %333, %328, %cst_132 {dimension_numbers = #tpu.dot_dimension_numbers<[1], [0], [0], [1], [0, 0, 1, 1], [], []>} : vector<96x24xf32>, vector<24x128xf32>, vector<96x128xf32> -> vector<96x128xf32>
    %c0_133 = arith.constant 0 : index
    %c0_134 = arith.constant 0 : index
    %335 = vector.load %arg3[%c0_133, %c0_134] : memref<96x8xf32, #tpu.memory_space<vmem>>, vector<96x8xf32>
    %cst_135 = arith.constant dense<0.000000e+00> : vector<96x128xf32>
    %336 = tpu.matmul %335, %332, %cst_135 {dimension_numbers = #tpu.dot_dimension_numbers<[1], [0], [0], [1], [0, 0, 1, 1], [], []>} : vector<96x8xf32>, vector<8x128xf32>, vector<96x128xf32> -> vector<96x128xf32>
    %337 = arith.addf %334, %336 : vector<96x128xf32>
    %338 = vector.extract_strided_slice %337 {offsets = [0, 0], sizes = [24, 128], strides = [1, 1]} : vector<96x128xf32> to vector<24x128xf32>
    %cst_136 = arith.constant 5.000000e-01 : f32
    %339 = vector.broadcast %cst_136 : f32 to vector<24x128xf32>
    %340 = arith.mulf %339, %338 : vector<24x128xf32>
    %341 = math.tanh %340 : vector<24x128xf32>
    %cst_137 = arith.constant 5.000000e-01 : f32
    %342 = vector.broadcast %cst_137 : f32 to vector<24x128xf32>
    %343 = arith.mulf %342, %341 : vector<24x128xf32>
    %cst_138 = arith.constant 5.000000e-01 : f32
    %344 = vector.broadcast %cst_138 : f32 to vector<24x128xf32>
    %345 = arith.addf %343, %344 : vector<24x128xf32>
    %346 = vector.extract_strided_slice %337 {offsets = [24, 0], sizes = [24, 128], strides = [1, 1]} : vector<96x128xf32> to vector<24x128xf32>
    %cst_139 = arith.constant 5.000000e-01 : f32
    %347 = vector.broadcast %cst_139 : f32 to vector<24x128xf32>
    %348 = arith.mulf %347, %346 : vector<24x128xf32>
    %349 = math.tanh %348 : vector<24x128xf32>
    %cst_140 = arith.constant 5.000000e-01 : f32
    %350 = vector.broadcast %cst_140 : f32 to vector<24x128xf32>
    %351 = arith.mulf %350, %349 : vector<24x128xf32>
    %cst_141 = arith.constant 5.000000e-01 : f32
    %352 = vector.broadcast %cst_141 : f32 to vector<24x128xf32>
    %353 = arith.addf %351, %352 : vector<24x128xf32>
    %354 = vector.extract_strided_slice %337 {offsets = [48, 0], sizes = [24, 128], strides = [1, 1]} : vector<96x128xf32> to vector<24x128xf32>
    %355 = math.tanh %354 : vector<24x128xf32>
    %356 = vector.extract_strided_slice %337 {offsets = [72, 0], sizes = [24, 128], strides = [1, 1]} : vector<96x128xf32> to vector<24x128xf32>
    %cst_142 = arith.constant 5.000000e-01 : f32
    %357 = vector.broadcast %cst_142 : f32 to vector<24x128xf32>
    %358 = arith.mulf %357, %356 : vector<24x128xf32>
    %359 = math.tanh %358 : vector<24x128xf32>
    %cst_143 = arith.constant 5.000000e-01 : f32
    %360 = vector.broadcast %cst_143 : f32 to vector<24x128xf32>
    %361 = arith.mulf %360, %359 : vector<24x128xf32>
    %cst_144 = arith.constant 5.000000e-01 : f32
    %362 = vector.broadcast %cst_144 : f32 to vector<24x128xf32>
    %363 = arith.addf %361, %362 : vector<24x128xf32>
    %364 = arith.mulf %353, %326 : vector<24x128xf32>
    %365 = arith.mulf %345, %355 : vector<24x128xf32>
    %366 = arith.addf %364, %365 : vector<24x128xf32>
    %367 = math.tanh %366 : vector<24x128xf32>
    %368 = arith.mulf %363, %367 : vector<24x128xf32>
    %c9 = arith.constant 9 : index
    %c0_145 = arith.constant 0 : index
    %369 = vector.load %arg1[%c9, %c0_145] : memref<27x128xf32, #tpu.memory_space<vmem>>, vector<1x128xf32>
    %370 = vector.shape_cast %369 : vector<1x128xf32> to vector<1x128xf32>
    %371 = vector.broadcast %370 : vector<1x128xf32> to vector<8x128xf32>
    %372 = arith.select %2, %371, %6 : vector<8x128xi1>, vector<8x128xf32>
    %c0_146 = arith.constant 0 : index
    %c0_147 = arith.constant 0 : index
    %373 = vector.load %arg2[%c0_146, %c0_147] : memref<96x24xf32, #tpu.memory_space<vmem>>, vector<96x24xf32>
    %cst_148 = arith.constant dense<0.000000e+00> : vector<96x128xf32>
    %374 = tpu.matmul %373, %368, %cst_148 {dimension_numbers = #tpu.dot_dimension_numbers<[1], [0], [0], [1], [0, 0, 1, 1], [], []>} : vector<96x24xf32>, vector<24x128xf32>, vector<96x128xf32> -> vector<96x128xf32>
    %c0_149 = arith.constant 0 : index
    %c0_150 = arith.constant 0 : index
    %375 = vector.load %arg3[%c0_149, %c0_150] : memref<96x8xf32, #tpu.memory_space<vmem>>, vector<96x8xf32>
    %cst_151 = arith.constant dense<0.000000e+00> : vector<96x128xf32>
    %376 = tpu.matmul %375, %372, %cst_151 {dimension_numbers = #tpu.dot_dimension_numbers<[1], [0], [0], [1], [0, 0, 1, 1], [], []>} : vector<96x8xf32>, vector<8x128xf32>, vector<96x128xf32> -> vector<96x128xf32>
    %377 = arith.addf %374, %376 : vector<96x128xf32>
    %378 = vector.extract_strided_slice %377 {offsets = [0, 0], sizes = [24, 128], strides = [1, 1]} : vector<96x128xf32> to vector<24x128xf32>
    %cst_152 = arith.constant 5.000000e-01 : f32
    %379 = vector.broadcast %cst_152 : f32 to vector<24x128xf32>
    %380 = arith.mulf %379, %378 : vector<24x128xf32>
    %381 = math.tanh %380 : vector<24x128xf32>
    %cst_153 = arith.constant 5.000000e-01 : f32
    %382 = vector.broadcast %cst_153 : f32 to vector<24x128xf32>
    %383 = arith.mulf %382, %381 : vector<24x128xf32>
    %cst_154 = arith.constant 5.000000e-01 : f32
    %384 = vector.broadcast %cst_154 : f32 to vector<24x128xf32>
    %385 = arith.addf %383, %384 : vector<24x128xf32>
    %386 = vector.extract_strided_slice %377 {offsets = [24, 0], sizes = [24, 128], strides = [1, 1]} : vector<96x128xf32> to vector<24x128xf32>
    %cst_155 = arith.constant 5.000000e-01 : f32
    %387 = vector.broadcast %cst_155 : f32 to vector<24x128xf32>
    %388 = arith.mulf %387, %386 : vector<24x128xf32>
    %389 = math.tanh %388 : vector<24x128xf32>
    %cst_156 = arith.constant 5.000000e-01 : f32
    %390 = vector.broadcast %cst_156 : f32 to vector<24x128xf32>
    %391 = arith.mulf %390, %389 : vector<24x128xf32>
    %cst_157 = arith.constant 5.000000e-01 : f32
    %392 = vector.broadcast %cst_157 : f32 to vector<24x128xf32>
    %393 = arith.addf %391, %392 : vector<24x128xf32>
    %394 = vector.extract_strided_slice %377 {offsets = [48, 0], sizes = [24, 128], strides = [1, 1]} : vector<96x128xf32> to vector<24x128xf32>
    %395 = math.tanh %394 : vector<24x128xf32>
    %396 = vector.extract_strided_slice %377 {offsets = [72, 0], sizes = [24, 128], strides = [1, 1]} : vector<96x128xf32> to vector<24x128xf32>
    %cst_158 = arith.constant 5.000000e-01 : f32
    %397 = vector.broadcast %cst_158 : f32 to vector<24x128xf32>
    %398 = arith.mulf %397, %396 : vector<24x128xf32>
    %399 = math.tanh %398 : vector<24x128xf32>
    %cst_159 = arith.constant 5.000000e-01 : f32
    %400 = vector.broadcast %cst_159 : f32 to vector<24x128xf32>
    %401 = arith.mulf %400, %399 : vector<24x128xf32>
    %cst_160 = arith.constant 5.000000e-01 : f32
    %402 = vector.broadcast %cst_160 : f32 to vector<24x128xf32>
    %403 = arith.addf %401, %402 : vector<24x128xf32>
    %404 = arith.mulf %393, %366 : vector<24x128xf32>
    %405 = arith.mulf %385, %395 : vector<24x128xf32>
    %406 = arith.addf %404, %405 : vector<24x128xf32>
    %407 = math.tanh %406 : vector<24x128xf32>
    %408 = arith.mulf %403, %407 : vector<24x128xf32>
    %c10 = arith.constant 10 : index
    %c0_161 = arith.constant 0 : index
    %409 = vector.load %arg1[%c10, %c0_161] : memref<27x128xf32, #tpu.memory_space<vmem>>, vector<1x128xf32>
    %410 = vector.shape_cast %409 : vector<1x128xf32> to vector<1x128xf32>
    %411 = vector.broadcast %410 : vector<1x128xf32> to vector<8x128xf32>
    %412 = arith.select %2, %411, %6 : vector<8x128xi1>, vector<8x128xf32>
    %c0_162 = arith.constant 0 : index
    %c0_163 = arith.constant 0 : index
    %413 = vector.load %arg2[%c0_162, %c0_163] : memref<96x24xf32, #tpu.memory_space<vmem>>, vector<96x24xf32>
    %cst_164 = arith.constant dense<0.000000e+00> : vector<96x128xf32>
    %414 = tpu.matmul %413, %408, %cst_164 {dimension_numbers = #tpu.dot_dimension_numbers<[1], [0], [0], [1], [0, 0, 1, 1], [], []>} : vector<96x24xf32>, vector<24x128xf32>, vector<96x128xf32> -> vector<96x128xf32>
    %c0_165 = arith.constant 0 : index
    %c0_166 = arith.constant 0 : index
    %415 = vector.load %arg3[%c0_165, %c0_166] : memref<96x8xf32, #tpu.memory_space<vmem>>, vector<96x8xf32>
    %cst_167 = arith.constant dense<0.000000e+00> : vector<96x128xf32>
    %416 = tpu.matmul %415, %412, %cst_167 {dimension_numbers = #tpu.dot_dimension_numbers<[1], [0], [0], [1], [0, 0, 1, 1], [], []>} : vector<96x8xf32>, vector<8x128xf32>, vector<96x128xf32> -> vector<96x128xf32>
    %417 = arith.addf %414, %416 : vector<96x128xf32>
    %418 = vector.extract_strided_slice %417 {offsets = [0, 0], sizes = [24, 128], strides = [1, 1]} : vector<96x128xf32> to vector<24x128xf32>
    %cst_168 = arith.constant 5.000000e-01 : f32
    %419 = vector.broadcast %cst_168 : f32 to vector<24x128xf32>
    %420 = arith.mulf %419, %418 : vector<24x128xf32>
    %421 = math.tanh %420 : vector<24x128xf32>
    %cst_169 = arith.constant 5.000000e-01 : f32
    %422 = vector.broadcast %cst_169 : f32 to vector<24x128xf32>
    %423 = arith.mulf %422, %421 : vector<24x128xf32>
    %cst_170 = arith.constant 5.000000e-01 : f32
    %424 = vector.broadcast %cst_170 : f32 to vector<24x128xf32>
    %425 = arith.addf %423, %424 : vector<24x128xf32>
    %426 = vector.extract_strided_slice %417 {offsets = [24, 0], sizes = [24, 128], strides = [1, 1]} : vector<96x128xf32> to vector<24x128xf32>
    %cst_171 = arith.constant 5.000000e-01 : f32
    %427 = vector.broadcast %cst_171 : f32 to vector<24x128xf32>
    %428 = arith.mulf %427, %426 : vector<24x128xf32>
    %429 = math.tanh %428 : vector<24x128xf32>
    %cst_172 = arith.constant 5.000000e-01 : f32
    %430 = vector.broadcast %cst_172 : f32 to vector<24x128xf32>
    %431 = arith.mulf %430, %429 : vector<24x128xf32>
    %cst_173 = arith.constant 5.000000e-01 : f32
    %432 = vector.broadcast %cst_173 : f32 to vector<24x128xf32>
    %433 = arith.addf %431, %432 : vector<24x128xf32>
    %434 = vector.extract_strided_slice %417 {offsets = [48, 0], sizes = [24, 128], strides = [1, 1]} : vector<96x128xf32> to vector<24x128xf32>
    %435 = math.tanh %434 : vector<24x128xf32>
    %436 = vector.extract_strided_slice %417 {offsets = [72, 0], sizes = [24, 128], strides = [1, 1]} : vector<96x128xf32> to vector<24x128xf32>
    %cst_174 = arith.constant 5.000000e-01 : f32
    %437 = vector.broadcast %cst_174 : f32 to vector<24x128xf32>
    %438 = arith.mulf %437, %436 : vector<24x128xf32>
    %439 = math.tanh %438 : vector<24x128xf32>
    %cst_175 = arith.constant 5.000000e-01 : f32
    %440 = vector.broadcast %cst_175 : f32 to vector<24x128xf32>
    %441 = arith.mulf %440, %439 : vector<24x128xf32>
    %cst_176 = arith.constant 5.000000e-01 : f32
    %442 = vector.broadcast %cst_176 : f32 to vector<24x128xf32>
    %443 = arith.addf %441, %442 : vector<24x128xf32>
    %444 = arith.mulf %433, %406 : vector<24x128xf32>
    %445 = arith.mulf %425, %435 : vector<24x128xf32>
    %446 = arith.addf %444, %445 : vector<24x128xf32>
    %447 = math.tanh %446 : vector<24x128xf32>
    %448 = arith.mulf %443, %447 : vector<24x128xf32>
    %c11 = arith.constant 11 : index
    %c0_177 = arith.constant 0 : index
    %449 = vector.load %arg1[%c11, %c0_177] : memref<27x128xf32, #tpu.memory_space<vmem>>, vector<1x128xf32>
    %450 = vector.shape_cast %449 : vector<1x128xf32> to vector<1x128xf32>
    %451 = vector.broadcast %450 : vector<1x128xf32> to vector<8x128xf32>
    %452 = arith.select %2, %451, %6 : vector<8x128xi1>, vector<8x128xf32>
    %c0_178 = arith.constant 0 : index
    %c0_179 = arith.constant 0 : index
    %453 = vector.load %arg2[%c0_178, %c0_179] : memref<96x24xf32, #tpu.memory_space<vmem>>, vector<96x24xf32>
    %cst_180 = arith.constant dense<0.000000e+00> : vector<96x128xf32>
    %454 = tpu.matmul %453, %448, %cst_180 {dimension_numbers = #tpu.dot_dimension_numbers<[1], [0], [0], [1], [0, 0, 1, 1], [], []>} : vector<96x24xf32>, vector<24x128xf32>, vector<96x128xf32> -> vector<96x128xf32>
    %c0_181 = arith.constant 0 : index
    %c0_182 = arith.constant 0 : index
    %455 = vector.load %arg3[%c0_181, %c0_182] : memref<96x8xf32, #tpu.memory_space<vmem>>, vector<96x8xf32>
    %cst_183 = arith.constant dense<0.000000e+00> : vector<96x128xf32>
    %456 = tpu.matmul %455, %452, %cst_183 {dimension_numbers = #tpu.dot_dimension_numbers<[1], [0], [0], [1], [0, 0, 1, 1], [], []>} : vector<96x8xf32>, vector<8x128xf32>, vector<96x128xf32> -> vector<96x128xf32>
    %457 = arith.addf %454, %456 : vector<96x128xf32>
    %458 = vector.extract_strided_slice %457 {offsets = [0, 0], sizes = [24, 128], strides = [1, 1]} : vector<96x128xf32> to vector<24x128xf32>
    %cst_184 = arith.constant 5.000000e-01 : f32
    %459 = vector.broadcast %cst_184 : f32 to vector<24x128xf32>
    %460 = arith.mulf %459, %458 : vector<24x128xf32>
    %461 = math.tanh %460 : vector<24x128xf32>
    %cst_185 = arith.constant 5.000000e-01 : f32
    %462 = vector.broadcast %cst_185 : f32 to vector<24x128xf32>
    %463 = arith.mulf %462, %461 : vector<24x128xf32>
    %cst_186 = arith.constant 5.000000e-01 : f32
    %464 = vector.broadcast %cst_186 : f32 to vector<24x128xf32>
    %465 = arith.addf %463, %464 : vector<24x128xf32>
    %466 = vector.extract_strided_slice %457 {offsets = [24, 0], sizes = [24, 128], strides = [1, 1]} : vector<96x128xf32> to vector<24x128xf32>
    %cst_187 = arith.constant 5.000000e-01 : f32
    %467 = vector.broadcast %cst_187 : f32 to vector<24x128xf32>
    %468 = arith.mulf %467, %466 : vector<24x128xf32>
    %469 = math.tanh %468 : vector<24x128xf32>
    %cst_188 = arith.constant 5.000000e-01 : f32
    %470 = vector.broadcast %cst_188 : f32 to vector<24x128xf32>
    %471 = arith.mulf %470, %469 : vector<24x128xf32>
    %cst_189 = arith.constant 5.000000e-01 : f32
    %472 = vector.broadcast %cst_189 : f32 to vector<24x128xf32>
    %473 = arith.addf %471, %472 : vector<24x128xf32>
    %474 = vector.extract_strided_slice %457 {offsets = [48, 0], sizes = [24, 128], strides = [1, 1]} : vector<96x128xf32> to vector<24x128xf32>
    %475 = math.tanh %474 : vector<24x128xf32>
    %476 = vector.extract_strided_slice %457 {offsets = [72, 0], sizes = [24, 128], strides = [1, 1]} : vector<96x128xf32> to vector<24x128xf32>
    %cst_190 = arith.constant 5.000000e-01 : f32
    %477 = vector.broadcast %cst_190 : f32 to vector<24x128xf32>
    %478 = arith.mulf %477, %476 : vector<24x128xf32>
    %479 = math.tanh %478 : vector<24x128xf32>
    %cst_191 = arith.constant 5.000000e-01 : f32
    %480 = vector.broadcast %cst_191 : f32 to vector<24x128xf32>
    %481 = arith.mulf %480, %479 : vector<24x128xf32>
    %cst_192 = arith.constant 5.000000e-01 : f32
    %482 = vector.broadcast %cst_192 : f32 to vector<24x128xf32>
    %483 = arith.addf %481, %482 : vector<24x128xf32>
    %484 = arith.mulf %473, %446 : vector<24x128xf32>
    %485 = arith.mulf %465, %475 : vector<24x128xf32>
    %486 = arith.addf %484, %485 : vector<24x128xf32>
    %487 = math.tanh %486 : vector<24x128xf32>
    %488 = arith.mulf %483, %487 : vector<24x128xf32>
    %c12 = arith.constant 12 : index
    %c0_193 = arith.constant 0 : index
    %489 = vector.load %arg1[%c12, %c0_193] : memref<27x128xf32, #tpu.memory_space<vmem>>, vector<1x128xf32>
    %490 = vector.shape_cast %489 : vector<1x128xf32> to vector<1x128xf32>
    %491 = vector.broadcast %490 : vector<1x128xf32> to vector<8x128xf32>
    %492 = arith.select %2, %491, %6 : vector<8x128xi1>, vector<8x128xf32>
    %c0_194 = arith.constant 0 : index
    %c0_195 = arith.constant 0 : index
    %493 = vector.load %arg2[%c0_194, %c0_195] : memref<96x24xf32, #tpu.memory_space<vmem>>, vector<96x24xf32>
    %cst_196 = arith.constant dense<0.000000e+00> : vector<96x128xf32>
    %494 = tpu.matmul %493, %488, %cst_196 {dimension_numbers = #tpu.dot_dimension_numbers<[1], [0], [0], [1], [0, 0, 1, 1], [], []>} : vector<96x24xf32>, vector<24x128xf32>, vector<96x128xf32> -> vector<96x128xf32>
    %c0_197 = arith.constant 0 : index
    %c0_198 = arith.constant 0 : index
    %495 = vector.load %arg3[%c0_197, %c0_198] : memref<96x8xf32, #tpu.memory_space<vmem>>, vector<96x8xf32>
    %cst_199 = arith.constant dense<0.000000e+00> : vector<96x128xf32>
    %496 = tpu.matmul %495, %492, %cst_199 {dimension_numbers = #tpu.dot_dimension_numbers<[1], [0], [0], [1], [0, 0, 1, 1], [], []>} : vector<96x8xf32>, vector<8x128xf32>, vector<96x128xf32> -> vector<96x128xf32>
    %497 = arith.addf %494, %496 : vector<96x128xf32>
    %498 = vector.extract_strided_slice %497 {offsets = [0, 0], sizes = [24, 128], strides = [1, 1]} : vector<96x128xf32> to vector<24x128xf32>
    %cst_200 = arith.constant 5.000000e-01 : f32
    %499 = vector.broadcast %cst_200 : f32 to vector<24x128xf32>
    %500 = arith.mulf %499, %498 : vector<24x128xf32>
    %501 = math.tanh %500 : vector<24x128xf32>
    %cst_201 = arith.constant 5.000000e-01 : f32
    %502 = vector.broadcast %cst_201 : f32 to vector<24x128xf32>
    %503 = arith.mulf %502, %501 : vector<24x128xf32>
    %cst_202 = arith.constant 5.000000e-01 : f32
    %504 = vector.broadcast %cst_202 : f32 to vector<24x128xf32>
    %505 = arith.addf %503, %504 : vector<24x128xf32>
    %506 = vector.extract_strided_slice %497 {offsets = [24, 0], sizes = [24, 128], strides = [1, 1]} : vector<96x128xf32> to vector<24x128xf32>
    %cst_203 = arith.constant 5.000000e-01 : f32
    %507 = vector.broadcast %cst_203 : f32 to vector<24x128xf32>
    %508 = arith.mulf %507, %506 : vector<24x128xf32>
    %509 = math.tanh %508 : vector<24x128xf32>
    %cst_204 = arith.constant 5.000000e-01 : f32
    %510 = vector.broadcast %cst_204 : f32 to vector<24x128xf32>
    %511 = arith.mulf %510, %509 : vector<24x128xf32>
    %cst_205 = arith.constant 5.000000e-01 : f32
    %512 = vector.broadcast %cst_205 : f32 to vector<24x128xf32>
    %513 = arith.addf %511, %512 : vector<24x128xf32>
    %514 = vector.extract_strided_slice %497 {offsets = [48, 0], sizes = [24, 128], strides = [1, 1]} : vector<96x128xf32> to vector<24x128xf32>
    %515 = math.tanh %514 : vector<24x128xf32>
    %516 = vector.extract_strided_slice %497 {offsets = [72, 0], sizes = [24, 128], strides = [1, 1]} : vector<96x128xf32> to vector<24x128xf32>
    %cst_206 = arith.constant 5.000000e-01 : f32
    %517 = vector.broadcast %cst_206 : f32 to vector<24x128xf32>
    %518 = arith.mulf %517, %516 : vector<24x128xf32>
    %519 = math.tanh %518 : vector<24x128xf32>
    %cst_207 = arith.constant 5.000000e-01 : f32
    %520 = vector.broadcast %cst_207 : f32 to vector<24x128xf32>
    %521 = arith.mulf %520, %519 : vector<24x128xf32>
    %cst_208 = arith.constant 5.000000e-01 : f32
    %522 = vector.broadcast %cst_208 : f32 to vector<24x128xf32>
    %523 = arith.addf %521, %522 : vector<24x128xf32>
    %524 = arith.mulf %513, %486 : vector<24x128xf32>
    %525 = arith.mulf %505, %515 : vector<24x128xf32>
    %526 = arith.addf %524, %525 : vector<24x128xf32>
    %527 = math.tanh %526 : vector<24x128xf32>
    %528 = arith.mulf %523, %527 : vector<24x128xf32>
    %c13 = arith.constant 13 : index
    %c0_209 = arith.constant 0 : index
    %529 = vector.load %arg1[%c13, %c0_209] : memref<27x128xf32, #tpu.memory_space<vmem>>, vector<1x128xf32>
    %530 = vector.shape_cast %529 : vector<1x128xf32> to vector<1x128xf32>
    %531 = vector.broadcast %530 : vector<1x128xf32> to vector<8x128xf32>
    %532 = arith.select %2, %531, %6 : vector<8x128xi1>, vector<8x128xf32>
    %c0_210 = arith.constant 0 : index
    %c0_211 = arith.constant 0 : index
    %533 = vector.load %arg2[%c0_210, %c0_211] : memref<96x24xf32, #tpu.memory_space<vmem>>, vector<96x24xf32>
    %cst_212 = arith.constant dense<0.000000e+00> : vector<96x128xf32>
    %534 = tpu.matmul %533, %528, %cst_212 {dimension_numbers = #tpu.dot_dimension_numbers<[1], [0], [0], [1], [0, 0, 1, 1], [], []>} : vector<96x24xf32>, vector<24x128xf32>, vector<96x128xf32> -> vector<96x128xf32>
    %c0_213 = arith.constant 0 : index
    %c0_214 = arith.constant 0 : index
    %535 = vector.load %arg3[%c0_213, %c0_214] : memref<96x8xf32, #tpu.memory_space<vmem>>, vector<96x8xf32>
    %cst_215 = arith.constant dense<0.000000e+00> : vector<96x128xf32>
    %536 = tpu.matmul %535, %532, %cst_215 {dimension_numbers = #tpu.dot_dimension_numbers<[1], [0], [0], [1], [0, 0, 1, 1], [], []>} : vector<96x8xf32>, vector<8x128xf32>, vector<96x128xf32> -> vector<96x128xf32>
    %537 = arith.addf %534, %536 : vector<96x128xf32>
    %538 = vector.extract_strided_slice %537 {offsets = [0, 0], sizes = [24, 128], strides = [1, 1]} : vector<96x128xf32> to vector<24x128xf32>
    %cst_216 = arith.constant 5.000000e-01 : f32
    %539 = vector.broadcast %cst_216 : f32 to vector<24x128xf32>
    %540 = arith.mulf %539, %538 : vector<24x128xf32>
    %541 = math.tanh %540 : vector<24x128xf32>
    %cst_217 = arith.constant 5.000000e-01 : f32
    %542 = vector.broadcast %cst_217 : f32 to vector<24x128xf32>
    %543 = arith.mulf %542, %541 : vector<24x128xf32>
    %cst_218 = arith.constant 5.000000e-01 : f32
    %544 = vector.broadcast %cst_218 : f32 to vector<24x128xf32>
    %545 = arith.addf %543, %544 : vector<24x128xf32>
    %546 = vector.extract_strided_slice %537 {offsets = [24, 0], sizes = [24, 128], strides = [1, 1]} : vector<96x128xf32> to vector<24x128xf32>
    %cst_219 = arith.constant 5.000000e-01 : f32
    %547 = vector.broadcast %cst_219 : f32 to vector<24x128xf32>
    %548 = arith.mulf %547, %546 : vector<24x128xf32>
    %549 = math.tanh %548 : vector<24x128xf32>
    %cst_220 = arith.constant 5.000000e-01 : f32
    %550 = vector.broadcast %cst_220 : f32 to vector<24x128xf32>
    %551 = arith.mulf %550, %549 : vector<24x128xf32>
    %cst_221 = arith.constant 5.000000e-01 : f32
    %552 = vector.broadcast %cst_221 : f32 to vector<24x128xf32>
    %553 = arith.addf %551, %552 : vector<24x128xf32>
    %554 = vector.extract_strided_slice %537 {offsets = [48, 0], sizes = [24, 128], strides = [1, 1]} : vector<96x128xf32> to vector<24x128xf32>
    %555 = math.tanh %554 : vector<24x128xf32>
    %556 = vector.extract_strided_slice %537 {offsets = [72, 0], sizes = [24, 128], strides = [1, 1]} : vector<96x128xf32> to vector<24x128xf32>
    %cst_222 = arith.constant 5.000000e-01 : f32
    %557 = vector.broadcast %cst_222 : f32 to vector<24x128xf32>
    %558 = arith.mulf %557, %556 : vector<24x128xf32>
    %559 = math.tanh %558 : vector<24x128xf32>
    %cst_223 = arith.constant 5.000000e-01 : f32
    %560 = vector.broadcast %cst_223 : f32 to vector<24x128xf32>
    %561 = arith.mulf %560, %559 : vector<24x128xf32>
    %cst_224 = arith.constant 5.000000e-01 : f32
    %562 = vector.broadcast %cst_224 : f32 to vector<24x128xf32>
    %563 = arith.addf %561, %562 : vector<24x128xf32>
    %564 = arith.mulf %553, %526 : vector<24x128xf32>
    %565 = arith.mulf %545, %555 : vector<24x128xf32>
    %566 = arith.addf %564, %565 : vector<24x128xf32>
    %567 = math.tanh %566 : vector<24x128xf32>
    %568 = arith.mulf %563, %567 : vector<24x128xf32>
    %c14 = arith.constant 14 : index
    %c0_225 = arith.constant 0 : index
    %569 = vector.load %arg1[%c14, %c0_225] : memref<27x128xf32, #tpu.memory_space<vmem>>, vector<1x128xf32>
    %570 = vector.shape_cast %569 : vector<1x128xf32> to vector<1x128xf32>
    %571 = vector.broadcast %570 : vector<1x128xf32> to vector<8x128xf32>
    %572 = arith.select %2, %571, %6 : vector<8x128xi1>, vector<8x128xf32>
    %c0_226 = arith.constant 0 : index
    %c0_227 = arith.constant 0 : index
    %573 = vector.load %arg2[%c0_226, %c0_227] : memref<96x24xf32, #tpu.memory_space<vmem>>, vector<96x24xf32>
    %cst_228 = arith.constant dense<0.000000e+00> : vector<96x128xf32>
    %574 = tpu.matmul %573, %568, %cst_228 {dimension_numbers = #tpu.dot_dimension_numbers<[1], [0], [0], [1], [0, 0, 1, 1], [], []>} : vector<96x24xf32>, vector<24x128xf32>, vector<96x128xf32> -> vector<96x128xf32>
    %c0_229 = arith.constant 0 : index
    %c0_230 = arith.constant 0 : index
    %575 = vector.load %arg3[%c0_229, %c0_230] : memref<96x8xf32, #tpu.memory_space<vmem>>, vector<96x8xf32>
    %cst_231 = arith.constant dense<0.000000e+00> : vector<96x128xf32>
    %576 = tpu.matmul %575, %572, %cst_231 {dimension_numbers = #tpu.dot_dimension_numbers<[1], [0], [0], [1], [0, 0, 1, 1], [], []>} : vector<96x8xf32>, vector<8x128xf32>, vector<96x128xf32> -> vector<96x128xf32>
    %577 = arith.addf %574, %576 : vector<96x128xf32>
    %578 = vector.extract_strided_slice %577 {offsets = [0, 0], sizes = [24, 128], strides = [1, 1]} : vector<96x128xf32> to vector<24x128xf32>
    %cst_232 = arith.constant 5.000000e-01 : f32
    %579 = vector.broadcast %cst_232 : f32 to vector<24x128xf32>
    %580 = arith.mulf %579, %578 : vector<24x128xf32>
    %581 = math.tanh %580 : vector<24x128xf32>
    %cst_233 = arith.constant 5.000000e-01 : f32
    %582 = vector.broadcast %cst_233 : f32 to vector<24x128xf32>
    %583 = arith.mulf %582, %581 : vector<24x128xf32>
    %cst_234 = arith.constant 5.000000e-01 : f32
    %584 = vector.broadcast %cst_234 : f32 to vector<24x128xf32>
    %585 = arith.addf %583, %584 : vector<24x128xf32>
    %586 = vector.extract_strided_slice %577 {offsets = [24, 0], sizes = [24, 128], strides = [1, 1]} : vector<96x128xf32> to vector<24x128xf32>
    %cst_235 = arith.constant 5.000000e-01 : f32
    %587 = vector.broadcast %cst_235 : f32 to vector<24x128xf32>
    %588 = arith.mulf %587, %586 : vector<24x128xf32>
    %589 = math.tanh %588 : vector<24x128xf32>
    %cst_236 = arith.constant 5.000000e-01 : f32
    %590 = vector.broadcast %cst_236 : f32 to vector<24x128xf32>
    %591 = arith.mulf %590, %589 : vector<24x128xf32>
    %cst_237 = arith.constant 5.000000e-01 : f32
    %592 = vector.broadcast %cst_237 : f32 to vector<24x128xf32>
    %593 = arith.addf %591, %592 : vector<24x128xf32>
    %594 = vector.extract_strided_slice %577 {offsets = [48, 0], sizes = [24, 128], strides = [1, 1]} : vector<96x128xf32> to vector<24x128xf32>
    %595 = math.tanh %594 : vector<24x128xf32>
    %596 = vector.extract_strided_slice %577 {offsets = [72, 0], sizes = [24, 128], strides = [1, 1]} : vector<96x128xf32> to vector<24x128xf32>
    %cst_238 = arith.constant 5.000000e-01 : f32
    %597 = vector.broadcast %cst_238 : f32 to vector<24x128xf32>
    %598 = arith.mulf %597, %596 : vector<24x128xf32>
    %599 = math.tanh %598 : vector<24x128xf32>
    %cst_239 = arith.constant 5.000000e-01 : f32
    %600 = vector.broadcast %cst_239 : f32 to vector<24x128xf32>
    %601 = arith.mulf %600, %599 : vector<24x128xf32>
    %cst_240 = arith.constant 5.000000e-01 : f32
    %602 = vector.broadcast %cst_240 : f32 to vector<24x128xf32>
    %603 = arith.addf %601, %602 : vector<24x128xf32>
    %604 = arith.mulf %593, %566 : vector<24x128xf32>
    %605 = arith.mulf %585, %595 : vector<24x128xf32>
    %606 = arith.addf %604, %605 : vector<24x128xf32>
    %607 = math.tanh %606 : vector<24x128xf32>
    %608 = arith.mulf %603, %607 : vector<24x128xf32>
    %c15 = arith.constant 15 : index
    %c0_241 = arith.constant 0 : index
    %609 = vector.load %arg1[%c15, %c0_241] : memref<27x128xf32, #tpu.memory_space<vmem>>, vector<1x128xf32>
    %610 = vector.shape_cast %609 : vector<1x128xf32> to vector<1x128xf32>
    %611 = vector.broadcast %610 : vector<1x128xf32> to vector<8x128xf32>
    %612 = arith.select %2, %611, %6 : vector<8x128xi1>, vector<8x128xf32>
    %c0_242 = arith.constant 0 : index
    %c0_243 = arith.constant 0 : index
    %613 = vector.load %arg2[%c0_242, %c0_243] : memref<96x24xf32, #tpu.memory_space<vmem>>, vector<96x24xf32>
    %cst_244 = arith.constant dense<0.000000e+00> : vector<96x128xf32>
    %614 = tpu.matmul %613, %608, %cst_244 {dimension_numbers = #tpu.dot_dimension_numbers<[1], [0], [0], [1], [0, 0, 1, 1], [], []>} : vector<96x24xf32>, vector<24x128xf32>, vector<96x128xf32> -> vector<96x128xf32>
    %c0_245 = arith.constant 0 : index
    %c0_246 = arith.constant 0 : index
    %615 = vector.load %arg3[%c0_245, %c0_246] : memref<96x8xf32, #tpu.memory_space<vmem>>, vector<96x8xf32>
    %cst_247 = arith.constant dense<0.000000e+00> : vector<96x128xf32>
    %616 = tpu.matmul %615, %612, %cst_247 {dimension_numbers = #tpu.dot_dimension_numbers<[1], [0], [0], [1], [0, 0, 1, 1], [], []>} : vector<96x8xf32>, vector<8x128xf32>, vector<96x128xf32> -> vector<96x128xf32>
    %617 = arith.addf %614, %616 : vector<96x128xf32>
    %618 = vector.extract_strided_slice %617 {offsets = [0, 0], sizes = [24, 128], strides = [1, 1]} : vector<96x128xf32> to vector<24x128xf32>
    %cst_248 = arith.constant 5.000000e-01 : f32
    %619 = vector.broadcast %cst_248 : f32 to vector<24x128xf32>
    %620 = arith.mulf %619, %618 : vector<24x128xf32>
    %621 = math.tanh %620 : vector<24x128xf32>
    %cst_249 = arith.constant 5.000000e-01 : f32
    %622 = vector.broadcast %cst_249 : f32 to vector<24x128xf32>
    %623 = arith.mulf %622, %621 : vector<24x128xf32>
    %cst_250 = arith.constant 5.000000e-01 : f32
    %624 = vector.broadcast %cst_250 : f32 to vector<24x128xf32>
    %625 = arith.addf %623, %624 : vector<24x128xf32>
    %626 = vector.extract_strided_slice %617 {offsets = [24, 0], sizes = [24, 128], strides = [1, 1]} : vector<96x128xf32> to vector<24x128xf32>
    %cst_251 = arith.constant 5.000000e-01 : f32
    %627 = vector.broadcast %cst_251 : f32 to vector<24x128xf32>
    %628 = arith.mulf %627, %626 : vector<24x128xf32>
    %629 = math.tanh %628 : vector<24x128xf32>
    %cst_252 = arith.constant 5.000000e-01 : f32
    %630 = vector.broadcast %cst_252 : f32 to vector<24x128xf32>
    %631 = arith.mulf %630, %629 : vector<24x128xf32>
    %cst_253 = arith.constant 5.000000e-01 : f32
    %632 = vector.broadcast %cst_253 : f32 to vector<24x128xf32>
    %633 = arith.addf %631, %632 : vector<24x128xf32>
    %634 = vector.extract_strided_slice %617 {offsets = [48, 0], sizes = [24, 128], strides = [1, 1]} : vector<96x128xf32> to vector<24x128xf32>
    %635 = math.tanh %634 : vector<24x128xf32>
    %636 = vector.extract_strided_slice %617 {offsets = [72, 0], sizes = [24, 128], strides = [1, 1]} : vector<96x128xf32> to vector<24x128xf32>
    %cst_254 = arith.constant 5.000000e-01 : f32
    %637 = vector.broadcast %cst_254 : f32 to vector<24x128xf32>
    %638 = arith.mulf %637, %636 : vector<24x128xf32>
    %639 = math.tanh %638 : vector<24x128xf32>
    %cst_255 = arith.constant 5.000000e-01 : f32
    %640 = vector.broadcast %cst_255 : f32 to vector<24x128xf32>
    %641 = arith.mulf %640, %639 : vector<24x128xf32>
    %cst_256 = arith.constant 5.000000e-01 : f32
    %642 = vector.broadcast %cst_256 : f32 to vector<24x128xf32>
    %643 = arith.addf %641, %642 : vector<24x128xf32>
    %644 = arith.mulf %633, %606 : vector<24x128xf32>
    %645 = arith.mulf %625, %635 : vector<24x128xf32>
    %646 = arith.addf %644, %645 : vector<24x128xf32>
    %647 = math.tanh %646 : vector<24x128xf32>
    %648 = arith.mulf %643, %647 : vector<24x128xf32>
    %c16 = arith.constant 16 : index
    %c0_257 = arith.constant 0 : index
    %649 = vector.load %arg1[%c16, %c0_257] : memref<27x128xf32, #tpu.memory_space<vmem>>, vector<1x128xf32>
    %650 = vector.shape_cast %649 : vector<1x128xf32> to vector<1x128xf32>
    %651 = vector.broadcast %650 : vector<1x128xf32> to vector<8x128xf32>
    %652 = arith.select %2, %651, %6 : vector<8x128xi1>, vector<8x128xf32>
    %c0_258 = arith.constant 0 : index
    %c0_259 = arith.constant 0 : index
    %653 = vector.load %arg2[%c0_258, %c0_259] : memref<96x24xf32, #tpu.memory_space<vmem>>, vector<96x24xf32>
    %cst_260 = arith.constant dense<0.000000e+00> : vector<96x128xf32>
    %654 = tpu.matmul %653, %648, %cst_260 {dimension_numbers = #tpu.dot_dimension_numbers<[1], [0], [0], [1], [0, 0, 1, 1], [], []>} : vector<96x24xf32>, vector<24x128xf32>, vector<96x128xf32> -> vector<96x128xf32>
    %c0_261 = arith.constant 0 : index
    %c0_262 = arith.constant 0 : index
    %655 = vector.load %arg3[%c0_261, %c0_262] : memref<96x8xf32, #tpu.memory_space<vmem>>, vector<96x8xf32>
    %cst_263 = arith.constant dense<0.000000e+00> : vector<96x128xf32>
    %656 = tpu.matmul %655, %652, %cst_263 {dimension_numbers = #tpu.dot_dimension_numbers<[1], [0], [0], [1], [0, 0, 1, 1], [], []>} : vector<96x8xf32>, vector<8x128xf32>, vector<96x128xf32> -> vector<96x128xf32>
    %657 = arith.addf %654, %656 : vector<96x128xf32>
    %658 = vector.extract_strided_slice %657 {offsets = [0, 0], sizes = [24, 128], strides = [1, 1]} : vector<96x128xf32> to vector<24x128xf32>
    %cst_264 = arith.constant 5.000000e-01 : f32
    %659 = vector.broadcast %cst_264 : f32 to vector<24x128xf32>
    %660 = arith.mulf %659, %658 : vector<24x128xf32>
    %661 = math.tanh %660 : vector<24x128xf32>
    %cst_265 = arith.constant 5.000000e-01 : f32
    %662 = vector.broadcast %cst_265 : f32 to vector<24x128xf32>
    %663 = arith.mulf %662, %661 : vector<24x128xf32>
    %cst_266 = arith.constant 5.000000e-01 : f32
    %664 = vector.broadcast %cst_266 : f32 to vector<24x128xf32>
    %665 = arith.addf %663, %664 : vector<24x128xf32>
    %666 = vector.extract_strided_slice %657 {offsets = [24, 0], sizes = [24, 128], strides = [1, 1]} : vector<96x128xf32> to vector<24x128xf32>
    %cst_267 = arith.constant 5.000000e-01 : f32
    %667 = vector.broadcast %cst_267 : f32 to vector<24x128xf32>
    %668 = arith.mulf %667, %666 : vector<24x128xf32>
    %669 = math.tanh %668 : vector<24x128xf32>
    %cst_268 = arith.constant 5.000000e-01 : f32
    %670 = vector.broadcast %cst_268 : f32 to vector<24x128xf32>
    %671 = arith.mulf %670, %669 : vector<24x128xf32>
    %cst_269 = arith.constant 5.000000e-01 : f32
    %672 = vector.broadcast %cst_269 : f32 to vector<24x128xf32>
    %673 = arith.addf %671, %672 : vector<24x128xf32>
    %674 = vector.extract_strided_slice %657 {offsets = [48, 0], sizes = [24, 128], strides = [1, 1]} : vector<96x128xf32> to vector<24x128xf32>
    %675 = math.tanh %674 : vector<24x128xf32>
    %676 = vector.extract_strided_slice %657 {offsets = [72, 0], sizes = [24, 128], strides = [1, 1]} : vector<96x128xf32> to vector<24x128xf32>
    %cst_270 = arith.constant 5.000000e-01 : f32
    %677 = vector.broadcast %cst_270 : f32 to vector<24x128xf32>
    %678 = arith.mulf %677, %676 : vector<24x128xf32>
    %679 = math.tanh %678 : vector<24x128xf32>
    %cst_271 = arith.constant 5.000000e-01 : f32
    %680 = vector.broadcast %cst_271 : f32 to vector<24x128xf32>
    %681 = arith.mulf %680, %679 : vector<24x128xf32>
    %cst_272 = arith.constant 5.000000e-01 : f32
    %682 = vector.broadcast %cst_272 : f32 to vector<24x128xf32>
    %683 = arith.addf %681, %682 : vector<24x128xf32>
    %684 = arith.mulf %673, %646 : vector<24x128xf32>
    %685 = arith.mulf %665, %675 : vector<24x128xf32>
    %686 = arith.addf %684, %685 : vector<24x128xf32>
    %687 = math.tanh %686 : vector<24x128xf32>
    %688 = arith.mulf %683, %687 : vector<24x128xf32>
    %c17 = arith.constant 17 : index
    %c0_273 = arith.constant 0 : index
    %689 = vector.load %arg1[%c17, %c0_273] : memref<27x128xf32, #tpu.memory_space<vmem>>, vector<1x128xf32>
    %690 = vector.shape_cast %689 : vector<1x128xf32> to vector<1x128xf32>
    %691 = vector.broadcast %690 : vector<1x128xf32> to vector<8x128xf32>
    %692 = arith.select %2, %691, %6 : vector<8x128xi1>, vector<8x128xf32>
    %c0_274 = arith.constant 0 : index
    %c0_275 = arith.constant 0 : index
    %693 = vector.load %arg2[%c0_274, %c0_275] : memref<96x24xf32, #tpu.memory_space<vmem>>, vector<96x24xf32>
    %cst_276 = arith.constant dense<0.000000e+00> : vector<96x128xf32>
    %694 = tpu.matmul %693, %688, %cst_276 {dimension_numbers = #tpu.dot_dimension_numbers<[1], [0], [0], [1], [0, 0, 1, 1], [], []>} : vector<96x24xf32>, vector<24x128xf32>, vector<96x128xf32> -> vector<96x128xf32>
    %c0_277 = arith.constant 0 : index
    %c0_278 = arith.constant 0 : index
    %695 = vector.load %arg3[%c0_277, %c0_278] : memref<96x8xf32, #tpu.memory_space<vmem>>, vector<96x8xf32>
    %cst_279 = arith.constant dense<0.000000e+00> : vector<96x128xf32>
    %696 = tpu.matmul %695, %692, %cst_279 {dimension_numbers = #tpu.dot_dimension_numbers<[1], [0], [0], [1], [0, 0, 1, 1], [], []>} : vector<96x8xf32>, vector<8x128xf32>, vector<96x128xf32> -> vector<96x128xf32>
    %697 = arith.addf %694, %696 : vector<96x128xf32>
    %698 = vector.extract_strided_slice %697 {offsets = [0, 0], sizes = [24, 128], strides = [1, 1]} : vector<96x128xf32> to vector<24x128xf32>
    %cst_280 = arith.constant 5.000000e-01 : f32
    %699 = vector.broadcast %cst_280 : f32 to vector<24x128xf32>
    %700 = arith.mulf %699, %698 : vector<24x128xf32>
    %701 = math.tanh %700 : vector<24x128xf32>
    %cst_281 = arith.constant 5.000000e-01 : f32
    %702 = vector.broadcast %cst_281 : f32 to vector<24x128xf32>
    %703 = arith.mulf %702, %701 : vector<24x128xf32>
    %cst_282 = arith.constant 5.000000e-01 : f32
    %704 = vector.broadcast %cst_282 : f32 to vector<24x128xf32>
    %705 = arith.addf %703, %704 : vector<24x128xf32>
    %706 = vector.extract_strided_slice %697 {offsets = [24, 0], sizes = [24, 128], strides = [1, 1]} : vector<96x128xf32> to vector<24x128xf32>
    %cst_283 = arith.constant 5.000000e-01 : f32
    %707 = vector.broadcast %cst_283 : f32 to vector<24x128xf32>
    %708 = arith.mulf %707, %706 : vector<24x128xf32>
    %709 = math.tanh %708 : vector<24x128xf32>
    %cst_284 = arith.constant 5.000000e-01 : f32
    %710 = vector.broadcast %cst_284 : f32 to vector<24x128xf32>
    %711 = arith.mulf %710, %709 : vector<24x128xf32>
    %cst_285 = arith.constant 5.000000e-01 : f32
    %712 = vector.broadcast %cst_285 : f32 to vector<24x128xf32>
    %713 = arith.addf %711, %712 : vector<24x128xf32>
    %714 = vector.extract_strided_slice %697 {offsets = [48, 0], sizes = [24, 128], strides = [1, 1]} : vector<96x128xf32> to vector<24x128xf32>
    %715 = math.tanh %714 : vector<24x128xf32>
    %716 = vector.extract_strided_slice %697 {offsets = [72, 0], sizes = [24, 128], strides = [1, 1]} : vector<96x128xf32> to vector<24x128xf32>
    %cst_286 = arith.constant 5.000000e-01 : f32
    %717 = vector.broadcast %cst_286 : f32 to vector<24x128xf32>
    %718 = arith.mulf %717, %716 : vector<24x128xf32>
    %719 = math.tanh %718 : vector<24x128xf32>
    %cst_287 = arith.constant 5.000000e-01 : f32
    %720 = vector.broadcast %cst_287 : f32 to vector<24x128xf32>
    %721 = arith.mulf %720, %719 : vector<24x128xf32>
    %cst_288 = arith.constant 5.000000e-01 : f32
    %722 = vector.broadcast %cst_288 : f32 to vector<24x128xf32>
    %723 = arith.addf %721, %722 : vector<24x128xf32>
    %724 = arith.mulf %713, %686 : vector<24x128xf32>
    %725 = arith.mulf %705, %715 : vector<24x128xf32>
    %726 = arith.addf %724, %725 : vector<24x128xf32>
    %727 = math.tanh %726 : vector<24x128xf32>
    %728 = arith.mulf %723, %727 : vector<24x128xf32>
    %c18 = arith.constant 18 : index
    %c0_289 = arith.constant 0 : index
    %729 = vector.load %arg1[%c18, %c0_289] : memref<27x128xf32, #tpu.memory_space<vmem>>, vector<1x128xf32>
    %730 = vector.shape_cast %729 : vector<1x128xf32> to vector<1x128xf32>
    %731 = vector.broadcast %730 : vector<1x128xf32> to vector<8x128xf32>
    %732 = arith.select %2, %731, %6 : vector<8x128xi1>, vector<8x128xf32>
    %c0_290 = arith.constant 0 : index
    %c0_291 = arith.constant 0 : index
    %733 = vector.load %arg2[%c0_290, %c0_291] : memref<96x24xf32, #tpu.memory_space<vmem>>, vector<96x24xf32>
    %cst_292 = arith.constant dense<0.000000e+00> : vector<96x128xf32>
    %734 = tpu.matmul %733, %728, %cst_292 {dimension_numbers = #tpu.dot_dimension_numbers<[1], [0], [0], [1], [0, 0, 1, 1], [], []>} : vector<96x24xf32>, vector<24x128xf32>, vector<96x128xf32> -> vector<96x128xf32>
    %c0_293 = arith.constant 0 : index
    %c0_294 = arith.constant 0 : index
    %735 = vector.load %arg3[%c0_293, %c0_294] : memref<96x8xf32, #tpu.memory_space<vmem>>, vector<96x8xf32>
    %cst_295 = arith.constant dense<0.000000e+00> : vector<96x128xf32>
    %736 = tpu.matmul %735, %732, %cst_295 {dimension_numbers = #tpu.dot_dimension_numbers<[1], [0], [0], [1], [0, 0, 1, 1], [], []>} : vector<96x8xf32>, vector<8x128xf32>, vector<96x128xf32> -> vector<96x128xf32>
    %737 = arith.addf %734, %736 : vector<96x128xf32>
    %738 = vector.extract_strided_slice %737 {offsets = [0, 0], sizes = [24, 128], strides = [1, 1]} : vector<96x128xf32> to vector<24x128xf32>
    %cst_296 = arith.constant 5.000000e-01 : f32
    %739 = vector.broadcast %cst_296 : f32 to vector<24x128xf32>
    %740 = arith.mulf %739, %738 : vector<24x128xf32>
    %741 = math.tanh %740 : vector<24x128xf32>
    %cst_297 = arith.constant 5.000000e-01 : f32
    %742 = vector.broadcast %cst_297 : f32 to vector<24x128xf32>
    %743 = arith.mulf %742, %741 : vector<24x128xf32>
    %cst_298 = arith.constant 5.000000e-01 : f32
    %744 = vector.broadcast %cst_298 : f32 to vector<24x128xf32>
    %745 = arith.addf %743, %744 : vector<24x128xf32>
    %746 = vector.extract_strided_slice %737 {offsets = [24, 0], sizes = [24, 128], strides = [1, 1]} : vector<96x128xf32> to vector<24x128xf32>
    %cst_299 = arith.constant 5.000000e-01 : f32
    %747 = vector.broadcast %cst_299 : f32 to vector<24x128xf32>
    %748 = arith.mulf %747, %746 : vector<24x128xf32>
    %749 = math.tanh %748 : vector<24x128xf32>
    %cst_300 = arith.constant 5.000000e-01 : f32
    %750 = vector.broadcast %cst_300 : f32 to vector<24x128xf32>
    %751 = arith.mulf %750, %749 : vector<24x128xf32>
    %cst_301 = arith.constant 5.000000e-01 : f32
    %752 = vector.broadcast %cst_301 : f32 to vector<24x128xf32>
    %753 = arith.addf %751, %752 : vector<24x128xf32>
    %754 = vector.extract_strided_slice %737 {offsets = [48, 0], sizes = [24, 128], strides = [1, 1]} : vector<96x128xf32> to vector<24x128xf32>
    %755 = math.tanh %754 : vector<24x128xf32>
    %756 = vector.extract_strided_slice %737 {offsets = [72, 0], sizes = [24, 128], strides = [1, 1]} : vector<96x128xf32> to vector<24x128xf32>
    %cst_302 = arith.constant 5.000000e-01 : f32
    %757 = vector.broadcast %cst_302 : f32 to vector<24x128xf32>
    %758 = arith.mulf %757, %756 : vector<24x128xf32>
    %759 = math.tanh %758 : vector<24x128xf32>
    %cst_303 = arith.constant 5.000000e-01 : f32
    %760 = vector.broadcast %cst_303 : f32 to vector<24x128xf32>
    %761 = arith.mulf %760, %759 : vector<24x128xf32>
    %cst_304 = arith.constant 5.000000e-01 : f32
    %762 = vector.broadcast %cst_304 : f32 to vector<24x128xf32>
    %763 = arith.addf %761, %762 : vector<24x128xf32>
    %764 = arith.mulf %753, %726 : vector<24x128xf32>
    %765 = arith.mulf %745, %755 : vector<24x128xf32>
    %766 = arith.addf %764, %765 : vector<24x128xf32>
    %767 = math.tanh %766 : vector<24x128xf32>
    %768 = arith.mulf %763, %767 : vector<24x128xf32>
    %c19 = arith.constant 19 : index
    %c0_305 = arith.constant 0 : index
    %769 = vector.load %arg1[%c19, %c0_305] : memref<27x128xf32, #tpu.memory_space<vmem>>, vector<1x128xf32>
    %770 = vector.shape_cast %769 : vector<1x128xf32> to vector<1x128xf32>
    %771 = vector.broadcast %770 : vector<1x128xf32> to vector<8x128xf32>
    %772 = arith.select %2, %771, %6 : vector<8x128xi1>, vector<8x128xf32>
    %c0_306 = arith.constant 0 : index
    %c0_307 = arith.constant 0 : index
    %773 = vector.load %arg2[%c0_306, %c0_307] : memref<96x24xf32, #tpu.memory_space<vmem>>, vector<96x24xf32>
    %cst_308 = arith.constant dense<0.000000e+00> : vector<96x128xf32>
    %774 = tpu.matmul %773, %768, %cst_308 {dimension_numbers = #tpu.dot_dimension_numbers<[1], [0], [0], [1], [0, 0, 1, 1], [], []>} : vector<96x24xf32>, vector<24x128xf32>, vector<96x128xf32> -> vector<96x128xf32>
    %c0_309 = arith.constant 0 : index
    %c0_310 = arith.constant 0 : index
    %775 = vector.load %arg3[%c0_309, %c0_310] : memref<96x8xf32, #tpu.memory_space<vmem>>, vector<96x8xf32>
    %cst_311 = arith.constant dense<0.000000e+00> : vector<96x128xf32>
    %776 = tpu.matmul %775, %772, %cst_311 {dimension_numbers = #tpu.dot_dimension_numbers<[1], [0], [0], [1], [0, 0, 1, 1], [], []>} : vector<96x8xf32>, vector<8x128xf32>, vector<96x128xf32> -> vector<96x128xf32>
    %777 = arith.addf %774, %776 : vector<96x128xf32>
    %778 = vector.extract_strided_slice %777 {offsets = [0, 0], sizes = [24, 128], strides = [1, 1]} : vector<96x128xf32> to vector<24x128xf32>
    %cst_312 = arith.constant 5.000000e-01 : f32
    %779 = vector.broadcast %cst_312 : f32 to vector<24x128xf32>
    %780 = arith.mulf %779, %778 : vector<24x128xf32>
    %781 = math.tanh %780 : vector<24x128xf32>
    %cst_313 = arith.constant 5.000000e-01 : f32
    %782 = vector.broadcast %cst_313 : f32 to vector<24x128xf32>
    %783 = arith.mulf %782, %781 : vector<24x128xf32>
    %cst_314 = arith.constant 5.000000e-01 : f32
    %784 = vector.broadcast %cst_314 : f32 to vector<24x128xf32>
    %785 = arith.addf %783, %784 : vector<24x128xf32>
    %786 = vector.extract_strided_slice %777 {offsets = [24, 0], sizes = [24, 128], strides = [1, 1]} : vector<96x128xf32> to vector<24x128xf32>
    %cst_315 = arith.constant 5.000000e-01 : f32
    %787 = vector.broadcast %cst_315 : f32 to vector<24x128xf32>
    %788 = arith.mulf %787, %786 : vector<24x128xf32>
    %789 = math.tanh %788 : vector<24x128xf32>
    %cst_316 = arith.constant 5.000000e-01 : f32
    %790 = vector.broadcast %cst_316 : f32 to vector<24x128xf32>
    %791 = arith.mulf %790, %789 : vector<24x128xf32>
    %cst_317 = arith.constant 5.000000e-01 : f32
    %792 = vector.broadcast %cst_317 : f32 to vector<24x128xf32>
    %793 = arith.addf %791, %792 : vector<24x128xf32>
    %794 = vector.extract_strided_slice %777 {offsets = [48, 0], sizes = [24, 128], strides = [1, 1]} : vector<96x128xf32> to vector<24x128xf32>
    %795 = math.tanh %794 : vector<24x128xf32>
    %796 = vector.extract_strided_slice %777 {offsets = [72, 0], sizes = [24, 128], strides = [1, 1]} : vector<96x128xf32> to vector<24x128xf32>
    %cst_318 = arith.constant 5.000000e-01 : f32
    %797 = vector.broadcast %cst_318 : f32 to vector<24x128xf32>
    %798 = arith.mulf %797, %796 : vector<24x128xf32>
    %799 = math.tanh %798 : vector<24x128xf32>
    %cst_319 = arith.constant 5.000000e-01 : f32
    %800 = vector.broadcast %cst_319 : f32 to vector<24x128xf32>
    %801 = arith.mulf %800, %799 : vector<24x128xf32>
    %cst_320 = arith.constant 5.000000e-01 : f32
    %802 = vector.broadcast %cst_320 : f32 to vector<24x128xf32>
    %803 = arith.addf %801, %802 : vector<24x128xf32>
    %804 = arith.mulf %793, %766 : vector<24x128xf32>
    %805 = arith.mulf %785, %795 : vector<24x128xf32>
    %806 = arith.addf %804, %805 : vector<24x128xf32>
    %807 = math.tanh %806 : vector<24x128xf32>
    %808 = arith.mulf %803, %807 : vector<24x128xf32>
    %c20 = arith.constant 20 : index
    %c0_321 = arith.constant 0 : index
    %809 = vector.load %arg1[%c20, %c0_321] : memref<27x128xf32, #tpu.memory_space<vmem>>, vector<1x128xf32>
    %810 = vector.shape_cast %809 : vector<1x128xf32> to vector<1x128xf32>
    %811 = vector.broadcast %810 : vector<1x128xf32> to vector<8x128xf32>
    %812 = arith.select %2, %811, %6 : vector<8x128xi1>, vector<8x128xf32>
    %c0_322 = arith.constant 0 : index
    %c0_323 = arith.constant 0 : index
    %813 = vector.load %arg2[%c0_322, %c0_323] : memref<96x24xf32, #tpu.memory_space<vmem>>, vector<96x24xf32>
    %cst_324 = arith.constant dense<0.000000e+00> : vector<96x128xf32>
    %814 = tpu.matmul %813, %808, %cst_324 {dimension_numbers = #tpu.dot_dimension_numbers<[1], [0], [0], [1], [0, 0, 1, 1], [], []>} : vector<96x24xf32>, vector<24x128xf32>, vector<96x128xf32> -> vector<96x128xf32>
    %c0_325 = arith.constant 0 : index
    %c0_326 = arith.constant 0 : index
    %815 = vector.load %arg3[%c0_325, %c0_326] : memref<96x8xf32, #tpu.memory_space<vmem>>, vector<96x8xf32>
    %cst_327 = arith.constant dense<0.000000e+00> : vector<96x128xf32>
    %816 = tpu.matmul %815, %812, %cst_327 {dimension_numbers = #tpu.dot_dimension_numbers<[1], [0], [0], [1], [0, 0, 1, 1], [], []>} : vector<96x8xf32>, vector<8x128xf32>, vector<96x128xf32> -> vector<96x128xf32>
    %817 = arith.addf %814, %816 : vector<96x128xf32>
    %818 = vector.extract_strided_slice %817 {offsets = [0, 0], sizes = [24, 128], strides = [1, 1]} : vector<96x128xf32> to vector<24x128xf32>
    %cst_328 = arith.constant 5.000000e-01 : f32
    %819 = vector.broadcast %cst_328 : f32 to vector<24x128xf32>
    %820 = arith.mulf %819, %818 : vector<24x128xf32>
    %821 = math.tanh %820 : vector<24x128xf32>
    %cst_329 = arith.constant 5.000000e-01 : f32
    %822 = vector.broadcast %cst_329 : f32 to vector<24x128xf32>
    %823 = arith.mulf %822, %821 : vector<24x128xf32>
    %cst_330 = arith.constant 5.000000e-01 : f32
    %824 = vector.broadcast %cst_330 : f32 to vector<24x128xf32>
    %825 = arith.addf %823, %824 : vector<24x128xf32>
    %826 = vector.extract_strided_slice %817 {offsets = [24, 0], sizes = [24, 128], strides = [1, 1]} : vector<96x128xf32> to vector<24x128xf32>
    %cst_331 = arith.constant 5.000000e-01 : f32
    %827 = vector.broadcast %cst_331 : f32 to vector<24x128xf32>
    %828 = arith.mulf %827, %826 : vector<24x128xf32>
    %829 = math.tanh %828 : vector<24x128xf32>
    %cst_332 = arith.constant 5.000000e-01 : f32
    %830 = vector.broadcast %cst_332 : f32 to vector<24x128xf32>
    %831 = arith.mulf %830, %829 : vector<24x128xf32>
    %cst_333 = arith.constant 5.000000e-01 : f32
    %832 = vector.broadcast %cst_333 : f32 to vector<24x128xf32>
    %833 = arith.addf %831, %832 : vector<24x128xf32>
    %834 = vector.extract_strided_slice %817 {offsets = [48, 0], sizes = [24, 128], strides = [1, 1]} : vector<96x128xf32> to vector<24x128xf32>
    %835 = math.tanh %834 : vector<24x128xf32>
    %836 = vector.extract_strided_slice %817 {offsets = [72, 0], sizes = [24, 128], strides = [1, 1]} : vector<96x128xf32> to vector<24x128xf32>
    %cst_334 = arith.constant 5.000000e-01 : f32
    %837 = vector.broadcast %cst_334 : f32 to vector<24x128xf32>
    %838 = arith.mulf %837, %836 : vector<24x128xf32>
    %839 = math.tanh %838 : vector<24x128xf32>
    %cst_335 = arith.constant 5.000000e-01 : f32
    %840 = vector.broadcast %cst_335 : f32 to vector<24x128xf32>
    %841 = arith.mulf %840, %839 : vector<24x128xf32>
    %cst_336 = arith.constant 5.000000e-01 : f32
    %842 = vector.broadcast %cst_336 : f32 to vector<24x128xf32>
    %843 = arith.addf %841, %842 : vector<24x128xf32>
    %844 = arith.mulf %833, %806 : vector<24x128xf32>
    %845 = arith.mulf %825, %835 : vector<24x128xf32>
    %846 = arith.addf %844, %845 : vector<24x128xf32>
    %847 = math.tanh %846 : vector<24x128xf32>
    %848 = arith.mulf %843, %847 : vector<24x128xf32>
    %c21 = arith.constant 21 : index
    %c0_337 = arith.constant 0 : index
    %849 = vector.load %arg1[%c21, %c0_337] : memref<27x128xf32, #tpu.memory_space<vmem>>, vector<1x128xf32>
    %850 = vector.shape_cast %849 : vector<1x128xf32> to vector<1x128xf32>
    %851 = vector.broadcast %850 : vector<1x128xf32> to vector<8x128xf32>
    %852 = arith.select %2, %851, %6 : vector<8x128xi1>, vector<8x128xf32>
    %c0_338 = arith.constant 0 : index
    %c0_339 = arith.constant 0 : index
    %853 = vector.load %arg2[%c0_338, %c0_339] : memref<96x24xf32, #tpu.memory_space<vmem>>, vector<96x24xf32>
    %cst_340 = arith.constant dense<0.000000e+00> : vector<96x128xf32>
    %854 = tpu.matmul %853, %848, %cst_340 {dimension_numbers = #tpu.dot_dimension_numbers<[1], [0], [0], [1], [0, 0, 1, 1], [], []>} : vector<96x24xf32>, vector<24x128xf32>, vector<96x128xf32> -> vector<96x128xf32>
    %c0_341 = arith.constant 0 : index
    %c0_342 = arith.constant 0 : index
    %855 = vector.load %arg3[%c0_341, %c0_342] : memref<96x8xf32, #tpu.memory_space<vmem>>, vector<96x8xf32>
    %cst_343 = arith.constant dense<0.000000e+00> : vector<96x128xf32>
    %856 = tpu.matmul %855, %852, %cst_343 {dimension_numbers = #tpu.dot_dimension_numbers<[1], [0], [0], [1], [0, 0, 1, 1], [], []>} : vector<96x8xf32>, vector<8x128xf32>, vector<96x128xf32> -> vector<96x128xf32>
    %857 = arith.addf %854, %856 : vector<96x128xf32>
    %858 = vector.extract_strided_slice %857 {offsets = [0, 0], sizes = [24, 128], strides = [1, 1]} : vector<96x128xf32> to vector<24x128xf32>
    %cst_344 = arith.constant 5.000000e-01 : f32
    %859 = vector.broadcast %cst_344 : f32 to vector<24x128xf32>
    %860 = arith.mulf %859, %858 : vector<24x128xf32>
    %861 = math.tanh %860 : vector<24x128xf32>
    %cst_345 = arith.constant 5.000000e-01 : f32
    %862 = vector.broadcast %cst_345 : f32 to vector<24x128xf32>
    %863 = arith.mulf %862, %861 : vector<24x128xf32>
    %cst_346 = arith.constant 5.000000e-01 : f32
    %864 = vector.broadcast %cst_346 : f32 to vector<24x128xf32>
    %865 = arith.addf %863, %864 : vector<24x128xf32>
    %866 = vector.extract_strided_slice %857 {offsets = [24, 0], sizes = [24, 128], strides = [1, 1]} : vector<96x128xf32> to vector<24x128xf32>
    %cst_347 = arith.constant 5.000000e-01 : f32
    %867 = vector.broadcast %cst_347 : f32 to vector<24x128xf32>
    %868 = arith.mulf %867, %866 : vector<24x128xf32>
    %869 = math.tanh %868 : vector<24x128xf32>
    %cst_348 = arith.constant 5.000000e-01 : f32
    %870 = vector.broadcast %cst_348 : f32 to vector<24x128xf32>
    %871 = arith.mulf %870, %869 : vector<24x128xf32>
    %cst_349 = arith.constant 5.000000e-01 : f32
    %872 = vector.broadcast %cst_349 : f32 to vector<24x128xf32>
    %873 = arith.addf %871, %872 : vector<24x128xf32>
    %874 = vector.extract_strided_slice %857 {offsets = [48, 0], sizes = [24, 128], strides = [1, 1]} : vector<96x128xf32> to vector<24x128xf32>
    %875 = math.tanh %874 : vector<24x128xf32>
    %876 = vector.extract_strided_slice %857 {offsets = [72, 0], sizes = [24, 128], strides = [1, 1]} : vector<96x128xf32> to vector<24x128xf32>
    %cst_350 = arith.constant 5.000000e-01 : f32
    %877 = vector.broadcast %cst_350 : f32 to vector<24x128xf32>
    %878 = arith.mulf %877, %876 : vector<24x128xf32>
    %879 = math.tanh %878 : vector<24x128xf32>
    %cst_351 = arith.constant 5.000000e-01 : f32
    %880 = vector.broadcast %cst_351 : f32 to vector<24x128xf32>
    %881 = arith.mulf %880, %879 : vector<24x128xf32>
    %cst_352 = arith.constant 5.000000e-01 : f32
    %882 = vector.broadcast %cst_352 : f32 to vector<24x128xf32>
    %883 = arith.addf %881, %882 : vector<24x128xf32>
    %884 = arith.mulf %873, %846 : vector<24x128xf32>
    %885 = arith.mulf %865, %875 : vector<24x128xf32>
    %886 = arith.addf %884, %885 : vector<24x128xf32>
    %887 = math.tanh %886 : vector<24x128xf32>
    %888 = arith.mulf %883, %887 : vector<24x128xf32>
    %c22 = arith.constant 22 : index
    %c0_353 = arith.constant 0 : index
    %889 = vector.load %arg1[%c22, %c0_353] : memref<27x128xf32, #tpu.memory_space<vmem>>, vector<1x128xf32>
    %890 = vector.shape_cast %889 : vector<1x128xf32> to vector<1x128xf32>
    %891 = vector.broadcast %890 : vector<1x128xf32> to vector<8x128xf32>
    %892 = arith.select %2, %891, %6 : vector<8x128xi1>, vector<8x128xf32>
    %c0_354 = arith.constant 0 : index
    %c0_355 = arith.constant 0 : index
    %893 = vector.load %arg2[%c0_354, %c0_355] : memref<96x24xf32, #tpu.memory_space<vmem>>, vector<96x24xf32>
    %cst_356 = arith.constant dense<0.000000e+00> : vector<96x128xf32>
    %894 = tpu.matmul %893, %888, %cst_356 {dimension_numbers = #tpu.dot_dimension_numbers<[1], [0], [0], [1], [0, 0, 1, 1], [], []>} : vector<96x24xf32>, vector<24x128xf32>, vector<96x128xf32> -> vector<96x128xf32>
    %c0_357 = arith.constant 0 : index
    %c0_358 = arith.constant 0 : index
    %895 = vector.load %arg3[%c0_357, %c0_358] : memref<96x8xf32, #tpu.memory_space<vmem>>, vector<96x8xf32>
    %cst_359 = arith.constant dense<0.000000e+00> : vector<96x128xf32>
    %896 = tpu.matmul %895, %892, %cst_359 {dimension_numbers = #tpu.dot_dimension_numbers<[1], [0], [0], [1], [0, 0, 1, 1], [], []>} : vector<96x8xf32>, vector<8x128xf32>, vector<96x128xf32> -> vector<96x128xf32>
    %897 = arith.addf %894, %896 : vector<96x128xf32>
    %898 = vector.extract_strided_slice %897 {offsets = [0, 0], sizes = [24, 128], strides = [1, 1]} : vector<96x128xf32> to vector<24x128xf32>
    %cst_360 = arith.constant 5.000000e-01 : f32
    %899 = vector.broadcast %cst_360 : f32 to vector<24x128xf32>
    %900 = arith.mulf %899, %898 : vector<24x128xf32>
    %901 = math.tanh %900 : vector<24x128xf32>
    %cst_361 = arith.constant 5.000000e-01 : f32
    %902 = vector.broadcast %cst_361 : f32 to vector<24x128xf32>
    %903 = arith.mulf %902, %901 : vector<24x128xf32>
    %cst_362 = arith.constant 5.000000e-01 : f32
    %904 = vector.broadcast %cst_362 : f32 to vector<24x128xf32>
    %905 = arith.addf %903, %904 : vector<24x128xf32>
    %906 = vector.extract_strided_slice %897 {offsets = [24, 0], sizes = [24, 128], strides = [1, 1]} : vector<96x128xf32> to vector<24x128xf32>
    %cst_363 = arith.constant 5.000000e-01 : f32
    %907 = vector.broadcast %cst_363 : f32 to vector<24x128xf32>
    %908 = arith.mulf %907, %906 : vector<24x128xf32>
    %909 = math.tanh %908 : vector<24x128xf32>
    %cst_364 = arith.constant 5.000000e-01 : f32
    %910 = vector.broadcast %cst_364 : f32 to vector<24x128xf32>
    %911 = arith.mulf %910, %909 : vector<24x128xf32>
    %cst_365 = arith.constant 5.000000e-01 : f32
    %912 = vector.broadcast %cst_365 : f32 to vector<24x128xf32>
    %913 = arith.addf %911, %912 : vector<24x128xf32>
    %914 = vector.extract_strided_slice %897 {offsets = [48, 0], sizes = [24, 128], strides = [1, 1]} : vector<96x128xf32> to vector<24x128xf32>
    %915 = math.tanh %914 : vector<24x128xf32>
    %916 = vector.extract_strided_slice %897 {offsets = [72, 0], sizes = [24, 128], strides = [1, 1]} : vector<96x128xf32> to vector<24x128xf32>
    %cst_366 = arith.constant 5.000000e-01 : f32
    %917 = vector.broadcast %cst_366 : f32 to vector<24x128xf32>
    %918 = arith.mulf %917, %916 : vector<24x128xf32>
    %919 = math.tanh %918 : vector<24x128xf32>
    %cst_367 = arith.constant 5.000000e-01 : f32
    %920 = vector.broadcast %cst_367 : f32 to vector<24x128xf32>
    %921 = arith.mulf %920, %919 : vector<24x128xf32>
    %cst_368 = arith.constant 5.000000e-01 : f32
    %922 = vector.broadcast %cst_368 : f32 to vector<24x128xf32>
    %923 = arith.addf %921, %922 : vector<24x128xf32>
    %924 = arith.mulf %913, %886 : vector<24x128xf32>
    %925 = arith.mulf %905, %915 : vector<24x128xf32>
    %926 = arith.addf %924, %925 : vector<24x128xf32>
    %927 = math.tanh %926 : vector<24x128xf32>
    %928 = arith.mulf %923, %927 : vector<24x128xf32>
    %c23 = arith.constant 23 : index
    %c0_369 = arith.constant 0 : index
    %929 = vector.load %arg1[%c23, %c0_369] : memref<27x128xf32, #tpu.memory_space<vmem>>, vector<1x128xf32>
    %930 = vector.shape_cast %929 : vector<1x128xf32> to vector<1x128xf32>
    %931 = vector.broadcast %930 : vector<1x128xf32> to vector<8x128xf32>
    %932 = arith.select %2, %931, %6 : vector<8x128xi1>, vector<8x128xf32>
    %c0_370 = arith.constant 0 : index
    %c0_371 = arith.constant 0 : index
    %933 = vector.load %arg2[%c0_370, %c0_371] : memref<96x24xf32, #tpu.memory_space<vmem>>, vector<96x24xf32>
    %cst_372 = arith.constant dense<0.000000e+00> : vector<96x128xf32>
    %934 = tpu.matmul %933, %928, %cst_372 {dimension_numbers = #tpu.dot_dimension_numbers<[1], [0], [0], [1], [0, 0, 1, 1], [], []>} : vector<96x24xf32>, vector<24x128xf32>, vector<96x128xf32> -> vector<96x128xf32>
    %c0_373 = arith.constant 0 : index
    %c0_374 = arith.constant 0 : index
    %935 = vector.load %arg3[%c0_373, %c0_374] : memref<96x8xf32, #tpu.memory_space<vmem>>, vector<96x8xf32>
    %cst_375 = arith.constant dense<0.000000e+00> : vector<96x128xf32>
    %936 = tpu.matmul %935, %932, %cst_375 {dimension_numbers = #tpu.dot_dimension_numbers<[1], [0], [0], [1], [0, 0, 1, 1], [], []>} : vector<96x8xf32>, vector<8x128xf32>, vector<96x128xf32> -> vector<96x128xf32>
    %937 = arith.addf %934, %936 : vector<96x128xf32>
    %938 = vector.extract_strided_slice %937 {offsets = [0, 0], sizes = [24, 128], strides = [1, 1]} : vector<96x128xf32> to vector<24x128xf32>
    %cst_376 = arith.constant 5.000000e-01 : f32
    %939 = vector.broadcast %cst_376 : f32 to vector<24x128xf32>
    %940 = arith.mulf %939, %938 : vector<24x128xf32>
    %941 = math.tanh %940 : vector<24x128xf32>
    %cst_377 = arith.constant 5.000000e-01 : f32
    %942 = vector.broadcast %cst_377 : f32 to vector<24x128xf32>
    %943 = arith.mulf %942, %941 : vector<24x128xf32>
    %cst_378 = arith.constant 5.000000e-01 : f32
    %944 = vector.broadcast %cst_378 : f32 to vector<24x128xf32>
    %945 = arith.addf %943, %944 : vector<24x128xf32>
    %946 = vector.extract_strided_slice %937 {offsets = [24, 0], sizes = [24, 128], strides = [1, 1]} : vector<96x128xf32> to vector<24x128xf32>
    %cst_379 = arith.constant 5.000000e-01 : f32
    %947 = vector.broadcast %cst_379 : f32 to vector<24x128xf32>
    %948 = arith.mulf %947, %946 : vector<24x128xf32>
    %949 = math.tanh %948 : vector<24x128xf32>
    %cst_380 = arith.constant 5.000000e-01 : f32
    %950 = vector.broadcast %cst_380 : f32 to vector<24x128xf32>
    %951 = arith.mulf %950, %949 : vector<24x128xf32>
    %cst_381 = arith.constant 5.000000e-01 : f32
    %952 = vector.broadcast %cst_381 : f32 to vector<24x128xf32>
    %953 = arith.addf %951, %952 : vector<24x128xf32>
    %954 = vector.extract_strided_slice %937 {offsets = [48, 0], sizes = [24, 128], strides = [1, 1]} : vector<96x128xf32> to vector<24x128xf32>
    %955 = math.tanh %954 : vector<24x128xf32>
    %956 = vector.extract_strided_slice %937 {offsets = [72, 0], sizes = [24, 128], strides = [1, 1]} : vector<96x128xf32> to vector<24x128xf32>
    %cst_382 = arith.constant 5.000000e-01 : f32
    %957 = vector.broadcast %cst_382 : f32 to vector<24x128xf32>
    %958 = arith.mulf %957, %956 : vector<24x128xf32>
    %959 = math.tanh %958 : vector<24x128xf32>
    %cst_383 = arith.constant 5.000000e-01 : f32
    %960 = vector.broadcast %cst_383 : f32 to vector<24x128xf32>
    %961 = arith.mulf %960, %959 : vector<24x128xf32>
    %cst_384 = arith.constant 5.000000e-01 : f32
    %962 = vector.broadcast %cst_384 : f32 to vector<24x128xf32>
    %963 = arith.addf %961, %962 : vector<24x128xf32>
    %964 = arith.mulf %953, %926 : vector<24x128xf32>
    %965 = arith.mulf %945, %955 : vector<24x128xf32>
    %966 = arith.addf %964, %965 : vector<24x128xf32>
    %967 = math.tanh %966 : vector<24x128xf32>
    %968 = arith.mulf %963, %967 : vector<24x128xf32>
    %c0_385 = arith.constant 0 : index
    %c0_386 = arith.constant 0 : index
    %969 = vector.load %arg4[%c0_385, %c0_386] : memref<27x128xf32, #tpu.memory_space<vmem>>, vector<24x128xf32>
    tpu.vector_store %arg4[%c0_385, %c0_386], %968 {strides = array<i32>} : memref<27x128xf32, #tpu.memory_space<vmem>>, vector<24x128xf32>,
    %c24 = arith.constant 24 : index
    %c0_387 = arith.constant 0 : index
    %970 = vector.load %arg1[%c24, %c0_387] : memref<27x128xf32, #tpu.memory_space<vmem>>, vector<3x128xf32>
    %c24_388 = arith.constant 24 : index
    %c0_389 = arith.constant 0 : index
    %971 = vector.load %arg4[%c24_388, %c0_389] : memref<27x128xf32, #tpu.memory_space<vmem>>, vector<3x128xf32>
    tpu.vector_store %arg4[%c24_388, %c0_389], %970 {strides = array<i32>} : memref<27x128xf32, #tpu.memory_space<vmem>>, vector<3x128xf32>,
    return
  }
  func.func @transform_0(%arg0: i32) -> (i32, i32) {
    %c0_i32 = arith.constant 0 : i32
    %c0_i32_0 = arith.constant 0 : i32
    return %c0_i32, %arg0 : i32, i32
  }
  func.func @transform_1(%arg0: i32) -> (i32, i32) {
    %c0_i32 = arith.constant 0 : i32
    %c0_i32_0 = arith.constant 0 : i32
    %c0_i32_1 = arith.constant 0 : i32
    return %c0_i32, %c0_i32_0 : i32, i32
  }
  func.func @transform_2(%arg0: i32) -> (i32, i32) {
    %c0_i32 = arith.constant 0 : i32
    %c0_i32_0 = arith.constant 0 : i32
    %c0_i32_1 = arith.constant 0 : i32
    return %c0_i32, %c0_i32_0 : i32, i32
  }
  func.func @transform_3(%arg0: i32) -> (i32, i32) {
    %c0_i32 = arith.constant 0 : i32
    %c0_i32_0 = arith.constant 0 : i32
    return %c0_i32, %arg0 : i32, i32
  }
}

</mosaic_0001>

<bundles_post_ra>
// kernel: tpu_custom_call.1
= control target key start
LH: loop header
LB: loop body
LE: loop exit
PB: predicated region body
PF: predicated region fallthrough
CT: control target
= control target key end

     0   :  { %v15_v0 = vlaneseq  ;;  %vm213_vm0 = vcmask 195584   ;;  %v10769_v3 = vmov 0.0   ;;  %vm51_vm1 = vcmask 64512   ;;  %s13097_s0 = inlined_call_operand.vmem [shape: f32[27,128], index: 0, kind: input, shape index: {}]   ;;  %s13098_s1 = inlined_call_operand.vmem [shape: f32[96,24], index: 1, kind: input, shape index: {}]   ;;  %s13099_s2 = inlined_call_operand.vmem [shape: f32[96,8], index: 2, kind: input, shape index: {}]   ;;  %s13100_s3 = inlined_call_operand.hbm [shape: f32[27,128], index: 3, kind: output, shape index: {}]  }
   0x1   :  { %v10796_v1 = vld [vmem:[%s13098_s1] sm:$0xff]  ;;  %v10801_v2 = vld [vmem:[%s13098_s1 + $0x8] sm:$0xff]  ;;  %8871 = vmatprep.subr.mxu1 %v10769_v3  ;;  %v10813_v5 = vld [vmem:[%s13098_s1 + $0x10] sm:$0xff] }
   0x2   :  { %8873 = vmatprep.mubr.msk.f32.mxu1 %vm213_vm0, %v10796_v1  ;;  %v10808_v4 = vld [vmem:[%s13099_s2] sm:$0xff]  ;;  %v10815_v6 = vshrl.u32 %v15_v0, 7  ;;  %8872 = vmatpush3.msra.mxu1 %v10769_v3  ;;  %v10831_v8 = vld [vmem:[%s13098_s1 + $0x18] sm:$0xff]  ;;  %v10846_v12 = vld [vmem:[%s13099_s2 + $0x8] sm:$0xff] }
   0x3   :  { %8853 = vmatprep.mubr.msk.f32.mxu0 %vm51_vm1, %v10808_v4  ;;  %v7581_v7 = vld [vmem:[%s13097_s0] ss:$0 sm:$0xff]  ;;  %8874 = vmatmul.mubr.msk.f32.vlgmr.msra.gmra.mxu1 %vm213_vm0, %v10801_v2  ;;  %v10853_v13 = vld [vmem:[%s13099_s2 + $0x10] sm:$0xff]  ;;  %v10860_v14 = vld [vmem:[%s13098_s1 + $0x28] sm:$0xff] }
   0x4   :  { %vm17_vm2 = vcmp.eq.s32.totalorder %v10815_v6, 0  ;;  %vm18_vm3 = vcmp.eq.s32.totalorder %v10815_v6, 1  ;;  %8876 = vmatprep.mubr.msk.f32.mxu1 %vm213_vm0, %v10813_v5  ;;  %v10838_v10 = vld [vmem:[%s13098_s1 + $0x20] sm:$0xff] }
   0x5   :  { %v10833_v9 = vsel %vm18_vm3, 1.0, %v10769_v3 }
   0x6   :  { %v26_v11 = vsel %vm17_vm2, %v7581_v7, %v10833_v9 }
   0x7   :  { %8851 = vmatprep.subr.mxu0 %v26_v11  ;;  %8877 = vmatmul.mubr.msk.f32.gmra.mxu1 %vm213_vm0, %v10831_v8 }
   0x8   :  { %8852 = vmatpush3.msra.mxu0 %v26_v11  ;;  %8879 = vmatprep.mubr.msk.f32.mxu1 %vm213_vm0, %v10838_v10 }
   0x9   :  { %8 = vsyncpa [#allocation3], 0  ;;  %8854 = vmatmul.mubr.msk.f32.vlgmr.msra.gmra.mxu0 %vm51_vm1, %v10846_v12  ;;  %v10867_v15 = vld [vmem:[%s13098_s1 + $0x30] sm:$0xff]  ;;  %v10874_v16 = vld [vmem:[%s13099_s2 + $0x18] sm:$0xff] }
   0xa   :  { %8856 = vmatprep.mubr.msk.f32.mxu0 %vm51_vm1, %v10853_v13  ;;  %v10881_v17 = vld [vmem:[%s13099_s2 + $0x20] sm:$0xff]  ;;  %v10888_v18 = vld [vmem:[%s13098_s1 + $0x38] sm:$0xff]  ;;  %v10902_v20 = vld [vmem:[%s13099_s2 + $0x28] sm:$0xff] }
   0xb   :  { %8880 = vmatmul.mubr.msk.f32.gmra.mxu1 %vm213_vm0, %v10860_v14  ;;  %v10895_v19 = vld [vmem:[%s13098_s1 + $0x40] sm:$0xff]  ;;  %v10909_v21 = vld [vmem:[%s13099_s2 + $0x30] sm:$0xff]  ;;  %v10916_v22 = vld [vmem:[%s13098_s1 + $0x48] sm:$0xff] }
   0xc   :  { %8882 = vmatprep.mubr.msk.f32.mxu1 %vm213_vm0, %v10867_v15  ;;  %v10923_v23 = vld [vmem:[%s13098_s1 + $0x50] sm:$0xff]  ;;  %v10930_v24 = vld [vmem:[%s13099_s2 + $0x38] sm:$0xff]  ;;  %v10937_v25 = vld [vmem:[%s13099_s2 + $0x40] sm:$0xff] }
   0xd   :  { %8857 = vmatmul.mubr.msk.f32.gmra.mxu0 %vm51_vm1, %v10874_v16  ;;  %v10944_v26 = vld [vmem:[%s13098_s1 + $0x58] sm:$0xff]  ;;  %v10953_v27 = vld [vmem:[%s13099_s2 + $0x48] sm:$0xff]  ;;  %v10958_v28 = vld [vmem:[%s13099_s2 + $0x50] sm:$0xff] }
   0xe   :  { %8859 = vmatprep.mubr.msk.f32.mxu0 %vm51_vm1, %v10881_v17  ;;  %v10971_v29 = vld [vmem:[%s13099_s2 + $0x58] sm:$0xff]  ;;  %v7606_v30 = vld [vmem:[%s13097_s0 + $0x1] ss:$0 sm:$0xff] }
   0xf   :  { %8883 = vmatmul.mubr.msk.f32.gmra.mxu1 %vm213_vm0, %v10888_v18  ;;  %v434_v31 = vsel %vm17_vm2, %v7606_v30, %v10833_v9 }
  0x10   :  { %8885 = vmatprep.mubr.msk.f32.mxu1 %vm213_vm0, %v10895_v19  ;;  %8891 = vmatprep.subr.mxu0 %v434_v31 }
  0x11   :  { %8860 = vmatmul.mubr.msk.f32.gmra.mxu0 %vm51_vm1, %v10902_v20 }
  0x12   :  { %8862 = vmatprep.mubr.msk.f32.mxu0 %vm51_vm1, %v10909_v21  ;;  %8892 = vmatpush3.msra.mxu0 %v434_v31 }
  0x13   :  { %8886 = vmatmul.mubr.msk.f32.gmra.mxu1 %vm213_vm0, %v10916_v22 }
  0x14   :  { %8888 = vmatprep.mubr.msk.f32.mxu1 %vm213_vm0, %v10923_v23 }
  0x15   :  { %8863 = vmatmul.mubr.msk.f32.gmra.mxu0 %vm51_vm1, %v10930_v24 }
  0x16   :  { %8865 = vmatprep.mubr.msk.f32.mxu0 %vm51_vm1, %v10937_v25 }
  0x17   :  { %8889 = vmatmul.mubr.msk.f32.gmra.mxu1 %vm213_vm0, %v10944_v26 }
  0x18   :  { %8917 = vmatprep.mubr.msk.f32.mxu1 %vm213_vm0, %v10796_v1 }
  0x19   :  { %8866 = vmatmul.mubr.msk.f32.gmra.mxu0 %vm51_vm1, %v10953_v27 }
  0x1a   :  { %8868 = vmatprep.mubr.msk.f32.mxu0 %vm51_vm1, %v10958_v28 }
  0x1d   :  { %8869 = vmatmul.mubr.msk.f32.gmra.mxu0 %vm51_vm1, %v10971_v29 }
  0x1e   :  { %8893 = vmatprep.mubr.msk.f32.mxu0 %vm51_vm1, %v10808_v4 }
  0x21   :  { %8894 = vmatmul.mubr.msk.f32.vlgmr.msra.gmra.mxu0 %vm51_vm1, %v10846_v12 }
  0x22   :  { %8896 = vmatprep.mubr.msk.f32.mxu0 %vm51_vm1, %v10853_v13 }
  0x25   :  { %8897 = vmatmul.mubr.msk.f32.gmra.mxu0 %vm51_vm1, %v10874_v16 }
  0x26   :  { %8899 = vmatprep.mubr.msk.f32.mxu0 %vm51_vm1, %v10881_v17 }
  0x29   :  { %8900 = vmatmul.mubr.msk.f32.gmra.mxu0 %vm51_vm1, %v10902_v20 }
  0x2a   :  { %8902 = vmatprep.mubr.msk.f32.mxu0 %vm51_vm1, %v10909_v21 }
  0x2d   :  { %8903 = vmatmul.mubr.msk.f32.gmra.mxu0 %vm51_vm1, %v10930_v24 }
  0x2e   :  { %8905 = vmatprep.mubr.msk.f32.mxu0 %vm51_vm1, %v10937_v25 }
  0x31   :  { %8906 = vmatmul.mubr.msk.f32.gmra.mxu0 %vm51_vm1, %v10953_v27 }
  0x32   :  { %8908 = vmatprep.mubr.msk.f32.mxu0 %vm51_vm1, %v10958_v28 }
  0x35   :  { %8909 = vmatmul.mubr.msk.f32.gmra.mxu0 %vm51_vm1, %v10971_v29 }
  0x36   :  { %8937 = vmatprep.mubr.msk.f32.mxu0 %vm51_vm1, %v10808_v4 }
  0xc3   :  { %v8875_v32 = vpop.f32.mrf.mxu1 }
  0xc5   :  { %v316_v33 = vpop.f32.mrf.mxu1 }
  0xc7   :  { %v8878_v34 = vpop.f32.mrf.mxu1 }
  0xc9   :  { %v8855_v35 = vpop.f32.mrf.mxu0  ;;  %v326_v36 = vpop.f32.mrf.mxu1 }
  0xca   :  { %v322_v37 = vadd.f32 %v8875_v32, %v8855_v35 }
  0xcb   :  { %v154_v38 = vpop.f32.mrf.mxu0  ;;  %v8881_v39 = vpop.f32.mrf.mxu1 }
  0xcc   :  { %v317_v40 = vadd.f32 %v316_v33, %v154_v38  ;;  %v376_v44 = vmul.f32 0.5, %v322_v37 }
  0xcd   :  { %v8858_v41 = vpop.f32.mrf.mxu0  ;;  %v336_v42 = vpop.f32.mrf.mxu1 }
  0xce   :  { %v332_v43 = vadd.f32 %v8878_v34, %v8858_v41  ;;  %v375_v47 = vmul.f32 0.5, %v317_v40  ;;  %9907 = vtanh.f32 %v376_v44 }
  0xcf   :  { %v164_v45 = vpop.f32.mrf.mxu0  ;;  %v8884_v46 = vpop.f32.mrf.mxu1 }
  0xd0   :  { %v327_v48 = vadd.f32 %v326_v36, %v164_v45  ;;  %v387_v49 = vmul.f32 0.5, %v332_v43  ;;  %9909 = vtanh.f32 %v375_v47 }
  0xd1   :  { %v8861_v50 = vpop.f32.mrf.mxu0  ;;  %v346_v51 = vpop.f32.mrf.mxu1 }
  0xd2   :  { %v342_v52 = vadd.f32 %v8881_v39, %v8861_v50  ;;  %v377_v53 = vmul.f32 0.5, %v327_v48  ;;  %9911 = vtanh.f32 %v387_v49 }
  0xd3   :  { %v174_v54 = vpop.f32.mrf.mxu0  ;;  %v8887_v57 = vpop.f32.mrf.mxu1 }
  0xd4   :  { %v389_v55 = vmul.f32 0.5, %v342_v52  ;;  %v337_v56 = vadd.f32 %v336_v42, %v174_v54 }
  0xd5   :  { %v8864_v58 = vpop.f32.mrf.mxu0  ;;  %v356_v63 = vpop.f32.mrf.mxu1 }
  0xd6   :  { %9913 = vtanh.f32 %v389_v55  ;;  %v388_v59 = vmul.f32 0.5, %v337_v56  ;;  %v352_v60 = vadd.f32 %v8884_v46, %v8864_v58 }
  0xd7   :  { %9915 = vtanh.f32 %v377_v53  ;;  %v184_v61 = vpop.f32.mrf.mxu0  ;;  %v8890_v3 = vpop.f32.mrf.mxu1 }
  0xd8   :  { %9917 = vtanh.f32 %v388_v59  ;;  %v347_v62 = vadd.f32 %v346_v51, %v184_v61 }
  0xd9   :  { %v8867_v0 = vpop.f32.mrf.mxu0  ;;  %9919 = vtanh.f32 %v352_v60  ;;  %v366_v31 = vpop.f32.mrf.mxu1 }
  0xda   :  { %9921 = vtanh.f32 %v347_v62  ;;  %v362_v42 = vadd.f32 %v8887_v57, %v8867_v0 }
  0xdb   :  { %v194_v7 = vpop.f32.mrf.mxu0  ;;  %v9908_v34 = vpop.eup %9907 }
  0xdc   :  { %v357_v11 = vadd.f32 %v356_v63, %v194_v7  ;;  %v382_v41 = vmul.f32 0.5, %v9908_v34  ;;  %v402_v54 = vmul.f32 0.5, %v362_v42 }
  0xdd   :  { %v8870_v30 = vpop.f32.mrf.mxu0  ;;  %v9910_v35 = vpop.eup %9909 }
  0xde   :  { %9923 = vtanh.f32 %v357_v11  ;;  %v372_v32 = vadd.f32 %v8890_v3, %v8870_v30  ;;  %v381_v44 = vmul.f32 0.5, %v9910_v35  ;;  %v385_v52 = vadd.f32 0.5, %v382_v41 }
  0xdf   :  { %v204_v33 = vpop.f32.mrf.mxu0  ;;  %v9912_v37 = vpop.eup %9911 }
  0xe0   :  { %v367_v36 = vadd.f32 %v366_v31, %v204_v33  ;;  %v404_v39 = vmul.f32 0.5, %v372_v32  ;;  %v393_v45 = vmul.f32 0.5, %v9912_v37  ;;  %v384_v55 = vadd.f32 0.5, %v381_v44 }
  0xe2   :  { %v403_v47 = vmul.f32 0.5, %v367_v36  ;;  %9925 = vtanh.f32 %v404_v39  ;;  %v396_v56 = vadd.f32 0.5, %v393_v45 }
  0xe3   :  { %v9914_v38 = vpop.eup %9913 }
  0xe4   :  { %v9916_v40 = vpop.eup %9915  ;;  %v395_v46 = vmul.f32 0.5, %v9914_v38  ;;  %9927 = vtanh.f32 %v403_v47  ;;  %v414_v0 = vmul.f32 0.0, %v396_v56 }
  0xe5   :  { %v9918_v43 = vpop.eup %9917  ;;  %v383_v50 = vmul.f32 0.5, %v9916_v40  ;;  %9929 = vtanh.f32 %v402_v54 }
  0xe6   :  { %v394_v48 = vmul.f32 0.5, %v9918_v43  ;;  %v9920_v49 = vpop.eup %9919  ;;  %v398_v58 = vadd.f32 0.5, %v395_v46  ;;  %v7631_v46 = vld [vmem:[%s13097_s0 + $0x2] ss:$0 sm:$0xff] }
  0xe7   :  { %v9922_v51 = vpop.eup %9921  ;;  %v418_v60 = vmul.f32 %v9920_v49, %v385_v52  ;;  %v386_v57 = vadd.f32 0.5, %v383_v50  ;;  %v744_v47 = vsel %vm17_vm2, %v7631_v46, %v10833_v9 }
  0xe8   :  { %v397_v53 = vadd.f32 0.5, %v394_v48  ;;  %v417_v61 = vmul.f32 %v9922_v51, %v384_v55  ;;  %v416_v3 = vmul.f32 0.0, %v398_v58  ;;  %8935 = vmatprep.subr.mxu0 %v744_v47  ;;  %v8895_v48 = vpop.f32.mrf.mxu0 }
  0xe9   :  { %8936 = vmatpush3.msra.mxu0 %v744_v47 }
  0xea   :  { %v415_v59 = vmul.f32 0.0, %v397_v53  ;;  %v11009_v11 = vadd.f32 %v417_v61, %v414_v0  ;;  %8938 = vmatmul.mubr.msk.f32.vlgmr.msra.gmra.mxu0 %vm51_vm1, %v10846_v12  ;;  %v501_v49 = vpop.f32.mrf.mxu0 }
  0xeb   :  { %v9924_v62 = vpop.eup %9923  ;;  %8940 = vmatprep.mubr.msk.f32.mxu0 %vm51_vm1, %v10853_v13 }
  0xec   :  { %v11007_v63 = vadd.f32 %v418_v60, %v415_v59  ;;  %v419_v7 = vmul.f32 %v9924_v62, %v386_v57  ;;  %v8898_v50 = vpop.f32.mrf.mxu0 }
  0xee   :  { %v11011_v30 = vadd.f32 %v419_v7, %v416_v3  ;;  %9931 = vtanh.f32 %v11007_v63  ;;  %8941 = vmatmul.mubr.msk.f32.gmra.mxu0 %vm51_vm1, %v10874_v16  ;;  %v511_v51 = vpop.f32.mrf.mxu0 }
  0xef   :  { %v9926_v31 = vpop.eup %9925  ;;  %8943 = vmatprep.mubr.msk.f32.mxu0 %vm51_vm1, %v10881_v17 }
  0xf0   :  { %9933 = vtanh.f32 %v11011_v30  ;;  %v410_v33 = vmul.f32 0.5, %v9926_v31  ;;  %v8901_v52 = vpop.f32.mrf.mxu0 }
  0xf1   :  { %9935 = vtanh.f32 %v11009_v11  ;;  %v9928_v32 = vpop.eup %9927 }
  0xf2   :  { %v409_v34 = vmul.f32 0.5, %v9928_v32  ;;  %v9930_v35 = vpop.eup %9929  ;;  %v413_v36 = vadd.f32 0.5, %v410_v33  ;;  %8944 = vmatmul.mubr.msk.f32.gmra.mxu0 %vm51_vm1, %v10902_v20  ;;  %v521_v53 = vpop.f32.mrf.mxu0 }
  0xf3   :  { %v408_v38 = vmul.f32 0.5, %v9930_v35  ;;  %8946 = vmatprep.mubr.msk.f32.mxu0 %vm51_vm1, %v10909_v21 }
  0xf4   :  { %v412_v39 = vadd.f32 0.5, %v409_v34  ;;  %v8904_v59 = vpop.f32.mrf.mxu0 }
  0xf5   :  { %v411_v43 = vadd.f32 0.5, %v408_v38 }
  0xf6   :  { %8947 = vmatmul.mubr.msk.f32.gmra.mxu0 %vm51_vm1, %v10930_v24  ;;  %v531_v7 = vpop.f32.mrf.mxu0 }
  0xf7   :  { %8949 = vmatprep.mubr.msk.f32.mxu0 %vm51_vm1, %v10937_v25 }
  0xf8   :  { %v8907_v38 = vpop.f32.mrf.mxu0 }
  0xfa   :  { %8950 = vmatmul.mubr.msk.f32.gmra.mxu0 %vm51_vm1, %v10953_v27 }
  0xfb   :  { %v9932_v37 = vpop.eup %9931  ;;  %8952 = vmatprep.mubr.msk.f32.mxu0 %vm51_vm1, %v10958_v28 }
  0xfc   :  { %v427_v44 = vmul.f32 %v9932_v37, %v412_v39 }
  0xfd   :  { %v9934_v40 = vpop.eup %9933 }
  0xfe   :  { %v428_v41 = vmul.f32 %v9934_v40, %v413_v36  ;;  %v9936_v42 = vpop.eup %9935  ;;  %8953 = vmatmul.mubr.msk.f32.gmra.mxu0 %vm51_vm1, %v10971_v29 }
  0xff   :  { %v426_v45 = vmul.f32 %v9936_v42, %v411_v43  ;;  %8981 = vmatprep.mubr.msk.f32.mxu0 %vm51_vm1, %v10808_v4 }
 0x100   :  { %8911 = vmatprep.subr.mxu1 %v428_v41 }
 0x101   :  { %8912 = vmatpush3.msra.mxu1 %v428_v41 }
 0x102   :  { %8913 = vmatprep.subr.mxu1 %v427_v44 }
 0x103   :  { %8914 = vmatpush3.msra.mxu1 %v427_v44  ;;  %v541_v44 = vpop.f32.mrf.mxu0 }
 0x104   :  { %8915 = vmatprep.subr.mxu1 %v426_v45 }
 0x105   :  { %8916 = vmatpush3.msra.mxu1 %v426_v45  ;;  %v8910_v46 = vpop.f32.mrf.mxu0 }
 0x106   :  { %8918 = vmatmul.mubr.msk.f32.vlgmr.msra.gmra.mxu1 %vm213_vm0, %v10801_v2 }
 0x107   :  { %8920 = vmatprep.mubr.msk.f32.mxu1 %vm213_vm0, %v10813_v5 }
 0x10a   :  { %8921 = vmatmul.mubr.msk.f32.gmra.mxu1 %vm213_vm0, %v10831_v8 }
 0x10b   :  { %8923 = vmatprep.mubr.msk.f32.mxu1 %vm213_vm0, %v10838_v10 }
 0x10e   :  { %8924 = vmatmul.mubr.msk.f32.gmra.mxu1 %vm213_vm0, %v10860_v14 }
 0x10f   :  { %8926 = vmatprep.mubr.msk.f32.mxu1 %vm213_vm0, %v10867_v15 }
 0x112   :  { %8927 = vmatmul.mubr.msk.f32.gmra.mxu1 %vm213_vm0, %v10888_v18 }
 0x113   :  { %8929 = vmatprep.mubr.msk.f32.mxu1 %vm213_vm0, %v10895_v19 }
 0x116   :  { %8930 = vmatmul.mubr.msk.f32.gmra.mxu1 %vm213_vm0, %v10916_v22 }
 0x117   :  { %8932 = vmatprep.mubr.msk.f32.mxu1 %vm213_vm0, %v10923_v23 }
 0x11a   :  { %8933 = vmatmul.mubr.msk.f32.gmra.mxu1 %vm213_vm0, %v10944_v26 }
 0x11b   :  { %8961 = vmatprep.mubr.msk.f32.mxu1 %vm213_vm0, %v10796_v1 }
 0x1c6   :  { %v8919_v54 = vpop.f32.mrf.mxu1 }
 0x1c7   :  { %v632_v55 = vadd.f32 %v8919_v54, %v8895_v48 }
 0x1c8   :  { %v626_v56 = vpop.f32.mrf.mxu1 }
 0x1c9   :  { %v627_v58 = vadd.f32 %v626_v56, %v501_v49  ;;  %v686_v61 = vmul.f32 0.5, %v632_v55 }
 0x1ca   :  { %v8922_v60 = vpop.f32.mrf.mxu1 }
 0x1cb   :  { %v642_v57 = vadd.f32 %v8922_v60, %v8898_v50  ;;  %v685_v0 = vmul.f32 0.5, %v627_v58  ;;  %9937 = vtanh.f32 %v686_v61  ;;  %v551_v50 = vpop.f32.mrf.mxu0 }
 0x1cc   :  { %v636_v62 = vpop.f32.mrf.mxu1 }
 0x1cd   :  { %v637_v3 = vadd.f32 %v636_v62, %v511_v51  ;;  %v697_v31 = vmul.f32 0.5, %v642_v57  ;;  %9939 = vtanh.f32 %v685_v0 }
 0x1ce   :  { %v8925_v32 = vpop.f32.mrf.mxu1 }
 0x1cf   :  { %v652_v33 = vadd.f32 %v8925_v32, %v8901_v52  ;;  %v687_v34 = vmul.f32 0.5, %v637_v3  ;;  %9941 = vtanh.f32 %v697_v31 }
 0x1d0   :  { %v646_v35 = vpop.f32.mrf.mxu1 }
 0x1d1   :  { %v699_v36 = vmul.f32 0.5, %v652_v33  ;;  %v647_v37 = vadd.f32 %v646_v35, %v521_v53 }
 0x1d2   :  { %v8928_v39 = vpop.f32.mrf.mxu1 }
 0x1d3   :  { %9943 = vtanh.f32 %v699_v36  ;;  %v698_v40 = vmul.f32 0.5, %v647_v37  ;;  %v662_v41 = vadd.f32 %v8928_v39, %v8904_v59 }
 0x1d4   :  { %9945 = vtanh.f32 %v687_v34  ;;  %v656_v42 = vpop.f32.mrf.mxu1 }
 0x1d5   :  { %9947 = vtanh.f32 %v698_v40  ;;  %v657_v43 = vadd.f32 %v656_v42, %v531_v7 }
 0x1d6   :  { %v8931_v45 = vpop.f32.mrf.mxu1  ;;  %9949 = vtanh.f32 %v662_v41 }
 0x1d7   :  { %9951 = vtanh.f32 %v657_v43  ;;  %v672_v61 = vadd.f32 %v8931_v45, %v8907_v38 }
 0x1d8   :  { %v666_v47 = vpop.f32.mrf.mxu1  ;;  %v9938_v53 = vpop.eup %9937 }
 0x1d9   :  { %v667_v48 = vadd.f32 %v666_v47, %v541_v44  ;;  %v692_v57 = vmul.f32 0.5, %v9938_v53  ;;  %v712_v39 = vmul.f32 0.5, %v672_v61 }
 0x1da   :  { %v8934_v49 = vpop.f32.mrf.mxu1  ;;  %v9940_v54 = vpop.eup %9939 }
 0x1db   :  { %9953 = vtanh.f32 %v667_v48  ;;  %v682_v51 = vadd.f32 %v8934_v49, %v8910_v46  ;;  %v691_v0 = vmul.f32 0.5, %v9940_v54  ;;  %v695_v36 = vadd.f32 0.5, %v692_v57 }
 0x1dc   :  { %v676_v52 = vpop.f32.mrf.mxu1  ;;  %v9942_v56 = vpop.eup %9941 }
 0x1dd   :  { %v677_v55 = vadd.f32 %v676_v52, %v551_v50  ;;  %v714_v59 = vmul.f32 0.5, %v682_v51  ;;  %v703_v3 = vmul.f32 0.5, %v9942_v56  ;;  %v694_v40 = vadd.f32 0.5, %v691_v0 }
 0x1df   :  { %v713_v31 = vmul.f32 0.5, %v677_v55  ;;  %9955 = vtanh.f32 %v714_v59  ;;  %v706_v41 = vadd.f32 0.5, %v703_v3 }
 0x1e0   :  { %v9944_v58 = vpop.eup %9943 }
 0x1e1   :  { %v9946_v60 = vpop.eup %9945  ;;  %v705_v7 = vmul.f32 0.5, %v9944_v58  ;;  %9957 = vtanh.f32 %v713_v31  ;;  %v724_v48 = vmul.f32 %v706_v41, %v11009_v11 }
 0x1e2   :  { %v9948_v62 = vpop.eup %9947  ;;  %v693_v34 = vmul.f32 0.5, %v9946_v60  ;;  %9959 = vtanh.f32 %v712_v39 }
 0x1e3   :  { %v704_v32 = vmul.f32 0.5, %v9948_v62  ;;  %v9950_v33 = vpop.eup %9949  ;;  %v708_v42 = vadd.f32 0.5, %v705_v7  ;;  %v7656_v7 = vld [vmem:[%s13097_s0 + $0x3] ss:$0 sm:$0xff] }
 0x1e4   :  { %v9952_v35 = vpop.eup %9951  ;;  %v728_v38 = vmul.f32 %v9950_v33, %v695_v36  ;;  %v696_v44 = vadd.f32 0.5, %v693_v34  ;;  %v1054_v31 = vsel %vm17_vm2, %v7656_v7, %v10833_v9 }
 0x1e5   :  { %v707_v37 = vadd.f32 0.5, %v704_v32  ;;  %v727_v45 = vmul.f32 %v9952_v35, %v694_v40  ;;  %v726_v49 = vmul.f32 %v708_v42, %v11011_v30  ;;  %8979 = vmatprep.subr.mxu0 %v1054_v31  ;;  %v8939_v32 = vpop.f32.mrf.mxu0 }
 0x1e6   :  { %8980 = vmatpush3.msra.mxu0 %v1054_v31 }
 0x1e7   :  { %v725_v43 = vmul.f32 %v707_v37, %v11007_v63  ;;  %v11075_v51 = vadd.f32 %v727_v45, %v724_v48  ;;  %8982 = vmatmul.mubr.msk.f32.vlgmr.msra.gmra.mxu0 %vm51_vm1, %v10846_v12  ;;  %v811_v33 = vpop.f32.mrf.mxu0 }
 0x1e8   :  { %v9954_v46 = vpop.eup %9953  ;;  %8984 = vmatprep.mubr.msk.f32.mxu0 %vm51_vm1, %v10853_v13 }
 0x1e9   :  { %v11071_v47 = vadd.f32 %v728_v38, %v725_v43  ;;  %v729_v50 = vmul.f32 %v9954_v46, %v696_v44  ;;  %v8942_v34 = vpop.f32.mrf.mxu0 }
 0x1eb   :  { %v11077_v52 = vadd.f32 %v729_v50, %v726_v49  ;;  %9961 = vtanh.f32 %v11071_v47  ;;  %8985 = vmatmul.mubr.msk.f32.gmra.mxu0 %vm51_vm1, %v10874_v16  ;;  %v821_v35 = vpop.f32.mrf.mxu0 }
 0x1ec   :  { %v9956_v63 = vpop.eup %9955  ;;  %8987 = vmatprep.mubr.msk.f32.mxu0 %vm51_vm1, %v10881_v17 }
 0x1ed   :  { %9963 = vtanh.f32 %v11077_v52  ;;  %v720_v54 = vmul.f32 0.5, %v9956_v63  ;;  %v8945_v36 = vpop.f32.mrf.mxu0 }
 0x1ee   :  { %9965 = vtanh.f32 %v11075_v51  ;;  %v9958_v53 = vpop.eup %9957 }
 0x1ef   :  { %v719_v55 = vmul.f32 0.5, %v9958_v53  ;;  %v9960_v56 = vpop.eup %9959  ;;  %v723_v11 = vadd.f32 0.5, %v720_v54  ;;  %8988 = vmatmul.mubr.msk.f32.gmra.mxu0 %vm51_vm1, %v10902_v20  ;;  %v831_v37 = vpop.f32.mrf.mxu0 }
 0x1f0   :  { %v718_v30 = vmul.f32 0.5, %v9960_v56  ;;  %8990 = vmatprep.mubr.msk.f32.mxu0 %vm51_vm1, %v10909_v21 }
 0x1f1   :  { %v722_v59 = vadd.f32 0.5, %v719_v55  ;;  %v8948_v43 = vpop.f32.mrf.mxu0 }
 0x1f2   :  { %v721_v62 = vadd.f32 0.5, %v718_v30 }
 0x1f3   :  { %8991 = vmatmul.mubr.msk.f32.gmra.mxu0 %vm51_vm1, %v10930_v24  ;;  %v841_v50 = vpop.f32.mrf.mxu0 }
 0x1f4   :  { %8993 = vmatprep.mubr.msk.f32.mxu0 %vm51_vm1, %v10937_v25 }
 0x1f5   :  { %v8951_v30 = vpop.f32.mrf.mxu0 }
 0x1f7   :  { %8994 = vmatmul.mubr.msk.f32.gmra.mxu0 %vm51_vm1, %v10953_v27 }
 0x1f8   :  { %v9962_v58 = vpop.eup %9961  ;;  %8996 = vmatprep.mubr.msk.f32.mxu0 %vm51_vm1, %v10958_v28 }
 0x1f9   :  { %v737_v0 = vmul.f32 %v9962_v58, %v722_v59 }
 0x1fa   :  { %v9964_v60 = vpop.eup %9963 }
 0x1fb   :  { %v738_v57 = vmul.f32 %v9964_v60, %v723_v11  ;;  %v9966_v61 = vpop.eup %9965  ;;  %8997 = vmatmul.mubr.msk.f32.gmra.mxu0 %vm51_vm1, %v10971_v29 }
 0x1fc   :  { %v736_v3 = vmul.f32 %v9966_v61, %v721_v62  ;;  %9025 = vmatprep.mubr.msk.f32.mxu0 %vm51_vm1, %v10808_v4 }
 0x1fd   :  { %8955 = vmatprep.subr.mxu1 %v738_v57 }
 0x1fe   :  { %8956 = vmatpush3.msra.mxu1 %v738_v57 }
 0x1ff   :  { %8957 = vmatprep.subr.mxu1 %v737_v0 }
 0x200   :  { %8958 = vmatpush3.msra.mxu1 %v737_v0  ;;  %v851_v0 = vpop.f32.mrf.mxu0 }
 0x201   :  { %8959 = vmatprep.subr.mxu1 %v736_v3 }
 0x202   :  { %8960 = vmatpush3.msra.mxu1 %v736_v3  ;;  %v8954_v7 = vpop.f32.mrf.mxu0 }
 0x203   :  { %8962 = vmatmul.mubr.msk.f32.vlgmr.msra.gmra.mxu1 %vm213_vm0, %v10801_v2 }
 0x204   :  { %8964 = vmatprep.mubr.msk.f32.mxu1 %vm213_vm0, %v10813_v5 }
 0x207   :  { %8965 = vmatmul.mubr.msk.f32.gmra.mxu1 %vm213_vm0, %v10831_v8 }
 0x208   :  { %8967 = vmatprep.mubr.msk.f32.mxu1 %vm213_vm0, %v10838_v10 }
 0x20b   :  { %8968 = vmatmul.mubr.msk.f32.gmra.mxu1 %vm213_vm0, %v10860_v14 }
 0x20c   :  { %8970 = vmatprep.mubr.msk.f32.mxu1 %vm213_vm0, %v10867_v15 }
 0x20f   :  { %8971 = vmatmul.mubr.msk.f32.gmra.mxu1 %vm213_vm0, %v10888_v18 }
 0x210   :  { %8973 = vmatprep.mubr.msk.f32.mxu1 %vm213_vm0, %v10895_v19 }
 0x213   :  { %8974 = vmatmul.mubr.msk.f32.gmra.mxu1 %vm213_vm0, %v10916_v22 }
 0x214   :  { %8976 = vmatprep.mubr.msk.f32.mxu1 %vm213_vm0, %v10923_v23 }
 0x217   :  { %8977 = vmatmul.mubr.msk.f32.gmra.mxu1 %vm213_vm0, %v10944_v26 }
 0x218   :  { %9005 = vmatprep.mubr.msk.f32.mxu1 %vm213_vm0, %v10796_v1 }
 0x2c3   :  { %v8963_v39 = vpop.f32.mrf.mxu1 }
 0x2c4   :  { %v942_v40 = vadd.f32 %v8963_v39, %v8939_v32 }
 0x2c5   :  { %v936_v41 = vpop.f32.mrf.mxu1 }
 0x2c6   :  { %v937_v42 = vadd.f32 %v936_v41, %v811_v33  ;;  %v996_v45 = vmul.f32 0.5, %v942_v40 }
 0x2c7   :  { %v8966_v38 = vpop.f32.mrf.mxu1 }
 0x2c8   :  { %v952_v44 = vadd.f32 %v8966_v38, %v8942_v34  ;;  %v995_v48 = vmul.f32 0.5, %v937_v42  ;;  %9967 = vtanh.f32 %v996_v45  ;;  %v861_v34 = vpop.f32.mrf.mxu0 }
 0x2c9   :  { %v946_v46 = vpop.f32.mrf.mxu1 }
 0x2ca   :  { %v947_v49 = vadd.f32 %v946_v46, %v821_v35  ;;  %v1007_v63 = vmul.f32 0.5, %v952_v44  ;;  %9969 = vtanh.f32 %v995_v48 }
 0x2cb   :  { %v8969_v53 = vpop.f32.mrf.mxu1 }
 0x2cc   :  { %v962_v54 = vadd.f32 %v8969_v53, %v8945_v36  ;;  %v997_v55 = vmul.f32 0.5, %v947_v49  ;;  %9971 = vtanh.f32 %v1007_v63 }
 0x2cd   :  { %v956_v56 = vpop.f32.mrf.mxu1 }
 0x2ce   :  { %v1009_v11 = vmul.f32 0.5, %v962_v54  ;;  %v957_v58 = vadd.f32 %v956_v56, %v831_v37 }
 0x2cf   :  { %v8972_v59 = vpop.f32.mrf.mxu1 }
 0x2d0   :  { %9973 = vtanh.f32 %v1009_v11  ;;  %v1008_v60 = vmul.f32 0.5, %v957_v58  ;;  %v972_v57 = vadd.f32 %v8972_v59, %v8948_v43 }
 0x2d1   :  { %9975 = vtanh.f32 %v997_v55  ;;  %v966_v61 = vpop.f32.mrf.mxu1 }
 0x2d2   :  { %9977 = vtanh.f32 %v1008_v60  ;;  %v967_v62 = vadd.f32 %v966_v61, %v841_v50 }
 0x2d3   :  { %v8975_v3 = vpop.f32.mrf.mxu1  ;;  %9979 = vtanh.f32 %v972_v57 }
 0x2d4   :  { %9981 = vtanh.f32 %v967_v62  ;;  %v982_v45 = vadd.f32 %v8975_v3, %v8951_v30 }
 0x2d5   :  { %v976_v31 = vpop.f32.mrf.mxu1  ;;  %v9968_v37 = vpop.eup %9967 }
 0x2d6   :  { %v977_v32 = vadd.f32 %v976_v31, %v851_v0  ;;  %v1002_v44 = vmul.f32 0.5, %v9968_v37  ;;  %v1022_v59 = vmul.f32 0.5, %v982_v45 }
 0x2d7   :  { %v8978_v33 = vpop.f32.mrf.mxu1  ;;  %v9970_v39 = vpop.eup %9969 }
 0x2d8   :  { %9983 = vtanh.f32 %v977_v32  ;;  %v992_v35 = vadd.f32 %v8978_v33, %v8954_v7  ;;  %v1001_v48 = vmul.f32 0.5, %v9970_v39  ;;  %v1005_v11 = vadd.f32 0.5, %v1002_v44 }
 0x2d9   :  { %v986_v36 = vpop.f32.mrf.mxu1  ;;  %v9972_v41 = vpop.eup %9971 }
 0x2da   :  { %v987_v40 = vadd.f32 %v986_v36, %v861_v34  ;;  %v1024_v43 = vmul.f32 0.5, %v992_v35  ;;  %v1013_v49 = vmul.f32 0.5, %v9972_v41  ;;  %v1004_v60 = vadd.f32 0.5, %v1001_v48 }
 0x2dc   :  { %v1023_v63 = vmul.f32 0.5, %v987_v40  ;;  %9985 = vtanh.f32 %v1024_v43  ;;  %v1016_v57 = vadd.f32 0.5, %v1013_v49 }
 0x2dd   :  { %v9974_v42 = vpop.eup %9973 }
 0x2de   :  { %v9976_v38 = vpop.eup %9975  ;;  %v1015_v50 = vmul.f32 0.5, %v9974_v42  ;;  %9987 = vtanh.f32 %v1023_v63  ;;  %v1034_v32 = vmul.f32 %v1016_v57, %v11075_v51 }
 0x2df   :  { %v9978_v46 = vpop.eup %9977  ;;  %v1003_v55 = vmul.f32 0.5, %v9976_v38  ;;  %9989 = vtanh.f32 %v1022_v59 }
 0x2e0   :  { %v1014_v53 = vmul.f32 0.5, %v9978_v46  ;;  %v9980_v54 = vpop.eup %9979  ;;  %v1018_v61 = vadd.f32 0.5, %v1015_v50 }
 0x2e1   :  { %v9982_v56 = vpop.eup %9981  ;;  %v1038_v30 = vmul.f32 %v9980_v54, %v1005_v11  ;;  %v1006_v0 = vadd.f32 0.5, %v1003_v55 }
 0x2e2   :  { %v1017_v58 = vadd.f32 0.5, %v1014_v53  ;;  %v1037_v3 = vmul.f32 %v9982_v56, %v1004_v60  ;;  %v1036_v33 = vmul.f32 %v1018_v61, %v11077_v52 }
 0x2e4   :  { %v1035_v62 = vmul.f32 %v1017_v58, %v11071_v47  ;;  %v11141_v35 = vadd.f32 %v1037_v3, %v1034_v32 }
 0x2e5   :  { %v9984_v7 = vpop.eup %9983 }
 0x2e6   :  { %v11137_v31 = vadd.f32 %v1038_v30, %v1035_v62  ;;  %v1039_v34 = vmul.f32 %v9984_v7, %v1006_v0 }
 0x2e8   :  { %v11143_v36 = vadd.f32 %v1039_v34, %v1036_v33  ;;  %9991 = vtanh.f32 %v11137_v31 }
 0x2e9   :  { %v9986_v47 = vpop.eup %9985 }
 0x2ea   :  { %9993 = vtanh.f32 %v11143_v36  ;;  %v1030_v39 = vmul.f32 0.5, %v9986_v47 }
 0x2eb   :  { %9995 = vtanh.f32 %v11141_v35  ;;  %v9988_v37 = vpop.eup %9987 }
 0x2ec   :  { %v1029_v40 = vmul.f32 0.5, %v9988_v37  ;;  %v9990_v41 = vpop.eup %9989  ;;  %v1033_v51 = vadd.f32 0.5, %v1030_v39 }
 0x2ed   :  { %v1028_v52 = vmul.f32 0.5, %v9990_v41 }
 0x2ee   :  { %v1032_v43 = vadd.f32 0.5, %v1029_v40 }
 0x2ef   :  { %v1031_v46 = vadd.f32 0.5, %v1028_v52 }
 0x2f5   :  { %v9992_v42 = vpop.eup %9991 }
 0x2f6   :  { %v1047_v48 = vmul.f32 %v9992_v42, %v1032_v43 }
 0x2f7   :  { %v9994_v38 = vpop.eup %9993 }
 0x2f8   :  { %v1048_v44 = vmul.f32 %v9994_v38, %v1033_v51  ;;  %v9996_v45 = vpop.eup %9995 }
 0x2f9   :  { %v1046_v49 = vmul.f32 %v9996_v45, %v1031_v46 }
 0x2fa   :  { %8999 = vmatprep.subr.mxu1 %v1048_v44 }
 0x2fb   :  { %9000 = vmatpush3.msra.mxu1 %v1048_v44 }
 0x2fc   :  { %9001 = vmatprep.subr.mxu1 %v1047_v48 }
 0x2fd   :  { %9002 = vmatpush3.msra.mxu1 %v1047_v48 }
 0x2fe   :  { %9003 = vmatprep.subr.mxu1 %v1046_v49 }
 0x2ff   :  { %9004 = vmatpush3.msra.mxu1 %v1046_v49 }
 0x300   :  { %9006 = vmatmul.mubr.msk.f32.vlgmr.msra.gmra.mxu1 %vm213_vm0, %v10801_v2  ;;  %v7681_v2 = vld [vmem:[%s13097_s0 + $0x4] ss:$0 sm:$0xff] }
 0x301   :  { %9008 = vmatprep.mubr.msk.f32.mxu1 %vm213_vm0, %v10813_v5  ;;  %v1364_v5 = vsel %vm17_vm2, %v7681_v2, %v10833_v9 }
 0x302   :  { %9023 = vmatprep.subr.mxu0 %v1364_v5 }
 0x303   :  { %9024 = vmatpush3.msra.mxu0 %v1364_v5 }
 0x304   :  { %9009 = vmatmul.mubr.msk.f32.gmra.mxu1 %vm213_vm0, %v10831_v8  ;;  %9026 = vmatmul.mubr.msk.f32.vlgmr.msra.gmra.mxu0 %vm51_vm1, %v10846_v12 }
 0x305   :  { %9011 = vmatprep.mubr.msk.f32.mxu1 %vm213_vm0, %v10838_v10  ;;  %9028 = vmatprep.mubr.msk.f32.mxu0 %vm51_vm1, %v10853_v13 }
 0x308   :  { %9012 = vmatmul.mubr.msk.f32.gmra.mxu1 %vm213_vm0, %v10860_v14  ;;  %9029 = vmatmul.mubr.msk.f32.gmra.mxu0 %vm51_vm1, %v10874_v16 }
 0x309   :  { %9014 = vmatprep.mubr.msk.f32.mxu1 %vm213_vm0, %v10867_v15  ;;  %9031 = vmatprep.mubr.msk.f32.mxu0 %vm51_vm1, %v10881_v17 }
 0x30c   :  { %9015 = vmatmul.mubr.msk.f32.gmra.mxu1 %vm213_vm0, %v10888_v18  ;;  %9032 = vmatmul.mubr.msk.f32.gmra.mxu0 %vm51_vm1, %v10902_v20 }
 0x30d   :  { %9017 = vmatprep.mubr.msk.f32.mxu1 %vm213_vm0, %v10895_v19  ;;  %9034 = vmatprep.mubr.msk.f32.mxu0 %vm51_vm1, %v10909_v21 }
 0x310   :  { %9018 = vmatmul.mubr.msk.f32.gmra.mxu1 %vm213_vm0, %v10916_v22  ;;  %9035 = vmatmul.mubr.msk.f32.gmra.mxu0 %vm51_vm1, %v10930_v24 }
 0x311   :  { %9020 = vmatprep.mubr.msk.f32.mxu1 %vm213_vm0, %v10923_v23  ;;  %9037 = vmatprep.mubr.msk.f32.mxu0 %vm51_vm1, %v10937_v25 }
 0x314   :  { %9021 = vmatmul.mubr.msk.f32.gmra.mxu1 %vm213_vm0, %v10944_v26  ;;  %9038 = vmatmul.mubr.msk.f32.gmra.mxu0 %vm51_vm1, %v10953_v27 }
 0x315   :  { %9049 = vmatprep.mubr.msk.f32.mxu1 %vm213_vm0, %v10796_v1  ;;  %9040 = vmatprep.mubr.msk.f32.mxu0 %vm51_vm1, %v10958_v28  ;;  %v8983_v1 = vpop.f32.mrf.mxu0 }
 0x317   :  { %v1121_v8 = vpop.f32.mrf.mxu0 }
 0x318   :  { %9041 = vmatmul.mubr.msk.f32.gmra.mxu0 %vm51_vm1, %v10971_v29 }
 0x319   :  { %9069 = vmatprep.mubr.msk.f32.mxu0 %vm51_vm1, %v10808_v4  ;;  %v8986_v10 = vpop.f32.mrf.mxu0 }
 0x31b   :  { %v1131_v12 = vpop.f32.mrf.mxu0 }
 0x31d   :  { %v8989_v13 = vpop.f32.mrf.mxu0 }
 0x31f   :  { %v1141_v14 = vpop.f32.mrf.mxu0 }
 0x321   :  { %v8992_v19 = vpop.f32.mrf.mxu0 }
 0x323   :  { %v1151_v26 = vpop.f32.mrf.mxu0 }
 0x325   :  { %v8995_v54 = vpop.f32.mrf.mxu0 }
 0x327   :  { %v1161_v60 = vpop.f32.mrf.mxu0 }
 0x329   :  { %v8998_v61 = vpop.f32.mrf.mxu0 }
 0x32b   :  { %v1171_v3 = vpop.f32.mrf.mxu0 }
 0x3c0   :  { %v9007_v15 = vpop.f32.mrf.mxu1 }
 0x3c1   :  { %v1252_v16 = vadd.f32 %v9007_v15, %v8983_v1 }
 0x3c2   :  { %v1246_v17 = vpop.f32.mrf.mxu1 }
 0x3c3   :  { %v1247_v18 = vadd.f32 %v1246_v17, %v1121_v8  ;;  %v1306_v22 = vmul.f32 0.5, %v1252_v16 }
 0x3c4   :  { %v9010_v20 = vpop.f32.mrf.mxu1 }
 0x3c5   :  { %v1262_v21 = vadd.f32 %v9010_v20, %v8986_v10  ;;  %v1305_v24 = vmul.f32 0.5, %v1247_v18  ;;  %9997 = vtanh.f32 %v1306_v22 }
 0x3c6   :  { %v1256_v23 = vpop.f32.mrf.mxu1 }
 0x3c7   :  { %v1257_v25 = vadd.f32 %v1256_v23, %v1131_v12  ;;  %v1317_v27 = vmul.f32 0.5, %v1262_v21  ;;  %9999 = vtanh.f32 %v1305_v24 }
 0x3c8   :  { %v9013_v4 = vpop.f32.mrf.mxu1 }
 0x3c9   :  { %v1272_v28 = vadd.f32 %v9013_v4, %v8989_v13  ;;  %v1307_v29 = vmul.f32 0.5, %v1257_v25  ;;  %10001 = vtanh.f32 %v1317_v27 }
 0x3ca   :  { %v1266_v50 = vpop.f32.mrf.mxu1 }
 0x3cb   :  { %v1319_v63 = vmul.f32 0.5, %v1272_v28  ;;  %v1267_v53 = vadd.f32 %v1266_v50, %v1141_v14 }
 0x3cc   :  { %v9016_v55 = vpop.f32.mrf.mxu1 }
 0x3cd   :  { %10003 = vtanh.f32 %v1319_v63  ;;  %v1318_v56 = vmul.f32 0.5, %v1267_v53  ;;  %v1282_v11 = vadd.f32 %v9016_v55, %v8992_v19 }
 0x3ce   :  { %10005 = vtanh.f32 %v1307_v29  ;;  %v1276_v58 = vpop.f32.mrf.mxu1 }
 0x3cf   :  { %10007 = vtanh.f32 %v1318_v56  ;;  %v1277_v59 = vadd.f32 %v1276_v58, %v1151_v26  ;;  %v11224_v58 = vld [vmem:[%s13098_s1 + $0x10] sm:$0xff] }
 0x3d0   :  { %v9019_v57 = vpop.f32.mrf.mxu1  ;;  %10009 = vtanh.f32 %v1282_v11  ;;  %v11217_v11 = vld [vmem:[%s13098_s1 + $0x8] sm:$0xff] }
 0x3d1   :  { %10011 = vtanh.f32 %v1277_v59  ;;  %v1292_v42 = vadd.f32 %v9019_v57, %v8995_v54  ;;  %v11231_v59 = vld [vmem:[%s13098_s1 + $0x18] sm:$0xff]  ;;  %v11245_v57 = vld [vmem:[%s13098_s1 + $0x28] sm:$0xff] }
 0x3d2   :  { %v1286_v62 = vpop.f32.mrf.mxu1  ;;  %v9998_v33 = vpop.eup %9997 }
 0x3d3   :  { %v1287_v30 = vadd.f32 %v1286_v62, %v1161_v60  ;;  %v1312_v51 = vmul.f32 0.5, %v9998_v33  ;;  %v1332_v8 = vmul.f32 0.5, %v1292_v42  ;;  %v11238_v60 = vld [vmem:[%s13098_s1 + $0x20] sm:$0xff]  ;;  %v11259_v62 = vld [vmem:[%s13098_s1 + $0x38] sm:$0xff] }
 0x3d4   :  { %v9022_v0 = vpop.f32.mrf.mxu1  ;;  %v10000_v34 = vpop.eup %9999  ;;  %v7706_v33 = vld [vmem:[%s13097_s0 + $0x5] ss:$0 sm:$0xff]  ;;  %v11349_v42 = vld [vmem:[%s13099_s2 + $0x38] sm:$0xff] }
 0x3d5   :  { %10013 = vtanh.f32 %v1287_v30  ;;  %v1302_v7 = vadd.f32 %v9022_v0, %v8998_v61  ;;  %v1311_v43 = vmul.f32 0.5, %v10000_v34  ;;  %v1315_v5 = vadd.f32 0.5, %v1312_v51  ;;  %v11252_v61 = vld [vmem:[%s13098_s1 + $0x30] sm:$0xff]  ;;  %v11266_v30 = vld [vmem:[%s13098_s1 + $0x40] sm:$0xff]  ;;  %v11273_v0 = vld [vmem:[%s13098_s1 + $0x48] sm:$0xff] }
 0x3d6   :  { %v1296_v32 = vpop.f32.mrf.mxu1  ;;  %v10002_v37 = vpop.eup %10001  ;;  %v1674_v34 = vsel %vm17_vm2, %v7706_v33, %v10833_v9  ;;  %v11342_v51 = vld [vmem:[%s13099_s2 + $0x30] sm:$0xff] }
 0x3d7   :  { %v1297_v47 = vadd.f32 %v1296_v32, %v1171_v3  ;;  %v1334_v40 = vmul.f32 0.5, %v1302_v7  ;;  %v1323_v38 = vmul.f32 0.5, %v10002_v37  ;;  %v1314_v10 = vadd.f32 0.5, %v1311_v43  ;;  %v11280_v3 = vld [vmem:[%s13098_s1 + $0x50] sm:$0xff]  ;;  %v11287_v7 = vld [vmem:[%s13098_s1 + $0x58] sm:$0xff]  ;;  %v11294_v32 = vld [vmem:[%s13098_s1] sm:$0xff]  ;;  %9067 = vmatprep.subr.mxu0 %v1674_v34 }
 0x3d8   :  { %9068 = vmatpush3.msra.mxu0 %v1674_v34  ;;  %v11314_v37 = vld [vmem:[%s13099_s2 + $0x10] sm:$0xff]  ;;  %v11363_v43 = vld [vmem:[%s13099_s2 + $0x48] sm:$0xff] }
 0x3d9   :  { %v1333_v45 = vmul.f32 0.5, %v1297_v47  ;;  %10015 = vtanh.f32 %v1334_v40  ;;  %v1326_v12 = vadd.f32 0.5, %v1323_v38  ;;  %v11307_v47 = vld [vmem:[%s13099_s2 + $0x8] sm:$0xff]  ;;  %v11328_v40 = vld [vmem:[%s13099_s2 + $0x20] sm:$0xff]  ;;  %v11370_v38 = vld [vmem:[%s13099_s2 + $0x50] sm:$0xff] }
 0x3da   :  { %v10004_v39 = vpop.eup %10003  ;;  %9070 = vmatmul.mubr.msk.f32.vlgmr.msra.gmra.mxu0 %vm51_vm1, %v11307_v47 }
 0x3db   :  { %v10006_v41 = vpop.eup %10005  ;;  %v1325_v44 = vmul.f32 0.5, %v10004_v39  ;;  %10017 = vtanh.f32 %v1333_v45  ;;  %v1344_v20 = vmul.f32 %v1326_v12, %v11141_v35  ;;  %9072 = vmatprep.mubr.msk.f32.mxu0 %vm51_vm1, %v11314_v37  ;;  %v11321_v39 = vld [vmem:[%s13099_s2 + $0x18] sm:$0xff]  ;;  %v11384_v45 = vld [vmem:[%s13099_s2] sm:$0xff] }
 0x3dc   :  { %v10008_v52 = vpop.eup %10007  ;;  %v1313_v49 = vmul.f32 0.5, %v10006_v41  ;;  %10019 = vtanh.f32 %v1332_v8  ;;  %v11335_v41 = vld [vmem:[%s13099_s2 + $0x28] sm:$0xff] }
 0x3dd   :  { %v1324_v46 = vmul.f32 0.5, %v10008_v52  ;;  %v10010_v48 = vpop.eup %10009  ;;  %v1328_v13 = vadd.f32 0.5, %v1325_v44  ;;  %v11356_v52 = vld [vmem:[%s13099_s2 + $0x40] sm:$0xff]  ;;  %v11377_v44 = vld [vmem:[%s13099_s2 + $0x58] sm:$0xff] }
 0x3de   :  { %v10012_v2 = vpop.eup %10011  ;;  %v1348_v15 = vmul.f32 %v10010_v48, %v1315_v5  ;;  %v1316_v16 = vadd.f32 0.5, %v1313_v49  ;;  %9073 = vmatmul.mubr.msk.f32.gmra.mxu0 %vm51_vm1, %v11321_v39 }
 0x3df   :  { %v1327_v1 = vadd.f32 0.5, %v1324_v46  ;;  %v1347_v17 = vmul.f32 %v10012_v2, %v1314_v10  ;;  %v1346_v21 = vmul.f32 %v1328_v13, %v11143_v36  ;;  %9075 = vmatprep.mubr.msk.f32.mxu0 %vm51_vm1, %v11328_v40  ;;  %v9027_v46 = vpop.f32.mrf.mxu0 }
 0x3e1   :  { %v1345_v14 = vmul.f32 %v1327_v1, %v11137_v31  ;;  %v11207_v23 = vadd.f32 %v1347_v17, %v1344_v20  ;;  %v1431_v48 = vpop.f32.mrf.mxu0 }
 0x3e2   :  { %v10014_v18 = vpop.eup %10013  ;;  %9076 = vmatmul.mubr.msk.f32.gmra.mxu0 %vm51_vm1, %v11335_v41 }
 0x3e3   :  { %v11203_v19 = vadd.f32 %v1348_v15, %v1345_v14  ;;  %v1349_v22 = vmul.f32 %v10014_v18, %v1316_v16  ;;  %9078 = vmatprep.mubr.msk.f32.mxu0 %vm51_vm1, %v11342_v51  ;;  %v9030_v49 = vpop.f32.mrf.mxu0 }
 0x3e5   :  { %v11209_v24 = vadd.f32 %v1349_v22, %v1346_v21  ;;  %10021 = vtanh.f32 %v11203_v19  ;;  %v1441_v2 = vpop.f32.mrf.mxu0 }
 0x3e6   :  { %v10016_v31 = vpop.eup %10015  ;;  %9079 = vmatmul.mubr.msk.f32.gmra.mxu0 %vm51_vm1, %v11349_v42 }
 0x3e7   :  { %10023 = vtanh.f32 %v11209_v24  ;;  %v1340_v26 = vmul.f32 0.5, %v10016_v31  ;;  %9081 = vmatprep.mubr.msk.f32.mxu0 %vm51_vm1, %v11356_v52  ;;  %v9033_v5 = vpop.f32.mrf.mxu0 }
 0x3e8   :  { %10025 = vtanh.f32 %v11207_v23  ;;  %v10018_v25 = vpop.eup %10017 }
 0x3e9   :  { %v1339_v27 = vmul.f32 0.5, %v10018_v25  ;;  %v10020_v4 = vpop.eup %10019  ;;  %v1343_v35 = vadd.f32 0.5, %v1340_v26  ;;  %v1451_v1 = vpop.f32.mrf.mxu0 }
 0x3ea   :  { %v1338_v36 = vmul.f32 0.5, %v10020_v4  ;;  %9082 = vmatmul.mubr.msk.f32.gmra.mxu0 %vm51_vm1, %v11363_v43 }
 0x3eb   :  { %v1342_v29 = vadd.f32 0.5, %v1339_v27  ;;  %9084 = vmatprep.mubr.msk.f32.mxu0 %vm51_vm1, %v11370_v38  ;;  %v9036_v14 = vpop.f32.mrf.mxu0 }
 0x3ec   :  { %v1341_v54 = vadd.f32 0.5, %v1338_v36 }
 0x3ed   :  { %v1461_v22 = vpop.f32.mrf.mxu0 }
 0x3ee   :  { %9085 = vmatmul.mubr.msk.f32.gmra.mxu0 %vm51_vm1, %v11377_v44 }
 0x3ef   :  { %9113 = vmatprep.mubr.msk.f32.mxu0 %vm51_vm1, %v11384_v45  ;;  %v9039_v36 = vpop.f32.mrf.mxu0 }
 0x3f2   :  { %v10022_v28 = vpop.eup %10021 }
 0x3f3   :  { %v1357_v55 = vmul.f32 %v10022_v28, %v1342_v29 }
 0x3f4   :  { %v10024_v50 = vpop.eup %10023 }
 0x3f5   :  { %v1358_v63 = vmul.f32 %v10024_v50, %v1343_v35  ;;  %v10026_v53 = vpop.eup %10025 }
 0x3f6   :  { %v1356_v56 = vmul.f32 %v10026_v53, %v1341_v54 }
 0x3f7   :  { %9043 = vmatprep.subr.mxu1 %v1358_v63 }
 0x3f8   :  { %9044 = vmatpush3.msra.mxu1 %v1358_v63 }
 0x3f9   :  { %9045 = vmatprep.subr.mxu1 %v1357_v55 }
 0x3fa   :  { %9046 = vmatpush3.msra.mxu1 %v1357_v55  ;;  %v1471_v55 = vpop.f32.mrf.mxu0 }
 0x3fb   :  { %9047 = vmatprep.subr.mxu1 %v1356_v56 }
 0x3fc   :  { %9048 = vmatpush3.msra.mxu1 %v1356_v56  ;;  %v9042_v33 = vpop.f32.mrf.mxu0 }
 0x3fd   :  { %9050 = vmatmul.mubr.msk.f32.vlgmr.msra.gmra.mxu1 %vm213_vm0, %v11217_v11 }
 0x3fe   :  { %9052 = vmatprep.mubr.msk.f32.mxu1 %vm213_vm0, %v11224_v58 }
 0x401   :  { %9053 = vmatmul.mubr.msk.f32.gmra.mxu1 %vm213_vm0, %v11231_v59 }
 0x402   :  { %9055 = vmatprep.mubr.msk.f32.mxu1 %vm213_vm0, %v11238_v60 }
 0x405   :  { %9056 = vmatmul.mubr.msk.f32.gmra.mxu1 %vm213_vm0, %v11245_v57 }
 0x406   :  { %9058 = vmatprep.mubr.msk.f32.mxu1 %vm213_vm0, %v11252_v61 }
 0x409   :  { %9059 = vmatmul.mubr.msk.f32.gmra.mxu1 %vm213_vm0, %v11259_v62 }
 0x40a   :  { %9061 = vmatprep.mubr.msk.f32.mxu1 %vm213_vm0, %v11266_v30 }
 0x40d   :  { %9062 = vmatmul.mubr.msk.f32.gmra.mxu1 %vm213_vm0, %v11273_v0 }
 0x40e   :  { %9064 = vmatprep.mubr.msk.f32.mxu1 %vm213_vm0, %v11280_v3 }
 0x411   :  { %9065 = vmatmul.mubr.msk.f32.gmra.mxu1 %vm213_vm0, %v11287_v7 }
 0x412   :  { %9093 = vmatprep.mubr.msk.f32.mxu1 %vm213_vm0, %v11294_v32 }
 0x4bd   :  { %v9051_v8 = vpop.f32.mrf.mxu1 }
 0x4be   :  { %v1562_v10 = vadd.f32 %v9051_v8, %v9027_v46 }
 0x4bf   :  { %v1556_v12 = vpop.f32.mrf.mxu1 }
 0x4c0   :  { %v1557_v13 = vadd.f32 %v1556_v12, %v1431_v48  ;;  %v1616_v17 = vmul.f32 0.5, %v1562_v10 }
 0x4c1   :  { %v9054_v15 = vpop.f32.mrf.mxu1 }
 0x4c2   :  { %v1572_v16 = vadd.f32 %v9054_v15, %v9030_v49  ;;  %v1615_v20 = vmul.f32 0.5, %v1557_v13  ;;  %10027 = vtanh.f32 %v1616_v17  ;;  %v1481_v49 = vpop.f32.mrf.mxu0 }
 0x4c3   :  { %v1566_v18 = vpop.f32.mrf.mxu1 }
 0x4c4   :  { %v1567_v21 = vadd.f32 %v1566_v18, %v1441_v2  ;;  %v1627_v31 = vmul.f32 0.5, %v1572_v16  ;;  %10029 = vtanh.f32 %v1615_v20 }
 0x4c5   :  { %v9057_v25 = vpop.f32.mrf.mxu1 }
 0x4c6   :  { %v1582_v26 = vadd.f32 %v9057_v25, %v9033_v5  ;;  %v1617_v27 = vmul.f32 0.5, %v1567_v21  ;;  %10031 = vtanh.f32 %v1627_v31 }
 0x4c7   :  { %v1576_v4 = vpop.f32.mrf.mxu1 }
 0x4c8   :  { %v1629_v35 = vmul.f32 0.5, %v1582_v26  ;;  %v1577_v28 = vadd.f32 %v1576_v4, %v1451_v1 }
 0x4c9   :  { %v9060_v29 = vpop.f32.mrf.mxu1 }
 0x4ca   :  { %10033 = vtanh.f32 %v1629_v35  ;;  %v1628_v50 = vmul.f32 0.5, %v1577_v28  ;;  %v1592_v63 = vadd.f32 %v9060_v29, %v9036_v14 }
 0x4cb   :  { %10035 = vtanh.f32 %v1617_v27  ;;  %v1586_v53 = vpop.f32.mrf.mxu1 }
 0x4cc   :  { %10037 = vtanh.f32 %v1628_v50  ;;  %v1587_v54 = vadd.f32 %v1586_v53, %v1461_v22 }
 0x4cd   :  { %v9063_v56 = vpop.f32.mrf.mxu1  ;;  %10039 = vtanh.f32 %v1592_v63 }
 0x4ce   :  { %10041 = vtanh.f32 %v1587_v54  ;;  %v1602_v17 = vadd.f32 %v9063_v56, %v9039_v36 }
 0x4cf   :  { %v1596_v34 = vpop.f32.mrf.mxu1  ;;  %v10028_v1 = vpop.eup %10027 }
 0x4d0   :  { %v1597_v46 = vadd.f32 %v1596_v34, %v1471_v55  ;;  %v1622_v16 = vmul.f32 0.5, %v10028_v1  ;;  %v1642_v29 = vmul.f32 0.5, %v1602_v17 }
 0x4d1   :  { %v9066_v48 = vpop.f32.mrf.mxu1  ;;  %v10030_v8 = vpop.eup %10029 }
 0x4d2   :  { %10043 = vtanh.f32 %v1597_v46  ;;  %v1612_v2 = vadd.f32 %v9066_v48, %v9042_v33  ;;  %v1621_v20 = vmul.f32 0.5, %v10030_v8  ;;  %v1625_v35 = vadd.f32 0.5, %v1622_v16 }
 0x4d3   :  { %v1606_v5 = vpop.f32.mrf.mxu1  ;;  %v10032_v12 = vpop.eup %10031 }
 0x4d4   :  { %v1607_v10 = vadd.f32 %v1606_v5, %v1481_v49  ;;  %v1644_v14 = vmul.f32 0.5, %v1612_v2  ;;  %v1633_v21 = vmul.f32 0.5, %v10032_v12  ;;  %v1624_v50 = vadd.f32 0.5, %v1621_v20 }
 0x4d6   :  { %v1643_v31 = vmul.f32 0.5, %v1607_v10  ;;  %10045 = vtanh.f32 %v1644_v14  ;;  %v1636_v63 = vadd.f32 0.5, %v1633_v21 }
 0x4d7   :  { %v10034_v13 = vpop.eup %10033 }
 0x4d8   :  { %v10036_v15 = vpop.eup %10035  ;;  %v1635_v22 = vmul.f32 0.5, %v10034_v13  ;;  %10047 = vtanh.f32 %v1643_v31  ;;  %v1654_v46 = vmul.f32 %v1636_v63, %v11207_v23 }
 0x4d9   :  { %v10038_v18 = vpop.eup %10037  ;;  %v1623_v27 = vmul.f32 0.5, %v10036_v15  ;;  %10049 = vtanh.f32 %v1642_v29 }
 0x4da   :  { %v1634_v25 = vmul.f32 0.5, %v10038_v18  ;;  %v10040_v26 = vpop.eup %10039  ;;  %v1638_v53 = vadd.f32 0.5, %v1635_v22  ;;  %v7731_v22 = vld [vmem:[%s13097_s0 + $0x6] ss:$0 sm:$0xff] }
 0x4db   :  { %v10042_v4 = vpop.eup %10041  ;;  %v1658_v36 = vmul.f32 %v10040_v26, %v1625_v35  ;;  %v1626_v55 = vadd.f32 0.5, %v1623_v27  ;;  %v1984_v31 = vsel %vm17_vm2, %v7731_v22, %v10833_v9 }
 0x4dc   :  { %v1637_v28 = vadd.f32 0.5, %v1634_v25  ;;  %v1657_v56 = vmul.f32 %v10042_v4, %v1624_v50  ;;  %v1656_v48 = vmul.f32 %v1638_v53, %v11209_v24  ;;  %9111 = vmatprep.subr.mxu0 %v1984_v31  ;;  %v9071_v25 = vpop.f32.mrf.mxu0 }
 0x4dd   :  { %9112 = vmatpush3.msra.mxu0 %v1984_v31 }
 0x4de   :  { %v1655_v54 = vmul.f32 %v1637_v28, %v11203_v19  ;;  %v11393_v2 = vadd.f32 %v1657_v56, %v1654_v46  ;;  %9114 = vmatmul.mubr.msk.f32.vlgmr.msra.gmra.mxu0 %vm51_vm1, %v11307_v47  ;;  %v1741_v26 = vpop.f32.mrf.mxu0 }
 0x4df   :  { %v10044_v33 = vpop.eup %10043  ;;  %9116 = vmatprep.mubr.msk.f32.mxu0 %vm51_vm1, %v11314_v37 }
 0x4e0   :  { %v11389_v34 = vadd.f32 %v1658_v36, %v1655_v54  ;;  %v1659_v49 = vmul.f32 %v10044_v33, %v1626_v55  ;;  %v9074_v27 = vpop.f32.mrf.mxu0 }
 0x4e2   :  { %v11395_v5 = vadd.f32 %v1659_v49, %v1656_v48  ;;  %10051 = vtanh.f32 %v11389_v34  ;;  %9117 = vmatmul.mubr.msk.f32.gmra.mxu0 %vm51_vm1, %v11321_v39  ;;  %v1751_v4 = vpop.f32.mrf.mxu0 }
 0x4e3   :  { %v10046_v19 = vpop.eup %10045  ;;  %9119 = vmatprep.mubr.msk.f32.mxu0 %vm51_vm1, %v11328_v40 }
 0x4e4   :  { %10053 = vtanh.f32 %v11395_v5  ;;  %v1650_v8 = vmul.f32 0.5, %v10046_v19  ;;  %v9077_v35 = vpop.f32.mrf.mxu0 }
 0x4e5   :  { %10055 = vtanh.f32 %v11393_v2  ;;  %v10048_v1 = vpop.eup %10047 }
 0x4e6   :  { %v1649_v10 = vmul.f32 0.5, %v10048_v1  ;;  %v10050_v12 = vpop.eup %10049  ;;  %v1653_v23 = vadd.f32 0.5, %v1650_v8  ;;  %9120 = vmatmul.mubr.msk.f32.gmra.mxu0 %vm51_vm1, %v11335_v41  ;;  %v1761_v28 = vpop.f32.mrf.mxu0 }
 0x4e7   :  { %v1648_v24 = vmul.f32 0.5, %v10050_v12  ;;  %9122 = vmatprep.mubr.msk.f32.mxu0 %vm51_vm1, %v11342_v51 }
 0x4e8   :  { %v1652_v14 = vadd.f32 0.5, %v1649_v10  ;;  %v9080_v54 = vpop.f32.mrf.mxu0 }
 0x4e9   :  { %v1651_v18 = vadd.f32 0.5, %v1648_v24 }
 0x4ea   :  { %9123 = vmatmul.mubr.msk.f32.gmra.mxu0 %vm51_vm1, %v11349_v42  ;;  %v1771_v49 = vpop.f32.mrf.mxu0 }
 0x4eb   :  { %9125 = vmatprep.mubr.msk.f32.mxu0 %vm51_vm1, %v11356_v52 }
 0x4ec   :  { %v9083_v24 = vpop.f32.mrf.mxu0 }
 0x4ee   :  { %9126 = vmatmul.mubr.msk.f32.gmra.mxu0 %vm51_vm1, %v11363_v43 }
 0x4ef   :  { %v10052_v13 = vpop.eup %10051  ;;  %9128 = vmatprep.mubr.msk.f32.mxu0 %vm51_vm1, %v11370_v38 }
 0x4f0   :  { %v1667_v20 = vmul.f32 %v10052_v13, %v1652_v14 }
 0x4f1   :  { %v10054_v15 = vpop.eup %10053 }
 0x4f2   :  { %v1668_v16 = vmul.f32 %v10054_v15, %v1653_v23  ;;  %v10056_v17 = vpop.eup %10055  ;;  %9129 = vmatmul.mubr.msk.f32.gmra.mxu0 %vm51_vm1, %v11377_v44 }
 0x4f3   :  { %v1666_v21 = vmul.f32 %v10056_v17, %v1651_v18  ;;  %9157 = vmatprep.mubr.msk.f32.mxu0 %vm51_vm1, %v11384_v45 }
 0x4f4   :  { %9087 = vmatprep.subr.mxu1 %v1668_v16 }
 0x4f5   :  { %9088 = vmatpush3.msra.mxu1 %v1668_v16 }
 0x4f6   :  { %9089 = vmatprep.subr.mxu1 %v1667_v20 }
 0x4f7   :  { %9090 = vmatpush3.msra.mxu1 %v1667_v20  ;;  %v1781_v20 = vpop.f32.mrf.mxu0 }
 0x4f8   :  { %9091 = vmatprep.subr.mxu1 %v1666_v21 }
 0x4f9   :  { %9092 = vmatpush3.msra.mxu1 %v1666_v21  ;;  %v9086_v22 = vpop.f32.mrf.mxu0 }
 0x4fa   :  { %9094 = vmatmul.mubr.msk.f32.vlgmr.msra.gmra.mxu1 %vm213_vm0, %v11217_v11 }
 0x4fb   :  { %9096 = vmatprep.mubr.msk.f32.mxu1 %vm213_vm0, %v11224_v58 }
 0x4fe   :  { %9097 = vmatmul.mubr.msk.f32.gmra.mxu1 %vm213_vm0, %v11231_v59 }
 0x4ff   :  { %9099 = vmatprep.mubr.msk.f32.mxu1 %vm213_vm0, %v11238_v60 }
 0x502   :  { %9100 = vmatmul.mubr.msk.f32.gmra.mxu1 %vm213_vm0, %v11245_v57 }
 0x503   :  { %9102 = vmatprep.mubr.msk.f32.mxu1 %vm213_vm0, %v11252_v61 }
 0x506   :  { %9103 = vmatmul.mubr.msk.f32.gmra.mxu1 %vm213_vm0, %v11259_v62 }
 0x507   :  { %9105 = vmatprep.mubr.msk.f32.mxu1 %vm213_vm0, %v11266_v30 }
 0x50a   :  { %9106 = vmatmul.mubr.msk.f32.gmra.mxu1 %vm213_vm0, %v11273_v0 }
 0x50b   :  { %9108 = vmatprep.mubr.msk.f32.mxu1 %vm213_vm0, %v11280_v3 }
 0x50e   :  { %9109 = vmatmul.mubr.msk.f32.gmra.mxu1 %vm213_vm0, %v11287_v7 }
 0x50f   :  { %9137 = vmatprep.mubr.msk.f32.mxu1 %vm213_vm0, %v11294_v32 }
 0x5ba   :  { %v9095_v29 = vpop.f32.mrf.mxu1 }
 0x5bb   :  { %v1872_v50 = vadd.f32 %v9095_v29, %v9071_v25 }
 0x5bc   :  { %v1866_v63 = vpop.f32.mrf.mxu1 }
 0x5bd   :  { %v1867_v53 = vadd.f32 %v1866_v63, %v1741_v26  ;;  %v1926_v56 = vmul.f32 0.5, %v1872_v50 }
 0x5be   :  { %v9098_v36 = vpop.f32.mrf.mxu1 }
 0x5bf   :  { %v1882_v55 = vadd.f32 %v9098_v36, %v9074_v27  ;;  %v1925_v46 = vmul.f32 0.5, %v1867_v53  ;;  %10057 = vtanh.f32 %v1926_v56  ;;  %v1791_v27 = vpop.f32.mrf.mxu0 }
 0x5c0   :  { %v1876_v33 = vpop.f32.mrf.mxu1 }
 0x5c1   :  { %v1877_v48 = vadd.f32 %v1876_v33, %v1751_v4  ;;  %v1937_v19 = vmul.f32 0.5, %v1882_v55  ;;  %10059 = vtanh.f32 %v1925_v46 }
 0x5c2   :  { %v9101_v1 = vpop.f32.mrf.mxu1 }
 0x5c3   :  { %v1892_v8 = vadd.f32 %v9101_v1, %v9077_v35  ;;  %v1927_v10 = vmul.f32 0.5, %v1877_v48  ;;  %10061 = vtanh.f32 %v1937_v19 }
 0x5c4   :  { %v1886_v12 = vpop.f32.mrf.mxu1 }
 0x5c5   :  { %v1939_v23 = vmul.f32 0.5, %v1892_v8  ;;  %v1887_v13 = vadd.f32 %v1886_v12, %v1761_v28 }
 0x5c6   :  { %v9104_v14 = vpop.f32.mrf.mxu1 }
 0x5c7   :  { %10063 = vtanh.f32 %v1939_v23  ;;  %v1938_v15 = vmul.f32 0.5, %v1887_v13  ;;  %v1902_v16 = vadd.f32 %v9104_v14, %v9080_v54 }
 0x5c8   :  { %10065 = vtanh.f32 %v1927_v10  ;;  %v1896_v17 = vpop.f32.mrf.mxu1 }
 0x5c9   :  { %10067 = vtanh.f32 %v1938_v15  ;;  %v1897_v18 = vadd.f32 %v1896_v17, %v1771_v49 }
 0x5ca   :  { %v9107_v21 = vpop.f32.mrf.mxu1  ;;  %10069 = vtanh.f32 %v1902_v16 }
 0x5cb   :  { %10071 = vtanh.f32 %v1897_v18  ;;  %v1912_v56 = vadd.f32 %v9107_v21, %v9083_v24 }
 0x5cc   :  { %v1906_v31 = vpop.f32.mrf.mxu1  ;;  %v10058_v28 = vpop.eup %10057 }
 0x5cd   :  { %v1907_v25 = vadd.f32 %v1906_v31, %v1781_v20  ;;  %v1932_v55 = vmul.f32 0.5, %v10058_v28  ;;  %v1952_v14 = vmul.f32 0.5, %v1912_v56 }
 0x5ce   :  { %v9110_v26 = vpop.f32.mrf.mxu1  ;;  %v10060_v29 = vpop.eup %10059 }
 0x5cf   :  { %10073 = vtanh.f32 %v1907_v25  ;;  %v1922_v4 = vadd.f32 %v9110_v26, %v9086_v22  ;;  %v1931_v46 = vmul.f32 0.5, %v10060_v29  ;;  %v1935_v23 = vadd.f32 0.5, %v1932_v55 }
 0x5d0   :  { %v1916_v35 = vpop.f32.mrf.mxu1  ;;  %v10062_v63 = vpop.eup %10061 }
 0x5d1   :  { %v1917_v50 = vadd.f32 %v1916_v35, %v1791_v27  ;;  %v1954_v54 = vmul.f32 0.5, %v1922_v4  ;;  %v1943_v48 = vmul.f32 0.5, %v10062_v63  ;;  %v1934_v15 = vadd.f32 0.5, %v1931_v46 }
 0x5d3   :  { %v1953_v19 = vmul.f32 0.5, %v1917_v50  ;;  %10075 = vtanh.f32 %v1954_v54  ;;  %v1946_v16 = vadd.f32 0.5, %v1943_v48 }
 0x5d4   :  { %v10064_v53 = vpop.eup %10063 }
 0x5d5   :  { %v10066_v36 = vpop.eup %10065  ;;  %v1945_v49 = vmul.f32 0.5, %v10064_v53  ;;  %10077 = vtanh.f32 %v1953_v19  ;;  %v1964_v25 = vmul.f32 %v1946_v16, %v11393_v2 }
 0x5d6   :  { %v10068_v33 = vpop.eup %10067  ;;  %v1933_v10 = vmul.f32 0.5, %v10066_v36  ;;  %10079 = vtanh.f32 %v1952_v14 }
 0x5d7   :  { %v1944_v1 = vmul.f32 0.5, %v10068_v33  ;;  %v10070_v8 = vpop.eup %10069  ;;  %v1948_v17 = vadd.f32 0.5, %v1945_v49  ;;  %v7756_v49 = vld [vmem:[%s13097_s0 + $0x7] ss:$0 sm:$0xff] }
 0x5d8   :  { %v10072_v12 = vpop.eup %10071  ;;  %v1968_v24 = vmul.f32 %v10070_v8, %v1935_v23  ;;  %v1936_v20 = vadd.f32 0.5, %v1933_v10  ;;  %v2294_v19 = vsel %vm17_vm2, %v7756_v49, %v10833_v9 }
 0x5d9   :  { %v1947_v13 = vadd.f32 0.5, %v1944_v1  ;;  %v1967_v21 = vmul.f32 %v10072_v12, %v1934_v15  ;;  %v1966_v26 = vmul.f32 %v1948_v17, %v11395_v5  ;;  %9155 = vmatprep.subr.mxu0 %v2294_v19  ;;  %v9115_v1 = vpop.f32.mrf.mxu0 }
 0x5da   :  { %9156 = vmatpush3.msra.mxu0 %v2294_v19 }
 0x5db   :  { %v1965_v18 = vmul.f32 %v1947_v13, %v11389_v34  ;;  %v11459_v4 = vadd.f32 %v1967_v21, %v1964_v25  ;;  %9158 = vmatmul.mubr.msk.f32.vlgmr.msra.gmra.mxu0 %vm51_vm1, %v11307_v47  ;;  %v2051_v8 = vpop.f32.mrf.mxu0 }
 0x5dc   :  { %v10074_v22 = vpop.eup %10073  ;;  %9160 = vmatprep.mubr.msk.f32.mxu0 %vm51_vm1, %v11314_v37 }
 0x5dd   :  { %v11455_v31 = vadd.f32 %v1968_v24, %v1965_v18  ;;  %v1969_v27 = vmul.f32 %v10074_v22, %v1936_v20  ;;  %v9118_v10 = vpop.f32.mrf.mxu0 }
 0x5df   :  { %v11461_v35 = vadd.f32 %v1969_v27, %v1966_v26  ;;  %10081 = vtanh.f32 %v11455_v31  ;;  %9161 = vmatmul.mubr.msk.f32.gmra.mxu0 %vm51_vm1, %v11321_v39  ;;  %v2061_v12 = vpop.f32.mrf.mxu0 }
 0x5e0   :  { %v10076_v34 = vpop.eup %10075  ;;  %9163 = vmatprep.mubr.msk.f32.mxu0 %vm51_vm1, %v11328_v40 }
 0x5e1   :  { %10083 = vtanh.f32 %v11461_v35  ;;  %v1960_v29 = vmul.f32 0.5, %v10076_v34  ;;  %v9121_v23 = vpop.f32.mrf.mxu0 }
 0x5e2   :  { %10085 = vtanh.f32 %v11459_v4  ;;  %v10078_v28 = vpop.eup %10077 }
 0x5e3   :  { %v1959_v50 = vmul.f32 0.5, %v10078_v28  ;;  %v10080_v63 = vpop.eup %10079  ;;  %v1963_v2 = vadd.f32 0.5, %v1960_v29  ;;  %9164 = vmatmul.mubr.msk.f32.gmra.mxu0 %vm51_vm1, %v11335_v41  ;;  %v2071_v13 = vpop.f32.mrf.mxu0 }
 0x5e4   :  { %v1958_v5 = vmul.f32 0.5, %v10080_v63  ;;  %9166 = vmatprep.mubr.msk.f32.mxu0 %vm51_vm1, %v11342_v51 }
 0x5e5   :  { %v1962_v54 = vadd.f32 0.5, %v1959_v50  ;;  %v9124_v18 = vpop.f32.mrf.mxu0 }
 0x5e6   :  { %v1961_v33 = vadd.f32 0.5, %v1958_v5 }
 0x5e7   :  { %9167 = vmatmul.mubr.msk.f32.gmra.mxu0 %vm51_vm1, %v11349_v42  ;;  %v2081_v27 = vpop.f32.mrf.mxu0 }
 0x5e8   :  { %9169 = vmatprep.mubr.msk.f32.mxu0 %vm51_vm1, %v11356_v52 }
 0x5e9   :  { %v9127_v5 = vpop.f32.mrf.mxu0 }
 0x5eb   :  { %9170 = vmatmul.mubr.msk.f32.gmra.mxu0 %vm51_vm1, %v11363_v43 }
 0x5ec   :  { %v10082_v53 = vpop.eup %10081  ;;  %9172 = vmatprep.mubr.msk.f32.mxu0 %vm51_vm1, %v11370_v38 }
 0x5ed   :  { %v1977_v46 = vmul.f32 %v10082_v53, %v1962_v54 }
 0x5ee   :  { %v10084_v36 = vpop.eup %10083 }
 0x5ef   :  { %v1978_v55 = vmul.f32 %v10084_v36, %v1963_v2  ;;  %v10086_v56 = vpop.eup %10085  ;;  %9173 = vmatmul.mubr.msk.f32.gmra.mxu0 %vm51_vm1, %v11377_v44 }
 0x5f0   :  { %v1976_v48 = vmul.f32 %v10086_v56, %v1961_v33  ;;  %9201 = vmatprep.mubr.msk.f32.mxu0 %vm51_vm1, %v11384_v45 }
 0x5f1   :  { %9131 = vmatprep.subr.mxu1 %v1978_v55 }
 0x5f2   :  { %9132 = vmatpush3.msra.mxu1 %v1978_v55 }
 0x5f3   :  { %9133 = vmatprep.subr.mxu1 %v1977_v46 }
 0x5f4   :  { %9134 = vmatpush3.msra.mxu1 %v1977_v46  ;;  %v2091_v46 = vpop.f32.mrf.mxu0 }
 0x5f5   :  { %9135 = vmatprep.subr.mxu1 %v1976_v48 }
 0x5f6   :  { %9136 = vmatpush3.msra.mxu1 %v1976_v48  ;;  %v9130_v49 = vpop.f32.mrf.mxu0 }
 0x5f7   :  { %9138 = vmatmul.mubr.msk.f32.vlgmr.msra.gmra.mxu1 %vm213_vm0, %v11217_v11 }
 0x5f8   :  { %9140 = vmatprep.mubr.msk.f32.mxu1 %vm213_vm0, %v11224_v58 }
 0x5fb   :  { %9141 = vmatmul.mubr.msk.f32.gmra.mxu1 %vm213_vm0, %v11231_v59 }
 0x5fc   :  { %9143 = vmatprep.mubr.msk.f32.mxu1 %vm213_vm0, %v11238_v60 }
 0x5ff   :  { %9144 = vmatmul.mubr.msk.f32.gmra.mxu1 %vm213_vm0, %v11245_v57 }
 0x600   :  { %9146 = vmatprep.mubr.msk.f32.mxu1 %vm213_vm0, %v11252_v61 }
 0x603   :  { %9147 = vmatmul.mubr.msk.f32.gmra.mxu1 %vm213_vm0, %v11259_v62 }
 0x604   :  { %9149 = vmatprep.mubr.msk.f32.mxu1 %vm213_vm0, %v11266_v30 }
 0x607   :  { %9150 = vmatmul.mubr.msk.f32.gmra.mxu1 %vm213_vm0, %v11273_v0 }
 0x608   :  { %9152 = vmatprep.mubr.msk.f32.mxu1 %vm213_vm0, %v11280_v3 }
 0x60b   :  { %9153 = vmatmul.mubr.msk.f32.gmra.mxu1 %vm213_vm0, %v11287_v7 }
 0x60c   :  { %9181 = vmatprep.mubr.msk.f32.mxu1 %vm213_vm0, %v11294_v32 }
 0x6b7   :  { %v9139_v14 = vpop.f32.mrf.mxu1 }
 0x6b8   :  { %v2182_v15 = vadd.f32 %v9139_v14, %v9115_v1 }
 0x6b9   :  { %v2176_v16 = vpop.f32.mrf.mxu1 }
 0x6ba   :  { %v2177_v17 = vadd.f32 %v2176_v16, %v2051_v8  ;;  %v2236_v21 = vmul.f32 0.5, %v2182_v15 }
 0x6bb   :  { %v9142_v24 = vpop.f32.mrf.mxu1 }
 0x6bc   :  { %v2192_v20 = vadd.f32 %v9142_v24, %v9118_v10  ;;  %v2235_v25 = vmul.f32 0.5, %v2177_v17  ;;  %10087 = vtanh.f32 %v2236_v21  ;;  %v2101_v10 = vpop.f32.mrf.mxu0 }
 0x6bd   :  { %v2186_v22 = vpop.f32.mrf.mxu1 }
 0x6be   :  { %v2187_v26 = vadd.f32 %v2186_v22, %v2061_v12  ;;  %v2247_v34 = vmul.f32 0.5, %v2192_v20  ;;  %10089 = vtanh.f32 %v2235_v25 }
 0x6bf   :  { %v9145_v28 = vpop.f32.mrf.mxu1 }
 0x6c0   :  { %v2202_v29 = vadd.f32 %v9145_v28, %v9121_v23  ;;  %v2237_v50 = vmul.f32 0.5, %v2187_v26  ;;  %10091 = vtanh.f32 %v2247_v34 }
 0x6c1   :  { %v2196_v63 = vpop.f32.mrf.mxu1 }
 0x6c2   :  { %v2249_v2 = vmul.f32 0.5, %v2202_v29  ;;  %v2197_v53 = vadd.f32 %v2196_v63, %v2071_v13 }
 0x6c3   :  { %v9148_v54 = vpop.f32.mrf.mxu1 }
 0x6c4   :  { %10093 = vtanh.f32 %v2249_v2  ;;  %v2248_v36 = vmul.f32 0.5, %v2197_v53  ;;  %v2212_v55 = vadd.f32 %v9148_v54, %v9124_v18 }
 0x6c5   :  { %10095 = vtanh.f32 %v2237_v50  ;;  %v2206_v56 = vpop.f32.mrf.mxu1 }
 0x6c6   :  { %10097 = vtanh.f32 %v2248_v36  ;;  %v2207_v33 = vadd.f32 %v2206_v56, %v2081_v27 }
 0x6c7   :  { %v9151_v48 = vpop.f32.mrf.mxu1  ;;  %10099 = vtanh.f32 %v2212_v55 }
 0x6c8   :  { %10101 = vtanh.f32 %v2207_v33  ;;  %v2222_v21 = vadd.f32 %v9151_v48, %v9127_v5 }
 0x6c9   :  { %v2216_v19 = vpop.f32.mrf.mxu1  ;;  %v10088_v13 = vpop.eup %10087 }
 0x6ca   :  { %v2217_v1 = vadd.f32 %v2216_v19, %v2091_v46  ;;  %v2242_v20 = vmul.f32 0.5, %v10088_v13  ;;  %v2262_v54 = vmul.f32 0.5, %v2222_v21 }
 0x6cb   :  { %v9154_v8 = vpop.f32.mrf.mxu1  ;;  %v10090_v14 = vpop.eup %10089 }
 0x6cc   :  { %10103 = vtanh.f32 %v2217_v1  ;;  %v2232_v12 = vadd.f32 %v9154_v8, %v9130_v49  ;;  %v2241_v25 = vmul.f32 0.5, %v10090_v14  ;;  %v2245_v2 = vadd.f32 0.5, %v2242_v20 }
 0x6cd   :  { %v2226_v23 = vpop.f32.mrf.mxu1  ;;  %v10092_v16 = vpop.eup %10091 }
 0x6ce   :  { %v2227_v15 = vadd.f32 %v2226_v23, %v2101_v10  ;;  %v2264_v18 = vmul.f32 0.5, %v2232_v12  ;;  %v2253_v26 = vmul.f32 0.5, %v10092_v16  ;;  %v2244_v36 = vadd.f32 0.5, %v2241_v25 }
 0x6d0   :  { %v2263_v34 = vmul.f32 0.5, %v2227_v15  ;;  %10105 = vtanh.f32 %v2264_v18  ;;  %v2256_v55 = vadd.f32 0.5, %v2253_v26 }
 0x6d1   :  { %v10094_v17 = vpop.eup %10093 }
 0x6d2   :  { %v10096_v24 = vpop.eup %10095  ;;  %v2255_v27 = vmul.f32 0.5, %v10094_v17  ;;  %10107 = vtanh.f32 %v2263_v34  ;;  %v2274_v1 = vmul.f32 %v2256_v55, %v11459_v4 }
 0x6d3   :  { %v10098_v22 = vpop.eup %10097  ;;  %v2243_v50 = vmul.f32 0.5, %v10096_v24  ;;  %10109 = vtanh.f32 %v2262_v54 }
 0x6d4   :  { %v2254_v28 = vmul.f32 0.5, %v10098_v22  ;;  %v10100_v29 = vpop.eup %10099  ;;  %v2258_v56 = vadd.f32 0.5, %v2255_v27 }
 0x6d5   :  { %v10102_v63 = vpop.eup %10101  ;;  %v2278_v5 = vmul.f32 %v10100_v29, %v2245_v2  ;;  %v2246_v46 = vadd.f32 0.5, %v2243_v50 }
 0x6d6   :  { %v2257_v53 = vadd.f32 0.5, %v2254_v28  ;;  %v2277_v48 = vmul.f32 %v10102_v63, %v2244_v36  ;;  %v2276_v8 = vmul.f32 %v2258_v56, %v11461_v35 }
 0x6d8   :  { %v2275_v33 = vmul.f32 %v2257_v53, %v11455_v31  ;;  %v11525_v12 = vadd.f32 %v2277_v48, %v2274_v1 }
 0x6d9   :  { %v10104_v49 = vpop.eup %10103 }
 0x6da   :  { %v11521_v19 = vadd.f32 %v2278_v5, %v2275_v33  ;;  %v2279_v10 = vmul.f32 %v10104_v49, %v2246_v46 }
 0x6dc   :  { %v11527_v23 = vadd.f32 %v2279_v10, %v2276_v8  ;;  %10111 = vtanh.f32 %v11521_v19 }
 0x6dd   :  { %v10106_v31 = vpop.eup %10105 }
 0x6de   :  { %10113 = vtanh.f32 %v11527_v23  ;;  %v2270_v14 = vmul.f32 0.5, %v10106_v31 }
 0x6df   :  { %10115 = vtanh.f32 %v11525_v12  ;;  %v10108_v13 = vpop.eup %10107 }
 0x6e0   :  { %v2269_v15 = vmul.f32 0.5, %v10108_v13  ;;  %v10110_v16 = vpop.eup %10109  ;;  %v2273_v4 = vadd.f32 0.5, %v2270_v14 }
 0x6e1   :  { %v2268_v35 = vmul.f32 0.5, %v10110_v16 }
 0x6e2   :  { %v2272_v18 = vadd.f32 0.5, %v2269_v15 }
 0x6e3   :  { %v2271_v22 = vadd.f32 0.5, %v2268_v35 }
 0x6e9   :  { %v10112_v17 = vpop.eup %10111 }
 0x6ea   :  { %v2287_v25 = vmul.f32 %v10112_v17, %v2272_v18 }
 0x6eb   :  { %v10114_v24 = vpop.eup %10113 }
 0x6ec   :  { %v2288_v20 = vmul.f32 %v10114_v24, %v2273_v4  ;;  %v10116_v21 = vpop.eup %10115 }
 0x6ed   :  { %v2286_v26 = vmul.f32 %v10116_v21, %v2271_v22 }
 0x6ee   :  { %9175 = vmatprep.subr.mxu1 %v2288_v20 }
 0x6ef   :  { %9176 = vmatpush3.msra.mxu1 %v2288_v20 }
 0x6f0   :  { %9177 = vmatprep.subr.mxu1 %v2287_v25 }
 0x6f1   :  { %9178 = vmatpush3.msra.mxu1 %v2287_v25 }
 0x6f2   :  { %9179 = vmatprep.subr.mxu1 %v2286_v26 }
 0x6f3   :  { %9180 = vmatpush3.msra.mxu1 %v2286_v26 }
 0x6f4   :  { %9182 = vmatmul.mubr.msk.f32.vlgmr.msra.gmra.mxu1 %vm213_vm0, %v11217_v11  ;;  %v7781_v11 = vld [vmem:[%s13097_s0 + $0x8] ss:$0 sm:$0xff] }
 0x6f5   :  { %9184 = vmatprep.mubr.msk.f32.mxu1 %vm213_vm0, %v11224_v58  ;;  %v2604_v58 = vsel %vm17_vm2, %v7781_v11, %v10833_v9 }
 0x6f6   :  { %9199 = vmatprep.subr.mxu0 %v2604_v58 }
 0x6f7   :  { %9200 = vmatpush3.msra.mxu0 %v2604_v58 }
 0x6f8   :  { %9185 = vmatmul.mubr.msk.f32.gmra.mxu1 %vm213_vm0, %v11231_v59  ;;  %9202 = vmatmul.mubr.msk.f32.vlgmr.msra.gmra.mxu0 %vm51_vm1, %v11307_v47  ;;  %v9159_v59 = vpop.f32.mrf.mxu0 }
 0x6f9   :  { %9187 = vmatprep.mubr.msk.f32.mxu1 %vm213_vm0, %v11238_v60  ;;  %9204 = vmatprep.mubr.msk.f32.mxu0 %vm51_vm1, %v11314_v37 }
 0x6fa   :  { %v2361_v60 = vpop.f32.mrf.mxu0 }
 0x6fc   :  { %9188 = vmatmul.mubr.msk.f32.gmra.mxu1 %vm213_vm0, %v11245_v57  ;;  %9205 = vmatmul.mubr.msk.f32.gmra.mxu0 %vm51_vm1, %v11321_v39  ;;  %v9162_v57 = vpop.f32.mrf.mxu0 }
 0x6fd   :  { %9190 = vmatprep.mubr.msk.f32.mxu1 %vm213_vm0, %v11252_v61  ;;  %9207 = vmatprep.mubr.msk.f32.mxu0 %vm51_vm1, %v11328_v40 }
 0x6fe   :  { %v2371_v61 = vpop.f32.mrf.mxu0 }
 0x700   :  { %9191 = vmatmul.mubr.msk.f32.gmra.mxu1 %vm213_vm0, %v11259_v62  ;;  %9208 = vmatmul.mubr.msk.f32.gmra.mxu0 %vm51_vm1, %v11335_v41  ;;  %v9165_v62 = vpop.f32.mrf.mxu0 }
 0x701   :  { %9193 = vmatprep.mubr.msk.f32.mxu1 %vm213_vm0, %v11266_v30  ;;  %9210 = vmatprep.mubr.msk.f32.mxu0 %vm51_vm1, %v11342_v51 }
 0x702   :  { %v2381_v30 = vpop.f32.mrf.mxu0 }
 0x704   :  { %9194 = vmatmul.mubr.msk.f32.gmra.mxu1 %vm213_vm0, %v11273_v0  ;;  %9211 = vmatmul.mubr.msk.f32.gmra.mxu0 %vm51_vm1, %v11349_v42  ;;  %v9168_v47 = vpop.f32.mrf.mxu0 }
 0x705   :  { %9196 = vmatprep.mubr.msk.f32.mxu1 %vm213_vm0, %v11280_v3  ;;  %9213 = vmatprep.mubr.msk.f32.mxu0 %vm51_vm1, %v11356_v52 }
 0x706   :  { %v2391_v52 = vpop.f32.mrf.mxu0 }
 0x708   :  { %9197 = vmatmul.mubr.msk.f32.gmra.mxu1 %vm213_vm0, %v11287_v7  ;;  %9214 = vmatmul.mubr.msk.f32.gmra.mxu0 %vm51_vm1, %v11363_v43  ;;  %v9171_v29 = vpop.f32.mrf.mxu0 }
 0x709   :  { %9225 = vmatprep.mubr.msk.f32.mxu1 %vm213_vm0, %v11294_v32  ;;  %9216 = vmatprep.mubr.msk.f32.mxu0 %vm51_vm1, %v11370_v38 }
 0x70a   :  { %v2401_v36 = vpop.f32.mrf.mxu0 }
 0x70c   :  { %9217 = vmatmul.mubr.msk.f32.gmra.mxu0 %vm51_vm1, %v11377_v44  ;;  %v9174_v56 = vpop.f32.mrf.mxu0 }
 0x70d   :  { %9245 = vmatprep.mubr.msk.f32.mxu0 %vm51_vm1, %v11384_v45 }
 0x70e   :  { %v2411_v48 = vpop.f32.mrf.mxu0 }
 0x7b4   :  { %v9183_v0 = vpop.f32.mrf.mxu1 }
 0x7b5   :  { %v2492_v3 = vadd.f32 %v9183_v0, %v9159_v59 }
 0x7b6   :  { %v2486_v7 = vpop.f32.mrf.mxu1 }
 0x7b7   :  { %v2487_v32 = vadd.f32 %v2486_v7, %v2361_v60  ;;  %v2546_v40 = vmul.f32 0.5, %v2492_v3 }
 0x7b8   :  { %v9186_v37 = vpop.f32.mrf.mxu1 }
 0x7b9   :  { %v2502_v39 = vadd.f32 %v9186_v37, %v9162_v57  ;;  %v2545_v51 = vmul.f32 0.5, %v2487_v32  ;;  %10117 = vtanh.f32 %v2546_v40 }
 0x7ba   :  { %v2496_v41 = vpop.f32.mrf.mxu1 }
 0x7bb   :  { %v2497_v42 = vadd.f32 %v2496_v41, %v2371_v61  ;;  %v2557_v43 = vmul.f32 0.5, %v2502_v39  ;;  %10119 = vtanh.f32 %v2545_v51 }
 0x7bc   :  { %v9189_v38 = vpop.f32.mrf.mxu1 }
 0x7bd   :  { %v2512_v44 = vadd.f32 %v9189_v38, %v9165_v62  ;;  %v2547_v45 = vmul.f32 0.5, %v2497_v42  ;;  %10121 = vtanh.f32 %v2557_v43 }
 0x7be   :  { %v2506_v27 = vpop.f32.mrf.mxu1 }
 0x7bf   :  { %v2559_v34 = vmul.f32 0.5, %v2512_v44  ;;  %v2507_v28 = vadd.f32 %v2506_v27, %v2381_v30 }
 0x7c0   :  { %v9192_v50 = vpop.f32.mrf.mxu1 }
 0x7c1   :  { %10123 = vtanh.f32 %v2559_v34  ;;  %v2558_v63 = vmul.f32 0.5, %v2507_v28  ;;  %v2522_v2 = vadd.f32 %v9192_v50, %v9168_v47 }
 0x7c2   :  { %10125 = vtanh.f32 %v2547_v45  ;;  %v2516_v53 = vpop.f32.mrf.mxu1 }
 0x7c3   :  { %10127 = vtanh.f32 %v2558_v63  ;;  %v2517_v54 = vadd.f32 %v2516_v53, %v2391_v52  ;;  %v11608_v53 = vld [vmem:[%s13098_s1 + $0x10] sm:$0xff] }
 0x7c4   :  { %v9195_v55 = vpop.f32.mrf.mxu1  ;;  %10129 = vtanh.f32 %v2522_v2  ;;  %v11601_v2 = vld [vmem:[%s13098_s1 + $0x8] sm:$0xff] }
 0x7c5   :  { %10131 = vtanh.f32 %v2517_v54  ;;  %v2532_v17 = vadd.f32 %v9195_v55, %v9171_v29  ;;  %v11615_v54 = vld [vmem:[%s13098_s1 + $0x18] sm:$0xff]  ;;  %v11629_v55 = vld [vmem:[%s13098_s1 + $0x28] sm:$0xff] }
 0x7c6   :  { %v2526_v33 = vpop.f32.mrf.mxu1  ;;  %v10118_v8 = vpop.eup %10117 }
 0x7c7   :  { %v2527_v5 = vadd.f32 %v2526_v33, %v2401_v36  ;;  %v2552_v4 = vmul.f32 0.5, %v10118_v8  ;;  %v2572_v60 = vmul.f32 0.5, %v2532_v17  ;;  %v11622_v36 = vld [vmem:[%s13098_s1 + $0x20] sm:$0xff]  ;;  %v11643_v33 = vld [vmem:[%s13098_s1 + $0x38] sm:$0xff]  ;;  %v7806_v8 = vld [vmem:[%s13097_s0 + $0x9] ss:$0 sm:$0xff] }
 0x7c8   :  { %v9198_v46 = vpop.f32.mrf.mxu1  ;;  %v10120_v10 = vpop.eup %10119  ;;  %v11733_v17 = vld [vmem:[%s13099_s2 + $0x38] sm:$0xff] }
 0x7c9   :  { %10133 = vtanh.f32 %v2527_v5  ;;  %v2542_v49 = vadd.f32 %v9198_v46, %v9174_v56  ;;  %v2551_v18 = vmul.f32 0.5, %v10120_v10  ;;  %v2555_v58 = vadd.f32 0.5, %v2552_v4  ;;  %v11636_v56 = vld [vmem:[%s13098_s1 + $0x30] sm:$0xff]  ;;  %v11650_v5 = vld [vmem:[%s13098_s1 + $0x40] sm:$0xff]  ;;  %v11657_v46 = vld [vmem:[%s13098_s1 + $0x48] sm:$0xff] }
 0x7ca   :  { %v2536_v1 = vpop.f32.mrf.mxu1  ;;  %v10122_v13 = vpop.eup %10121  ;;  %v2914_v10 = vsel %vm17_vm2, %v7806_v8, %v10833_v9  ;;  %v11726_v4 = vld [vmem:[%s13099_s2 + $0x30] sm:$0xff] }
 0x7cb   :  { %v2537_v31 = vadd.f32 %v2536_v1, %v2411_v48  ;;  %v2574_v15 = vmul.f32 0.5, %v2542_v49  ;;  %v2563_v24 = vmul.f32 0.5, %v10122_v13  ;;  %v2554_v57 = vadd.f32 0.5, %v2551_v18  ;;  %v11664_v48 = vld [vmem:[%s13098_s1 + $0x50] sm:$0xff]  ;;  %v11671_v49 = vld [vmem:[%s13098_s1 + $0x58] sm:$0xff]  ;;  %v11678_v1 = vld [vmem:[%s13098_s1] sm:$0xff]  ;;  %9243 = vmatprep.subr.mxu0 %v2914_v10 }
 0x7cc   :  { %9244 = vmatpush3.msra.mxu0 %v2914_v10  ;;  %v11698_v13 = vld [vmem:[%s13099_s2 + $0x10] sm:$0xff]  ;;  %v11747_v18 = vld [vmem:[%s13099_s2 + $0x48] sm:$0xff] }
 0x7cd   :  { %v2573_v21 = vmul.f32 0.5, %v2537_v31  ;;  %10135 = vtanh.f32 %v2574_v15  ;;  %v2566_v61 = vadd.f32 0.5, %v2563_v24  ;;  %v11691_v31 = vld [vmem:[%s13099_s2 + $0x8] sm:$0xff]  ;;  %v11712_v15 = vld [vmem:[%s13099_s2 + $0x20] sm:$0xff]  ;;  %v11754_v24 = vld [vmem:[%s13099_s2 + $0x50] sm:$0xff] }
 0x7ce   :  { %v10124_v14 = vpop.eup %10123  ;;  %9246 = vmatmul.mubr.msk.f32.vlgmr.msra.gmra.mxu0 %vm51_vm1, %v11691_v31 }
 0x7cf   :  { %v10126_v16 = vpop.eup %10125  ;;  %v2565_v20 = vmul.f32 0.5, %v10124_v14  ;;  %10137 = vtanh.f32 %v2573_v21  ;;  %v2584_v37 = vmul.f32 %v2566_v61, %v11525_v12  ;;  %9248 = vmatprep.mubr.msk.f32.mxu0 %vm51_vm1, %v11698_v13  ;;  %v11705_v14 = vld [vmem:[%s13099_s2 + $0x18] sm:$0xff]  ;;  %v11768_v21 = vld [vmem:[%s13099_s2] sm:$0xff] }
 0x7d0   :  { %v10128_v35 = vpop.eup %10127  ;;  %v2553_v26 = vmul.f32 0.5, %v10126_v16  ;;  %10139 = vtanh.f32 %v2572_v60  ;;  %v11719_v16 = vld [vmem:[%s13099_s2 + $0x28] sm:$0xff] }
 0x7d1   :  { %v2564_v22 = vmul.f32 0.5, %v10128_v35  ;;  %v10130_v25 = vpop.eup %10129  ;;  %v2568_v62 = vadd.f32 0.5, %v2565_v20  ;;  %v11740_v35 = vld [vmem:[%s13099_s2 + $0x40] sm:$0xff]  ;;  %v11761_v20 = vld [vmem:[%s13099_s2 + $0x58] sm:$0xff] }
 0x7d2   :  { %v10132_v11 = vpop.eup %10131  ;;  %v2588_v0 = vmul.f32 %v10130_v25, %v2555_v58  ;;  %v2556_v3 = vadd.f32 0.5, %v2553_v26  ;;  %9249 = vmatmul.mubr.msk.f32.gmra.mxu0 %vm51_vm1, %v11705_v14 }
 0x7d3   :  { %v2567_v59 = vadd.f32 0.5, %v2564_v22  ;;  %v2587_v7 = vmul.f32 %v10132_v11, %v2554_v57  ;;  %v2586_v39 = vmul.f32 %v2568_v62, %v11527_v23  ;;  %9251 = vmatprep.mubr.msk.f32.mxu0 %vm51_vm1, %v11712_v15  ;;  %v9203_v22 = vpop.f32.mrf.mxu0 }
 0x7d5   :  { %v2585_v30 = vmul.f32 %v2567_v59, %v11521_v19  ;;  %v11591_v41 = vadd.f32 %v2587_v7, %v2584_v37  ;;  %v2671_v25 = vpop.f32.mrf.mxu0 }
 0x7d6   :  { %v10134_v32 = vpop.eup %10133  ;;  %9252 = vmatmul.mubr.msk.f32.gmra.mxu0 %vm51_vm1, %v11719_v16 }
 0x7d7   :  { %v11587_v47 = vadd.f32 %v2588_v0, %v2585_v30  ;;  %v2589_v40 = vmul.f32 %v10134_v32, %v2556_v3  ;;  %9254 = vmatprep.mubr.msk.f32.mxu0 %vm51_vm1, %v11726_v4  ;;  %v9206_v26 = vpop.f32.mrf.mxu0 }
 0x7d9   :  { %v11593_v51 = vadd.f32 %v2589_v40, %v2586_v39  ;;  %10141 = vtanh.f32 %v11587_v47  ;;  %v2681_v11 = vpop.f32.mrf.mxu0 }
 0x7da   :  { %v10136_v19 = vpop.eup %10135  ;;  %9255 = vmatmul.mubr.msk.f32.gmra.mxu0 %vm51_vm1, %v11733_v17 }
 0x7db   :  { %10143 = vtanh.f32 %v11593_v51  ;;  %v2580_v52 = vmul.f32 0.5, %v10136_v19  ;;  %9257 = vmatprep.mubr.msk.f32.mxu0 %vm51_vm1, %v11740_v35  ;;  %v9209_v58 = vpop.f32.mrf.mxu0 }
 0x7dc   :  { %10145 = vtanh.f32 %v11591_v41  ;;  %v10138_v42 = vpop.eup %10137 }
 0x7dd   :  { %v2579_v43 = vmul.f32 0.5, %v10138_v42  ;;  %v10140_v38 = vpop.eup %10139  ;;  %v2583_v12 = vadd.f32 0.5, %v2580_v52  ;;  %v2691_v59 = vpop.f32.mrf.mxu0 }
 0x7de   :  { %v2578_v23 = vmul.f32 0.5, %v10140_v38  ;;  %9258 = vmatmul.mubr.msk.f32.gmra.mxu0 %vm51_vm1, %v11747_v18 }
 0x7df   :  { %v2582_v45 = vadd.f32 0.5, %v2579_v43  ;;  %9260 = vmatprep.mubr.msk.f32.mxu0 %vm51_vm1, %v11754_v24  ;;  %v9212_v30 = vpop.f32.mrf.mxu0 }
 0x7e0   :  { %v2581_v29 = vadd.f32 0.5, %v2578_v23 }
 0x7e1   :  { %v2701_v40 = vpop.f32.mrf.mxu0 }
 0x7e2   :  { %9261 = vmatmul.mubr.msk.f32.gmra.mxu0 %vm51_vm1, %v11761_v20 }
 0x7e3   :  { %9289 = vmatprep.mubr.msk.f32.mxu0 %vm51_vm1, %v11768_v21  ;;  %v9215_v23 = vpop.f32.mrf.mxu0 }
 0x7e6   :  { %v10142_v44 = vpop.eup %10141 }
 0x7e7   :  { %v2597_v50 = vmul.f32 %v10142_v44, %v2582_v45 }
 0x7e8   :  { %v10144_v27 = vpop.eup %10143 }
 0x7e9   :  { %v2598_v34 = vmul.f32 %v10144_v27, %v2583_v12  ;;  %v10146_v28 = vpop.eup %10145 }
 0x7ea   :  { %v2596_v63 = vmul.f32 %v10146_v28, %v2581_v29 }
 0x7eb   :  { %9219 = vmatprep.subr.mxu1 %v2598_v34 }
 0x7ec   :  { %9220 = vmatpush3.msra.mxu1 %v2598_v34 }
 0x7ed   :  { %9221 = vmatprep.subr.mxu1 %v2597_v50 }
 0x7ee   :  { %9222 = vmatpush3.msra.mxu1 %v2597_v50  ;;  %v2711_v50 = vpop.f32.mrf.mxu0 }
 0x7ef   :  { %9223 = vmatprep.subr.mxu1 %v2596_v63 }
 0x7f0   :  { %9224 = vmatpush3.msra.mxu1 %v2596_v63  ;;  %v9218_v8 = vpop.f32.mrf.mxu0 }
 0x7f1   :  { %9226 = vmatmul.mubr.msk.f32.vlgmr.msra.gmra.mxu1 %vm213_vm0, %v11601_v2 }
 0x7f2   :  { %9228 = vmatprep.mubr.msk.f32.mxu1 %vm213_vm0, %v11608_v53 }
 0x7f5   :  { %9229 = vmatmul.mubr.msk.f32.gmra.mxu1 %vm213_vm0, %v11615_v54 }
 0x7f6   :  { %9231 = vmatprep.mubr.msk.f32.mxu1 %vm213_vm0, %v11622_v36 }
 0x7f9   :  { %9232 = vmatmul.mubr.msk.f32.gmra.mxu1 %vm213_vm0, %v11629_v55 }
 0x7fa   :  { %9234 = vmatprep.mubr.msk.f32.mxu1 %vm213_vm0, %v11636_v56 }
 0x7fd   :  { %9235 = vmatmul.mubr.msk.f32.gmra.mxu1 %vm213_vm0, %v11643_v33 }
 0x7fe   :  { %9237 = vmatprep.mubr.msk.f32.mxu1 %vm213_vm0, %v11650_v5 }
 0x801   :  { %9238 = vmatmul.mubr.msk.f32.gmra.mxu1 %vm213_vm0, %v11657_v46 }
 0x802   :  { %9240 = vmatprep.mubr.msk.f32.mxu1 %vm213_vm0, %v11664_v48 }
 0x805   :  { %9241 = vmatmul.mubr.msk.f32.gmra.mxu1 %vm213_vm0, %v11671_v49 }
 0x806   :  { %9269 = vmatprep.mubr.msk.f32.mxu1 %vm213_vm0, %v11678_v1 }
 0x8b1   :  { %v9227_v60 = vpop.f32.mrf.mxu1 }
 0x8b2   :  { %v2802_v57 = vadd.f32 %v9227_v60, %v9203_v22 }
 0x8b3   :  { %v2796_v61 = vpop.f32.mrf.mxu1 }
 0x8b4   :  { %v2797_v62 = vadd.f32 %v2796_v61, %v2671_v25  ;;  %v2856_v7 = vmul.f32 0.5, %v2802_v57 }
 0x8b5   :  { %v9230_v0 = vpop.f32.mrf.mxu1 }
 0x8b6   :  { %v2812_v3 = vadd.f32 %v9230_v0, %v9206_v26  ;;  %v2855_v37 = vmul.f32 0.5, %v2797_v62  ;;  %10147 = vtanh.f32 %v2856_v7  ;;  %v2721_v26 = vpop.f32.mrf.mxu0 }
 0x8b7   :  { %v2806_v32 = vpop.f32.mrf.mxu1 }
 0x8b8   :  { %v2807_v39 = vadd.f32 %v2806_v32, %v2681_v11  ;;  %v2867_v19 = vmul.f32 0.5, %v2812_v3  ;;  %10149 = vtanh.f32 %v2855_v37 }
 0x8b9   :  { %v9233_v42 = vpop.f32.mrf.mxu1 }
 0x8ba   :  { %v2822_v52 = vadd.f32 %v9233_v42, %v9209_v58  ;;  %v2857_v43 = vmul.f32 0.5, %v2807_v39  ;;  %10151 = vtanh.f32 %v2867_v19 }
 0x8bb   :  { %v2816_v38 = vpop.f32.mrf.mxu1 }
 0x8bc   :  { %v2869_v12 = vmul.f32 0.5, %v2822_v52  ;;  %v2817_v44 = vadd.f32 %v2816_v38, %v2691_v59 }
 0x8bd   :  { %v9236_v45 = vpop.f32.mrf.mxu1 }
 0x8be   :  { %10153 = vtanh.f32 %v2869_v12  ;;  %v2868_v27 = vmul.f32 0.5, %v2817_v44  ;;  %v2832_v34 = vadd.f32 %v9236_v45, %v9212_v30 }
 0x8bf   :  { %10155 = vtanh.f32 %v2857_v43  ;;  %v2826_v28 = vpop.f32.mrf.mxu1 }
 0x8c0   :  { %10157 = vtanh.f32 %v2868_v27  ;;  %v2827_v29 = vadd.f32 %v2826_v28, %v2701_v40 }
 0x8c1   :  { %v9239_v63 = vpop.f32.mrf.mxu1  ;;  %10159 = vtanh.f32 %v2832_v34 }
 0x8c2   :  { %10161 = vtanh.f32 %v2827_v29  ;;  %v2842_v7 = vadd.f32 %v9239_v63, %v9215_v23 }
 0x8c3   :  { %v2836_v10 = vpop.f32.mrf.mxu1  ;;  %v10148_v59 = vpop.eup %10147 }
 0x8c4   :  { %v2837_v22 = vadd.f32 %v2836_v10, %v2711_v50  ;;  %v2862_v3 = vmul.f32 0.5, %v10148_v59  ;;  %v2882_v45 = vmul.f32 0.5, %v2842_v7 }
 0x8c5   :  { %v9242_v25 = vpop.f32.mrf.mxu1  ;;  %v10150_v60 = vpop.eup %10149 }
 0x8c6   :  { %10163 = vtanh.f32 %v2837_v22  ;;  %v2852_v11 = vadd.f32 %v9242_v25, %v9218_v8  ;;  %v2861_v37 = vmul.f32 0.5, %v10150_v60  ;;  %v2865_v12 = vadd.f32 0.5, %v2862_v3 }
 0x8c7   :  { %v2846_v58 = vpop.f32.mrf.mxu1  ;;  %v10152_v61 = vpop.eup %10151 }
 0x8c8   :  { %v2847_v57 = vadd.f32 %v2846_v58, %v2721_v26  ;;  %v2884_v30 = vmul.f32 0.5, %v2852_v11  ;;  %v2873_v39 = vmul.f32 0.5, %v10152_v61  ;;  %v2864_v27 = vadd.f32 0.5, %v2861_v37 }
 0x8ca   :  { %v2883_v19 = vmul.f32 0.5, %v2847_v57  ;;  %10165 = vtanh.f32 %v2884_v30  ;;  %v2876_v34 = vadd.f32 0.5, %v2873_v39 }
 0x8cb   :  { %v10154_v62 = vpop.eup %10153 }
 0x8cc   :  { %v10156_v0 = vpop.eup %10155  ;;  %v2875_v40 = vmul.f32 0.5, %v10154_v62  ;;  %10167 = vtanh.f32 %v2883_v19  ;;  %v2894_v22 = vmul.f32 %v2876_v34, %v11591_v41 }
 0x8cd   :  { %v10158_v32 = vpop.eup %10157  ;;  %v2863_v43 = vmul.f32 0.5, %v10156_v0  ;;  %10169 = vtanh.f32 %v2882_v45 }
 0x8ce   :  { %v2874_v42 = vmul.f32 0.5, %v10158_v32  ;;  %v10160_v52 = vpop.eup %10159  ;;  %v2878_v28 = vadd.f32 0.5, %v2875_v40  ;;  %v7831_v40 = vld [vmem:[%s13097_s0 + $0xa] ss:$0 sm:$0xff] }
 0x8cf   :  { %v10162_v38 = vpop.eup %10161  ;;  %v2898_v23 = vmul.f32 %v10160_v52, %v2865_v12  ;;  %v2866_v50 = vadd.f32 0.5, %v2863_v43  ;;  %v3224_v19 = vsel %vm17_vm2, %v7831_v40, %v10833_v9 }
 0x8d0   :  { %v2877_v44 = vadd.f32 0.5, %v2874_v42  ;;  %v2897_v63 = vmul.f32 %v10162_v38, %v2864_v27  ;;  %v2896_v25 = vmul.f32 %v2878_v28, %v11593_v51  ;;  %9287 = vmatprep.subr.mxu0 %v3224_v19  ;;  %v9247_v42 = vpop.f32.mrf.mxu0 }
 0x8d1   :  { %9288 = vmatpush3.msra.mxu0 %v3224_v19 }
 0x8d2   :  { %v2895_v29 = vmul.f32 %v2877_v44, %v11587_v47  ;;  %v11777_v11 = vadd.f32 %v2897_v63, %v2894_v22  ;;  %9290 = vmatmul.mubr.msk.f32.vlgmr.msra.gmra.mxu0 %vm51_vm1, %v11691_v31  ;;  %v2981_v52 = vpop.f32.mrf.mxu0 }
 0x8d3   :  { %v10164_v8 = vpop.eup %10163  ;;  %9292 = vmatprep.mubr.msk.f32.mxu0 %vm51_vm1, %v11698_v13 }
 0x8d4   :  { %v11773_v10 = vadd.f32 %v2898_v23, %v2895_v29  ;;  %v2899_v26 = vmul.f32 %v10164_v8, %v2866_v50  ;;  %v9250_v43 = vpop.f32.mrf.mxu0 }
 0x8d6   :  { %v11779_v58 = vadd.f32 %v2899_v26, %v2896_v25  ;;  %10171 = vtanh.f32 %v11773_v10  ;;  %9293 = vmatmul.mubr.msk.f32.gmra.mxu0 %vm51_vm1, %v11705_v14  ;;  %v2991_v38 = vpop.f32.mrf.mxu0 }
 0x8d7   :  { %v10166_v47 = vpop.eup %10165  ;;  %9295 = vmatprep.mubr.msk.f32.mxu0 %vm51_vm1, %v11712_v15 }
 0x8d8   :  { %10173 = vtanh.f32 %v11779_v58  ;;  %v2890_v60 = vmul.f32 0.5, %v10166_v47  ;;  %v9253_v12 = vpop.f32.mrf.mxu0 }
 0x8d9   :  { %10175 = vtanh.f32 %v11777_v11  ;;  %v10168_v59 = vpop.eup %10167 }
 0x8da   :  { %v2889_v57 = vmul.f32 0.5, %v10168_v59  ;;  %v10170_v61 = vpop.eup %10169  ;;  %v2893_v41 = vadd.f32 0.5, %v2890_v60  ;;  %9296 = vmatmul.mubr.msk.f32.gmra.mxu0 %vm51_vm1, %v11719_v16  ;;  %v3001_v44 = vpop.f32.mrf.mxu0 }
 0x8db   :  { %v2888_v51 = vmul.f32 0.5, %v10170_v61  ;;  %9298 = vmatprep.mubr.msk.f32.mxu0 %vm51_vm1, %v11726_v4 }
 0x8dc   :  { %v2892_v30 = vadd.f32 0.5, %v2889_v57  ;;  %v9256_v29 = vpop.f32.mrf.mxu0 }
 0x8dd   :  { %v2891_v32 = vadd.f32 0.5, %v2888_v51 }
 0x8de   :  { %9299 = vmatmul.mubr.msk.f32.gmra.mxu0 %vm51_vm1, %v11733_v17  ;;  %v3011_v26 = vpop.f32.mrf.mxu0 }
 0x8df   :  { %9301 = vmatprep.mubr.msk.f32.mxu0 %vm51_vm1, %v11740_v35 }
 0x8e0   :  { %v9259_v51 = vpop.f32.mrf.mxu0 }
 0x8e2   :  { %9302 = vmatmul.mubr.msk.f32.gmra.mxu0 %vm51_vm1, %v11747_v18 }
 0x8e3   :  { %v10172_v62 = vpop.eup %10171  ;;  %9304 = vmatprep.mubr.msk.f32.mxu0 %vm51_vm1, %v11754_v24 }
 0x8e4   :  { %v2907_v37 = vmul.f32 %v10172_v62, %v2892_v30 }
 0x8e5   :  { %v10174_v0 = vpop.eup %10173 }
 0x8e6   :  { %v2908_v3 = vmul.f32 %v10174_v0, %v2893_v41  ;;  %v10176_v7 = vpop.eup %10175  ;;  %9305 = vmatmul.mubr.msk.f32.gmra.mxu0 %vm51_vm1, %v11761_v20 }
 0x8e7   :  { %v2906_v39 = vmul.f32 %v10176_v7, %v2891_v32  ;;  %9333 = vmatprep.mubr.msk.f32.mxu0 %vm51_vm1, %v11768_v21 }
 0x8e8   :  { %9263 = vmatprep.subr.mxu1 %v2908_v3 }
 0x8e9   :  { %9264 = vmatpush3.msra.mxu1 %v2908_v3 }
 0x8ea   :  { %9265 = vmatprep.subr.mxu1 %v2907_v37 }
 0x8eb   :  { %9266 = vmatpush3.msra.mxu1 %v2907_v37  ;;  %v3021_v37 = vpop.f32.mrf.mxu0 }
 0x8ec   :  { %9267 = vmatprep.subr.mxu1 %v2906_v39 }
 0x8ed   :  { %9268 = vmatpush3.msra.mxu1 %v2906_v39  ;;  %v9262_v40 = vpop.f32.mrf.mxu0 }
 0x8ee   :  { %9270 = vmatmul.mubr.msk.f32.vlgmr.msra.gmra.mxu1 %vm213_vm0, %v11601_v2 }
 0x8ef   :  { %9272 = vmatprep.mubr.msk.f32.mxu1 %vm213_vm0, %v11608_v53 }
 0x8f2   :  { %9273 = vmatmul.mubr.msk.f32.gmra.mxu1 %vm213_vm0, %v11615_v54 }
 0x8f3   :  { %9275 = vmatprep.mubr.msk.f32.mxu1 %vm213_vm0, %v11622_v36 }
 0x8f6   :  { %9276 = vmatmul.mubr.msk.f32.gmra.mxu1 %vm213_vm0, %v11629_v55 }
 0x8f7   :  { %9278 = vmatprep.mubr.msk.f32.mxu1 %vm213_vm0, %v11636_v56 }
 0x8fa   :  { %9279 = vmatmul.mubr.msk.f32.gmra.mxu1 %vm213_vm0, %v11643_v33 }
 0x8fb   :  { %9281 = vmatprep.mubr.msk.f32.mxu1 %vm213_vm0, %v11650_v5 }
 0x8fe   :  { %9282 = vmatmul.mubr.msk.f32.gmra.mxu1 %vm213_vm0, %v11657_v46 }
 0x8ff   :  { %9284 = vmatprep.mubr.msk.f32.mxu1 %vm213_vm0, %v11664_v48 }
 0x902   :  { %9285 = vmatmul.mubr.msk.f32.gmra.mxu1 %vm213_vm0, %v11671_v49 }
 0x903   :  { %9313 = vmatprep.mubr.msk.f32.mxu1 %vm213_vm0, %v11678_v1 }
 0x9ae   :  { %v9271_v45 = vpop.f32.mrf.mxu1 }
 0x9af   :  { %v3112_v27 = vadd.f32 %v9271_v45, %v9247_v42 }
 0x9b0   :  { %v3106_v34 = vpop.f32.mrf.mxu1 }
 0x9b1   :  { %v3107_v28 = vadd.f32 %v3106_v34, %v2981_v52  ;;  %v3166_v63 = vmul.f32 0.5, %v3112_v27 }
 0x9b2   :  { %v9274_v23 = vpop.f32.mrf.mxu1 }
 0x9b3   :  { %v3122_v50 = vadd.f32 %v9274_v23, %v9250_v43  ;;  %v3165_v22 = vmul.f32 0.5, %v3107_v28  ;;  %10177 = vtanh.f32 %v3166_v63  ;;  %v3031_v43 = vpop.f32.mrf.mxu0 }
 0x9b4   :  { %v3116_v8 = vpop.f32.mrf.mxu1 }
 0x9b5   :  { %v3117_v25 = vadd.f32 %v3116_v8, %v2991_v38  ;;  %v3177_v47 = vmul.f32 0.5, %v3122_v50  ;;  %10179 = vtanh.f32 %v3165_v22 }
 0x9b6   :  { %v9277_v59 = vpop.f32.mrf.mxu1 }
 0x9b7   :  { %v3132_v60 = vadd.f32 %v9277_v59, %v9253_v12  ;;  %v3167_v57 = vmul.f32 0.5, %v3117_v25  ;;  %10181 = vtanh.f32 %v3177_v47 }
 0x9b8   :  { %v3126_v61 = vpop.f32.mrf.mxu1 }
 0x9b9   :  { %v3179_v41 = vmul.f32 0.5, %v3132_v60  ;;  %v3127_v62 = vadd.f32 %v3126_v61, %v3001_v44 }
 0x9ba   :  { %v9280_v30 = vpop.f32.mrf.mxu1 }
 0x9bb   :  { %10183 = vtanh.f32 %v3179_v41  ;;  %v3178_v0 = vmul.f32 0.5, %v3127_v62  ;;  %v3142_v3 = vadd.f32 %v9280_v30, %v9256_v29 }
 0x9bc   :  { %10185 = vtanh.f32 %v3167_v57  ;;  %v3136_v7 = vpop.f32.mrf.mxu1 }
 0x9bd   :  { %10187 = vtanh.f32 %v3178_v0  ;;  %v3137_v32 = vadd.f32 %v3136_v7, %v3011_v26 }
 0x9be   :  { %v9283_v39 = vpop.f32.mrf.mxu1  ;;  %10189 = vtanh.f32 %v3142_v3 }
 0x9bf   :  { %10191 = vtanh.f32 %v3137_v32  ;;  %v3152_v63 = vadd.f32 %v9283_v39, %v9259_v51 }
 0x9c0   :  { %v3146_v19 = vpop.f32.mrf.mxu1  ;;  %v10178_v44 = vpop.eup %10177 }
 0x9c1   :  { %v3147_v42 = vadd.f32 %v3146_v19, %v3021_v37  ;;  %v3172_v50 = vmul.f32 0.5, %v10178_v44  ;;  %v3192_v30 = vmul.f32 0.5, %v3152_v63 }
 0x9c2   :  { %v9286_v52 = vpop.f32.mrf.mxu1  ;;  %v10180_v45 = vpop.eup %10179 }
 0x9c3   :  { %10193 = vtanh.f32 %v3147_v42  ;;  %v3162_v38 = vadd.f32 %v9286_v52, %v9262_v40  ;;  %v3171_v22 = vmul.f32 0.5, %v10180_v45  ;;  %v3175_v41 = vadd.f32 0.5, %v3172_v50 }
 0x9c4   :  { %v3156_v12 = vpop.f32.mrf.mxu1  ;;  %v10182_v34 = vpop.eup %10181 }
 0x9c5   :  { %v3157_v27 = vadd.f32 %v3156_v12, %v3031_v43  ;;  %v3194_v29 = vmul.f32 0.5, %v3162_v38  ;;  %v3183_v25 = vmul.f32 0.5, %v10182_v34  ;;  %v3174_v0 = vadd.f32 0.5, %v3171_v22 }
 0x9c7   :  { %v3193_v47 = vmul.f32 0.5, %v3157_v27  ;;  %10195 = vtanh.f32 %v3194_v29  ;;  %v3186_v3 = vadd.f32 0.5, %v3183_v25 }
 0x9c8   :  { %v10184_v28 = vpop.eup %10183 }
 0x9c9   :  { %v10186_v23 = vpop.eup %10185  ;;  %v3185_v26 = vmul.f32 0.5, %v10184_v28  ;;  %10197 = vtanh.f32 %v3193_v47  ;;  %v3204_v42 = vmul.f32 %v3186_v3, %v11777_v11 }
 0x9ca   :  { %v10188_v8 = vpop.eup %10187  ;;  %v3173_v57 = vmul.f32 0.5, %v10186_v23  ;;  %10199 = vtanh.f32 %v3192_v30 }
 0x9cb   :  { %v3184_v59 = vmul.f32 0.5, %v10188_v8  ;;  %v10190_v60 = vpop.eup %10189  ;;  %v3188_v7 = vadd.f32 0.5, %v3185_v26  ;;  %v7856_v26 = vld [vmem:[%s13097_s0 + $0xb] ss:$0 sm:$0xff] }
 0x9cc   :  { %v10192_v61 = vpop.eup %10191  ;;  %v3208_v51 = vmul.f32 %v10190_v60, %v3175_v41  ;;  %v3176_v37 = vadd.f32 0.5, %v3173_v57  ;;  %v3534_v47 = vsel %vm17_vm2, %v7856_v26, %v10833_v9 }
 0x9cd   :  { %v3187_v62 = vadd.f32 0.5, %v3184_v59  ;;  %v3207_v39 = vmul.f32 %v10192_v61, %v3174_v0  ;;  %v3206_v52 = vmul.f32 %v3188_v7, %v11779_v58  ;;  %9331 = vmatprep.subr.mxu0 %v3534_v47  ;;  %v9291_v59 = vpop.f32.mrf.mxu0 }
 0x9ce   :  { %9332 = vmatpush3.msra.mxu0 %v3534_v47 }
 0x9cf   :  { %v3205_v32 = vmul.f32 %v3187_v62, %v11773_v10  ;;  %v11843_v38 = vadd.f32 %v3207_v39, %v3204_v42  ;;  %9334 = vmatmul.mubr.msk.f32.vlgmr.msra.gmra.mxu0 %vm51_vm1, %v11691_v31  ;;  %v3291_v60 = vpop.f32.mrf.mxu0 }
 0x9d0   :  { %v10194_v40 = vpop.eup %10193  ;;  %9336 = vmatprep.mubr.msk.f32.mxu0 %vm51_vm1, %v11698_v13 }
 0x9d1   :  { %v11839_v19 = vadd.f32 %v3208_v51, %v3205_v32  ;;  %v3209_v43 = vmul.f32 %v10194_v40, %v3176_v37  ;;  %v9294_v57 = vpop.f32.mrf.mxu0 }
 0x9d3   :  { %v11845_v12 = vadd.f32 %v3209_v43, %v3206_v52  ;;  %10201 = vtanh.f32 %v11839_v19  ;;  %9337 = vmatmul.mubr.msk.f32.gmra.mxu0 %vm51_vm1, %v11705_v14  ;;  %v3301_v61 = vpop.f32.mrf.mxu0 }
 0x9d4   :  { %v10196_v10 = vpop.eup %10195  ;;  %9339 = vmatprep.mubr.msk.f32.mxu0 %vm51_vm1, %v11712_v15 }
 0x9d5   :  { %10203 = vtanh.f32 %v11845_v12  ;;  %v3200_v45 = vmul.f32 0.5, %v10196_v10  ;;  %v9297_v41 = vpop.f32.mrf.mxu0 }
 0x9d6   :  { %10205 = vtanh.f32 %v11843_v38  ;;  %v10198_v44 = vpop.eup %10197 }
 0x9d7   :  { %v3199_v27 = vmul.f32 0.5, %v10198_v44  ;;  %v10200_v34 = vpop.eup %10199  ;;  %v3203_v11 = vadd.f32 0.5, %v3200_v45  ;;  %9340 = vmatmul.mubr.msk.f32.gmra.mxu0 %vm51_vm1, %v11719_v16  ;;  %v3311_v62 = vpop.f32.mrf.mxu0 }
 0x9d8   :  { %v3198_v58 = vmul.f32 0.5, %v10200_v34  ;;  %9342 = vmatprep.mubr.msk.f32.mxu0 %vm51_vm1, %v11726_v4 }
 0x9d9   :  { %v3202_v29 = vadd.f32 0.5, %v3199_v27  ;;  %v9300_v32 = vpop.f32.mrf.mxu0 }
 0x9da   :  { %v3201_v8 = vadd.f32 0.5, %v3198_v58 }
 0x9db   :  { %9343 = vmatmul.mubr.msk.f32.gmra.mxu0 %vm51_vm1, %v11733_v17  ;;  %v3321_v43 = vpop.f32.mrf.mxu0 }
 0x9dc   :  { %9345 = vmatprep.mubr.msk.f32.mxu0 %vm51_vm1, %v11740_v35 }
 0x9dd   :  { %v9303_v58 = vpop.f32.mrf.mxu0 }
 0x9df   :  { %9346 = vmatmul.mubr.msk.f32.gmra.mxu0 %vm51_vm1, %v11747_v18 }
 0x9e0   :  { %v10202_v28 = vpop.eup %10201  ;;  %9348 = vmatprep.mubr.msk.f32.mxu0 %vm51_vm1, %v11754_v24 }
 0x9e1   :  { %v3217_v22 = vmul.f32 %v10202_v28, %v3202_v29 }
 0x9e2   :  { %v10204_v23 = vpop.eup %10203 }
 0x9e3   :  { %v3218_v50 = vmul.f32 %v10204_v23, %v3203_v11  ;;  %v10206_v63 = vpop.eup %10205  ;;  %9349 = vmatmul.mubr.msk.f32.gmra.mxu0 %vm51_vm1, %v11761_v20 }
 0x9e4   :  { %v3216_v25 = vmul.f32 %v10206_v63, %v3201_v8  ;;  %9377 = vmatprep.mubr.msk.f32.mxu0 %vm51_vm1, %v11768_v21 }
 0x9e5   :  { %9307 = vmatprep.subr.mxu1 %v3218_v50 }
 0x9e6   :  { %9308 = vmatpush3.msra.mxu1 %v3218_v50 }
 0x9e7   :  { %9309 = vmatprep.subr.mxu1 %v3217_v22 }
 0x9e8   :  { %9310 = vmatpush3.msra.mxu1 %v3217_v22  ;;  %v3331_v22 = vpop.f32.mrf.mxu0 }
 0x9e9   :  { %9311 = vmatprep.subr.mxu1 %v3216_v25 }
 0x9ea   :  { %9312 = vmatpush3.msra.mxu1 %v3216_v25  ;;  %v9306_v26 = vpop.f32.mrf.mxu0 }
 0x9eb   :  { %9314 = vmatmul.mubr.msk.f32.vlgmr.msra.gmra.mxu1 %vm213_vm0, %v11601_v2 }
 0x9ec   :  { %9316 = vmatprep.mubr.msk.f32.mxu1 %vm213_vm0, %v11608_v53 }
 0x9ef   :  { %9317 = vmatmul.mubr.msk.f32.gmra.mxu1 %vm213_vm0, %v11615_v54 }
 0x9f0   :  { %9319 = vmatprep.mubr.msk.f32.mxu1 %vm213_vm0, %v11622_v36 }
 0x9f3   :  { %9320 = vmatmul.mubr.msk.f32.gmra.mxu1 %vm213_vm0, %v11629_v55 }
 0x9f4   :  { %9322 = vmatprep.mubr.msk.f32.mxu1 %vm213_vm0, %v11636_v56 }
 0x9f7   :  { %9323 = vmatmul.mubr.msk.f32.gmra.mxu1 %vm213_vm0, %v11643_v33 }
 0x9f8   :  { %9325 = vmatprep.mubr.msk.f32.mxu1 %vm213_vm0, %v11650_v5 }
 0x9fb   :  { %9326 = vmatmul.mubr.msk.f32.gmra.mxu1 %vm213_vm0, %v11657_v46 }
 0x9fc   :  { %9328 = vmatprep.mubr.msk.f32.mxu1 %vm213_vm0, %v11664_v48 }
 0x9ff   :  { %9329 = vmatmul.mubr.msk.f32.gmra.mxu1 %vm213_vm0, %v11671_v49 }
 0xa00   :  { %9357 = vmatprep.mubr.msk.f32.mxu1 %vm213_vm0, %v11678_v1 }
 0xaab   :  { %v9315_v30 = vpop.f32.mrf.mxu1 }
 0xaac   :  { %v3422_v0 = vadd.f32 %v9315_v30, %v9291_v59 }
 0xaad   :  { %v3416_v3 = vpop.f32.mrf.mxu1 }
 0xaae   :  { %v3417_v7 = vadd.f32 %v3416_v3, %v3291_v60  ;;  %v3476_v39 = vmul.f32 0.5, %v3422_v0 }
 0xaaf   :  { %v9318_v51 = vpop.f32.mrf.mxu1 }
 0xab0   :  { %v3432_v37 = vadd.f32 %v9318_v51, %v9294_v57  ;;  %v3475_v42 = vmul.f32 0.5, %v3417_v7  ;;  %10207 = vtanh.f32 %v3476_v39  ;;  %v3341_v57 = vpop.f32.mrf.mxu0 }
 0xab1   :  { %v3426_v40 = vpop.f32.mrf.mxu1 }
 0xab2   :  { %v3427_v52 = vadd.f32 %v3426_v40, %v3301_v61  ;;  %v3487_v10 = vmul.f32 0.5, %v3432_v37  ;;  %10209 = vtanh.f32 %v3475_v42 }
 0xab3   :  { %v9321_v44 = vpop.f32.mrf.mxu1 }
 0xab4   :  { %v3442_v45 = vadd.f32 %v9321_v44, %v9297_v41  ;;  %v3477_v27 = vmul.f32 0.5, %v3427_v52  ;;  %10211 = vtanh.f32 %v3487_v10 }
 0xab5   :  { %v3436_v34 = vpop.f32.mrf.mxu1 }
 0xab6   :  { %v3489_v11 = vmul.f32 0.5, %v3442_v45  ;;  %v3437_v28 = vadd.f32 %v3436_v34, %v3311_v62 }
 0xab7   :  { %v9324_v29 = vpop.f32.mrf.mxu1 }
 0xab8   :  { %10213 = vtanh.f32 %v3489_v11  ;;  %v3488_v23 = vmul.f32 0.5, %v3437_v28  ;;  %v3452_v50 = vadd.f32 %v9324_v29, %v9300_v32 }
 0xab9   :  { %10215 = vtanh.f32 %v3477_v27  ;;  %v3446_v63 = vpop.f32.mrf.mxu1 }
 0xaba   :  { %10217 = vtanh.f32 %v3488_v23  ;;  %v3447_v8 = vadd.f32 %v3446_v63, %v3321_v43 }
 0xabb   :  { %v9327_v25 = vpop.f32.mrf.mxu1  ;;  %10219 = vtanh.f32 %v3452_v50 }
 0xabc   :  { %10221 = vtanh.f32 %v3447_v8  ;;  %v3462_v39 = vadd.f32 %v9327_v25, %v9303_v58 }
 0xabd   :  { %v3456_v47 = vpop.f32.mrf.mxu1  ;;  %v10208_v62 = vpop.eup %10207 }
 0xabe   :  { %v3457_v59 = vadd.f32 %v3456_v47, %v3331_v22  ;;  %v3482_v37 = vmul.f32 0.5, %v10208_v62  ;;  %v3502_v29 = vmul.f32 0.5, %v3462_v39 }
 0xabf   :  { %v9330_v60 = vpop.f32.mrf.mxu1  ;;  %v10210_v30 = vpop.eup %10209 }
 0xac0   :  { %10223 = vtanh.f32 %v3457_v59  ;;  %v3472_v61 = vadd.f32 %v9330_v60, %v9306_v26  ;;  %v3481_v42 = vmul.f32 0.5, %v10210_v30  ;;  %v3485_v11 = vadd.f32 0.5, %v3482_v37 }
 0xac1   :  { %v3466_v41 = vpop.f32.mrf.mxu1  ;;  %v10212_v3 = vpop.eup %10211 }
 0xac2   :  { %v3467_v0 = vadd.f32 %v3466_v41, %v3341_v57  ;;  %v3504_v32 = vmul.f32 0.5, %v3472_v61  ;;  %v3493_v52 = vmul.f32 0.5, %v10212_v3  ;;  %v3484_v23 = vadd.f32 0.5, %v3481_v42 }
 0xac4   :  { %v3503_v10 = vmul.f32 0.5, %v3467_v0  ;;  %10225 = vtanh.f32 %v3504_v32  ;;  %v3496_v50 = vadd.f32 0.5, %v3493_v52 }
 0xac5   :  { %v10214_v7 = vpop.eup %10213 }
 0xac6   :  { %v10216_v51 = vpop.eup %10215  ;;  %v3495_v43 = vmul.f32 0.5, %v10214_v7  ;;  %10227 = vtanh.f32 %v3503_v10  ;;  %v3514_v59 = vmul.f32 %v3496_v50, %v11843_v38 }
 0xac7   :  { %v10218_v40 = vpop.eup %10217  ;;  %v3483_v27 = vmul.f32 0.5, %v10216_v51  ;;  %10229 = vtanh.f32 %v3502_v29 }
 0xac8   :  { %v3494_v44 = vmul.f32 0.5, %v10218_v40  ;;  %v10220_v45 = vpop.eup %10219  ;;  %v3498_v63 = vadd.f32 0.5, %v3495_v43 }
 0xac9   :  { %v10222_v34 = vpop.eup %10221  ;;  %v3518_v58 = vmul.f32 %v10220_v45, %v3485_v11  ;;  %v3486_v22 = vadd.f32 0.5, %v3483_v27 }
 0xaca   :  { %v3497_v28 = vadd.f32 0.5, %v3494_v44  ;;  %v3517_v25 = vmul.f32 %v10222_v34, %v3484_v23  ;;  %v3516_v60 = vmul.f32 %v3498_v63, %v11845_v12 }
 0xacc   :  { %v3515_v8 = vmul.f32 %v3497_v28, %v11839_v19  ;;  %v11909_v61 = vadd.f32 %v3517_v25, %v3514_v59 }
 0xacd   :  { %v10224_v26 = vpop.eup %10223 }
 0xace   :  { %v11905_v47 = vadd.f32 %v3518_v58, %v3515_v8  ;;  %v3519_v57 = vmul.f32 %v10224_v26, %v3486_v22 }
 0xad0   :  { %v11911_v41 = vadd.f32 %v3519_v57, %v3516_v60  ;;  %10231 = vtanh.f32 %v11905_v47 }
 0xad1   :  { %v10226_v19 = vpop.eup %10225 }
 0xad2   :  { %10233 = vtanh.f32 %v11911_v41  ;;  %v3510_v30 = vmul.f32 0.5, %v10226_v19 }
 0xad3   :  { %10235 = vtanh.f32 %v11909_v61  ;;  %v10228_v62 = vpop.eup %10227 }
 0xad4   :  { %v3509_v0 = vmul.f32 0.5, %v10228_v62  ;;  %v10230_v3 = vpop.eup %10229  ;;  %v3513_v38 = vadd.f32 0.5, %v3510_v30 }
 0xad5   :  { %v3508_v12 = vmul.f32 0.5, %v10230_v3 }
 0xad6   :  { %v3512_v32 = vadd.f32 0.5, %v3509_v0 }
 0xad7   :  { %v3511_v40 = vadd.f32 0.5, %v3508_v12 }
 0xadd   :  { %v10232_v7 = vpop.eup %10231 }
 0xade   :  { %v3527_v42 = vmul.f32 %v10232_v7, %v3512_v32 }
 0xadf   :  { %v10234_v51 = vpop.eup %10233 }
 0xae0   :  { %v3528_v37 = vmul.f32 %v10234_v51, %v3513_v38  ;;  %v10236_v39 = vpop.eup %10235 }
 0xae1   :  { %v3526_v52 = vmul.f32 %v10236_v39, %v3511_v40 }
 0xae2   :  { %9351 = vmatprep.subr.mxu1 %v3528_v37 }
 0xae3   :  { %9352 = vmatpush3.msra.mxu1 %v3528_v37 }
 0xae4   :  { %9353 = vmatprep.subr.mxu1 %v3527_v42 }
 0xae5   :  { %9354 = vmatpush3.msra.mxu1 %v3527_v42 }
 0xae6   :  { %9355 = vmatprep.subr.mxu1 %v3526_v52 }
 0xae7   :  { %9356 = vmatpush3.msra.mxu1 %v3526_v52 }
 0xae8   :  { %9358 = vmatmul.mubr.msk.f32.vlgmr.msra.gmra.mxu1 %vm213_vm0, %v11601_v2  ;;  %v7881_v2 = vld [vmem:[%s13097_s0 + $0xc] ss:$0 sm:$0xff] }
 0xae9   :  { %9360 = vmatprep.mubr.msk.f32.mxu1 %vm213_vm0, %v11608_v53  ;;  %v3844_v53 = vsel %vm17_vm2, %v7881_v2, %v10833_v9 }
 0xaea   :  { %9375 = vmatprep.subr.mxu0 %v3844_v53 }
 0xaeb   :  { %9376 = vmatpush3.msra.mxu0 %v3844_v53 }
 0xaec   :  { %9361 = vmatmul.mubr.msk.f32.gmra.mxu1 %vm213_vm0, %v11615_v54  ;;  %9378 = vmatmul.mubr.msk.f32.vlgmr.msra.gmra.mxu0 %vm51_vm1, %v11691_v31  ;;  %v9335_v54 = vpop.f32.mrf.mxu0 }
 0xaed   :  { %9363 = vmatprep.mubr.msk.f32.mxu1 %vm213_vm0, %v11622_v36  ;;  %9380 = vmatprep.mubr.msk.f32.mxu0 %vm51_vm1, %v11698_v13 }
 0xaee   :  { %v3601_v36 = vpop.f32.mrf.mxu0 }
 0xaf0   :  { %9364 = vmatmul.mubr.msk.f32.gmra.mxu1 %vm213_vm0, %v11629_v55  ;;  %9381 = vmatmul.mubr.msk.f32.gmra.mxu0 %vm51_vm1, %v11705_v14  ;;  %v9338_v55 = vpop.f32.mrf.mxu0 }
 0xaf1   :  { %9366 = vmatprep.mubr.msk.f32.mxu1 %vm213_vm0, %v11636_v56  ;;  %9383 = vmatprep.mubr.msk.f32.mxu0 %vm51_vm1, %v11712_v15 }
 0xaf2   :  { %v3611_v56 = vpop.f32.mrf.mxu0 }
 0xaf4   :  { %9367 = vmatmul.mubr.msk.f32.gmra.mxu1 %vm213_vm0, %v11643_v33  ;;  %9384 = vmatmul.mubr.msk.f32.gmra.mxu0 %vm51_vm1, %v11719_v16  ;;  %v9341_v33 = vpop.f32.mrf.mxu0 }
 0xaf5   :  { %9369 = vmatprep.mubr.msk.f32.mxu1 %vm213_vm0, %v11650_v5  ;;  %9386 = vmatprep.mubr.msk.f32.mxu0 %vm51_vm1, %v11726_v4 }
 0xaf6   :  { %v3621_v5 = vpop.f32.mrf.mxu0 }
 0xaf8   :  { %9370 = vmatmul.mubr.msk.f32.gmra.mxu1 %vm213_vm0, %v11657_v46  ;;  %9387 = vmatmul.mubr.msk.f32.gmra.mxu0 %vm51_vm1, %v11733_v17  ;;  %v9344_v31 = vpop.f32.mrf.mxu0 }
 0xaf9   :  { %9372 = vmatprep.mubr.msk.f32.mxu1 %vm213_vm0, %v11664_v48  ;;  %9389 = vmatprep.mubr.msk.f32.mxu0 %vm51_vm1, %v11740_v35 }
 0xafa   :  { %v3631_v35 = vpop.f32.mrf.mxu0 }
 0xafc   :  { %9373 = vmatmul.mubr.msk.f32.gmra.mxu1 %vm213_vm0, %v11671_v49  ;;  %9390 = vmatmul.mubr.msk.f32.gmra.mxu0 %vm51_vm1, %v11747_v18  ;;  %v9347_v45 = vpop.f32.mrf.mxu0 }
 0xafd   :  { %9401 = vmatprep.mubr.msk.f32.mxu1 %vm213_vm0, %v11678_v1  ;;  %9392 = vmatprep.mubr.msk.f32.mxu0 %vm51_vm1, %v11754_v24 }
 0xafe   :  { %v3641_v23 = vpop.f32.mrf.mxu0 }
 0xb00   :  { %9393 = vmatmul.mubr.msk.f32.gmra.mxu0 %vm51_vm1, %v11761_v20  ;;  %v9350_v63 = vpop.f32.mrf.mxu0 }
 0xb01   :  { %9421 = vmatprep.mubr.msk.f32.mxu0 %vm51_vm1, %v11768_v21 }
 0xb02   :  { %v3651_v25 = vpop.f32.mrf.mxu0 }
 0xba8   :  { %v9359_v46 = vpop.f32.mrf.mxu1 }
 0xba9   :  { %v3732_v48 = vadd.f32 %v9359_v46, %v9335_v54 }
 0xbaa   :  { %v3726_v49 = vpop.f32.mrf.mxu1 }
 0xbab   :  { %v3727_v1 = vadd.f32 %v3726_v49, %v3601_v36  ;;  %v3786_v15 = vmul.f32 0.5, %v3732_v48 }
 0xbac   :  { %v9362_v13 = vpop.f32.mrf.mxu1 }
 0xbad   :  { %v3742_v14 = vadd.f32 %v9362_v13, %v9338_v55  ;;  %v3785_v4 = vmul.f32 0.5, %v3727_v1  ;;  %10237 = vtanh.f32 %v3786_v15 }
 0xbae   :  { %v3736_v16 = vpop.f32.mrf.mxu1 }
 0xbaf   :  { %v3737_v17 = vadd.f32 %v3736_v16, %v3611_v56  ;;  %v3797_v18 = vmul.f32 0.5, %v3742_v14  ;;  %10239 = vtanh.f32 %v3785_v4 }
 0xbb0   :  { %v9365_v24 = vpop.f32.mrf.mxu1 }
 0xbb1   :  { %v3752_v20 = vadd.f32 %v9365_v24, %v9341_v33  ;;  %v3787_v21 = vmul.f32 0.5, %v3737_v17  ;;  %10241 = vtanh.f32 %v3797_v18 }
 0xbb2   :  { %v3746_v43 = vpop.f32.mrf.mxu1 }
 0xbb3   :  { %v3799_v10 = vmul.f32 0.5, %v3752_v20  ;;  %v3747_v44 = vadd.f32 %v3746_v43, %v3621_v5 }
 0xbb4   :  { %v9368_v27 = vpop.f32.mrf.mxu1 }
 0xbb5   :  { %10243 = vtanh.f32 %v3799_v10  ;;  %v3798_v34 = vmul.f32 0.5, %v3747_v44  ;;  %v3762_v11 = vadd.f32 %v9368_v27, %v9344_v31 }
 0xbb6   :  { %10245 = vtanh.f32 %v3787_v21  ;;  %v3756_v28 = vpop.f32.mrf.mxu1 }
 0xbb7   :  { %10247 = vtanh.f32 %v3798_v34  ;;  %v3757_v29 = vadd.f32 %v3756_v28, %v3631_v35  ;;  %v11992_v28 = vld [vmem:[%s13098_s1 + $0x10] sm:$0xff] }
 0xbb8   :  { %v9371_v50 = vpop.f32.mrf.mxu1  ;;  %10249 = vtanh.f32 %v3762_v11  ;;  %v11985_v11 = vld [vmem:[%s13098_s1 + $0x8] sm:$0xff] }
 0xbb9   :  { %10251 = vtanh.f32 %v3757_v29  ;;  %v3772_v7 = vadd.f32 %v9371_v50, %v9347_v45  ;;  %v11999_v29 = vld [vmem:[%s13098_s1 + $0x18] sm:$0xff]  ;;  %v12013_v50 = vld [vmem:[%s13098_s1 + $0x28] sm:$0xff] }
 0xbba   :  { %v3766_v8 = vpop.f32.mrf.mxu1  ;;  %v10238_v60 = vpop.eup %10237 }
 0xbbb   :  { %v3767_v58 = vadd.f32 %v3766_v8, %v3641_v23  ;;  %v3792_v38 = vmul.f32 0.5, %v10238_v60  ;;  %v3812_v36 = vmul.f32 0.5, %v3772_v7  ;;  %v12006_v23 = vld [vmem:[%s13098_s1 + $0x20] sm:$0xff]  ;;  %v12027_v8 = vld [vmem:[%s13098_s1 + $0x38] sm:$0xff]  ;;  %v7906_v60 = vld [vmem:[%s13097_s0 + $0xd] ss:$0 sm:$0xff] }
 0xbbc   :  { %v9374_v22 = vpop.f32.mrf.mxu1  ;;  %v10240_v57 = vpop.eup %10239  ;;  %v12117_v7 = vld [vmem:[%s13099_s2 + $0x38] sm:$0xff] }
 0xbbd   :  { %10253 = vtanh.f32 %v3767_v58  ;;  %v3782_v26 = vadd.f32 %v9374_v22, %v9350_v63  ;;  %v3791_v32 = vmul.f32 0.5, %v10240_v57  ;;  %v3795_v53 = vadd.f32 0.5, %v3792_v38  ;;  %v12020_v63 = vld [vmem:[%s13098_s1 + $0x30] sm:$0xff]  ;;  %v12034_v58 = vld [vmem:[%s13098_s1 + $0x40] sm:$0xff]  ;;  %v12041_v22 = vld [vmem:[%s13098_s1 + $0x48] sm:$0xff] }
 0xbbe   :  { %v3776_v59 = vpop.f32.mrf.mxu1  ;;  %v10242_v62 = vpop.eup %10241  ;;  %v4154_v57 = vsel %vm17_vm2, %v7906_v60, %v10833_v9  ;;  %v12110_v38 = vld [vmem:[%s13099_s2 + $0x30] sm:$0xff] }
 0xbbf   :  { %v3777_v19 = vadd.f32 %v3776_v59, %v3651_v25  ;;  %v3814_v0 = vmul.f32 0.5, %v3782_v26  ;;  %v3803_v51 = vmul.f32 0.5, %v10242_v62  ;;  %v3794_v55 = vadd.f32 0.5, %v3791_v32  ;;  %v12048_v25 = vld [vmem:[%s13098_s1 + $0x50] sm:$0xff]  ;;  %v12055_v26 = vld [vmem:[%s13098_s1 + $0x58] sm:$0xff]  ;;  %v12062_v59 = vld [vmem:[%s13098_s1] sm:$0xff]  ;;  %9419 = vmatprep.subr.mxu0 %v4154_v57 }
 0xbc0   :  { %9420 = vmatpush3.msra.mxu0 %v4154_v57  ;;  %v12082_v62 = vld [vmem:[%s13099_s2 + $0x10] sm:$0xff]  ;;  %v12131_v32 = vld [vmem:[%s13099_s2 + $0x48] sm:$0xff] }
 0xbc1   :  { %v3813_v39 = vmul.f32 0.5, %v3777_v19  ;;  %10255 = vtanh.f32 %v3814_v0  ;;  %v3806_v56 = vadd.f32 0.5, %v3803_v51  ;;  %v12075_v19 = vld [vmem:[%s13099_s2 + $0x8] sm:$0xff]  ;;  %v12096_v0 = vld [vmem:[%s13099_s2 + $0x20] sm:$0xff]  ;;  %v12138_v51 = vld [vmem:[%s13099_s2 + $0x50] sm:$0xff] }
 0xbc2   :  { %v10244_v30 = vpop.eup %10243  ;;  %9422 = vmatmul.mubr.msk.f32.vlgmr.msra.gmra.mxu0 %vm51_vm1, %v12075_v19 }
 0xbc3   :  { %v10246_v3 = vpop.eup %10245  ;;  %v3805_v37 = vmul.f32 0.5, %v10244_v30  ;;  %10257 = vtanh.f32 %v3813_v39  ;;  %v3824_v13 = vmul.f32 %v3806_v56, %v11909_v61  ;;  %9424 = vmatprep.mubr.msk.f32.mxu0 %vm51_vm1, %v12082_v62  ;;  %v12089_v30 = vld [vmem:[%s13099_s2 + $0x18] sm:$0xff]  ;;  %v12152_v39 = vld [vmem:[%s13099_s2] sm:$0xff] }
 0xbc4   :  { %v10248_v12 = vpop.eup %10247  ;;  %v3793_v52 = vmul.f32 0.5, %v10246_v3  ;;  %10259 = vtanh.f32 %v3812_v36  ;;  %v12103_v3 = vld [vmem:[%s13099_s2 + $0x28] sm:$0xff] }
 0xbc5   :  { %v3804_v40 = vmul.f32 0.5, %v10248_v12  ;;  %v10250_v42 = vpop.eup %10249  ;;  %v3808_v33 = vadd.f32 0.5, %v3805_v37  ;;  %v12124_v12 = vld [vmem:[%s13099_s2 + $0x40] sm:$0xff]  ;;  %v12145_v37 = vld [vmem:[%s13099_s2 + $0x58] sm:$0xff] }
 0xbc6   :  { %v10252_v2 = vpop.eup %10251  ;;  %v3828_v46 = vmul.f32 %v10250_v42, %v3795_v53  ;;  %v3796_v48 = vadd.f32 0.5, %v3793_v52  ;;  %9425 = vmatmul.mubr.msk.f32.gmra.mxu0 %vm51_vm1, %v12089_v30 }
 0xbc7   :  { %v3807_v54 = vadd.f32 0.5, %v3804_v40  ;;  %v3827_v49 = vmul.f32 %v10252_v2, %v3794_v55  ;;  %v3826_v14 = vmul.f32 %v3808_v33, %v11911_v41  ;;  %9427 = vmatprep.mubr.msk.f32.mxu0 %vm51_vm1, %v12096_v0  ;;  %v9379_v40 = vpop.f32.mrf.mxu0 }
 0xbc9   :  { %v3825_v5 = vmul.f32 %v3807_v54, %v11905_v47  ;;  %v11975_v16 = vadd.f32 %v3827_v49, %v3824_v13  ;;  %v3911_v42 = vpop.f32.mrf.mxu0 }
 0xbca   :  { %v10254_v1 = vpop.eup %10253  ;;  %9428 = vmatmul.mubr.msk.f32.gmra.mxu0 %vm51_vm1, %v12103_v3 }
 0xbcb   :  { %v11971_v31 = vadd.f32 %v3828_v46, %v3825_v5  ;;  %v3829_v15 = vmul.f32 %v10254_v1, %v3796_v48  ;;  %9430 = vmatprep.mubr.msk.f32.mxu0 %vm51_vm1, %v12110_v38  ;;  %v9382_v52 = vpop.f32.mrf.mxu0 }
 0xbcd   :  { %v11977_v4 = vadd.f32 %v3829_v15, %v3826_v14  ;;  %10261 = vtanh.f32 %v11971_v31  ;;  %v3921_v2 = vpop.f32.mrf.mxu0 }
 0xbce   :  { %v10256_v47 = vpop.eup %10255  ;;  %9431 = vmatmul.mubr.msk.f32.gmra.mxu0 %vm51_vm1, %v12117_v7 }
 0xbcf   :  { %10263 = vtanh.f32 %v11977_v4  ;;  %v3820_v35 = vmul.f32 0.5, %v10256_v47  ;;  %9433 = vmatprep.mubr.msk.f32.mxu0 %vm51_vm1, %v12124_v12  ;;  %v9385_v53 = vpop.f32.mrf.mxu0 }
 0xbd0   :  { %10265 = vtanh.f32 %v11975_v16  ;;  %v10258_v17 = vpop.eup %10257 }
 0xbd1   :  { %v3819_v18 = vmul.f32 0.5, %v10258_v17  ;;  %v10260_v24 = vpop.eup %10259  ;;  %v3823_v61 = vadd.f32 0.5, %v3820_v35  ;;  %v3931_v54 = vpop.f32.mrf.mxu0 }
 0xbd2   :  { %v3818_v41 = vmul.f32 0.5, %v10260_v24  ;;  %9434 = vmatmul.mubr.msk.f32.gmra.mxu0 %vm51_vm1, %v12131_v32 }
 0xbd3   :  { %v3822_v21 = vadd.f32 0.5, %v3819_v18  ;;  %9436 = vmatprep.mubr.msk.f32.mxu0 %vm51_vm1, %v12138_v51  ;;  %v9388_v5 = vpop.f32.mrf.mxu0 }
 0xbd4   :  { %v3821_v45 = vadd.f32 0.5, %v3818_v41 }
 0xbd5   :  { %v3941_v15 = vpop.f32.mrf.mxu0 }
 0xbd6   :  { %9437 = vmatmul.mubr.msk.f32.gmra.mxu0 %vm51_vm1, %v12145_v37 }
 0xbd7   :  { %9465 = vmatprep.mubr.msk.f32.mxu0 %vm51_vm1, %v12152_v39  ;;  %v9391_v41 = vpop.f32.mrf.mxu0 }
 0xbda   :  { %v10262_v20 = vpop.eup %10261 }
 0xbdb   :  { %v3837_v27 = vmul.f32 %v10262_v20, %v3822_v21 }
 0xbdc   :  { %v10264_v43 = vpop.eup %10263 }
 0xbdd   :  { %v3838_v10 = vmul.f32 %v10264_v43, %v3823_v61  ;;  %v10266_v44 = vpop.eup %10265 }
 0xbde   :  { %v3836_v34 = vmul.f32 %v10266_v44, %v3821_v45 }
 0xbdf   :  { %9395 = vmatprep.subr.mxu1 %v3838_v10 }
 0xbe0   :  { %9396 = vmatpush3.msra.mxu1 %v3838_v10 }
 0xbe1   :  { %9397 = vmatprep.subr.mxu1 %v3837_v27 }
 0xbe2   :  { %9398 = vmatpush3.msra.mxu1 %v3837_v27  ;;  %v3951_v27 = vpop.f32.mrf.mxu0 }
 0xbe3   :  { %9399 = vmatprep.subr.mxu1 %v3836_v34 }
 0xbe4   :  { %9400 = vmatpush3.msra.mxu1 %v3836_v34  ;;  %v9394_v60 = vpop.f32.mrf.mxu0 }
 0xbe5   :  { %9402 = vmatmul.mubr.msk.f32.vlgmr.msra.gmra.mxu1 %vm213_vm0, %v11985_v11 }
 0xbe6   :  { %9404 = vmatprep.mubr.msk.f32.mxu1 %vm213_vm0, %v11992_v28 }
 0xbe9   :  { %9405 = vmatmul.mubr.msk.f32.gmra.mxu1 %vm213_vm0, %v11999_v29 }
 0xbea   :  { %9407 = vmatprep.mubr.msk.f32.mxu1 %vm213_vm0, %v12006_v23 }
 0xbed   :  { %9408 = vmatmul.mubr.msk.f32.gmra.mxu1 %vm213_vm0, %v12013_v50 }
 0xbee   :  { %9410 = vmatprep.mubr.msk.f32.mxu1 %vm213_vm0, %v12020_v63 }
 0xbf1   :  { %9411 = vmatmul.mubr.msk.f32.gmra.mxu1 %vm213_vm0, %v12027_v8 }
 0xbf2   :  { %9413 = vmatprep.mubr.msk.f32.mxu1 %vm213_vm0, %v12034_v58 }
 0xbf5   :  { %9414 = vmatmul.mubr.msk.f32.gmra.mxu1 %vm213_vm0, %v12041_v22 }
 0xbf6   :  { %9416 = vmatprep.mubr.msk.f32.mxu1 %vm213_vm0, %v12048_v25 }
 0xbf9   :  { %9417 = vmatmul.mubr.msk.f32.gmra.mxu1 %vm213_vm0, %v12055_v26 }
 0xbfa   :  { %9445 = vmatprep.mubr.msk.f32.mxu1 %vm213_vm0, %v12062_v59 }
 0xca5   :  { %v9403_v36 = vpop.f32.mrf.mxu1 }
 0xca6   :  { %v4042_v55 = vadd.f32 %v9403_v36, %v9379_v40 }
 0xca7   :  { %v4036_v56 = vpop.f32.mrf.mxu1 }
 0xca8   :  { %v4037_v33 = vadd.f32 %v4036_v56, %v3911_v42  ;;  %v4096_v49 = vmul.f32 0.5, %v4042_v55 }
 0xca9   :  { %v9406_v46 = vpop.f32.mrf.mxu1 }
 0xcaa   :  { %v4052_v48 = vadd.f32 %v9406_v46, %v9382_v52  ;;  %v4095_v13 = vmul.f32 0.5, %v4037_v33  ;;  %10267 = vtanh.f32 %v4096_v49  ;;  %v3961_v52 = vpop.f32.mrf.mxu0 }
 0xcab   :  { %v4046_v1 = vpop.f32.mrf.mxu1 }
 0xcac   :  { %v4047_v14 = vadd.f32 %v4046_v1, %v3921_v2  ;;  %v4107_v47 = vmul.f32 0.5, %v4052_v48  ;;  %10269 = vtanh.f32 %v4095_v13 }
 0xcad   :  { %v9409_v17 = vpop.f32.mrf.mxu1 }
 0xcae   :  { %v4062_v35 = vadd.f32 %v9409_v17, %v9385_v53  ;;  %v4097_v18 = vmul.f32 0.5, %v4047_v14  ;;  %10271 = vtanh.f32 %v4107_v47 }
 0xcaf   :  { %v4056_v24 = vpop.f32.mrf.mxu1 }
 0xcb0   :  { %v4109_v61 = vmul.f32 0.5, %v4062_v35  ;;  %v4057_v20 = vadd.f32 %v4056_v24, %v3931_v54 }
 0xcb1   :  { %v9412_v21 = vpop.f32.mrf.mxu1 }
 0xcb2   :  { %10273 = vtanh.f32 %v4109_v61  ;;  %v4108_v43 = vmul.f32 0.5, %v4057_v20  ;;  %v4072_v10 = vadd.f32 %v9412_v21, %v9388_v5 }
 0xcb3   :  { %10275 = vtanh.f32 %v4097_v18  ;;  %v4066_v44 = vpop.f32.mrf.mxu1 }
 0xcb4   :  { %10277 = vtanh.f32 %v4108_v43  ;;  %v4067_v45 = vadd.f32 %v4066_v44, %v3941_v15 }
 0xcb5   :  { %v9415_v34 = vpop.f32.mrf.mxu1  ;;  %10279 = vtanh.f32 %v4072_v10 }
 0xcb6   :  { %10281 = vtanh.f32 %v4067_v45  ;;  %v4082_v49 = vadd.f32 %v9415_v34, %v9391_v41 }
 0xcb7   :  { %v4076_v57 = vpop.f32.mrf.mxu1  ;;  %v10268_v54 = vpop.eup %10267 }
 0xcb8   :  { %v4077_v40 = vadd.f32 %v4076_v57, %v3951_v27  ;;  %v4102_v48 = vmul.f32 0.5, %v10268_v54  ;;  %v4122_v21 = vmul.f32 0.5, %v4082_v49 }
 0xcb9   :  { %v9418_v42 = vpop.f32.mrf.mxu1  ;;  %v10270_v36 = vpop.eup %10269 }
 0xcba   :  { %10283 = vtanh.f32 %v4077_v40  ;;  %v4092_v2 = vadd.f32 %v9418_v42, %v9394_v60  ;;  %v4101_v13 = vmul.f32 0.5, %v10270_v36  ;;  %v4105_v61 = vadd.f32 0.5, %v4102_v48 }
 0xcbb   :  { %v4086_v53 = vpop.f32.mrf.mxu1  ;;  %v10272_v56 = vpop.eup %10271 }
 0xcbc   :  { %v4087_v55 = vadd.f32 %v4086_v53, %v3961_v52  ;;  %v4124_v5 = vmul.f32 0.5, %v4092_v2  ;;  %v4113_v14 = vmul.f32 0.5, %v10272_v56  ;;  %v4104_v43 = vadd.f32 0.5, %v4101_v13 }
 0xcbe   :  { %v4123_v47 = vmul.f32 0.5, %v4087_v55  ;;  %10285 = vtanh.f32 %v4124_v5  ;;  %v4116_v10 = vadd.f32 0.5, %v4113_v14 }
 0xcbf   :  { %v10274_v33 = vpop.eup %10273 }
 0xcc0   :  { %v10276_v46 = vpop.eup %10275  ;;  %v4115_v15 = vmul.f32 0.5, %v10274_v33  ;;  %10287 = vtanh.f32 %v4123_v47  ;;  %v4134_v40 = vmul.f32 %v4116_v10, %v11975_v16 }
 0xcc1   :  { %v10278_v1 = vpop.eup %10277  ;;  %v4103_v18 = vmul.f32 0.5, %v10276_v46  ;;  %10289 = vtanh.f32 %v4122_v21 }
 0xcc2   :  { %v4114_v17 = vmul.f32 0.5, %v10278_v1  ;;  %v10280_v35 = vpop.eup %10279  ;;  %v4118_v44 = vadd.f32 0.5, %v4115_v15  ;;  %v7931_v15 = vld [vmem:[%s13097_s0 + $0xe] ss:$0 sm:$0xff] }
 0xcc3   :  { %v10282_v24 = vpop.eup %10281  ;;  %v4138_v41 = vmul.f32 %v10280_v35, %v4105_v61  ;;  %v4106_v27 = vadd.f32 0.5, %v4103_v18  ;;  %v4464_v47 = vsel %vm17_vm2, %v7931_v15, %v10833_v9 }
 0xcc4   :  { %v4117_v20 = vadd.f32 0.5, %v4114_v17  ;;  %v4137_v34 = vmul.f32 %v10282_v24, %v4104_v43  ;;  %v4136_v42 = vmul.f32 %v4118_v44, %v11977_v4  ;;  %9463 = vmatprep.subr.mxu0 %v4464_v47  ;;  %v9423_v17 = vpop.f32.mrf.mxu0 }
 0xcc5   :  { %9464 = vmatpush3.msra.mxu0 %v4464_v47 }
 0xcc6   :  { %v4135_v45 = vmul.f32 %v4117_v20, %v11971_v31  ;;  %v12161_v2 = vadd.f32 %v4137_v34, %v4134_v40  ;;  %9466 = vmatmul.mubr.msk.f32.vlgmr.msra.gmra.mxu0 %vm51_vm1, %v12075_v19  ;;  %v4221_v35 = vpop.f32.mrf.mxu0 }
 0xcc7   :  { %v10284_v60 = vpop.eup %10283  ;;  %9468 = vmatprep.mubr.msk.f32.mxu0 %vm51_vm1, %v12082_v62 }
 0xcc8   :  { %v12157_v57 = vadd.f32 %v4138_v41, %v4135_v45  ;;  %v4139_v52 = vmul.f32 %v10284_v60, %v4106_v27  ;;  %v9426_v18 = vpop.f32.mrf.mxu0 }
 0xcca   :  { %v12163_v53 = vadd.f32 %v4139_v52, %v4136_v42  ;;  %10291 = vtanh.f32 %v12157_v57  ;;  %9469 = vmatmul.mubr.msk.f32.gmra.mxu0 %vm51_vm1, %v12089_v30  ;;  %v4231_v24 = vpop.f32.mrf.mxu0 }
 0xccb   :  { %v10286_v31 = vpop.eup %10285  ;;  %9471 = vmatprep.mubr.msk.f32.mxu0 %vm51_vm1, %v12096_v0 }
 0xccc   :  { %10293 = vtanh.f32 %v12163_v53  ;;  %v4130_v36 = vmul.f32 0.5, %v10286_v31  ;;  %v9429_v61 = vpop.f32.mrf.mxu0 }
 0xccd   :  { %10295 = vtanh.f32 %v12161_v2  ;;  %v10288_v54 = vpop.eup %10287 }
 0xcce   :  { %v4129_v55 = vmul.f32 0.5, %v10288_v54  ;;  %v10290_v56 = vpop.eup %10289  ;;  %v4133_v16 = vadd.f32 0.5, %v4130_v36  ;;  %9472 = vmatmul.mubr.msk.f32.gmra.mxu0 %vm51_vm1, %v12103_v3  ;;  %v4241_v20 = vpop.f32.mrf.mxu0 }
 0xccf   :  { %v4128_v4 = vmul.f32 0.5, %v10290_v56  ;;  %9474 = vmatprep.mubr.msk.f32.mxu0 %vm51_vm1, %v12110_v38 }
 0xcd0   :  { %v4132_v5 = vadd.f32 0.5, %v4129_v55  ;;  %v9432_v45 = vpop.f32.mrf.mxu0 }
 0xcd1   :  { %v4131_v1 = vadd.f32 0.5, %v4128_v4 }
 0xcd2   :  { %9475 = vmatmul.mubr.msk.f32.gmra.mxu0 %vm51_vm1, %v12117_v7  ;;  %v4251_v52 = vpop.f32.mrf.mxu0 }
 0xcd3   :  { %9477 = vmatprep.mubr.msk.f32.mxu0 %vm51_vm1, %v12124_v12 }
 0xcd4   :  { %v9435_v4 = vpop.f32.mrf.mxu0 }
 0xcd6   :  { %9478 = vmatmul.mubr.msk.f32.gmra.mxu0 %vm51_vm1, %v12131_v32 }
 0xcd7   :  { %v10292_v33 = vpop.eup %10291  ;;  %9480 = vmatprep.mubr.msk.f32.mxu0 %vm51_vm1, %v12138_v51 }
 0xcd8   :  { %v4147_v13 = vmul.f32 %v10292_v33, %v4132_v5 }
 0xcd9   :  { %v10294_v46 = vpop.eup %10293 }
 0xcda   :  { %v4148_v48 = vmul.f32 %v10294_v46, %v4133_v16  ;;  %v10296_v49 = vpop.eup %10295  ;;  %9481 = vmatmul.mubr.msk.f32.gmra.mxu0 %vm51_vm1, %v12145_v37 }
 0xcdb   :  { %v4146_v14 = vmul.f32 %v10296_v49, %v4131_v1  ;;  %9509 = vmatprep.mubr.msk.f32.mxu0 %vm51_vm1, %v12152_v39 }
 0xcdc   :  { %9439 = vmatprep.subr.mxu1 %v4148_v48 }
 0xcdd   :  { %9440 = vmatpush3.msra.mxu1 %v4148_v48 }
 0xcde   :  { %9441 = vmatprep.subr.mxu1 %v4147_v13 }
 0xcdf   :  { %9442 = vmatpush3.msra.mxu1 %v4147_v13  ;;  %v4261_v13 = vpop.f32.mrf.mxu0 }
 0xce0   :  { %9443 = vmatprep.subr.mxu1 %v4146_v14 }
 0xce1   :  { %9444 = vmatpush3.msra.mxu1 %v4146_v14  ;;  %v9438_v15 = vpop.f32.mrf.mxu0 }
 0xce2   :  { %9446 = vmatmul.mubr.msk.f32.vlgmr.msra.gmra.mxu1 %vm213_vm0, %v11985_v11 }
 0xce3   :  { %9448 = vmatprep.mubr.msk.f32.mxu1 %vm213_vm0, %v11992_v28 }
 0xce6   :  { %9449 = vmatmul.mubr.msk.f32.gmra.mxu1 %vm213_vm0, %v11999_v29 }
 0xce7   :  { %9451 = vmatprep.mubr.msk.f32.mxu1 %vm213_vm0, %v12006_v23 }
 0xcea   :  { %9452 = vmatmul.mubr.msk.f32.gmra.mxu1 %vm213_vm0, %v12013_v50 }
 0xceb   :  { %9454 = vmatprep.mubr.msk.f32.mxu1 %vm213_vm0, %v12020_v63 }
 0xcee   :  { %9455 = vmatmul.mubr.msk.f32.gmra.mxu1 %vm213_vm0, %v12027_v8 }
 0xcef   :  { %9457 = vmatprep.mubr.msk.f32.mxu1 %vm213_vm0, %v12034_v58 }
 0xcf2   :  { %9458 = vmatmul.mubr.msk.f32.gmra.mxu1 %vm213_vm0, %v12041_v22 }
 0xcf3   :  { %9460 = vmatprep.mubr.msk.f32.mxu1 %vm213_vm0, %v12048_v25 }
 0xcf6   :  { %9461 = vmatmul.mubr.msk.f32.gmra.mxu1 %vm213_vm0, %v12055_v26 }
 0xcf7   :  { %9489 = vmatprep.mubr.msk.f32.mxu1 %vm213_vm0, %v12062_v59 }
 0xda2   :  { %v9447_v21 = vpop.f32.mrf.mxu1 }
 0xda3   :  { %v4352_v43 = vadd.f32 %v9447_v21, %v9423_v17 }
 0xda4   :  { %v4346_v10 = vpop.f32.mrf.mxu1 }
 0xda5   :  { %v4347_v44 = vadd.f32 %v4346_v10, %v4221_v35  ;;  %v4406_v34 = vmul.f32 0.5, %v4352_v43 }
 0xda6   :  { %v9450_v41 = vpop.f32.mrf.mxu1 }
 0xda7   :  { %v4362_v27 = vadd.f32 %v9450_v41, %v9426_v18  ;;  %v4405_v40 = vmul.f32 0.5, %v4347_v44  ;;  %10297 = vtanh.f32 %v4406_v34  ;;  %v4271_v18 = vpop.f32.mrf.mxu0 }
 0xda8   :  { %v4356_v60 = vpop.f32.mrf.mxu1 }
 0xda9   :  { %v4357_v42 = vadd.f32 %v4356_v60, %v4231_v24  ;;  %v4417_v31 = vmul.f32 0.5, %v4362_v27  ;;  %10299 = vtanh.f32 %v4405_v40 }
 0xdaa   :  { %v9453_v54 = vpop.f32.mrf.mxu1 }
 0xdab   :  { %v4372_v36 = vadd.f32 %v9453_v54, %v9429_v61  ;;  %v4407_v55 = vmul.f32 0.5, %v4357_v42  ;;  %10301 = vtanh.f32 %v4417_v31 }
 0xdac   :  { %v4366_v56 = vpop.f32.mrf.mxu1 }
 0xdad   :  { %v4419_v16 = vmul.f32 0.5, %v4372_v36  ;;  %v4367_v33 = vadd.f32 %v4366_v56, %v4241_v20 }
 0xdae   :  { %v9456_v5 = vpop.f32.mrf.mxu1 }
 0xdaf   :  { %10303 = vtanh.f32 %v4419_v16  ;;  %v4418_v46 = vmul.f32 0.5, %v4367_v33  ;;  %v4382_v48 = vadd.f32 %v9456_v5, %v9432_v45 }
 0xdb0   :  { %10305 = vtanh.f32 %v4407_v55  ;;  %v4376_v49 = vpop.f32.mrf.mxu1 }
 0xdb1   :  { %10307 = vtanh.f32 %v4418_v46  ;;  %v4377_v1 = vadd.f32 %v4376_v49, %v4251_v52 }
 0xdb2   :  { %v9459_v14 = vpop.f32.mrf.mxu1  ;;  %10309 = vtanh.f32 %v4382_v48 }
 0xdb3   :  { %10311 = vtanh.f32 %v4377_v1  ;;  %v4392_v34 = vadd.f32 %v9459_v14, %v9435_v4 }
 0xdb4   :  { %v4386_v47 = vpop.f32.mrf.mxu1  ;;  %v10298_v20 = vpop.eup %10297 }
 0xdb5   :  { %v4387_v17 = vadd.f32 %v4386_v47, %v4261_v13  ;;  %v4412_v27 = vmul.f32 0.5, %v10298_v20  ;;  %v4432_v5 = vmul.f32 0.5, %v4392_v34 }
 0xdb6   :  { %v9462_v35 = vpop.f32.mrf.mxu1  ;;  %v10300_v21 = vpop.eup %10299 }
 0xdb7   :  { %10313 = vtanh.f32 %v4387_v17  ;;  %v4402_v24 = vadd.f32 %v9462_v35, %v9438_v15  ;;  %v4411_v40 = vmul.f32 0.5, %v10300_v21  ;;  %v4415_v16 = vadd.f32 0.5, %v4412_v27 }
 0xdb8   :  { %v4396_v61 = vpop.f32.mrf.mxu1  ;;  %v10302_v10 = vpop.eup %10301 }
 0xdb9   :  { %v4397_v43 = vadd.f32 %v4396_v61, %v4271_v18  ;;  %v4434_v45 = vmul.f32 0.5, %v4402_v24  ;;  %v4423_v42 = vmul.f32 0.5, %v10302_v10  ;;  %v4414_v46 = vadd.f32 0.5, %v4411_v40 }
 0xdbb   :  { %v4433_v31 = vmul.f32 0.5, %v4397_v43  ;;  %10315 = vtanh.f32 %v4434_v45  ;;  %v4426_v48 = vadd.f32 0.5, %v4423_v42 }
 0xdbc   :  { %v10304_v44 = vpop.eup %10303 }
 0xdbd   :  { %v10306_v41 = vpop.eup %10305  ;;  %v4425_v52 = vmul.f32 0.5, %v10304_v44  ;;  %10317 = vtanh.f32 %v4433_v31  ;;  %v4444_v17 = vmul.f32 %v4426_v48, %v12161_v2 }
 0xdbe   :  { %v10308_v60 = vpop.eup %10307  ;;  %v4413_v55 = vmul.f32 0.5, %v10306_v41  ;;  %10319 = vtanh.f32 %v4432_v5 }
 0xdbf   :  { %v4424_v54 = vmul.f32 0.5, %v10308_v60  ;;  %v10310_v36 = vpop.eup %10309  ;;  %v4428_v49 = vadd.f32 0.5, %v4425_v52  ;;  %v7956_v52 = vld [vmem:[%s13097_s0 + $0xf] ss:$0 sm:$0xff] }
 0xdc0   :  { %v10312_v56 = vpop.eup %10311  ;;  %v4448_v4 = vmul.f32 %v10310_v36, %v4415_v16  ;;  %v4416_v13 = vadd.f32 0.5, %v4413_v55  ;;  %v4774_v31 = vsel %vm17_vm2, %v7956_v52, %v10833_v9 }
 0xdc1   :  { %v4427_v33 = vadd.f32 0.5, %v4424_v54  ;;  %v4447_v14 = vmul.f32 %v10312_v56, %v4414_v46  ;;  %v4446_v35 = vmul.f32 %v4428_v49, %v12163_v53  ;;  %9507 = vmatprep.subr.mxu0 %v4774_v31  ;;  %v9467_v54 = vpop.f32.mrf.mxu0 }
 0xdc2   :  { %9508 = vmatpush3.msra.mxu0 %v4774_v31 }
 0xdc3   :  { %v4445_v1 = vmul.f32 %v4427_v33, %v12157_v57  ;;  %v12227_v24 = vadd.f32 %v4447_v14, %v4444_v17  ;;  %9510 = vmatmul.mubr.msk.f32.vlgmr.msra.gmra.mxu0 %vm51_vm1, %v12075_v19  ;;  %v4531_v36 = vpop.f32.mrf.mxu0 }
 0xdc4   :  { %v10314_v15 = vpop.eup %10313  ;;  %9512 = vmatprep.mubr.msk.f32.mxu0 %vm51_vm1, %v12082_v62 }
 0xdc5   :  { %v12223_v47 = vadd.f32 %v4448_v4, %v4445_v1  ;;  %v4449_v18 = vmul.f32 %v10314_v15, %v4416_v13  ;;  %v9470_v55 = vpop.f32.mrf.mxu0 }
 0xdc7   :  { %v12229_v61 = vadd.f32 %v4449_v18, %v4446_v35  ;;  %10321 = vtanh.f32 %v12223_v47  ;;  %9513 = vmatmul.mubr.msk.f32.gmra.mxu0 %vm51_vm1, %v12089_v30  ;;  %v4541_v56 = vpop.f32.mrf.mxu0 }
 0xdc8   :  { %v10316_v57 = vpop.eup %10315  ;;  %9515 = vmatprep.mubr.msk.f32.mxu0 %vm51_vm1, %v12096_v0 }
 0xdc9   :  { %10323 = vtanh.f32 %v12229_v61  ;;  %v4440_v21 = vmul.f32 0.5, %v10316_v57  ;;  %v9473_v16 = vpop.f32.mrf.mxu0 }
 0xdca   :  { %10325 = vtanh.f32 %v12227_v24  ;;  %v10318_v20 = vpop.eup %10317 }
 0xdcb   :  { %v4439_v43 = vmul.f32 0.5, %v10318_v20  ;;  %v10320_v10 = vpop.eup %10319  ;;  %v4443_v2 = vadd.f32 0.5, %v4440_v21  ;;  %9516 = vmatmul.mubr.msk.f32.gmra.mxu0 %vm51_vm1, %v12103_v3  ;;  %v4551_v33 = vpop.f32.mrf.mxu0 }
 0xdcc   :  { %v4438_v53 = vmul.f32 0.5, %v10320_v10  ;;  %9518 = vmatprep.mubr.msk.f32.mxu0 %vm51_vm1, %v12110_v38 }
 0xdcd   :  { %v4442_v45 = vadd.f32 0.5, %v4439_v43  ;;  %v9476_v1 = vpop.f32.mrf.mxu0 }
 0xdce   :  { %v4441_v60 = vadd.f32 0.5, %v4438_v53 }
 0xdcf   :  { %9519 = vmatmul.mubr.msk.f32.gmra.mxu0 %vm51_vm1, %v12117_v7  ;;  %v4561_v18 = vpop.f32.mrf.mxu0 }
 0xdd0   :  { %9521 = vmatprep.mubr.msk.f32.mxu0 %vm51_vm1, %v12124_v12 }
 0xdd1   :  { %v9479_v53 = vpop.f32.mrf.mxu0 }
 0xdd3   :  { %9522 = vmatmul.mubr.msk.f32.gmra.mxu0 %vm51_vm1, %v12131_v32 }
 0xdd4   :  { %v10322_v44 = vpop.eup %10321  ;;  %9524 = vmatprep.mubr.msk.f32.mxu0 %vm51_vm1, %v12138_v51 }
 0xdd5   :  { %v4457_v40 = vmul.f32 %v10322_v44, %v4442_v45 }
 0xdd6   :  { %v10324_v41 = vpop.eup %10323 }
 0xdd7   :  { %v4458_v27 = vmul.f32 %v10324_v41, %v4443_v2  ;;  %v10326_v34 = vpop.eup %10325  ;;  %9525 = vmatmul.mubr.msk.f32.gmra.mxu0 %vm51_vm1, %v12145_v37 }
 0xdd8   :  { %v4456_v42 = vmul.f32 %v10326_v34, %v4441_v60  ;;  %9553 = vmatprep.mubr.msk.f32.mxu0 %vm51_vm1, %v12152_v39 }
 0xdd9   :  { %9483 = vmatprep.subr.mxu1 %v4458_v27 }
 0xdda   :  { %9484 = vmatpush3.msra.mxu1 %v4458_v27 }
 0xddb   :  { %9485 = vmatprep.subr.mxu1 %v4457_v40 }
 0xddc   :  { %9486 = vmatpush3.msra.mxu1 %v4457_v40  ;;  %v4571_v40 = vpop.f32.mrf.mxu0 }
 0xddd   :  { %9487 = vmatprep.subr.mxu1 %v4456_v42 }
 0xdde   :  { %9488 = vmatpush3.msra.mxu1 %v4456_v42  ;;  %v9482_v52 = vpop.f32.mrf.mxu0 }
 0xddf   :  { %9490 = vmatmul.mubr.msk.f32.vlgmr.msra.gmra.mxu1 %vm213_vm0, %v11985_v11 }
 0xde0   :  { %9492 = vmatprep.mubr.msk.f32.mxu1 %vm213_vm0, %v11992_v28 }
 0xde3   :  { %9493 = vmatmul.mubr.msk.f32.gmra.mxu1 %vm213_vm0, %v11999_v29 }
 0xde4   :  { %9495 = vmatprep.mubr.msk.f32.mxu1 %vm213_vm0, %v12006_v23 }
 0xde7   :  { %9496 = vmatmul.mubr.msk.f32.gmra.mxu1 %vm213_vm0, %v12013_v50 }
 0xde8   :  { %9498 = vmatprep.mubr.msk.f32.mxu1 %vm213_vm0, %v12020_v63 }
 0xdeb   :  { %9499 = vmatmul.mubr.msk.f32.gmra.mxu1 %vm213_vm0, %v12027_v8 }
 0xdec   :  { %9501 = vmatprep.mubr.msk.f32.mxu1 %vm213_vm0, %v12034_v58 }
 0xdef   :  { %9502 = vmatmul.mubr.msk.f32.gmra.mxu1 %vm213_vm0, %v12041_v22 }
 0xdf0   :  { %9504 = vmatprep.mubr.msk.f32.mxu1 %vm213_vm0, %v12048_v25 }
 0xdf3   :  { %9505 = vmatmul.mubr.msk.f32.gmra.mxu1 %vm213_vm0, %v12055_v26 }
 0xdf4   :  { %9533 = vmatprep.mubr.msk.f32.mxu1 %vm213_vm0, %v12062_v59 }
 0xe9f   :  { %v9491_v5 = vpop.f32.mrf.mxu1 }
 0xea0   :  { %v4662_v46 = vadd.f32 %v9491_v5, %v9467_v54 }
 0xea1   :  { %v4656_v48 = vpop.f32.mrf.mxu1 }
 0xea2   :  { %v4657_v49 = vadd.f32 %v4656_v48, %v4531_v36  ;;  %v4716_v14 = vmul.f32 0.5, %v4662_v46 }
 0xea3   :  { %v9494_v4 = vpop.f32.mrf.mxu1 }
 0xea4   :  { %v4672_v13 = vadd.f32 %v9494_v4, %v9470_v55  ;;  %v4715_v17 = vmul.f32 0.5, %v4657_v49  ;;  %10327 = vtanh.f32 %v4716_v14  ;;  %v4581_v55 = vpop.f32.mrf.mxu0 }
 0xea5   :  { %v4666_v15 = vpop.f32.mrf.mxu1 }
 0xea6   :  { %v4667_v35 = vadd.f32 %v4666_v15, %v4541_v56  ;;  %v4727_v57 = vmul.f32 0.5, %v4672_v13  ;;  %10329 = vtanh.f32 %v4715_v17 }
 0xea7   :  { %v9497_v20 = vpop.f32.mrf.mxu1 }
 0xea8   :  { %v4682_v21 = vadd.f32 %v9497_v20, %v9473_v16  ;;  %v4717_v43 = vmul.f32 0.5, %v4667_v35  ;;  %10331 = vtanh.f32 %v4727_v57 }
 0xea9   :  { %v4676_v10 = vpop.f32.mrf.mxu1 }
 0xeaa   :  { %v4729_v2 = vmul.f32 0.5, %v4682_v21  ;;  %v4677_v44 = vadd.f32 %v4676_v10, %v4551_v33 }
 0xeab   :  { %v9500_v45 = vpop.f32.mrf.mxu1 }
 0xeac   :  { %10333 = vtanh.f32 %v4729_v2  ;;  %v4728_v41 = vmul.f32 0.5, %v4677_v44  ;;  %v4692_v27 = vadd.f32 %v9500_v45, %v9476_v1 }
 0xead   :  { %10335 = vtanh.f32 %v4717_v43  ;;  %v4686_v34 = vpop.f32.mrf.mxu1 }
 0xeae   :  { %10337 = vtanh.f32 %v4728_v41  ;;  %v4687_v60 = vadd.f32 %v4686_v34, %v4561_v18 }
 0xeaf   :  { %v9503_v42 = vpop.f32.mrf.mxu1  ;;  %10339 = vtanh.f32 %v4692_v27 }
 0xeb0   :  { %10341 = vtanh.f32 %v4687_v60  ;;  %v4702_v14 = vadd.f32 %v9503_v42, %v9479_v53 }
 0xeb1   :  { %v4696_v31 = vpop.f32.mrf.mxu1  ;;  %v10328_v33 = vpop.eup %10327 }
 0xeb2   :  { %v4697_v54 = vadd.f32 %v4696_v31, %v4571_v40  ;;  %v4722_v13 = vmul.f32 0.5, %v10328_v33  ;;  %v4742_v45 = vmul.f32 0.5, %v4702_v14 }
 0xeb3   :  { %v9506_v36 = vpop.f32.mrf.mxu1  ;;  %v10330_v5 = vpop.eup %10329 }
 0xeb4   :  { %10343 = vtanh.f32 %v4697_v54  ;;  %v4712_v56 = vadd.f32 %v9506_v36, %v9482_v52  ;;  %v4721_v17 = vmul.f32 0.5, %v10330_v5  ;;  %v4725_v2 = vadd.f32 0.5, %v4722_v13 }
 0xeb5   :  { %v4706_v16 = vpop.f32.mrf.mxu1  ;;  %v10332_v48 = vpop.eup %10331 }
 0xeb6   :  { %v4707_v46 = vadd.f32 %v4706_v16, %v4581_v55  ;;  %v4744_v1 = vmul.f32 0.5, %v4712_v56  ;;  %v4733_v35 = vmul.f32 0.5, %v10332_v48  ;;  %v4724_v41 = vadd.f32 0.5, %v4721_v17 }
 0xeb8   :  { %v4743_v57 = vmul.f32 0.5, %v4707_v46  ;;  %10345 = vtanh.f32 %v4744_v1  ;;  %v4736_v27 = vadd.f32 0.5, %v4733_v35 }
 0xeb9   :  { %v10334_v49 = vpop.eup %10333 }
 0xeba   :  { %v10336_v4 = vpop.eup %10335  ;;  %v4735_v18 = vmul.f32 0.5, %v10334_v49  ;;  %10347 = vtanh.f32 %v4743_v57  ;;  %v4754_v54 = vmul.f32 %v4736_v27, %v12227_v24 }
 0xebb   :  { %v10338_v15 = vpop.eup %10337  ;;  %v4723_v43 = vmul.f32 0.5, %v10336_v4  ;;  %10349 = vtanh.f32 %v4742_v45 }
 0xebc   :  { %v4734_v20 = vmul.f32 0.5, %v10338_v15  ;;  %v10340_v21 = vpop.eup %10339  ;;  %v4738_v34 = vadd.f32 0.5, %v4735_v18 }
 0xebd   :  { %v10342_v10 = vpop.eup %10341  ;;  %v4758_v53 = vmul.f32 %v10340_v21, %v4725_v2  ;;  %v4726_v40 = vadd.f32 0.5, %v4723_v43 }
 0xebe   :  { %v4737_v44 = vadd.f32 0.5, %v4734_v20  ;;  %v4757_v42 = vmul.f32 %v10342_v10, %v4724_v41  ;;  %v4756_v36 = vmul.f32 %v4738_v34, %v12229_v61 }
 0xec0   :  { %v4755_v60 = vmul.f32 %v4737_v44, %v12223_v47  ;;  %v12293_v56 = vadd.f32 %v4757_v42, %v4754_v54 }
 0xec1   :  { %v10344_v52 = vpop.eup %10343 }
 0xec2   :  { %v12289_v31 = vadd.f32 %v4758_v53, %v4755_v60  ;;  %v4759_v55 = vmul.f32 %v10344_v52, %v4726_v40 }
 0xec4   :  { %v12295_v16 = vadd.f32 %v4759_v55, %v4756_v36  ;;  %10351 = vtanh.f32 %v12289_v31 }
 0xec5   :  { %v10346_v47 = vpop.eup %10345 }
 0xec6   :  { %10353 = vtanh.f32 %v12295_v16  ;;  %v4750_v5 = vmul.f32 0.5, %v10346_v47 }
 0xec7   :  { %10355 = vtanh.f32 %v12293_v56  ;;  %v10348_v33 = vpop.eup %10347 }
 0xec8   :  { %v4749_v46 = vmul.f32 0.5, %v10348_v33  ;;  %v10350_v48 = vpop.eup %10349  ;;  %v4753_v24 = vadd.f32 0.5, %v4750_v5 }
 0xec9   :  { %v4748_v61 = vmul.f32 0.5, %v10350_v48 }
 0xeca   :  { %v4752_v1 = vadd.f32 0.5, %v4749_v46 }
 0xecb   :  { %v4751_v15 = vadd.f32 0.5, %v4748_v61 }
 0xed1   :  { %v10352_v49 = vpop.eup %10351 }
 0xed2   :  { %v4767_v17 = vmul.f32 %v10352_v49, %v4752_v1 }
 0xed3   :  { %v10354_v4 = vpop.eup %10353 }
 0xed4   :  { %v4768_v13 = vmul.f32 %v10354_v4, %v4753_v24  ;;  %v10356_v14 = vpop.eup %10355 }
 0xed5   :  { %v4766_v35 = vmul.f32 %v10356_v14, %v4751_v15 }
 0xed6   :  { %9527 = vmatprep.subr.mxu1 %v4768_v13 }
 0xed7   :  { %9528 = vmatpush3.msra.mxu1 %v4768_v13 }
 0xed8   :  { %9529 = vmatprep.subr.mxu1 %v4767_v17 }
 0xed9   :  { %9530 = vmatpush3.msra.mxu1 %v4767_v17 }
 0xeda   :  { %9531 = vmatprep.subr.mxu1 %v4766_v35 }
 0xedb   :  { %9532 = vmatpush3.msra.mxu1 %v4766_v35 }
 0xedc   :  { %9534 = vmatmul.mubr.msk.f32.vlgmr.msra.gmra.mxu1 %vm213_vm0, %v11985_v11  ;;  %v7981_v11 = vld [vmem:[%s13097_s0 + $0x10] ss:$0 sm:$0xff] }
 0xedd   :  { %9536 = vmatprep.mubr.msk.f32.mxu1 %vm213_vm0, %v11992_v28  ;;  %v5084_v28 = vsel %vm17_vm2, %v7981_v11, %v10833_v9 }
 0xede   :  { %9551 = vmatprep.subr.mxu0 %v5084_v28 }
 0xedf   :  { %9552 = vmatpush3.msra.mxu0 %v5084_v28 }
 0xee0   :  { %9537 = vmatmul.mubr.msk.f32.gmra.mxu1 %vm213_vm0, %v11999_v29  ;;  %9554 = vmatmul.mubr.msk.f32.vlgmr.msra.gmra.mxu0 %vm51_vm1, %v12075_v19  ;;  %v9511_v29 = vpop.f32.mrf.mxu0 }
 0xee1   :  { %9539 = vmatprep.mubr.msk.f32.mxu1 %vm213_vm0, %v12006_v23  ;;  %9556 = vmatprep.mubr.msk.f32.mxu0 %vm51_vm1, %v12082_v62 }
 0xee2   :  { %v4841_v23 = vpop.f32.mrf.mxu0 }
 0xee4   :  { %9540 = vmatmul.mubr.msk.f32.gmra.mxu1 %vm213_vm0, %v12013_v50  ;;  %9557 = vmatmul.mubr.msk.f32.gmra.mxu0 %vm51_vm1, %v12089_v30  ;;  %v9514_v50 = vpop.f32.mrf.mxu0 }
 0xee5   :  { %9542 = vmatprep.mubr.msk.f32.mxu1 %vm213_vm0, %v12020_v63  ;;  %9559 = vmatprep.mubr.msk.f32.mxu0 %vm51_vm1, %v12096_v0 }
 0xee6   :  { %v4851_v63 = vpop.f32.mrf.mxu0 }
 0xee8   :  { %9543 = vmatmul.mubr.msk.f32.gmra.mxu1 %vm213_vm0, %v12027_v8  ;;  %9560 = vmatmul.mubr.msk.f32.gmra.mxu0 %vm51_vm1, %v12103_v3  ;;  %v9517_v8 = vpop.f32.mrf.mxu0 }
 0xee9   :  { %9545 = vmatprep.mubr.msk.f32.mxu1 %vm213_vm0, %v12034_v58  ;;  %9562 = vmatprep.mubr.msk.f32.mxu0 %vm51_vm1, %v12110_v38 }
 0xeea   :  { %v4861_v58 = vpop.f32.mrf.mxu0 }
 0xeec   :  { %9546 = vmatmul.mubr.msk.f32.gmra.mxu1 %vm213_vm0, %v12041_v22  ;;  %9563 = vmatmul.mubr.msk.f32.gmra.mxu0 %vm51_vm1, %v12117_v7  ;;  %v9520_v19 = vpop.f32.mrf.mxu0 }
 0xeed   :  { %9548 = vmatprep.mubr.msk.f32.mxu1 %vm213_vm0, %v12048_v25  ;;  %9565 = vmatprep.mubr.msk.f32.mxu0 %vm51_vm1, %v12124_v12 }
 0xeee   :  { %v4871_v12 = vpop.f32.mrf.mxu0 }
 0xef0   :  { %9549 = vmatmul.mubr.msk.f32.gmra.mxu1 %vm213_vm0, %v12055_v26  ;;  %9566 = vmatmul.mubr.msk.f32.gmra.mxu0 %vm51_vm1, %v12131_v32  ;;  %v9523_v21 = vpop.f32.mrf.mxu0 }
 0xef1   :  { %9577 = vmatprep.mubr.msk.f32.mxu1 %vm213_vm0, %v12062_v59  ;;  %9568 = vmatprep.mubr.msk.f32.mxu0 %vm51_vm1, %v12138_v51 }
 0xef2   :  { %v4881_v41 = vpop.f32.mrf.mxu0 }
 0xef4   :  { %9569 = vmatmul.mubr.msk.f32.gmra.mxu0 %vm51_vm1, %v12145_v37  ;;  %v9526_v34 = vpop.f32.mrf.mxu0 }
 0xef5   :  { %9597 = vmatprep.mubr.msk.f32.mxu0 %vm51_vm1, %v12152_v39 }
 0xef6   :  { %v4891_v42 = vpop.f32.mrf.mxu0 }
 0xf9c   :  { %v9535_v22 = vpop.f32.mrf.mxu1 }
 0xf9d   :  { %v4972_v25 = vadd.f32 %v9535_v22, %v9511_v29 }
 0xf9e   :  { %v4966_v26 = vpop.f32.mrf.mxu1 }
 0xf9f   :  { %v4967_v59 = vadd.f32 %v4966_v26, %v4841_v23  ;;  %v5026_v0 = vmul.f32 0.5, %v4972_v25 }
 0xfa0   :  { %v9538_v62 = vpop.f32.mrf.mxu1 }
 0xfa1   :  { %v4982_v30 = vadd.f32 %v9538_v62, %v9514_v50  ;;  %v5025_v38 = vmul.f32 0.5, %v4967_v59  ;;  %10357 = vtanh.f32 %v5026_v0 }
 0xfa2   :  { %v4976_v3 = vpop.f32.mrf.mxu1 }
 0xfa3   :  { %v4977_v7 = vadd.f32 %v4976_v3, %v4851_v63  ;;  %v5037_v32 = vmul.f32 0.5, %v4982_v30  ;;  %10359 = vtanh.f32 %v5025_v38 }
 0xfa4   :  { %v9541_v51 = vpop.f32.mrf.mxu1 }
 0xfa5   :  { %v4992_v37 = vadd.f32 %v9541_v51, %v9517_v8  ;;  %v5027_v39 = vmul.f32 0.5, %v4977_v7  ;;  %10361 = vtanh.f32 %v5037_v32 }
 0xfa6   :  { %v4986_v18 = vpop.f32.mrf.mxu1 }
 0xfa7   :  { %v5039_v57 = vmul.f32 0.5, %v4992_v37  ;;  %v4987_v20 = vadd.f32 %v4986_v18, %v4861_v58 }
 0xfa8   :  { %v9544_v43 = vpop.f32.mrf.mxu1 }
 0xfa9   :  { %10363 = vtanh.f32 %v5039_v57  ;;  %v5038_v10 = vmul.f32 0.5, %v4987_v20  ;;  %v5002_v2 = vadd.f32 %v9544_v43, %v9520_v19 }
 0xfaa   :  { %10365 = vtanh.f32 %v5027_v39  ;;  %v4996_v44 = vpop.f32.mrf.mxu1 }
 0xfab   :  { %10367 = vtanh.f32 %v5038_v10  ;;  %v4997_v45 = vadd.f32 %v4996_v44, %v4871_v12  ;;  %v12376_v44 = vld [vmem:[%s13098_s1 + $0x10] sm:$0xff] }
 0xfac   :  { %v9547_v27 = vpop.f32.mrf.mxu1  ;;  %10369 = vtanh.f32 %v5002_v2  ;;  %v12369_v2 = vld [vmem:[%s13098_s1 + $0x8] sm:$0xff] }
 0xfad   :  { %10371 = vtanh.f32 %v4997_v45  ;;  %v5012_v49 = vadd.f32 %v9547_v27, %v9523_v21  ;;  %v12383_v45 = vld [vmem:[%s13098_s1 + $0x18] sm:$0xff]  ;;  %v12397_v27 = vld [vmem:[%s13098_s1 + $0x28] sm:$0xff] }
 0xfae   :  { %v5006_v60 = vpop.f32.mrf.mxu1  ;;  %v10358_v36 = vpop.eup %10357 }
 0xfaf   :  { %v5007_v53 = vadd.f32 %v5006_v60, %v4881_v41  ;;  %v5032_v24 = vmul.f32 0.5, %v10358_v36  ;;  %v5052_v23 = vmul.f32 0.5, %v5012_v49  ;;  %v12390_v41 = vld [vmem:[%s13098_s1 + $0x20] sm:$0xff]  ;;  %v12411_v60 = vld [vmem:[%s13098_s1 + $0x38] sm:$0xff]  ;;  %v8006_v36 = vld [vmem:[%s13097_s0 + $0x11] ss:$0 sm:$0xff] }
 0xfb0   :  { %v9550_v40 = vpop.f32.mrf.mxu1  ;;  %v10360_v55 = vpop.eup %10359  ;;  %v12501_v49 = vld [vmem:[%s13099_s2 + $0x38] sm:$0xff] }
 0xfb1   :  { %10373 = vtanh.f32 %v5007_v53  ;;  %v5022_v52 = vadd.f32 %v9550_v40, %v9526_v34  ;;  %v5031_v1 = vmul.f32 0.5, %v10360_v55  ;;  %v5035_v28 = vadd.f32 0.5, %v5032_v24  ;;  %v12404_v34 = vld [vmem:[%s13098_s1 + $0x30] sm:$0xff]  ;;  %v12418_v53 = vld [vmem:[%s13098_s1 + $0x40] sm:$0xff]  ;;  %v12425_v40 = vld [vmem:[%s13098_s1 + $0x48] sm:$0xff] }
 0xfb2   :  { %v5016_v54 = vpop.f32.mrf.mxu1  ;;  %v10362_v33 = vpop.eup %10361  ;;  %v5394_v55 = vsel %vm17_vm2, %v8006_v36, %v10833_v9  ;;  %v12494_v24 = vld [vmem:[%s13099_s2 + $0x30] sm:$0xff] }
 0xfb3   :  { %v5017_v47 = vadd.f32 %v5016_v54, %v4891_v42  ;;  %v5054_v46 = vmul.f32 0.5, %v5022_v52  ;;  %v5043_v4 = vmul.f32 0.5, %v10362_v33  ;;  %v5034_v50 = vadd.f32 0.5, %v5031_v1  ;;  %v12432_v42 = vld [vmem:[%s13098_s1 + $0x50] sm:$0xff]  ;;  %v12439_v52 = vld [vmem:[%s13098_s1 + $0x58] sm:$0xff]  ;;  %v12446_v54 = vld [vmem:[%s13098_s1] sm:$0xff]  ;;  %9595 = vmatprep.subr.mxu0 %v5394_v55 }
 0xfb4   :  { %9596 = vmatpush3.msra.mxu0 %v5394_v55  ;;  %v12466_v33 = vld [vmem:[%s13099_s2 + $0x10] sm:$0xff]  ;;  %v12515_v1 = vld [vmem:[%s13099_s2 + $0x48] sm:$0xff] }
 0xfb5   :  { %v5053_v14 = vmul.f32 0.5, %v5017_v47  ;;  %10375 = vtanh.f32 %v5054_v46  ;;  %v5046_v63 = vadd.f32 0.5, %v5043_v4  ;;  %v12459_v47 = vld [vmem:[%s13099_s2 + $0x8] sm:$0xff]  ;;  %v12480_v46 = vld [vmem:[%s13099_s2 + $0x20] sm:$0xff]  ;;  %v12522_v4 = vld [vmem:[%s13099_s2 + $0x50] sm:$0xff] }
 0xfb6   :  { %v10364_v5 = vpop.eup %10363  ;;  %9598 = vmatmul.mubr.msk.f32.vlgmr.msra.gmra.mxu0 %vm51_vm1, %v12459_v47 }
 0xfb7   :  { %v10366_v48 = vpop.eup %10365  ;;  %v5045_v13 = vmul.f32 0.5, %v10364_v5  ;;  %10377 = vtanh.f32 %v5053_v14  ;;  %v5064_v62 = vmul.f32 %v5046_v63, %v12293_v56  ;;  %9600 = vmatprep.mubr.msk.f32.mxu0 %vm51_vm1, %v12466_v33  ;;  %v12473_v5 = vld [vmem:[%s13099_s2 + $0x18] sm:$0xff]  ;;  %v12536_v14 = vld [vmem:[%s13099_s2] sm:$0xff] }
 0xfb8   :  { %v10368_v61 = vpop.eup %10367  ;;  %v5033_v35 = vmul.f32 0.5, %v10366_v48  ;;  %10379 = vtanh.f32 %v5052_v23  ;;  %v12487_v48 = vld [vmem:[%s13099_s2 + $0x28] sm:$0xff] }
 0xfb9   :  { %v5044_v15 = vmul.f32 0.5, %v10368_v61  ;;  %v10370_v17 = vpop.eup %10369  ;;  %v5048_v8 = vadd.f32 0.5, %v5045_v13  ;;  %v12508_v61 = vld [vmem:[%s13099_s2 + $0x40] sm:$0xff]  ;;  %v12529_v13 = vld [vmem:[%s13099_s2 + $0x58] sm:$0xff] }
 0xfba   :  { %v10372_v11 = vpop.eup %10371  ;;  %v5068_v22 = vmul.f32 %v10370_v17, %v5035_v28  ;;  %v5036_v25 = vadd.f32 0.5, %v5033_v35  ;;  %9601 = vmatmul.mubr.msk.f32.gmra.mxu0 %vm51_vm1, %v12473_v5 }
 0xfbb   :  { %v5047_v29 = vadd.f32 0.5, %v5044_v15  ;;  %v5067_v26 = vmul.f32 %v10372_v11, %v5034_v50  ;;  %v5066_v30 = vmul.f32 %v5048_v8, %v12295_v16  ;;  %9603 = vmatprep.mubr.msk.f32.mxu0 %vm51_vm1, %v12480_v46  ;;  %v9555_v15 = vpop.f32.mrf.mxu0 }
 0xfbd   :  { %v5065_v58 = vmul.f32 %v5047_v29, %v12289_v31  ;;  %v12359_v3 = vadd.f32 %v5067_v26, %v5064_v62  ;;  %v5151_v17 = vpop.f32.mrf.mxu0 }
 0xfbe   :  { %v10374_v59 = vpop.eup %10373  ;;  %9604 = vmatmul.mubr.msk.f32.gmra.mxu0 %vm51_vm1, %v12487_v48 }
 0xfbf   :  { %v12355_v19 = vadd.f32 %v5068_v22, %v5065_v58  ;;  %v5069_v0 = vmul.f32 %v10374_v59, %v5036_v25  ;;  %9606 = vmatprep.mubr.msk.f32.mxu0 %vm51_vm1, %v12494_v24  ;;  %v9558_v35 = vpop.f32.mrf.mxu0 }
 0xfc1   :  { %v12361_v38 = vadd.f32 %v5069_v0, %v5066_v30  ;;  %10381 = vtanh.f32 %v12355_v19  ;;  %v5161_v11 = vpop.f32.mrf.mxu0 }
 0xfc2   :  { %v10376_v31 = vpop.eup %10375  ;;  %9607 = vmatmul.mubr.msk.f32.gmra.mxu0 %vm51_vm1, %v12501_v49 }
 0xfc3   :  { %10383 = vtanh.f32 %v12361_v38  ;;  %v5060_v12 = vmul.f32 0.5, %v10376_v31  ;;  %9609 = vmatprep.mubr.msk.f32.mxu0 %vm51_vm1, %v12508_v61  ;;  %v9561_v28 = vpop.f32.mrf.mxu0 }
 0xfc4   :  { %10385 = vtanh.f32 %v12359_v3  ;;  %v10378_v7 = vpop.eup %10377 }
 0xfc5   :  { %v5059_v32 = vmul.f32 0.5, %v10378_v7  ;;  %v10380_v51 = vpop.eup %10379  ;;  %v5063_v56 = vadd.f32 0.5, %v5060_v12  ;;  %v5171_v29 = vpop.f32.mrf.mxu0 }
 0xfc6   :  { %v5058_v16 = vmul.f32 0.5, %v10380_v51  ;;  %9610 = vmatmul.mubr.msk.f32.gmra.mxu0 %vm51_vm1, %v12515_v1 }
 0xfc7   :  { %v5062_v39 = vadd.f32 0.5, %v5059_v32  ;;  %9612 = vmatprep.mubr.msk.f32.mxu0 %vm51_vm1, %v12522_v4  ;;  %v9564_v58 = vpop.f32.mrf.mxu0 }
 0xfc8   :  { %v5061_v21 = vadd.f32 0.5, %v5058_v16 }
 0xfc9   :  { %v5181_v0 = vpop.f32.mrf.mxu0 }
 0xfca   :  { %9613 = vmatmul.mubr.msk.f32.gmra.mxu0 %vm51_vm1, %v12529_v13 }
 0xfcb   :  { %9641 = vmatprep.mubr.msk.f32.mxu0 %vm51_vm1, %v12536_v14  ;;  %v9567_v16 = vpop.f32.mrf.mxu0 }
 0xfce   :  { %v10382_v37 = vpop.eup %10381 }
 0xfcf   :  { %v5077_v43 = vmul.f32 %v10382_v37, %v5062_v39 }
 0xfd0   :  { %v10384_v18 = vpop.eup %10383 }
 0xfd1   :  { %v5078_v57 = vmul.f32 %v10384_v18, %v5063_v56  ;;  %v10386_v20 = vpop.eup %10385 }
 0xfd2   :  { %v5076_v10 = vmul.f32 %v10386_v20, %v5061_v21 }
 0xfd3   :  { %9571 = vmatprep.subr.mxu1 %v5078_v57 }
 0xfd4   :  { %9572 = vmatpush3.msra.mxu1 %v5078_v57 }
 0xfd5   :  { %9573 = vmatprep.subr.mxu1 %v5077_v43 }
 0xfd6   :  { %9574 = vmatpush3.msra.mxu1 %v5077_v43  ;;  %v5191_v43 = vpop.f32.mrf.mxu0 }
 0xfd7   :  { %9575 = vmatprep.subr.mxu1 %v5076_v10 }
 0xfd8   :  { %9576 = vmatpush3.msra.mxu1 %v5076_v10  ;;  %v9570_v36 = vpop.f32.mrf.mxu0 }
 0xfd9   :  { %9578 = vmatmul.mubr.msk.f32.vlgmr.msra.gmra.mxu1 %vm213_vm0, %v12369_v2 }
 0xfda   :  { %9580 = vmatprep.mubr.msk.f32.mxu1 %vm213_vm0, %v12376_v44 }
 0xfdd   :  { %9581 = vmatmul.mubr.msk.f32.gmra.mxu1 %vm213_vm0, %v12383_v45 }
 0xfde   :  { %9583 = vmatprep.mubr.msk.f32.mxu1 %vm213_vm0, %v12390_v41 }
 0xfe1   :  { %9584 = vmatmul.mubr.msk.f32.gmra.mxu1 %vm213_vm0, %v12397_v27 }
 0xfe2   :  { %9586 = vmatprep.mubr.msk.f32.mxu1 %vm213_vm0, %v12404_v34 }
 0xfe5   :  { %9587 = vmatmul.mubr.msk.f32.gmra.mxu1 %vm213_vm0, %v12411_v60 }
 0xfe6   :  { %9589 = vmatprep.mubr.msk.f32.mxu1 %vm213_vm0, %v12418_v53 }
 0xfe9   :  { %9590 = vmatmul.mubr.msk.f32.gmra.mxu1 %vm213_vm0, %v12425_v40 }
 0xfea   :  { %9592 = vmatprep.mubr.msk.f32.mxu1 %vm213_vm0, %v12432_v42 }
 0xfed   :  { %9593 = vmatmul.mubr.msk.f32.gmra.mxu1 %vm213_vm0, %v12439_v52 }
 0xfee   :  { %9621 = vmatprep.mubr.msk.f32.mxu1 %vm213_vm0, %v12446_v54 }
0x1099   :  { %v9579_v23 = vpop.f32.mrf.mxu1 }
0x109a   :  { %v5282_v50 = vadd.f32 %v9579_v23, %v9555_v15 }
0x109b   :  { %v5276_v63 = vpop.f32.mrf.mxu1 }
0x109c   :  { %v5277_v8 = vadd.f32 %v5276_v63, %v5151_v17  ;;  %v5336_v26 = vmul.f32 0.5, %v5282_v50 }
0x109d   :  { %v9582_v22 = vpop.f32.mrf.mxu1 }
0x109e   :  { %v5292_v25 = vadd.f32 %v9582_v22, %v9558_v35  ;;  %v5335_v62 = vmul.f32 0.5, %v5277_v8  ;;  %10387 = vtanh.f32 %v5336_v26  ;;  %v5201_v35 = vpop.f32.mrf.mxu0 }
0x109f   :  { %v5286_v59 = vpop.f32.mrf.mxu1 }
0x10a0   :  { %v5287_v30 = vadd.f32 %v5286_v59, %v5161_v11  ;;  %v5347_v31 = vmul.f32 0.5, %v5292_v25  ;;  %10389 = vtanh.f32 %v5335_v62 }
0x10a1   :  { %v9585_v7 = vpop.f32.mrf.mxu1 }
0x10a2   :  { %v5302_v12 = vadd.f32 %v9585_v7, %v9561_v28  ;;  %v5337_v32 = vmul.f32 0.5, %v5287_v30  ;;  %10391 = vtanh.f32 %v5347_v31 }
0x10a3   :  { %v5296_v51 = vpop.f32.mrf.mxu1 }
0x10a4   :  { %v5349_v56 = vmul.f32 0.5, %v5302_v12  ;;  %v5297_v37 = vadd.f32 %v5296_v51, %v5171_v29 }
0x10a5   :  { %v9588_v39 = vpop.f32.mrf.mxu1 }
0x10a6   :  { %10393 = vtanh.f32 %v5349_v56  ;;  %v5348_v18 = vmul.f32 0.5, %v5297_v37  ;;  %v5312_v57 = vadd.f32 %v9588_v39, %v9564_v58 }
0x10a7   :  { %10395 = vtanh.f32 %v5337_v32  ;;  %v5306_v20 = vpop.f32.mrf.mxu1 }
0x10a8   :  { %10397 = vtanh.f32 %v5348_v18  ;;  %v5307_v21 = vadd.f32 %v5306_v20, %v5181_v0 }
0x10a9   :  { %v9591_v10 = vpop.f32.mrf.mxu1  ;;  %10399 = vtanh.f32 %v5312_v57 }
0x10aa   :  { %10401 = vtanh.f32 %v5307_v21  ;;  %v5322_v26 = vadd.f32 %v9591_v10, %v9567_v16 }
0x10ab   :  { %v5316_v55 = vpop.f32.mrf.mxu1  ;;  %v10388_v29 = vpop.eup %10387 }
0x10ac   :  { %v5317_v15 = vadd.f32 %v5316_v55, %v5191_v43  ;;  %v5342_v25 = vmul.f32 0.5, %v10388_v29  ;;  %v5362_v39 = vmul.f32 0.5, %v5322_v26 }
0x10ad   :  { %v9594_v17 = vpop.f32.mrf.mxu1  ;;  %v10390_v23 = vpop.eup %10389 }
0x10ae   :  { %10403 = vtanh.f32 %v5317_v15  ;;  %v5332_v11 = vadd.f32 %v9594_v17, %v9570_v36  ;;  %v5341_v62 = vmul.f32 0.5, %v10390_v23  ;;  %v5345_v56 = vadd.f32 0.5, %v5342_v25 }
0x10af   :  { %v5326_v28 = vpop.f32.mrf.mxu1  ;;  %v10392_v63 = vpop.eup %10391 }
0x10b0   :  { %v5327_v50 = vadd.f32 %v5326_v28, %v5201_v35  ;;  %v5364_v58 = vmul.f32 0.5, %v5332_v11  ;;  %v5353_v30 = vmul.f32 0.5, %v10392_v63  ;;  %v5344_v18 = vadd.f32 0.5, %v5341_v62 }
0x10b2   :  { %v5363_v31 = vmul.f32 0.5, %v5327_v50  ;;  %10405 = vtanh.f32 %v5364_v58  ;;  %v5356_v57 = vadd.f32 0.5, %v5353_v30 }
0x10b3   :  { %v10394_v8 = vpop.eup %10393 }
0x10b4   :  { %v10396_v22 = vpop.eup %10395  ;;  %v5355_v0 = vmul.f32 0.5, %v10394_v8  ;;  %10407 = vtanh.f32 %v5363_v31  ;;  %v5374_v15 = vmul.f32 %v5356_v57, %v12359_v3 }
0x10b5   :  { %v10398_v59 = vpop.eup %10397  ;;  %v5343_v32 = vmul.f32 0.5, %v10396_v22  ;;  %10409 = vtanh.f32 %v5362_v39 }
0x10b6   :  { %v5354_v7 = vmul.f32 0.5, %v10398_v59  ;;  %v10400_v12 = vpop.eup %10399  ;;  %v5358_v20 = vadd.f32 0.5, %v5355_v0  ;;  %v8031_v0 = vld [vmem:[%s13097_s0 + $0x12] ss:$0 sm:$0xff] }
0x10b7   :  { %v10402_v51 = vpop.eup %10401  ;;  %v5378_v16 = vmul.f32 %v10400_v12, %v5345_v56  ;;  %v5346_v43 = vadd.f32 0.5, %v5343_v32  ;;  %v5704_v31 = vsel %vm17_vm2, %v8031_v0, %v10833_v9 }
0x10b8   :  { %v5357_v37 = vadd.f32 0.5, %v5354_v7  ;;  %v5377_v10 = vmul.f32 %v10402_v51, %v5344_v18  ;;  %v5376_v17 = vmul.f32 %v5358_v20, %v12361_v38  ;;  %9639 = vmatprep.subr.mxu0 %v5704_v31  ;;  %v9599_v7 = vpop.f32.mrf.mxu0 }
0x10b9   :  { %9640 = vmatpush3.msra.mxu0 %v5704_v31 }
0x10ba   :  { %v5375_v21 = vmul.f32 %v5357_v37, %v12355_v19  ;;  %v12545_v11 = vadd.f32 %v5377_v10, %v5374_v15  ;;  %9642 = vmatmul.mubr.msk.f32.vlgmr.msra.gmra.mxu0 %vm51_vm1, %v12459_v47  ;;  %v5461_v12 = vpop.f32.mrf.mxu0 }
0x10bb   :  { %v10404_v36 = vpop.eup %10403  ;;  %9644 = vmatprep.mubr.msk.f32.mxu0 %vm51_vm1, %v12466_v33 }
0x10bc   :  { %v12541_v55 = vadd.f32 %v5378_v16, %v5375_v21  ;;  %v5379_v35 = vmul.f32 %v10404_v36, %v5346_v43  ;;  %v9602_v32 = vpop.f32.mrf.mxu0 }
0x10be   :  { %v12547_v28 = vadd.f32 %v5379_v35, %v5376_v17  ;;  %10411 = vtanh.f32 %v12541_v55  ;;  %9645 = vmatmul.mubr.msk.f32.gmra.mxu0 %vm51_vm1, %v12473_v5  ;;  %v5471_v51 = vpop.f32.mrf.mxu0 }
0x10bf   :  { %v10406_v19 = vpop.eup %10405  ;;  %9647 = vmatprep.mubr.msk.f32.mxu0 %vm51_vm1, %v12480_v46 }
0x10c0   :  { %10413 = vtanh.f32 %v12547_v28  ;;  %v5370_v23 = vmul.f32 0.5, %v10406_v19  ;;  %v9605_v56 = vpop.f32.mrf.mxu0 }
0x10c1   :  { %10415 = vtanh.f32 %v12545_v11  ;;  %v10408_v29 = vpop.eup %10407 }
0x10c2   :  { %v5369_v50 = vmul.f32 0.5, %v10408_v29  ;;  %v10410_v63 = vpop.eup %10409  ;;  %v5373_v3 = vadd.f32 0.5, %v5370_v23  ;;  %9648 = vmatmul.mubr.msk.f32.gmra.mxu0 %vm51_vm1, %v12487_v48  ;;  %v5481_v37 = vpop.f32.mrf.mxu0 }
0x10c3   :  { %v5368_v38 = vmul.f32 0.5, %v10410_v63  ;;  %9650 = vmatprep.mubr.msk.f32.mxu0 %vm51_vm1, %v12494_v24 }
0x10c4   :  { %v5372_v58 = vadd.f32 0.5, %v5369_v50  ;;  %v9608_v21 = vpop.f32.mrf.mxu0 }
0x10c5   :  { %v5371_v59 = vadd.f32 0.5, %v5368_v38 }
0x10c6   :  { %9651 = vmatmul.mubr.msk.f32.gmra.mxu0 %vm51_vm1, %v12501_v49  ;;  %v5491_v35 = vpop.f32.mrf.mxu0 }
0x10c7   :  { %9653 = vmatprep.mubr.msk.f32.mxu0 %vm51_vm1, %v12508_v61 }
0x10c8   :  { %v9611_v38 = vpop.f32.mrf.mxu0 }
0x10ca   :  { %9654 = vmatmul.mubr.msk.f32.gmra.mxu0 %vm51_vm1, %v12515_v1 }
0x10cb   :  { %v10412_v8 = vpop.eup %10411  ;;  %9656 = vmatprep.mubr.msk.f32.mxu0 %vm51_vm1, %v12522_v4 }
0x10cc   :  { %v5387_v62 = vmul.f32 %v10412_v8, %v5372_v58 }
0x10cd   :  { %v10414_v22 = vpop.eup %10413 }
0x10ce   :  { %v5388_v25 = vmul.f32 %v10414_v22, %v5373_v3  ;;  %v10416_v26 = vpop.eup %10415  ;;  %9657 = vmatmul.mubr.msk.f32.gmra.mxu0 %vm51_vm1, %v12529_v13 }
0x10cf   :  { %v5386_v30 = vmul.f32 %v10416_v26, %v5371_v59  ;;  %9685 = vmatprep.mubr.msk.f32.mxu0 %vm51_vm1, %v12536_v14 }
0x10d0   :  { %9615 = vmatprep.subr.mxu1 %v5388_v25 }
0x10d1   :  { %9616 = vmatpush3.msra.mxu1 %v5388_v25 }
0x10d2   :  { %9617 = vmatprep.subr.mxu1 %v5387_v62 }
0x10d3   :  { %9618 = vmatpush3.msra.mxu1 %v5387_v62  ;;  %v5501_v62 = vpop.f32.mrf.mxu0 }
0x10d4   :  { %9619 = vmatprep.subr.mxu1 %v5386_v30 }
0x10d5   :  { %9620 = vmatpush3.msra.mxu1 %v5386_v30  ;;  %v9614_v0 = vpop.f32.mrf.mxu0 }
0x10d6   :  { %9622 = vmatmul.mubr.msk.f32.vlgmr.msra.gmra.mxu1 %vm213_vm0, %v12369_v2 }
0x10d7   :  { %9624 = vmatprep.mubr.msk.f32.mxu1 %vm213_vm0, %v12376_v44 }
0x10da   :  { %9625 = vmatmul.mubr.msk.f32.gmra.mxu1 %vm213_vm0, %v12383_v45 }
0x10db   :  { %9627 = vmatprep.mubr.msk.f32.mxu1 %vm213_vm0, %v12390_v41 }
0x10de   :  { %9628 = vmatmul.mubr.msk.f32.gmra.mxu1 %vm213_vm0, %v12397_v27 }
0x10df   :  { %9630 = vmatprep.mubr.msk.f32.mxu1 %vm213_vm0, %v12404_v34 }
0x10e2   :  { %9631 = vmatmul.mubr.msk.f32.gmra.mxu1 %vm213_vm0, %v12411_v60 }
0x10e3   :  { %9633 = vmatprep.mubr.msk.f32.mxu1 %vm213_vm0, %v12418_v53 }
0x10e6   :  { %9634 = vmatmul.mubr.msk.f32.gmra.mxu1 %vm213_vm0, %v12425_v40 }
0x10e7   :  { %9636 = vmatprep.mubr.msk.f32.mxu1 %vm213_vm0, %v12432_v42 }
0x10ea   :  { %9637 = vmatmul.mubr.msk.f32.gmra.mxu1 %vm213_vm0, %v12439_v52 }
0x10eb   :  { %9665 = vmatprep.mubr.msk.f32.mxu1 %vm213_vm0, %v12446_v54 }
0x1196   :  { %v9623_v39 = vpop.f32.mrf.mxu1 }
0x1197   :  { %v5592_v18 = vadd.f32 %v9623_v39, %v9599_v7 }
0x1198   :  { %v5586_v57 = vpop.f32.mrf.mxu1 }
0x1199   :  { %v5587_v20 = vadd.f32 %v5586_v57, %v5461_v12  ;;  %v5646_v10 = vmul.f32 0.5, %v5592_v18 }
0x119a   :  { %v9626_v16 = vpop.f32.mrf.mxu1 }
0x119b   :  { %v5602_v43 = vadd.f32 %v9626_v16, %v9602_v32  ;;  %v5645_v15 = vmul.f32 0.5, %v5587_v20  ;;  %10417 = vtanh.f32 %v5646_v10  ;;  %v5511_v32 = vpop.f32.mrf.mxu0 }
0x119c   :  { %v5596_v36 = vpop.f32.mrf.mxu1 }
0x119d   :  { %v5597_v17 = vadd.f32 %v5596_v36, %v5471_v51  ;;  %v5657_v19 = vmul.f32 0.5, %v5602_v43  ;;  %10419 = vtanh.f32 %v5645_v15 }
0x119e   :  { %v9629_v29 = vpop.f32.mrf.mxu1 }
0x119f   :  { %v5612_v23 = vadd.f32 %v9629_v29, %v9605_v56  ;;  %v5647_v50 = vmul.f32 0.5, %v5597_v17  ;;  %10421 = vtanh.f32 %v5657_v19 }
0x11a0   :  { %v5606_v63 = vpop.f32.mrf.mxu1 }
0x11a1   :  { %v5659_v3 = vmul.f32 0.5, %v5612_v23  ;;  %v5607_v8 = vadd.f32 %v5606_v63, %v5481_v37 }
0x11a2   :  { %v9632_v58 = vpop.f32.mrf.mxu1 }
0x11a3   :  { %10423 = vtanh.f32 %v5659_v3  ;;  %v5658_v22 = vmul.f32 0.5, %v5607_v8  ;;  %v5622_v25 = vadd.f32 %v9632_v58, %v9608_v21 }
0x11a4   :  { %10425 = vtanh.f32 %v5647_v50  ;;  %v5616_v26 = vpop.f32.mrf.mxu1 }
0x11a5   :  { %10427 = vtanh.f32 %v5658_v22  ;;  %v5617_v59 = vadd.f32 %v5616_v26, %v5491_v35 }
0x11a6   :  { %v9635_v30 = vpop.f32.mrf.mxu1  ;;  %10429 = vtanh.f32 %v5622_v25 }
0x11a7   :  { %10431 = vtanh.f32 %v5617_v59  ;;  %v5632_v10 = vadd.f32 %v9635_v30, %v9611_v38 }
0x11a8   :  { %v5626_v31 = vpop.f32.mrf.mxu1  ;;  %v10418_v37 = vpop.eup %10417 }
0x11a9   :  { %v5627_v7 = vadd.f32 %v5626_v31, %v5501_v62  ;;  %v5652_v43 = vmul.f32 0.5, %v10418_v37  ;;  %v5672_v58 = vmul.f32 0.5, %v5632_v10 }
0x11aa   :  { %v9638_v12 = vpop.f32.mrf.mxu1  ;;  %v10420_v39 = vpop.eup %10419 }
0x11ab   :  { %10433 = vtanh.f32 %v5627_v7  ;;  %v5642_v51 = vadd.f32 %v9638_v12, %v9614_v0  ;;  %v5651_v15 = vmul.f32 0.5, %v10420_v39  ;;  %v5655_v3 = vadd.f32 0.5, %v5652_v43 }
0x11ac   :  { %v5636_v56 = vpop.f32.mrf.mxu1  ;;  %v10422_v57 = vpop.eup %10421 }
0x11ad   :  { %v5637_v18 = vadd.f32 %v5636_v56, %v5511_v32  ;;  %v5674_v21 = vmul.f32 0.5, %v5642_v51  ;;  %v5663_v17 = vmul.f32 0.5, %v10422_v57  ;;  %v5654_v22 = vadd.f32 0.5, %v5651_v15 }
0x11af   :  { %v5673_v19 = vmul.f32 0.5, %v5637_v18  ;;  %10435 = vtanh.f32 %v5674_v21  ;;  %v5666_v25 = vadd.f32 0.5, %v5663_v17 }
0x11b0   :  { %v10424_v20 = vpop.eup %10423 }
0x11b1   :  { %v10426_v16 = vpop.eup %10425  ;;  %v5665_v35 = vmul.f32 0.5, %v10424_v20  ;;  %10437 = vtanh.f32 %v5673_v19  ;;  %v5684_v7 = vmul.f32 %v5666_v25, %v12545_v11 }
0x11b2   :  { %v10428_v36 = vpop.eup %10427  ;;  %v5653_v50 = vmul.f32 0.5, %v10426_v16  ;;  %10439 = vtanh.f32 %v5672_v58 }
0x11b3   :  { %v5664_v29 = vmul.f32 0.5, %v10428_v36  ;;  %v10430_v23 = vpop.eup %10429  ;;  %v5668_v26 = vadd.f32 0.5, %v5665_v35  ;;  %v8056_v35 = vld [vmem:[%s13097_s0 + $0x13] ss:$0 sm:$0xff] }
0x11b4   :  { %v10432_v63 = vpop.eup %10431  ;;  %v5688_v38 = vmul.f32 %v10430_v23, %v5655_v3  ;;  %v5656_v62 = vadd.f32 0.5, %v5653_v50  ;;  %v6014_v19 = vsel %vm17_vm2, %v8056_v35, %v10833_v9 }
0x11b5   :  { %v5667_v8 = vadd.f32 0.5, %v5664_v29  ;;  %v5687_v30 = vmul.f32 %v10432_v63, %v5654_v22  ;;  %v5686_v12 = vmul.f32 %v5668_v26, %v12547_v28  ;;  %9683 = vmatprep.subr.mxu0 %v6014_v19  ;;  %v9643_v29 = vpop.f32.mrf.mxu0 }
0x11b6   :  { %9684 = vmatpush3.msra.mxu0 %v6014_v19 }
0x11b7   :  { %v5685_v59 = vmul.f32 %v5667_v8, %v12541_v55  ;;  %v12611_v51 = vadd.f32 %v5687_v30, %v5684_v7  ;;  %9686 = vmatmul.mubr.msk.f32.vlgmr.msra.gmra.mxu0 %vm51_vm1, %v12459_v47  ;;  %v5771_v23 = vpop.f32.mrf.mxu0 }
0x11b8   :  { %v10434_v0 = vpop.eup %10433  ;;  %9688 = vmatprep.mubr.msk.f32.mxu0 %vm51_vm1, %v12466_v33 }
0x11b9   :  { %v12607_v31 = vadd.f32 %v5688_v38, %v5685_v59  ;;  %v5689_v32 = vmul.f32 %v10434_v0, %v5656_v62  ;;  %v9646_v50 = vpop.f32.mrf.mxu0 }
0x11bb   :  { %v12613_v56 = vadd.f32 %v5689_v32, %v5686_v12  ;;  %10441 = vtanh.f32 %v12607_v31  ;;  %9689 = vmatmul.mubr.msk.f32.gmra.mxu0 %vm51_vm1, %v12473_v5  ;;  %v5781_v63 = vpop.f32.mrf.mxu0 }
0x11bc   :  { %v10436_v55 = vpop.eup %10435  ;;  %9691 = vmatprep.mubr.msk.f32.mxu0 %vm51_vm1, %v12480_v46 }
0x11bd   :  { %10443 = vtanh.f32 %v12613_v56  ;;  %v5680_v39 = vmul.f32 0.5, %v10436_v55  ;;  %v9649_v3 = vpop.f32.mrf.mxu0 }
0x11be   :  { %10445 = vtanh.f32 %v12611_v51  ;;  %v10438_v37 = vpop.eup %10437 }
0x11bf   :  { %v5679_v18 = vmul.f32 0.5, %v10438_v37  ;;  %v10440_v57 = vpop.eup %10439  ;;  %v5683_v11 = vadd.f32 0.5, %v5680_v39  ;;  %9692 = vmatmul.mubr.msk.f32.gmra.mxu0 %vm51_vm1, %v12487_v48  ;;  %v5791_v8 = vpop.f32.mrf.mxu0 }
0x11c0   :  { %v5678_v28 = vmul.f32 0.5, %v10440_v57  ;;  %9694 = vmatprep.mubr.msk.f32.mxu0 %vm51_vm1, %v12494_v24 }
0x11c1   :  { %v5682_v21 = vadd.f32 0.5, %v5679_v18  ;;  %v9652_v59 = vpop.f32.mrf.mxu0 }
0x11c2   :  { %v5681_v36 = vadd.f32 0.5, %v5678_v28 }
0x11c3   :  { %9695 = vmatmul.mubr.msk.f32.gmra.mxu0 %vm51_vm1, %v12501_v49  ;;  %v5801_v32 = vpop.f32.mrf.mxu0 }
0x11c4   :  { %9697 = vmatprep.mubr.msk.f32.mxu0 %vm51_vm1, %v12508_v61 }
0x11c5   :  { %v9655_v28 = vpop.f32.mrf.mxu0 }
0x11c7   :  { %9698 = vmatmul.mubr.msk.f32.gmra.mxu0 %vm51_vm1, %v12515_v1 }
0x11c8   :  { %v10442_v20 = vpop.eup %10441  ;;  %9700 = vmatprep.mubr.msk.f32.mxu0 %vm51_vm1, %v12522_v4 }
0x11c9   :  { %v5697_v15 = vmul.f32 %v10442_v20, %v5682_v21 }
0x11ca   :  { %v10444_v16 = vpop.eup %10443 }
0x11cb   :  { %v5698_v43 = vmul.f32 %v10444_v16, %v5683_v11  ;;  %v10446_v10 = vpop.eup %10445  ;;  %9701 = vmatmul.mubr.msk.f32.gmra.mxu0 %vm51_vm1, %v12529_v13 }
0x11cc   :  { %v5696_v17 = vmul.f32 %v10446_v10, %v5681_v36  ;;  %9729 = vmatprep.mubr.msk.f32.mxu0 %vm51_vm1, %v12536_v14 }
0x11cd   :  { %9659 = vmatprep.subr.mxu1 %v5698_v43 }
0x11ce   :  { %9660 = vmatpush3.msra.mxu1 %v5698_v43 }
0x11cf   :  { %9661 = vmatprep.subr.mxu1 %v5697_v15 }
0x11d0   :  { %9662 = vmatpush3.msra.mxu1 %v5697_v15  ;;  %v5811_v15 = vpop.f32.mrf.mxu0 }
0x11d1   :  { %9663 = vmatprep.subr.mxu1 %v5696_v17 }
0x11d2   :  { %9664 = vmatpush3.msra.mxu1 %v5696_v17  ;;  %v9658_v35 = vpop.f32.mrf.mxu0 }
0x11d3   :  { %9666 = vmatmul.mubr.msk.f32.vlgmr.msra.gmra.mxu1 %vm213_vm0, %v12369_v2 }
0x11d4   :  { %9668 = vmatprep.mubr.msk.f32.mxu1 %vm213_vm0, %v12376_v44 }
0x11d7   :  { %9669 = vmatmul.mubr.msk.f32.gmra.mxu1 %vm213_vm0, %v12383_v45 }
0x11d8   :  { %9671 = vmatprep.mubr.msk.f32.mxu1 %vm213_vm0, %v12390_v41 }
0x11db   :  { %9672 = vmatmul.mubr.msk.f32.gmra.mxu1 %vm213_vm0, %v12397_v27 }
0x11dc   :  { %9674 = vmatprep.mubr.msk.f32.mxu1 %vm213_vm0, %v12404_v34 }
0x11df   :  { %9675 = vmatmul.mubr.msk.f32.gmra.mxu1 %vm213_vm0, %v12411_v60 }
0x11e0   :  { %9677 = vmatprep.mubr.msk.f32.mxu1 %vm213_vm0, %v12418_v53 }
0x11e3   :  { %9678 = vmatmul.mubr.msk.f32.gmra.mxu1 %vm213_vm0, %v12425_v40 }
0x11e4   :  { %9680 = vmatprep.mubr.msk.f32.mxu1 %vm213_vm0, %v12432_v42 }
0x11e7   :  { %9681 = vmatmul.mubr.msk.f32.gmra.mxu1 %vm213_vm0, %v12439_v52 }
0x11e8   :  { %9709 = vmatprep.mubr.msk.f32.mxu1 %vm213_vm0, %v12446_v54 }
0x1293   :  { %v9667_v58 = vpop.f32.mrf.mxu1 }
0x1294   :  { %v5902_v22 = vadd.f32 %v9667_v58, %v9643_v29 }
0x1295   :  { %v5896_v25 = vpop.f32.mrf.mxu1 }
0x1296   :  { %v5897_v26 = vadd.f32 %v5896_v25, %v5771_v23  ;;  %v5956_v30 = vmul.f32 0.5, %v5902_v22 }
0x1297   :  { %v9670_v38 = vpop.f32.mrf.mxu1 }
0x1298   :  { %v5912_v62 = vadd.f32 %v9670_v38, %v9646_v50  ;;  %v5955_v7 = vmul.f32 0.5, %v5897_v26  ;;  %10447 = vtanh.f32 %v5956_v30  ;;  %v5821_v50 = vpop.f32.mrf.mxu0 }
0x1299   :  { %v5906_v0 = vpop.f32.mrf.mxu1 }
0x129a   :  { %v5907_v12 = vadd.f32 %v5906_v0, %v5781_v63  ;;  %v5967_v55 = vmul.f32 0.5, %v5912_v62  ;;  %10449 = vtanh.f32 %v5955_v7 }
0x129b   :  { %v9673_v37 = vpop.f32.mrf.mxu1 }
0x129c   :  { %v5922_v39 = vadd.f32 %v9673_v37, %v9649_v3  ;;  %v5957_v18 = vmul.f32 0.5, %v5907_v12  ;;  %10451 = vtanh.f32 %v5967_v55 }
0x129d   :  { %v5916_v57 = vpop.f32.mrf.mxu1 }
0x129e   :  { %v5969_v11 = vmul.f32 0.5, %v5922_v39  ;;  %v5917_v20 = vadd.f32 %v5916_v57, %v5791_v8 }
0x129f   :  { %v9676_v21 = vpop.f32.mrf.mxu1 }
0x12a0   :  { %10453 = vtanh.f32 %v5969_v11  ;;  %v5968_v16 = vmul.f32 0.5, %v5917_v20  ;;  %v5932_v43 = vadd.f32 %v9676_v21, %v9652_v59 }
0x12a1   :  { %10455 = vtanh.f32 %v5957_v18  ;;  %v5926_v10 = vpop.f32.mrf.mxu1 }
0x12a2   :  { %10457 = vtanh.f32 %v5968_v16  ;;  %v5927_v36 = vadd.f32 %v5926_v10, %v5801_v32 }
0x12a3   :  { %v9679_v17 = vpop.f32.mrf.mxu1  ;;  %10459 = vtanh.f32 %v5932_v43 }
0x12a4   :  { %10461 = vtanh.f32 %v5927_v36  ;;  %v5942_v30 = vadd.f32 %v9679_v17, %v9655_v28 }
0x12a5   :  { %v5936_v19 = vpop.f32.mrf.mxu1  ;;  %v10448_v8 = vpop.eup %10447 }
0x12a6   :  { %v5937_v29 = vadd.f32 %v5936_v19, %v5811_v15  ;;  %v5962_v62 = vmul.f32 0.5, %v10448_v8  ;;  %v5982_v21 = vmul.f32 0.5, %v5942_v30 }
0x12a7   :  { %v9682_v23 = vpop.f32.mrf.mxu1  ;;  %v10450_v58 = vpop.eup %10449 }
0x12a8   :  { %10463 = vtanh.f32 %v5937_v29  ;;  %v5952_v63 = vadd.f32 %v9682_v23, %v9658_v35  ;;  %v5961_v7 = vmul.f32 0.5, %v10450_v58  ;;  %v5965_v11 = vadd.f32 0.5, %v5962_v62 }
0x12a9   :  { %v5946_v3 = vpop.f32.mrf.mxu1  ;;  %v10452_v25 = vpop.eup %10451 }
0x12aa   :  { %v5947_v22 = vadd.f32 %v5946_v3, %v5821_v50  ;;  %v5984_v59 = vmul.f32 0.5, %v5952_v63  ;;  %v5973_v12 = vmul.f32 0.5, %v10452_v25  ;;  %v5964_v16 = vadd.f32 0.5, %v5961_v7 }
0x12ac   :  { %v5983_v55 = vmul.f32 0.5, %v5947_v22  ;;  %10465 = vtanh.f32 %v5984_v59  ;;  %v5976_v43 = vadd.f32 0.5, %v5973_v12 }
0x12ad   :  { %v10454_v26 = vpop.eup %10453 }
0x12ae   :  { %v10456_v38 = vpop.eup %10455  ;;  %v5975_v32 = vmul.f32 0.5, %v10454_v26  ;;  %10467 = vtanh.f32 %v5983_v55  ;;  %v5994_v29 = vmul.f32 %v5976_v43, %v12611_v51 }
0x12af   :  { %v10458_v0 = vpop.eup %10457  ;;  %v5963_v18 = vmul.f32 0.5, %v10456_v38  ;;  %10469 = vtanh.f32 %v5982_v21 }
0x12b0   :  { %v5974_v37 = vmul.f32 0.5, %v10458_v0  ;;  %v10460_v39 = vpop.eup %10459  ;;  %v5978_v10 = vadd.f32 0.5, %v5975_v32 }
0x12b1   :  { %v10462_v57 = vpop.eup %10461  ;;  %v5998_v28 = vmul.f32 %v10460_v39, %v5965_v11  ;;  %v5966_v15 = vadd.f32 0.5, %v5963_v18 }
0x12b2   :  { %v5977_v20 = vadd.f32 0.5, %v5974_v37  ;;  %v5997_v17 = vmul.f32 %v10462_v57, %v5964_v16  ;;  %v5996_v23 = vmul.f32 %v5978_v10, %v12613_v56 }
0x12b4   :  { %v5995_v36 = vmul.f32 %v5977_v20, %v12607_v31  ;;  %v12677_v63 = vadd.f32 %v5997_v17, %v5994_v29 }
0x12b5   :  { %v10464_v35 = vpop.eup %10463 }
0x12b6   :  { %v12673_v19 = vadd.f32 %v5998_v28, %v5995_v36  ;;  %v5999_v50 = vmul.f32 %v10464_v35, %v5966_v15 }
0x12b8   :  { %v12679_v3 = vadd.f32 %v5999_v50, %v5996_v23  ;;  %10471 = vtanh.f32 %v12673_v19 }
0x12b9   :  { %v10466_v31 = vpop.eup %10465 }
0x12ba   :  { %10473 = vtanh.f32 %v12679_v3  ;;  %v5990_v58 = vmul.f32 0.5, %v10466_v31 }
0x12bb   :  { %10475 = vtanh.f32 %v12677_v63  ;;  %v10468_v8 = vpop.eup %10467 }
0x12bc   :  { %v5989_v22 = vmul.f32 0.5, %v10468_v8  ;;  %v10470_v25 = vpop.eup %10469  ;;  %v5993_v51 = vadd.f32 0.5, %v5990_v58 }
0x12bd   :  { %v5988_v56 = vmul.f32 0.5, %v10470_v25 }
0x12be   :  { %v5992_v59 = vadd.f32 0.5, %v5989_v22 }
0x12bf   :  { %v5991_v0 = vadd.f32 0.5, %v5988_v56 }
0x12c5   :  { %v10472_v26 = vpop.eup %10471 }
0x12c6   :  { %v6007_v7 = vmul.f32 %v10472_v26, %v5992_v59 }
0x12c7   :  { %v10474_v38 = vpop.eup %10473 }
0x12c8   :  { %v6008_v62 = vmul.f32 %v10474_v38, %v5993_v51  ;;  %v10476_v30 = vpop.eup %10475 }
0x12c9   :  { %v6006_v12 = vmul.f32 %v10476_v30, %v5991_v0 }
0x12ca   :  { %9703 = vmatprep.subr.mxu1 %v6008_v62 }
0x12cb   :  { %9704 = vmatpush3.msra.mxu1 %v6008_v62 }
0x12cc   :  { %9705 = vmatprep.subr.mxu1 %v6007_v7 }
0x12cd   :  { %9706 = vmatpush3.msra.mxu1 %v6007_v7 }
0x12ce   :  { %9707 = vmatprep.subr.mxu1 %v6006_v12 }
0x12cf   :  { %9708 = vmatpush3.msra.mxu1 %v6006_v12 }
0x12d0   :  { %9710 = vmatmul.mubr.msk.f32.vlgmr.msra.gmra.mxu1 %vm213_vm0, %v12369_v2  ;;  %v8081_v2 = vld [vmem:[%s13097_s0 + $0x14] ss:$0 sm:$0xff] }
0x12d1   :  { %9712 = vmatprep.mubr.msk.f32.mxu1 %vm213_vm0, %v12376_v44  ;;  %v6324_v44 = vsel %vm17_vm2, %v8081_v2, %v10833_v9 }
0x12d2   :  { %9727 = vmatprep.subr.mxu0 %v6324_v44 }
0x12d3   :  { %9728 = vmatpush3.msra.mxu0 %v6324_v44 }
0x12d4   :  { %9713 = vmatmul.mubr.msk.f32.gmra.mxu1 %vm213_vm0, %v12383_v45  ;;  %9730 = vmatmul.mubr.msk.f32.vlgmr.msra.gmra.mxu0 %vm51_vm1, %v12459_v47  ;;  %v9687_v45 = vpop.f32.mrf.mxu0 }
0x12d5   :  { %9715 = vmatprep.mubr.msk.f32.mxu1 %vm213_vm0, %v12390_v41  ;;  %9732 = vmatprep.mubr.msk.f32.mxu0 %vm51_vm1, %v12466_v33 }
0x12d6   :  { %v6081_v41 = vpop.f32.mrf.mxu0 }
0x12d8   :  { %9716 = vmatmul.mubr.msk.f32.gmra.mxu1 %vm213_vm0, %v12397_v27  ;;  %9733 = vmatmul.mubr.msk.f32.gmra.mxu0 %vm51_vm1, %v12473_v5  ;;  %v9690_v27 = vpop.f32.mrf.mxu0 }
0x12d9   :  { %9718 = vmatprep.mubr.msk.f32.mxu1 %vm213_vm0, %v12404_v34  ;;  %9735 = vmatprep.mubr.msk.f32.mxu0 %vm51_vm1, %v12480_v46 }
0x12da   :  { %v6091_v34 = vpop.f32.mrf.mxu0 }
0x12dc   :  { %9719 = vmatmul.mubr.msk.f32.gmra.mxu1 %vm213_vm0, %v12411_v60  ;;  %9736 = vmatmul.mubr.msk.f32.gmra.mxu0 %vm51_vm1, %v12487_v48  ;;  %v9693_v60 = vpop.f32.mrf.mxu0 }
0x12dd   :  { %9721 = vmatprep.mubr.msk.f32.mxu1 %vm213_vm0, %v12418_v53  ;;  %9738 = vmatprep.mubr.msk.f32.mxu0 %vm51_vm1, %v12494_v24 }
0x12de   :  { %v6101_v53 = vpop.f32.mrf.mxu0 }
0x12e0   :  { %9722 = vmatmul.mubr.msk.f32.gmra.mxu1 %vm213_vm0, %v12425_v40  ;;  %9739 = vmatmul.mubr.msk.f32.gmra.mxu0 %vm51_vm1, %v12501_v49  ;;  %v9696_v47 = vpop.f32.mrf.mxu0 }
0x12e1   :  { %9724 = vmatprep.mubr.msk.f32.mxu1 %vm213_vm0, %v12432_v42  ;;  %9741 = vmatprep.mubr.msk.f32.mxu0 %vm51_vm1, %v12508_v61 }
0x12e2   :  { %v6111_v61 = vpop.f32.mrf.mxu0 }
0x12e4   :  { %9725 = vmatmul.mubr.msk.f32.gmra.mxu1 %vm213_vm0, %v12439_v52  ;;  %9742 = vmatmul.mubr.msk.f32.gmra.mxu0 %vm51_vm1, %v12515_v1  ;;  %v9699_v39 = vpop.f32.mrf.mxu0 }
0x12e5   :  { %9753 = vmatprep.mubr.msk.f32.mxu1 %vm213_vm0, %v12446_v54  ;;  %9744 = vmatprep.mubr.msk.f32.mxu0 %vm51_vm1, %v12522_v4 }
0x12e6   :  { %v6121_v16 = vpop.f32.mrf.mxu0 }
0x12e8   :  { %9745 = vmatmul.mubr.msk.f32.gmra.mxu0 %vm51_vm1, %v12529_v13  ;;  %v9702_v10 = vpop.f32.mrf.mxu0 }
0x12e9   :  { %9773 = vmatprep.mubr.msk.f32.mxu0 %vm51_vm1, %v12536_v14 }
0x12ea   :  { %v6131_v17 = vpop.f32.mrf.mxu0 }
0x1390   :  { %v9711_v40 = vpop.f32.mrf.mxu1 }
0x1391   :  { %v6212_v42 = vadd.f32 %v9711_v40, %v9687_v45 }
0x1392   :  { %v6206_v52 = vpop.f32.mrf.mxu1 }
0x1393   :  { %v6207_v54 = vadd.f32 %v6206_v52, %v6081_v41  ;;  %v6266_v46 = vmul.f32 0.5, %v6212_v42 }
0x1394   :  { %v9714_v33 = vpop.f32.mrf.mxu1 }
0x1395   :  { %v6222_v5 = vadd.f32 %v9714_v33, %v9690_v27  ;;  %v6265_v24 = vmul.f32 0.5, %v6207_v54  ;;  %10477 = vtanh.f32 %v6266_v46 }
0x1396   :  { %v6216_v48 = vpop.f32.mrf.mxu1 }
0x1397   :  { %v6217_v49 = vadd.f32 %v6216_v48, %v6091_v34  ;;  %v6277_v1 = vmul.f32 0.5, %v6222_v5  ;;  %10479 = vtanh.f32 %v6265_v24 }
0x1398   :  { %v9717_v4 = vpop.f32.mrf.mxu1 }
0x1399   :  { %v6232_v13 = vadd.f32 %v9717_v4, %v9693_v60  ;;  %v6267_v14 = vmul.f32 0.5, %v6217_v49  ;;  %10481 = vtanh.f32 %v6277_v1 }
0x139a   :  { %v6226_v32 = vpop.f32.mrf.mxu1 }
0x139b   :  { %v6279_v55 = vmul.f32 0.5, %v6232_v13  ;;  %v6227_v37 = vadd.f32 %v6226_v32, %v6101_v53 }
0x139c   :  { %v9720_v18 = vpop.f32.mrf.mxu1 }
0x139d   :  { %10483 = vtanh.f32 %v6279_v55  ;;  %v6278_v57 = vmul.f32 0.5, %v6227_v37  ;;  %v6242_v11 = vadd.f32 %v9720_v18, %v9696_v47 }
0x139e   :  { %10485 = vtanh.f32 %v6267_v14  ;;  %v6236_v20 = vpop.f32.mrf.mxu1 }
0x139f   :  { %10487 = vtanh.f32 %v6278_v57  ;;  %v6237_v21 = vadd.f32 %v6236_v20, %v6111_v61  ;;  %v12760_v20 = vld [vmem:[%s13098_s1 + $0x10] sm:$0xff] }
0x13a0   :  { %v9723_v43 = vpop.f32.mrf.mxu1  ;;  %10489 = vtanh.f32 %v6242_v11  ;;  %v12753_v11 = vld [vmem:[%s13098_s1 + $0x8] sm:$0xff] }
0x13a1   :  { %10491 = vtanh.f32 %v6237_v21  ;;  %v6252_v26 = vadd.f32 %v9723_v43, %v9699_v39  ;;  %v12767_v21 = vld [vmem:[%s13098_s1 + $0x18] sm:$0xff]  ;;  %v12781_v43 = vld [vmem:[%s13098_s1 + $0x28] sm:$0xff] }
0x13a2   :  { %v6246_v36 = vpop.f32.mrf.mxu1  ;;  %v10478_v23 = vpop.eup %10477 }
0x13a3   :  { %v6247_v28 = vadd.f32 %v6246_v36, %v6121_v16  ;;  %v6272_v51 = vmul.f32 0.5, %v10478_v23  ;;  %v6292_v41 = vmul.f32 0.5, %v6252_v26  ;;  %v12774_v16 = vld [vmem:[%s13098_s1 + $0x20] sm:$0xff]  ;;  %v12795_v36 = vld [vmem:[%s13098_s1 + $0x38] sm:$0xff]  ;;  %v8106_v23 = vld [vmem:[%s13097_s0 + $0x15] ss:$0 sm:$0xff] }
0x13a4   :  { %v9726_v15 = vpop.f32.mrf.mxu1  ;;  %v10480_v50 = vpop.eup %10479  ;;  %v12885_v26 = vld [vmem:[%s13099_s2 + $0x38] sm:$0xff] }
0x13a5   :  { %10493 = vtanh.f32 %v6247_v28  ;;  %v6262_v35 = vadd.f32 %v9726_v15, %v9702_v10  ;;  %v6271_v59 = vmul.f32 0.5, %v10480_v50  ;;  %v6275_v44 = vadd.f32 0.5, %v6272_v51  ;;  %v12788_v10 = vld [vmem:[%s13098_s1 + $0x30] sm:$0xff]  ;;  %v12802_v28 = vld [vmem:[%s13098_s1 + $0x40] sm:$0xff]  ;;  %v12809_v15 = vld [vmem:[%s13098_s1 + $0x48] sm:$0xff] }
0x13a6   :  { %v6256_v29 = vpop.f32.mrf.mxu1  ;;  %v10482_v8 = vpop.eup %10481  ;;  %v6634_v50 = vsel %vm17_vm2, %v8106_v23, %v10833_v9  ;;  %v12878_v51 = vld [vmem:[%s13099_s2 + $0x30] sm:$0xff] }
0x13a7   :  { %v6257_v31 = vadd.f32 %v6256_v29, %v6131_v17  ;;  %v6294_v22 = vmul.f32 0.5, %v6262_v35  ;;  %v6283_v38 = vmul.f32 0.5, %v10482_v8  ;;  %v6274_v27 = vadd.f32 0.5, %v6271_v59  ;;  %v12816_v17 = vld [vmem:[%s13098_s1 + $0x50] sm:$0xff]  ;;  %v12823_v35 = vld [vmem:[%s13098_s1 + $0x58] sm:$0xff]  ;;  %v12830_v29 = vld [vmem:[%s13098_s1] sm:$0xff]  ;;  %9771 = vmatprep.subr.mxu0 %v6634_v50 }
0x13a8   :  { %9772 = vmatpush3.msra.mxu0 %v6634_v50  ;;  %v12850_v8 = vld [vmem:[%s13099_s2 + $0x10] sm:$0xff]  ;;  %v12899_v59 = vld [vmem:[%s13099_s2 + $0x48] sm:$0xff] }
0x13a9   :  { %v6293_v30 = vmul.f32 0.5, %v6257_v31  ;;  %10495 = vtanh.f32 %v6294_v22  ;;  %v6286_v34 = vadd.f32 0.5, %v6283_v38  ;;  %v12843_v31 = vld [vmem:[%s13099_s2 + $0x8] sm:$0xff]  ;;  %v12864_v22 = vld [vmem:[%s13099_s2 + $0x20] sm:$0xff]  ;;  %v12906_v38 = vld [vmem:[%s13099_s2 + $0x50] sm:$0xff] }
0x13aa   :  { %v10484_v58 = vpop.eup %10483  ;;  %9774 = vmatmul.mubr.msk.f32.vlgmr.msra.gmra.mxu0 %vm51_vm1, %v12843_v31 }
0x13ab   :  { %v10486_v25 = vpop.eup %10485  ;;  %v6285_v62 = vmul.f32 0.5, %v10484_v58  ;;  %10497 = vtanh.f32 %v6293_v30  ;;  %v6304_v33 = vmul.f32 %v6286_v34, %v12677_v63  ;;  %9776 = vmatprep.mubr.msk.f32.mxu0 %vm51_vm1, %v12850_v8  ;;  %v12857_v58 = vld [vmem:[%s13099_s2 + $0x18] sm:$0xff]  ;;  %v12920_v30 = vld [vmem:[%s13099_s2] sm:$0xff] }
0x13ac   :  { %v10488_v56 = vpop.eup %10487  ;;  %v6273_v12 = vmul.f32 0.5, %v10486_v25  ;;  %10499 = vtanh.f32 %v6292_v41  ;;  %v12871_v25 = vld [vmem:[%s13099_s2 + $0x28] sm:$0xff] }
0x13ad   :  { %v6284_v0 = vmul.f32 0.5, %v10488_v56  ;;  %v10490_v7 = vpop.eup %10489  ;;  %v6288_v60 = vadd.f32 0.5, %v6285_v62  ;;  %v12892_v56 = vld [vmem:[%s13099_s2 + $0x40] sm:$0xff]  ;;  %v12913_v62 = vld [vmem:[%s13099_s2 + $0x58] sm:$0xff] }
0x13ae   :  { %v10492_v2 = vpop.eup %10491  ;;  %v6308_v40 = vmul.f32 %v10490_v7, %v6275_v44  ;;  %v6276_v42 = vadd.f32 0.5, %v6273_v12  ;;  %9777 = vmatmul.mubr.msk.f32.gmra.mxu0 %vm51_vm1, %v12857_v58 }
0x13af   :  { %v6287_v45 = vadd.f32 0.5, %v6284_v0  ;;  %v6307_v52 = vmul.f32 %v10492_v2, %v6274_v27  ;;  %v6306_v5 = vmul.f32 %v6288_v60, %v12679_v3  ;;  %9779 = vmatprep.mubr.msk.f32.mxu0 %vm51_vm1, %v12864_v22  ;;  %v9731_v0 = vpop.f32.mrf.mxu0 }
0x13b1   :  { %v6305_v53 = vmul.f32 %v6287_v45, %v12673_v19  ;;  %v12743_v48 = vadd.f32 %v6307_v52, %v6304_v33  ;;  %v6391_v7 = vpop.f32.mrf.mxu0 }
0x13b2   :  { %v10494_v54 = vpop.eup %10493  ;;  %9780 = vmatmul.mubr.msk.f32.gmra.mxu0 %vm51_vm1, %v12871_v25 }
0x13b3   :  { %v12739_v47 = vadd.f32 %v6308_v40, %v6305_v53  ;;  %v6309_v46 = vmul.f32 %v10494_v54, %v6276_v42  ;;  %9782 = vmatprep.mubr.msk.f32.mxu0 %vm51_vm1, %v12878_v51  ;;  %v9734_v12 = vpop.f32.mrf.mxu0 }
0x13b5   :  { %v12745_v24 = vadd.f32 %v6309_v46, %v6306_v5  ;;  %10501 = vtanh.f32 %v12739_v47  ;;  %v6401_v2 = vpop.f32.mrf.mxu0 }
0x13b6   :  { %v10496_v19 = vpop.eup %10495  ;;  %9783 = vmatmul.mubr.msk.f32.gmra.mxu0 %vm51_vm1, %v12885_v26 }
0x13b7   :  { %10503 = vtanh.f32 %v12745_v24  ;;  %v6300_v61 = vmul.f32 0.5, %v10496_v19  ;;  %9785 = vmatprep.mubr.msk.f32.mxu0 %vm51_vm1, %v12892_v56  ;;  %v9737_v44 = vpop.f32.mrf.mxu0 }
0x13b8   :  { %10505 = vtanh.f32 %v12743_v48  ;;  %v10498_v49 = vpop.eup %10497 }
0x13b9   :  { %v6299_v1 = vmul.f32 0.5, %v10498_v49  ;;  %v10500_v4 = vpop.eup %10499  ;;  %v6303_v63 = vadd.f32 0.5, %v6300_v61  ;;  %v6411_v45 = vpop.f32.mrf.mxu0 }
0x13ba   :  { %v6298_v3 = vmul.f32 0.5, %v10500_v4  ;;  %9786 = vmatmul.mubr.msk.f32.gmra.mxu0 %vm51_vm1, %v12899_v59 }
0x13bb   :  { %v6302_v14 = vadd.f32 0.5, %v6299_v1  ;;  %9788 = vmatprep.mubr.msk.f32.mxu0 %vm51_vm1, %v12906_v38  ;;  %v9740_v53 = vpop.f32.mrf.mxu0 }
0x13bc   :  { %v6301_v39 = vadd.f32 0.5, %v6298_v3 }
0x13bd   :  { %v6421_v46 = vpop.f32.mrf.mxu0 }
0x13be   :  { %9789 = vmatmul.mubr.msk.f32.gmra.mxu0 %vm51_vm1, %v12913_v62 }
0x13bf   :  { %9817 = vmatprep.mubr.msk.f32.mxu0 %vm51_vm1, %v12920_v30  ;;  %v9743_v3 = vpop.f32.mrf.mxu0 }
0x13c2   :  { %v10502_v13 = vpop.eup %10501 }
0x13c3   :  { %v6317_v18 = vmul.f32 %v10502_v13, %v6302_v14 }
0x13c4   :  { %v10504_v32 = vpop.eup %10503 }
0x13c5   :  { %v6318_v55 = vmul.f32 %v10504_v32, %v6303_v63  ;;  %v10506_v37 = vpop.eup %10505 }
0x13c6   :  { %v6316_v57 = vmul.f32 %v10506_v37, %v6301_v39 }
0x13c7   :  { %9747 = vmatprep.subr.mxu1 %v6318_v55 }
0x13c8   :  { %9748 = vmatpush3.msra.mxu1 %v6318_v55 }
0x13c9   :  { %9749 = vmatprep.subr.mxu1 %v6317_v18 }
0x13ca   :  { %9750 = vmatpush3.msra.mxu1 %v6317_v18  ;;  %v6431_v18 = vpop.f32.mrf.mxu0 }
0x13cb   :  { %9751 = vmatprep.subr.mxu1 %v6316_v57 }
0x13cc   :  { %9752 = vmatpush3.msra.mxu1 %v6316_v57  ;;  %v9746_v23 = vpop.f32.mrf.mxu0 }
0x13cd   :  { %9754 = vmatmul.mubr.msk.f32.vlgmr.msra.gmra.mxu1 %vm213_vm0, %v12753_v11 }
0x13ce   :  { %9756 = vmatprep.mubr.msk.f32.mxu1 %vm213_vm0, %v12760_v20 }
0x13d1   :  { %9757 = vmatmul.mubr.msk.f32.gmra.mxu1 %vm213_vm0, %v12767_v21 }
0x13d2   :  { %9759 = vmatprep.mubr.msk.f32.mxu1 %vm213_vm0, %v12774_v16 }
0x13d5   :  { %9760 = vmatmul.mubr.msk.f32.gmra.mxu1 %vm213_vm0, %v12781_v43 }
0x13d6   :  { %9762 = vmatprep.mubr.msk.f32.mxu1 %vm213_vm0, %v12788_v10 }
0x13d9   :  { %9763 = vmatmul.mubr.msk.f32.gmra.mxu1 %vm213_vm0, %v12795_v36 }
0x13da   :  { %9765 = vmatprep.mubr.msk.f32.mxu1 %vm213_vm0, %v12802_v28 }
0x13dd   :  { %9766 = vmatmul.mubr.msk.f32.gmra.mxu1 %vm213_vm0, %v12809_v15 }
0x13de   :  { %9768 = vmatprep.mubr.msk.f32.mxu1 %vm213_vm0, %v12816_v17 }
0x13e1   :  { %9769 = vmatmul.mubr.msk.f32.gmra.mxu1 %vm213_vm0, %v12823_v35 }
0x13e2   :  { %9797 = vmatprep.mubr.msk.f32.mxu1 %vm213_vm0, %v12830_v29 }
0x148d   :  { %v9755_v41 = vpop.f32.mrf.mxu1 }
0x148e   :  { %v6522_v27 = vadd.f32 %v9755_v41, %v9731_v0 }
0x148f   :  { %v6516_v34 = vpop.f32.mrf.mxu1 }
0x1490   :  { %v6517_v60 = vadd.f32 %v6516_v34, %v6391_v7  ;;  %v6576_v52 = vmul.f32 0.5, %v6522_v27 }
0x1491   :  { %v9758_v40 = vpop.f32.mrf.mxu1 }
0x1492   :  { %v6532_v42 = vadd.f32 %v9758_v40, %v9734_v12  ;;  %v6575_v33 = vmul.f32 0.5, %v6517_v60  ;;  %10507 = vtanh.f32 %v6576_v52  ;;  %v6441_v12 = vpop.f32.mrf.mxu0 }
0x1493   :  { %v6526_v54 = vpop.f32.mrf.mxu1 }
0x1494   :  { %v6527_v5 = vadd.f32 %v6526_v54, %v6401_v2  ;;  %v6587_v19 = vmul.f32 0.5, %v6532_v42  ;;  %10509 = vtanh.f32 %v6575_v33 }
0x1495   :  { %v9761_v49 = vpop.f32.mrf.mxu1 }
0x1496   :  { %v6542_v61 = vadd.f32 %v9761_v49, %v9737_v44  ;;  %v6577_v1 = vmul.f32 0.5, %v6527_v5  ;;  %10511 = vtanh.f32 %v6587_v19 }
0x1497   :  { %v6536_v4 = vpop.f32.mrf.mxu1 }
0x1498   :  { %v6589_v63 = vmul.f32 0.5, %v6542_v61  ;;  %v6537_v13 = vadd.f32 %v6536_v4, %v6411_v45 }
0x1499   :  { %v9764_v14 = vpop.f32.mrf.mxu1 }
0x149a   :  { %10513 = vtanh.f32 %v6589_v63  ;;  %v6588_v32 = vmul.f32 0.5, %v6537_v13  ;;  %v6552_v55 = vadd.f32 %v9764_v14, %v9740_v53 }
0x149b   :  { %10515 = vtanh.f32 %v6577_v1  ;;  %v6546_v37 = vpop.f32.mrf.mxu1 }
0x149c   :  { %10517 = vtanh.f32 %v6588_v32  ;;  %v6547_v39 = vadd.f32 %v6546_v37, %v6421_v46 }
0x149d   :  { %v9767_v57 = vpop.f32.mrf.mxu1  ;;  %10519 = vtanh.f32 %v6552_v55 }
0x149e   :  { %10521 = vtanh.f32 %v6547_v39  ;;  %v6562_v52 = vadd.f32 %v9767_v57, %v9743_v3 }
0x149f   :  { %v6556_v50 = vpop.f32.mrf.mxu1  ;;  %v10508_v45 = vpop.eup %10507 }
0x14a0   :  { %v6557_v0 = vadd.f32 %v6556_v50, %v6431_v18  ;;  %v6582_v42 = vmul.f32 0.5, %v10508_v45  ;;  %v6602_v14 = vmul.f32 0.5, %v6562_v52 }
0x14a1   :  { %v9770_v7 = vpop.f32.mrf.mxu1  ;;  %v10510_v41 = vpop.eup %10509 }
0x14a2   :  { %10523 = vtanh.f32 %v6557_v0  ;;  %v6572_v2 = vadd.f32 %v9770_v7, %v9746_v23  ;;  %v6581_v33 = vmul.f32 0.5, %v10510_v41  ;;  %v6585_v63 = vadd.f32 0.5, %v6582_v42 }
0x14a3   :  { %v6566_v44 = vpop.f32.mrf.mxu1  ;;  %v10512_v34 = vpop.eup %10511 }
0x14a4   :  { %v6567_v27 = vadd.f32 %v6566_v44, %v6441_v12  ;;  %v6604_v53 = vmul.f32 0.5, %v6572_v2  ;;  %v6593_v5 = vmul.f32 0.5, %v10512_v34  ;;  %v6584_v32 = vadd.f32 0.5, %v6581_v33 }
0x14a6   :  { %v6603_v19 = vmul.f32 0.5, %v6567_v27  ;;  %10525 = vtanh.f32 %v6604_v53  ;;  %v6596_v55 = vadd.f32 0.5, %v6593_v5 }
0x14a7   :  { %v10514_v60 = vpop.eup %10513 }
0x14a8   :  { %v10516_v40 = vpop.eup %10515  ;;  %v6595_v46 = vmul.f32 0.5, %v10514_v60  ;;  %10527 = vtanh.f32 %v6603_v19  ;;  %v6614_v0 = vmul.f32 %v6596_v55, %v12743_v48 }
0x14a9   :  { %v10518_v54 = vpop.eup %10517  ;;  %v6583_v1 = vmul.f32 0.5, %v10516_v40  ;;  %10529 = vtanh.f32 %v6602_v14 }
0x14aa   :  { %v6594_v49 = vmul.f32 0.5, %v10518_v54  ;;  %v10520_v61 = vpop.eup %10519  ;;  %v6598_v37 = vadd.f32 0.5, %v6595_v46  ;;  %v8131_v46 = vld [vmem:[%s13097_s0 + $0x16] ss:$0 sm:$0xff] }
0x14ab   :  { %v10522_v4 = vpop.eup %10521  ;;  %v6618_v3 = vmul.f32 %v10520_v61, %v6585_v63  ;;  %v6586_v18 = vadd.f32 0.5, %v6583_v1  ;;  %v6944_v19 = vsel %vm17_vm2, %v8131_v46, %v10833_v9 }
0x14ac   :  { %v6597_v13 = vadd.f32 0.5, %v6594_v49  ;;  %v6617_v57 = vmul.f32 %v10522_v4, %v6584_v32  ;;  %v6616_v7 = vmul.f32 %v6598_v37, %v12745_v24  ;;  %9815 = vmatprep.subr.mxu0 %v6944_v19  ;;  %v9775_v49 = vpop.f32.mrf.mxu0 }
0x14ad   :  { %9816 = vmatpush3.msra.mxu0 %v6944_v19 }
0x14ae   :  { %v6615_v39 = vmul.f32 %v6597_v13, %v12739_v47  ;;  %v12929_v2 = vadd.f32 %v6617_v57, %v6614_v0  ;;  %9818 = vmatmul.mubr.msk.f32.vlgmr.msra.gmra.mxu0 %vm51_vm1, %v12843_v31  ;;  %v6701_v61 = vpop.f32.mrf.mxu0 }
0x14af   :  { %v10524_v23 = vpop.eup %10523  ;;  %9820 = vmatprep.mubr.msk.f32.mxu0 %vm51_vm1, %v12850_v8 }
0x14b0   :  { %v12925_v50 = vadd.f32 %v6618_v3, %v6615_v39  ;;  %v6619_v12 = vmul.f32 %v10524_v23, %v6586_v18  ;;  %v9778_v1 = vpop.f32.mrf.mxu0 }
0x14b2   :  { %v12931_v44 = vadd.f32 %v6619_v12, %v6616_v7  ;;  %10531 = vtanh.f32 %v12925_v50  ;;  %9821 = vmatmul.mubr.msk.f32.gmra.mxu0 %vm51_vm1, %v12857_v58  ;;  %v6711_v4 = vpop.f32.mrf.mxu0 }
0x14b3   :  { %v10526_v47 = vpop.eup %10525  ;;  %9823 = vmatprep.mubr.msk.f32.mxu0 %vm51_vm1, %v12864_v22 }
0x14b4   :  { %10533 = vtanh.f32 %v12931_v44  ;;  %v6610_v41 = vmul.f32 0.5, %v10526_v47  ;;  %v9781_v63 = vpop.f32.mrf.mxu0 }
0x14b5   :  { %10535 = vtanh.f32 %v12929_v2  ;;  %v10528_v45 = vpop.eup %10527 }
0x14b6   :  { %v6609_v27 = vmul.f32 0.5, %v10528_v45  ;;  %v10530_v34 = vpop.eup %10529  ;;  %v6613_v48 = vadd.f32 0.5, %v6610_v41  ;;  %9824 = vmatmul.mubr.msk.f32.gmra.mxu0 %vm51_vm1, %v12871_v25  ;;  %v6721_v13 = vpop.f32.mrf.mxu0 }
0x14b7   :  { %v6608_v24 = vmul.f32 0.5, %v10530_v34  ;;  %9826 = vmatprep.mubr.msk.f32.mxu0 %vm51_vm1, %v12878_v51 }
0x14b8   :  { %v6612_v53 = vadd.f32 0.5, %v6609_v27  ;;  %v9784_v39 = vpop.f32.mrf.mxu0 }
0x14b9   :  { %v6611_v54 = vadd.f32 0.5, %v6608_v24 }
0x14ba   :  { %9827 = vmatmul.mubr.msk.f32.gmra.mxu0 %vm51_vm1, %v12885_v26  ;;  %v6731_v12 = vpop.f32.mrf.mxu0 }
0x14bb   :  { %9829 = vmatprep.mubr.msk.f32.mxu0 %vm51_vm1, %v12892_v56 }
0x14be   :  { %9830 = vmatmul.mubr.msk.f32.gmra.mxu0 %vm51_vm1, %v12899_v59 }
0x14bf   :  { %v10532_v60 = vpop.eup %10531  ;;  %9832 = vmatprep.mubr.msk.f32.mxu0 %vm51_vm1, %v12906_v38 }
0x14c0   :  { %v6627_v33 = vmul.f32 %v10532_v60, %v6612_v53  ;;  %v9787_v60 = vpop.f32.mrf.mxu0 }
0x14c1   :  { %v10534_v40 = vpop.eup %10533 }
0x14c2   :  { %v6628_v42 = vmul.f32 %v10534_v40, %v6613_v48  ;;  %v10536_v52 = vpop.eup %10535  ;;  %9833 = vmatmul.mubr.msk.f32.gmra.mxu0 %vm51_vm1, %v12913_v62 }
0x14c3   :  { %v6626_v5 = vmul.f32 %v10536_v52, %v6611_v54  ;;  %9861 = vmatprep.mubr.msk.f32.mxu0 %vm51_vm1, %v12920_v30  ;;  %v6741_v54 = vpop.f32.mrf.mxu0 }
0x14c4   :  { %9791 = vmatprep.subr.mxu1 %v6628_v42 }
0x14c5   :  { %9792 = vmatpush3.msra.mxu1 %v6628_v42 }
0x14c6   :  { %9793 = vmatprep.subr.mxu1 %v6627_v33 }
0x14c7   :  { %9794 = vmatpush3.msra.mxu1 %v6627_v33 }
0x14c8   :  { %9795 = vmatprep.subr.mxu1 %v6626_v5 }
0x14c9   :  { %9796 = vmatpush3.msra.mxu1 %v6626_v5  ;;  %v9790_v5 = vpop.f32.mrf.mxu0 }
0x14ca   :  { %9798 = vmatmul.mubr.msk.f32.vlgmr.msra.gmra.mxu1 %vm213_vm0, %v12753_v11 }
0x14cb   :  { %9800 = vmatprep.mubr.msk.f32.mxu1 %vm213_vm0, %v12760_v20 }
0x14ce   :  { %9801 = vmatmul.mubr.msk.f32.gmra.mxu1 %vm213_vm0, %v12767_v21 }
0x14cf   :  { %9803 = vmatprep.mubr.msk.f32.mxu1 %vm213_vm0, %v12774_v16 }
0x14d2   :  { %9804 = vmatmul.mubr.msk.f32.gmra.mxu1 %vm213_vm0, %v12781_v43 }
0x14d3   :  { %9806 = vmatprep.mubr.msk.f32.mxu1 %vm213_vm0, %v12788_v10 }
0x14d6   :  { %9807 = vmatmul.mubr.msk.f32.gmra.mxu1 %vm213_vm0, %v12795_v36 }
0x14d7   :  { %9809 = vmatprep.mubr.msk.f32.mxu1 %vm213_vm0, %v12802_v28 }
0x14da   :  { %9810 = vmatmul.mubr.msk.f32.gmra.mxu1 %vm213_vm0, %v12809_v15 }
0x14db   :  { %9812 = vmatprep.mubr.msk.f32.mxu1 %vm213_vm0, %v12816_v17 }
0x14de   :  { %9813 = vmatmul.mubr.msk.f32.gmra.mxu1 %vm213_vm0, %v12823_v35 }
0x14df   :  { %9841 = vmatprep.mubr.msk.f32.mxu1 %vm213_vm0, %v12830_v29 }
0x158a   :  { %v9799_v14 = vpop.f32.mrf.mxu1 }
0x158b   :  { %v6832_v32 = vadd.f32 %v9799_v14, %v9775_v49 }
0x158c   :  { %v6826_v55 = vpop.f32.mrf.mxu1 }
0x158d   :  { %v6827_v37 = vadd.f32 %v6826_v55, %v6701_v61  ;;  %v6886_v57 = vmul.f32 0.5, %v6832_v32  ;;  %v6751_v61 = vpop.f32.mrf.mxu0 }
0x158e   :  { %v9802_v3 = vpop.f32.mrf.mxu1 }
0x158f   :  { %v6842_v18 = vadd.f32 %v9802_v3, %v9778_v1  ;;  %v6885_v0 = vmul.f32 0.5, %v6827_v37  ;;  %10537 = vtanh.f32 %v6886_v57  ;;  %v9819_v6 = vpop.f32.mrf.mxu0 }
0x1590   :  { %v6836_v23 = vpop.f32.mrf.mxu1 }
0x1591   :  { %v6837_v7 = vadd.f32 %v6836_v23, %v6711_v4  ;;  %v6897_v47 = vmul.f32 0.5, %v6842_v18  ;;  %10539 = vtanh.f32 %v6885_v0 }
0x1592   :  { %v9805_v30 = vpop.f32.mrf.mxu1 }
0x1593   :  { %v6852_v45 = vadd.f32 %v9805_v30, %v9781_v63  ;;  %v6887_v41 = vmul.f32 0.5, %v6837_v7  ;;  %10541 = vtanh.f32 %v6897_v47 }
0x1594   :  { %v6846_v27 = vpop.f32.mrf.mxu1 }
0x1595   :  { %v6899_v34 = vmul.f32 0.5, %v6852_v45  ;;  %v6847_v48 = vadd.f32 %v6846_v27, %v6721_v13 }
0x1596   :  { %v9808_v24 = vpop.f32.mrf.mxu1 }
0x1597   :  { %10543 = vtanh.f32 %v6899_v34  ;;  %v6898_v53 = vmul.f32 0.5, %v6847_v48  ;;  %v6862_v40 = vadd.f32 %v9808_v24, %v9784_v39 }
0x1598   :  { %10545 = vtanh.f32 %v6887_v41  ;;  %v6856_v42 = vpop.f32.mrf.mxu1 }
0x1599   :  { %10547 = vtanh.f32 %v6898_v53  ;;  %v6857_v52 = vadd.f32 %v6856_v42, %v6731_v12 }
0x159a   :  { %v9811_v33 = vpop.f32.mrf.mxu1  ;;  %10549 = vtanh.f32 %v6862_v40 }
0x159b   :  { %10551 = vtanh.f32 %v6857_v52  ;;  %v6872_v18 = vadd.f32 %v9811_v33, %v9787_v60 }
0x159c   :  { %v6866_v46 = vpop.f32.mrf.mxu1  ;;  %v10538_v63 = vpop.eup %10537 }
0x159d   :  { %v6867_v19 = vadd.f32 %v6866_v46, %v6741_v54  ;;  %v6892_v3 = vmul.f32 0.5, %v10538_v63  ;;  %v6912_v48 = vmul.f32 0.5, %v6872_v18 }
0x159e   :  { %v9814_v49 = vpop.f32.mrf.mxu1  ;;  %v10540_v13 = vpop.eup %10539 }
0x159f   :  { %10553 = vtanh.f32 %v6867_v19  ;;  %v6882_v1 = vadd.f32 %v9814_v49, %v9790_v5  ;;  %v6891_v23 = vmul.f32 0.5, %v10540_v13  ;;  %v6895_v27 = vadd.f32 0.5, %v6892_v3 }
0x15a0   :  { %v6876_v4 = vpop.f32.mrf.mxu1  ;;  %v10542_v32 = vpop.eup %10541 }
0x15a1   :  { %v6877_v14 = vadd.f32 %v6876_v4, %v6751_v61  ;;  %v6914_v37 = vmul.f32 0.5, %v6882_v1  ;;  %v6903_v0 = vmul.f32 0.5, %v10542_v32  ;;  %v6894_v24 = vadd.f32 0.5, %v6891_v23 }
0x15a3   :  { %v6913_v12 = vmul.f32 0.5, %v6877_v14  ;;  %10555 = vtanh.f32 %v6914_v37  ;;  %v6906_v53 = vadd.f32 0.5, %v6903_v0  ;;  %v8156_v0 = vld [vmem:[%s13097_s0 + $0x17] ss:$0 sm:$0xff] }
0x15a4   :  { %v10544_v55 = vpop.eup %10543 }
0x15a5   :  { %v10546_v39 = vpop.eup %10545  ;;  %v6905_v7 = vmul.f32 0.5, %v10544_v55  ;;  %10557 = vtanh.f32 %v6913_v12  ;;  %v6924_v46 = vmul.f32 %v6906_v53, %v12929_v2 }
0x15a6   :  { %v10548_v57 = vpop.eup %10547  ;;  %v6893_v45 = vmul.f32 0.5, %v10546_v39  ;;  %10559 = vtanh.f32 %v6912_v48 }
0x15a7   :  { %v6904_v47 = vmul.f32 0.5, %v10548_v57  ;;  %v10550_v30 = vpop.eup %10549  ;;  %v6908_v40 = vadd.f32 0.5, %v6905_v7  ;;  %v7254_v7 = vsel %vm17_vm2, %v8156_v0, %v10833_v9  ;;  %v7011_v9 = vpop.f32.mrf.mxu0 }
0x15a8   :  { %v10552_v41 = vpop.eup %10551  ;;  %v6928_v60 = vmul.f32 %v10550_v30, %v6895_v27  ;;  %v6896_v52 = vadd.f32 0.5, %v6893_v45  ;;  %9859 = vmatprep.subr.mxu0 %v7254_v7 }
0x15a9   :  { %v6907_v34 = vadd.f32 0.5, %v6904_v47  ;;  %v6927_v54 = vmul.f32 %v10552_v41, %v6894_v24  ;;  %v6926_v19 = vmul.f32 %v6908_v40, %v12931_v44  ;;  %9860 = vmatpush3.msra.mxu0 %v7254_v7 }
0x15aa   :  { %9862 = vmatmul.mubr.msk.f32.vlgmr.msra.gmra.mxu0 %vm51_vm1, %v12843_v31 }
0x15ab   :  { %v6925_v42 = vmul.f32 %v6907_v34, %v12925_v50  ;;  %v12995_v61 = vadd.f32 %v6927_v54, %v6924_v46  ;;  %9864 = vmatprep.mubr.msk.f32.mxu0 %vm51_vm1, %v12850_v8 }
0x15ac   :  { %v10554_v33 = vpop.eup %10553 }
0x15ad   :  { %v12991_v5 = vadd.f32 %v6928_v60, %v6925_v42  ;;  %v6929_v49 = vmul.f32 %v10554_v33, %v6896_v52 }
0x15ae   :  { %9865 = vmatmul.mubr.msk.f32.gmra.mxu0 %vm51_vm1, %v12857_v58 }
0x15af   :  { %v12997_v1 = vadd.f32 %v6929_v49, %v6926_v19  ;;  %10561 = vtanh.f32 %v12991_v5  ;;  %9867 = vmatprep.mubr.msk.f32.mxu0 %vm51_vm1, %v12864_v22 }
0x15b0   :  { %v10556_v50 = vpop.eup %10555 }
0x15b1   :  { %10563 = vtanh.f32 %v12997_v1  ;;  %v6920_v63 = vmul.f32 0.5, %v10556_v50 }
0x15b2   :  { %10565 = vtanh.f32 %v12995_v61  ;;  %v10558_v4 = vpop.eup %10557  ;;  %9868 = vmatmul.mubr.msk.f32.gmra.mxu0 %vm51_vm1, %v12871_v25 }
0x15b3   :  { %v6919_v13 = vmul.f32 0.5, %v10558_v4  ;;  %v10560_v14 = vpop.eup %10559  ;;  %v6923_v2 = vadd.f32 0.5, %v6920_v63  ;;  %9870 = vmatprep.mubr.msk.f32.mxu0 %vm51_vm1, %v12878_v51 }
0x15b4   :  { %v6918_v44 = vmul.f32 0.5, %v10560_v14 }
0x15b5   :  { %v6922_v55 = vadd.f32 0.5, %v6919_v13 }
0x15b6   :  { %v6921_v18 = vadd.f32 0.5, %v6918_v44  ;;  %9871 = vmatmul.mubr.msk.f32.gmra.mxu0 %vm51_vm1, %v12885_v26 }
0x15b7   :  { %9873 = vmatprep.mubr.msk.f32.mxu0 %vm51_vm1, %v12892_v56 }
0x15ba   :  { %9874 = vmatmul.mubr.msk.f32.gmra.mxu0 %vm51_vm1, %v12899_v59 }
0x15bb   :  { %9876 = vmatprep.mubr.msk.f32.mxu0 %vm51_vm1, %v12906_v38 }
0x15bc   :  { %v10562_v32 = vpop.eup %10561 }
0x15bd   :  { %v6937_v57 = vmul.f32 %v10562_v32, %v6922_v55 }
0x15be   :  { %v10564_v37 = vpop.eup %10563  ;;  %9877 = vmatmul.mubr.msk.f32.gmra.mxu0 %vm51_vm1, %v12913_v62 }
0x15bf   :  { %v6938_v39 = vmul.f32 %v10564_v37, %v6923_v2  ;;  %v10566_v3 = vpop.eup %10565 }
0x15c0   :  { %v6936_v23 = vmul.f32 %v10566_v3, %v6921_v18 }
0x15c1   :  { %9835 = vmatprep.subr.mxu1 %v6938_v39 }
0x15c2   :  { %9836 = vmatpush3.msra.mxu1 %v6938_v39 }
0x15c3   :  { %9837 = vmatprep.subr.mxu1 %v6937_v57 }
0x15c4   :  { %9838 = vmatpush3.msra.mxu1 %v6937_v57 }
0x15c5   :  { %9839 = vmatprep.subr.mxu1 %v6936_v23 }
0x15c6   :  { %9840 = vmatpush3.msra.mxu1 %v6936_v23 }
0x15c7   :  { %9842 = vmatmul.mubr.msk.f32.vlgmr.msra.gmra.mxu1 %vm213_vm0, %v12753_v11 }
0x15c8   :  { %9844 = vmatprep.mubr.msk.f32.mxu1 %vm213_vm0, %v12760_v20 }
0x15cb   :  { %9845 = vmatmul.mubr.msk.f32.gmra.mxu1 %vm213_vm0, %v12767_v21 }
0x15cc   :  { %9847 = vmatprep.mubr.msk.f32.mxu1 %vm213_vm0, %v12774_v16 }
0x15cf   :  { %9848 = vmatmul.mubr.msk.f32.gmra.mxu1 %vm213_vm0, %v12781_v43 }
0x15d0   :  { %9850 = vmatprep.mubr.msk.f32.mxu1 %vm213_vm0, %v12788_v10 }
0x15d3   :  { %9851 = vmatmul.mubr.msk.f32.gmra.mxu1 %vm213_vm0, %v12795_v36 }
0x15d4   :  { %9853 = vmatprep.mubr.msk.f32.mxu1 %vm213_vm0, %v12802_v28 }
0x15d7   :  { %9854 = vmatmul.mubr.msk.f32.gmra.mxu1 %vm213_vm0, %v12809_v15 }
0x15d8   :  { %9856 = vmatprep.mubr.msk.f32.mxu1 %vm213_vm0, %v12816_v17 }
0x15db   :  { %9857 = vmatmul.mubr.msk.f32.gmra.mxu1 %vm213_vm0, %v12823_v35 }
0x15dc   :  { %9885 = vmatprep.mubr.msk.f32.mxu1 %vm213_vm0, %v12830_v29  ;;  %v9822_v29 = vpop.f32.mrf.mxu0 }
0x15de   :  { %v7021_v31 = vpop.f32.mrf.mxu0 }
0x15e0   :  { %v9825_v8 = vpop.f32.mrf.mxu0 }
0x15e2   :  { %v7031_v58 = vpop.f32.mrf.mxu0 }
0x15e4   :  { %v9828_v56 = vpop.f32.mrf.mxu0 }
0x15e6   :  { %v7041_v41 = vpop.f32.mrf.mxu0 }
0x15e8   :  { %v9831_v42 = vpop.f32.mrf.mxu0 }
0x15ea   :  { %v7051_v19 = vpop.f32.mrf.mxu0 }
0x15ec   :  { %v9834_v50 = vpop.f32.mrf.mxu0 }
0x15ee   :  { %v7061_v14 = vpop.f32.mrf.mxu0 }
0x1687   :  { %v9843_v22 = vpop.f32.mrf.mxu1 }
0x1688   :  { %v7142_v25 = vadd.f32 %v9843_v22, %v9819_v6 }
0x1689   :  { %v7136_v51 = vpop.f32.mrf.mxu1 }
0x168a   :  { %v7137_v26 = vadd.f32 %v7136_v51, %v7011_v9  ;;  %v7196_v59 = vmul.f32 0.5, %v7142_v25 }
0x168b   :  { %v9846_v12 = vpop.f32.mrf.mxu1 }
0x168c   :  { %v7152_v47 = vadd.f32 %v9846_v12, %v9822_v29  ;;  %v7195_v45 = vmul.f32 0.5, %v7137_v26  ;;  %10567 = vtanh.f32 %v7196_v59 }
0x168d   :  { %v7146_v30 = vpop.f32.mrf.mxu1 }
0x168e   :  { %v7147_v38 = vadd.f32 %v7146_v30, %v7021_v31  ;;  %v7207_v27 = vmul.f32 0.5, %v7152_v47  ;;  %10569 = vtanh.f32 %v7195_v45 }
0x168f   :  { %v9849_v62 = vpop.f32.mrf.mxu1 }
0x1690   :  { %v7162_v34 = vadd.f32 %v9849_v62, %v9825_v8  ;;  %v7197_v48 = vmul.f32 0.5, %v7147_v38  ;;  %10571 = vtanh.f32 %v7207_v27 }
0x1691   :  { %v7156_v24 = vpop.f32.mrf.mxu1 }
0x1692   :  { %v7209_v53 = vmul.f32 0.5, %v7162_v34  ;;  %v7157_v40 = vadd.f32 %v7156_v24, %v7031_v58 }
0x1693   :  { %v9852_v60 = vpop.f32.mrf.mxu1 }
0x1694   :  { %10573 = vtanh.f32 %v7209_v53  ;;  %v7208_v52 = vmul.f32 0.5, %v7157_v40  ;;  %v7172_v54 = vadd.f32 %v9852_v60, %v9828_v56 }
0x1695   :  { %10575 = vtanh.f32 %v7197_v48  ;;  %v7166_v33 = vpop.f32.mrf.mxu1 }
0x1696   :  { %10577 = vtanh.f32 %v7208_v52  ;;  %v7167_v46 = vadd.f32 %v7166_v33, %v7041_v41 }
0x1697   :  { %v9855_v49 = vpop.f32.mrf.mxu1  ;;  %10579 = vtanh.f32 %v7172_v54 }
0x1698   :  { %10581 = vtanh.f32 %v7167_v46  ;;  %v7182_v0 = vadd.f32 %v9855_v49, %v9831_v42 }
0x1699   :  { %v7176_v4 = vpop.f32.mrf.mxu1  ;;  %v10568_v44 = vpop.eup %10567 }
0x169a   :  { %v7177_v63 = vadd.f32 %v7176_v4, %v7051_v19  ;;  %v7202_v23 = vmul.f32 0.5, %v10568_v44  ;;  %v7222_v56 = vmul.f32 0.5, %v7182_v0 }
0x169b   :  { %v9858_v13 = vpop.f32.mrf.mxu1  ;;  %v10570_v55 = vpop.eup %10569 }
0x169c   :  { %10583 = vtanh.f32 %v7177_v63  ;;  %v7192_v2 = vadd.f32 %v9858_v13, %v9834_v50  ;;  %v7201_v6 = vmul.f32 0.5, %v10570_v55  ;;  %v7205_v51 = vadd.f32 0.5, %v7202_v23 }
0x169d   :  { %v7186_v32 = vpop.f32.mrf.mxu1  ;;  %v10572_v39 = vpop.eup %10571 }
0x169e   :  { %v7187_v37 = vadd.f32 %v7186_v32, %v7061_v14  ;;  %v7224_v18 = vmul.f32 0.5, %v7192_v2  ;;  %v7213_v9 = vmul.f32 0.5, %v10572_v39  ;;  %v7204_v12 = vadd.f32 0.5, %v7201_v6 }
0x16a0   :  { %v7223_v31 = vmul.f32 0.5, %v7187_v37  ;;  %10585 = vtanh.f32 %v7224_v18  ;;  %v7216_v47 = vadd.f32 0.5, %v7213_v9 }
0x16a1   :  { %v10574_v3 = vpop.eup %10573 }
0x16a2   :  { %v10576_v57 = vpop.eup %10575  ;;  %v7215_v29 = vmul.f32 0.5, %v10574_v3  ;;  %10587 = vtanh.f32 %v7223_v31  ;;  %v7234_v34 = vmul.f32 %v7216_v47, %v12995_v61 }
0x16a3   :  { %v10578_v7 = vpop.eup %10577  ;;  %v7203_v22 = vmul.f32 0.5, %v10576_v57  ;;  %10589 = vtanh.f32 %v7222_v56 }
0x16a4   :  { %v7214_v8 = vmul.f32 0.5, %v10578_v7  ;;  %v10580_v58 = vpop.eup %10579  ;;  %v7218_v59 = vadd.f32 0.5, %v7215_v29 }
0x16a5   :  { %v10582_v25 = vpop.eup %10581  ;;  %v7238_v45 = vmul.f32 %v10580_v58, %v7205_v51  ;;  %v7206_v38 = vadd.f32 0.5, %v7203_v22 }
0x16a6   :  { %v7217_v26 = vadd.f32 0.5, %v7214_v8  ;;  %v7237_v41 = vmul.f32 %v10582_v25, %v7204_v12  ;;  %v7236_v48 = vmul.f32 %v7218_v59, %v12997_v1 }
0x16a8   :  { %v7235_v30 = vmul.f32 %v7217_v26, %v12991_v5  ;;  %v13059_v53 = vadd.f32 %v7237_v41, %v7234_v34 }
0x16a9   :  { %v10584_v27 = vpop.eup %10583 }
0x16aa   :  { %v13055_v62 = vadd.f32 %v7238_v45, %v7235_v30  ;;  %v7239_v24 = vmul.f32 %v10584_v27, %v7206_v38 }
0x16ac   :  { %v13061_v40 = vadd.f32 %v7239_v24, %v7236_v48  ;;  %10591 = vtanh.f32 %v13055_v62 }
0x16ad   :  { %v10586_v5 = vpop.eup %10585 }
0x16ae   :  { %10593 = vtanh.f32 %v13061_v40  ;;  %v7230_v60 = vmul.f32 0.5, %v10586_v5 }
0x16af   :  { %10595 = vtanh.f32 %v13059_v53  ;;  %v10588_v42 = vpop.eup %10587 }
0x16b0   :  { %v7229_v52 = vmul.f32 0.5, %v10588_v42  ;;  %v10590_v54 = vpop.eup %10589  ;;  %v7233_v61 = vadd.f32 0.5, %v7230_v60 }
0x16b1   :  { %v7228_v1 = vmul.f32 0.5, %v10590_v54 }
0x16b2   :  { %v7232_v46 = vadd.f32 0.5, %v7229_v52 }
0x16b3   :  { %v7231_v4 = vadd.f32 0.5, %v7228_v1 }
0x16b9   :  { %v10592_v33 = vpop.eup %10591 }
0x16ba   :  { %v7247_v63 = vmul.f32 %v10592_v33, %v7232_v46 }
0x16bb   :  { %v10594_v19 = vpop.eup %10593 }
0x16bc   :  { %v7248_v49 = vmul.f32 %v10594_v19, %v7233_v61  ;;  %v10596_v50 = vpop.eup %10595 }
0x16bd   :  { %v7246_v13 = vmul.f32 %v10596_v50, %v7231_v4 }
0x16be   :  { %9879 = vmatprep.subr.mxu1 %v7248_v49 }
0x16bf   :  { %9880 = vmatpush3.msra.mxu1 %v7248_v49 }
0x16c0   :  { %9881 = vmatprep.subr.mxu1 %v7247_v63 }
0x16c1   :  { %9882 = vmatpush3.msra.mxu1 %v7247_v63 }
0x16c2   :  { %9883 = vmatprep.subr.mxu1 %v7246_v13 }
0x16c3   :  { %9884 = vmatpush3.msra.mxu1 %v7246_v13 }
0x16c4   :  { %9886 = vmatmul.mubr.msk.f32.vlgmr.msra.gmra.mxu1 %vm213_vm0, %v12753_v11  ;;  %v7562_v11 = vld [vmem:[%s13097_s0 + $0x18] sm:$0x7]  ;;  %s10770_s0 = smov [#allocation2]  }
0x16c5   :  { %9888 = vmatprep.mubr.msk.f32.mxu1 %vm213_vm0, %v12760_v20  ;;  %7563 = vst [vmem:[#allocation2 + $0x18] sm:$0x7] %v7562_v11  ;;  %v9863_v20 = vpop.f32.mrf.mxu0  ;;  %s7569_s24 = sshll.u32 %s10770_s0, 4  ;;  %s7570_s24 = int_to_ptr.vmem [resolvable:$true] %s7569_s24 }
0x16c6   :  { %s10747_s1 = scalar_lea.vmem %s7570_s24, 512  ;;  %p10752_p1 = scmp.lt.s32.totalorder %s7570_s24, %s7570_s24 }
0x16c7   :  { %p10748_p0 = scmp.ne.s32.totalorder %s7570_s24, %s10747_s1  ;;  %p10753_p2 = scmp.lt.s32.totalorder %s10747_s1, %s10747_s1 }
0x16c8   :  { %9889 = vmatmul.mubr.msk.f32.gmra.mxu1 %vm213_vm0, %v12767_v21  ;;  %v7321_v21 = vpop.f32.mrf.mxu0 }
0x16c9   :  { %9891 = vmatprep.mubr.msk.f32.mxu1 %vm213_vm0, %v12774_v16  ;;  %p10754_p3 = por %p10753_p2, %p10752_p1 }
0x16ca   :  { %v9866_v16 = vpop.f32.mrf.mxu0 }
0x16cb   :  { %p10755_p4 = pnand %p10754_p3, %p10748_p0 }
0x16cc   :  { %9892 = vmatmul.mubr.msk.f32.gmra.mxu1 %vm213_vm0, %v12781_v43  ;;  %v7331_v43 = vpop.f32.mrf.mxu0 }
0x16cd   :  { %9894 = vmatprep.mubr.msk.f32.mxu1 %vm213_vm0, %v12788_v10 }
0x16ce   :  { %v9869_v10 = vpop.f32.mrf.mxu0 }
0x16d0   :  { %9895 = vmatmul.mubr.msk.f32.gmra.mxu1 %vm213_vm0, %v12795_v36  ;;  %v7341_v36 = vpop.f32.mrf.mxu0 }
0x16d1   :  { %9897 = vmatprep.mubr.msk.f32.mxu1 %vm213_vm0, %v12802_v28 }
0x16d4   :  { %9898 = vmatmul.mubr.msk.f32.gmra.mxu1 %vm213_vm0, %v12809_v15  ;;  %v9872_v15 = vpop.f32.mrf.mxu0 }
0x16d5   :  { %9900 = vmatprep.mubr.msk.f32.mxu1 %vm213_vm0, %v12816_v17 }
0x16d6   :  { %v7351_v37 = vpop.f32.mrf.mxu0 }
0x16d8   :  { %9901 = vmatmul.mubr.msk.f32.gmra.mxu1 %vm213_vm0, %v12823_v35  ;;  %v9875_v6 = vpop.f32.mrf.mxu0 }
0x16da   :  { %v7361_v25 = vpop.f32.mrf.mxu0 }
0x16dc   :  { %v9878_v56 = vpop.f32.mrf.mxu0 }
0x16de   :  { %v7371_v45 = vpop.f32.mrf.mxu0 }
0x1784   :  { %v9887_v28 = vpop.f32.mrf.mxu1 }
0x1785   :  { %v7452_v2 = vadd.f32 %v9887_v28, %v9863_v20 }
0x1786   :  { %v7446_v14 = vpop.f32.mrf.mxu1 }
0x1787   :  { %v7447_v32 = vadd.f32 %v7446_v14, %v7321_v21  ;;  %v7506_v39 = vmul.f32 0.5, %v7452_v2 }
0x1788   :  { %v9890_v17 = vpop.f32.mrf.mxu1 }
0x1789   :  { %v7505_v44 = vmul.f32 0.5, %v7447_v32  ;;  %v7462_v55 = vadd.f32 %v9890_v17, %v9866_v16 }
0x178a   :  { %v7456_v35 = vpop.f32.mrf.mxu1 }
0x178b   :  { %v7517_v3 = vmul.f32 0.5, %v7462_v55  ;;  %v7457_v18 = vadd.f32 %v7456_v35, %v7331_v43  ;;  %10597 = vtanh.f32 %v7505_v44 }
0x178c   :  { %v9893_v57 = vpop.f32.mrf.mxu1 }
0x178d   :  { %10599 = vtanh.f32 %v7517_v3  ;;  %v7472_v23 = vadd.f32 %v9893_v57, %v9869_v10  ;;  %v7507_v0 = vmul.f32 0.5, %v7457_v18 }
0x178e   :  { %v7466_v7 = vpop.f32.mrf.mxu1  ;;  %10601 = vtanh.f32 %v7506_v39 }
0x178f   :  { %v7519_v9 = vmul.f32 0.5, %v7472_v23  ;;  %v7467_v29 = vadd.f32 %v7466_v7, %v7341_v36 }
0x1790   :  { %v9896_v31 = vpop.f32.mrf.mxu1 }
0x1791   :  { %10603 = vtanh.f32 %v7519_v9  ;;  %v7518_v8 = vmul.f32 0.5, %v7467_v29  ;;  %v7482_v58 = vadd.f32 %v9896_v31, %v9872_v15 }
0x1792   :  { %10605 = vtanh.f32 %v7507_v0  ;;  %v7476_v22 = vpop.f32.mrf.mxu1 }
0x1793   :  { %10607 = vtanh.f32 %v7518_v8  ;;  %v7477_v51 = vadd.f32 %v7476_v22, %v7351_v37 }
0x1794   :  { %10609 = vtanh.f32 %v7482_v58  ;;  %v9899_v26 = vpop.f32.mrf.mxu1 }
0x1795   :  { %10611 = vtanh.f32 %v7477_v51  ;;  %v7492_v12 = vadd.f32 %v9899_v26, %v9875_v6 }
0x1796   :  { %v7486_v47 = vpop.f32.mrf.mxu1 }
0x1797   :  { %v7487_v59 = vadd.f32 %v7486_v47, %v7361_v25  ;;  %v7532_v27 = vmul.f32 0.5, %v7492_v12 }
0x1798   :  { %v9902_v30 = vpop.f32.mrf.mxu1  ;;  %v10598_v38 = vpop.eup %10597 }
0x1799   :  { %10613 = vtanh.f32 %v7487_v59  ;;  %v7502_v42 = vadd.f32 %v9902_v30, %v9878_v56  ;;  %v7511_v60 = vmul.f32 0.5, %v10598_v38 }
0x179a   :  { %v10600_v41 = vpop.eup %10599  ;;  %v7496_v34 = vpop.f32.mrf.mxu1  ;;  %10615 = vtanh.f32 %v7532_v27 }
0x179b   :  { %v7523_v48 = vmul.f32 0.5, %v10600_v41  ;;  %v7497_v24 = vadd.f32 %v7496_v34, %v7371_v45  ;;  %v10602_v5 = vpop.eup %10601  ;;  %v7534_v49 = vmul.f32 0.5, %v7502_v42  ;;  %v7514_v4 = vadd.f32 0.5, %v7511_v60 }
0x179c   :  { %v7512_v33 = vmul.f32 0.5, %v10602_v5 }
0x179d   :  { %v7533_v52 = vmul.f32 0.5, %v7497_v24  ;;  %v7526_v1 = vadd.f32 0.5, %v7523_v48 }
0x179e   :  { %v10604_v54 = vpop.eup %10603  ;;  %v7515_v20 = vadd.f32 0.5, %v7512_v33 }
0x179f   :  { %v10606_v61 = vpop.eup %10605  ;;  %10617 = vtanh.f32 %v7533_v52  ;;  %v7525_v19 = vmul.f32 0.5, %v10604_v54  ;;  %v7544_v21 = vmul.f32 %v7526_v1, %v13059_v53 }
0x17a0   :  { %v10608_v46 = vpop.eup %10607  ;;  %v7513_v11 = vmul.f32 0.5, %v10606_v61  ;;  %10619 = vtanh.f32 %v7534_v49 }
0x17a1   :  { %v10610_v50 = vpop.eup %10609  ;;  %v7524_v63 = vmul.f32 0.5, %v10608_v46  ;;  %v7528_v10 = vadd.f32 0.5, %v7525_v19 }
0x17a2   :  { %v10612_v13 = vpop.eup %10611  ;;  %v7548_v28 = vmul.f32 %v10610_v50, %v7515_v20  ;;  %v7516_v15 = vadd.f32 0.5, %v7513_v11 }
0x17a3   :  { %v7527_v16 = vadd.f32 0.5, %v7524_v63  ;;  %v7547_v43 = vmul.f32 %v10612_v13, %v7514_v4  ;;  %v7546_v17 = vmul.f32 %v7528_v10, %v13061_v40 }
0x17a5   :  { %v7545_v36 = vmul.f32 %v7527_v16, %v13055_v62  ;;  %v7550_v14 = vadd.f32 %v7547_v43, %v7544_v21 }
0x17a6   :  { %v10614_v2 = vpop.eup %10613 }
0x17a7   :  { %v7551_v32 = vadd.f32 %v7548_v28, %v7545_v36  ;;  %10621 = vtanh.f32 %v7550_v14  ;;  %v7549_v44 = vmul.f32 %v10614_v2, %v7516_v15  ;;  %v10616_v35 = vpop.eup %10615 }
0x17a8   :  { %v7538_v53 = vmul.f32 0.5, %v10616_v35 }
0x17a9   :  { %10623 = vtanh.f32 %v7551_v32  ;;  %v7552_v55 = vadd.f32 %v7549_v44, %v7546_v17 }
0x17aa   :  { %v7541_v18 = vadd.f32 0.5, %v7538_v53 }
0x17ab   :  { %10625 = vtanh.f32 %v7552_v55 }
0x17ac   :  { %v10618_v37 = vpop.eup %10617 }
0x17ad   :  { %v7539_v39 = vmul.f32 0.5, %v10618_v37  ;;  %v10620_v3 = vpop.eup %10619 }
0x17ae   :  { %v7540_v23 = vmul.f32 0.5, %v10620_v3 }
0x17af   :  { %v7542_v57 = vadd.f32 0.5, %v7539_v39 }
0x17b0   :  { %v7543_v40 = vadd.f32 0.5, %v7540_v23 }
0x17b4   :  { %v10622_v62 = vpop.eup %10621 }
0x17b5   :  { %v7556_v0 = vmul.f32 %v10622_v62, %v7541_v18 }
0x17b6   :  { %v10624_v7 = vpop.eup %10623 }
0x17b7   :  { %7559 = vst [vmem:[#allocation2] sm:$0xff] %v7556_v0  ;;  %v7557_v6 = vmul.f32 %v10624_v7, %v7542_v57 }
0x17b8   :  { %v10626_v9 = vpop.eup %10625 }
0x17b9   :  { %7560 = vst [vmem:[#allocation2 + $0x8] sm:$0xff] %v7557_v6  ;;  %v7558_v29 = vmul.f32 %v10626_v9, %v7543_v40 }
0x17bb   :  { %7561 = vst [vmem:[#allocation2 + $0x10] sm:$0xff] %v7558_v29 }
0x17bc   :  { %10758 = shalt.err (!%p10755_p4)
}
0x17bd   :  { %s10771_s25 = smov 128   ;;  %s10772_s26 = smov 8  }
0x17be   :  { %7575 = dma.vmem_to_hbm [thread:$0]  %s7570_s24, 512, %s13100_s3, [#allocation3], %s10771_s25, %s10771_s25, %s10772_s26  }
0x17bf   :  { %10767 = dma.done.wait [#allocation3], 512  }
0x17c0   :  { %10768 = vsyncadd [#allocation3], 4294966784 }
0x17c1   :  { %7579 = vsyncpa [#allocation3], 1 }

</bundles_post_ra>
